<compile_context>
chip_gen: v6e
topology: v6e:2x2x1
jax: 0.10.0
libtpu: 0.0.40
codegen_flags: <defaults>
</compile_context>

<pallas_src>
import jax
import jax.numpy as jnp
from jax import lax
from jax.experimental import pallas as pl
from jax.experimental.pallas import tpu as pltpu

# ---------------- configuration (small, consistent with the module) ----------
P_DIM, D_DIM, Z_DIM = 16, 16, 16          # embedded point / direction / latent dims
HID = 32                                  # hid_dim
COLOR_DIM = 3
SKIPS = (5,)                              # one-based skip indices
N_SIGMA = 8
N_COLOR = 1
FILM_HID = 32
FILM_N = 3
FILM_OUT = (N_SIGMA + 1) * HID + N_COLOR * (HID // 2)          # 304
SPLIT = tuple([HID] * (N_SIGMA + 1) + [HID // 2] * N_COLOR)    # per-layer FiLM widths
N_LAYERS = N_SIGMA + 1 + N_COLOR
LEAKY_SLOPE = 0.2   # TODO(synk): make_actv() is not given; assume LeakyReLU(0.2)

_OFFS = []
_o = 0
for _s in SPLIT:
    _OFFS.append(_o)
    _o += _s

# packed-bias layout: 3 FiLM hidden, FiLM head, 8 sigma, fused head, color, color_out
_BIAS_WIDTHS = [FILM_HID, FILM_HID, FILM_HID, 2 * FILM_OUT] + [HID] * N_SIGMA \
               + [1 + HID, HID // 2, COLOR_DIM]
_BIAS_OFFS = []
_b = 0
for _w in _BIAS_WIDTHS:
    _BIAS_OFFS.append(_b)
    _b += _w
BIAS_TOTAL = _b                            # 1012

_MACS_PER_SAMPLE = 32080                   # FiLM 22016 + trunk 8192 + head 1056 + color 768 + 48


# ------------------------------- kernel --------------------------------------
def nerf_kernel(p_ref, d_ref, z_ref,
                fw0, fw1, fw2, fwh,
                sw0, sw1, sw2, sw3, sw4x, sw4p, sw5, sw6, sw7,
                hw, cwx, cwd, cow,
                b_ref, out_ref):
    relu = lambda v: jnp.maximum(v, 0.0)
    lrelu = lambda v: jnp.where(v >= 0.0, v, LEAKY_SLOPE * v)

    def bias(idx):
        o = _BIAS_OFFS[idx]
        return b_ref[:, o:o + _BIAS_WIDTHS[idx]]          # (1, w) f32, static slice

    def mm(x, w_ref):
        # bf16 x bf16 -> f32 accumulation on the MXU
        return jnp.dot(x.astype(jnp.bfloat16), w_ref[...],
                       preferred_element_type=jnp.float32)

    p = p_ref[...]
    d = d_ref[...]
    z = z_ref[...]

    # ---- FiLM generator: F.normalize + 3 leaky-relu layers + linear head ----
    # F.normalize(x) == x / max(||x||, 1e-12); rsqrt goes to the EUP slot.
    sumsq = jnp.sum(z * z, axis=-1, keepdims=True)
    h = z * lax.rsqrt(jnp.maximum(sumsq, 1e-24))
    h = lrelu(mm(h, fw0) + bias(0))
    h = lrelu(mm(h, fw1) + bias(1))
    h = lrelu(mm(h, fw2) + bias(2))
    # head columns were pre-permuted so layout is [g0, b0, g1, b1, ..., g9, b9]
    film = mm(h, fwh) + bias(3)                           # (tb, 608) f32

    def chunk(k):
        o = 2 * _OFFS[k]
        s = SPLIT[k]
        return film[:, o:o + s], film[:, o + s:o + 2 * s]

    # ---- sigma trunk (skip-layer concat replaced by split matmuls) ----------
    trunk_w = (sw0, sw1, sw2, sw3, None, sw5, sw6, sw7)
    x = p
    for i in range(N_SIGMA):
        if (i + 1) in SKIPS:
            y = mm(x, sw4x) + mm(p, sw4p) + bias(4 + i)   # == concat([x, p]) @ W
        else:
            y = mm(x, trunk_w[i]) + bias(4 + i)
        g, bt = chunk(i)
        x = relu(g * y + bt)

    # ---- fused sigma head (no FiLM) + feature layer (FiLM, linear actv) -----
    hd = mm(x, hw) + bias(12)                             # (tb, 1 + HID)
    sigma = hd[:, 0:1]
    g, bt = chunk(N_SIGMA)
    feat = g * hd[:, 1:1 + HID] + bt

    # ---- color branch ([feat, d] concat replaced by split matmuls) ----------
    g, bt = chunk(N_SIGMA + 1)
    y = mm(feat, cwx) + mm(d, cwd) + bias(13)
    x = relu(g * y + bt)
    color = mm(x, cow) + bias(14)                         # (tb, COLOR_DIM)

    # ---- single output tile: [sigma | color] ---------------------------------
    out_ref[...] = jnp.concatenate([sigma, color], axis=-1)


# ------------------------------ parameters -----------------------------------
def _lin_init(key, din, dout):
    kw, kb = jax.random.split(key)
    scale = (2.0 / (din + dout)) ** 0.5               # xavier-like, deterministic
    w = scale * jax.random.normal(kw, (din, dout), jnp.float32)
    b = 0.01 * jax.random.normal(kb, (1, dout), jnp.float32)
    return w, b


def init_params(key):
    keys = iter(jax.random.split(key, 64))
    params = {}
    # FiLM generator
    film = []
    din = Z_DIM
    for _ in range(FILM_N):
        film.append(_lin_init(next(keys), din, FILM_HID)); din = FILM_HID
    film.append(_lin_init(next(keys), din, 2 * FILM_OUT))
    params["film"] = film
    # sigma layers
    sig = []
    din = P_DIM
    for i in range(1, N_SIGMA + 1):
        sig.append(_lin_init(next(keys), din, HID))
        din = HID if (i + 1) not in SKIPS else HID + P_DIM
    params["sigma"] = sig
    params["sigma_out"] = _lin_init(next(keys), din, 1)
    params["feat"] = _lin_init(next(keys), din, HID)
    din = HID + D_DIM
    col = []
    for _ in range(N_COLOR):
        col.append(_lin_init(next(keys), din, HID // 2)); din = HID // 2
    params["color"] = col
    params["color_out"] = _lin_init(next(keys), din, COLOR_DIM)
    return params


def prepare_params(params):
    """Wrapper-side one-time prep: bf16 weights, split concat-weights, fused
    head, permuted FiLM head, packed f32 biases."""
    bf = lambda w: w.astype(jnp.bfloat16)

    (fw0, fb0), (fw1, fb1), (fw2, fb2), (fwh, fbh) = params["film"]

    # permute FiLM head columns so each layer's [gamma_k, beta_k] is contiguous
    perm = []
    for k in range(N_LAYERS):
        perm += list(range(_OFFS[k], _OFFS[k] + SPLIT[k]))                       # gamma_k
        perm += list(range(FILM_OUT + _OFFS[k], FILM_OUT + _OFFS[k] + SPLIT[k]))  # beta_k
    perm = jnp.asarray(perm, jnp.int32)
    fwh_p = fwh[:, perm]
    fbh_p = fbh[:, perm]

    sw = [w for (w, _) in params["sigma"]]
    sb = [b for (_, b) in params["sigma"]]
    skip_i = SKIPS[0] - 1                                  # zero-based skip layer (4)
    sw_skip_x = sw[skip_i][:HID, :]                        # (32, 32) acts on x
    sw_skip_p = sw[skip_i][HID:, :]                        # (16, 32) acts on p

    so_w, so_b = params["sigma_out"]
    ft_w, ft_b = params["feat"]
    head_w = jnp.concatenate([so_w, ft_w], axis=1)         # (32, 33)
    head_b = jnp.concatenate([so_b, ft_b], axis=1)         # (1, 33)

    cw, cb = params["color"][0]
    cw_x = cw[:HID, :]                                     # (32, 16) acts on feat
    cw_d = cw[HID:, :]                                     # (16, 16) acts on d
    co_w, co_b = params["color_out"]

    bias_packed = jnp.concatenate(
        [fb0, fb1, fb2, fbh_p] + sb + [head_b, cb, co_b], axis=1
    ).astype(jnp.float32)
    assert bias_packed.shape == (1, BIAS_TOTAL)

    weights = [bf(fw0), bf(fw1), bf(fw2), bf(fwh_p),
               bf(sw[0]), bf(sw[1]), bf(sw[2]), bf(sw[3]),
               bf(sw_skip_x), bf(sw_skip_p),
               bf(sw[5]), bf(sw[6]), bf(sw[7]),
               bf(head_w), bf(cw_x), bf(cw_d), bf(co_w)]
    return weights, bias_packed


# ------------------------------- wrapper --------------------------------------
def nerf_pallas(p, d, z, params, *, tb=256):
    B = p.shape[0]
    weights, bias_packed = prepare_params(params)

    # pad batch up to a multiple of the tile size (DMA tiles stay (8,128)-legal)
    Bp = ((B + tb - 1) // tb) * tb
    if Bp != B:
        pad = ((0, Bp - B), (0, 0))
        p = jnp.pad(p, pad); d = jnp.pad(d, pad); z = jnp.pad(z, pad)

    in_specs = [
        pl.BlockSpec((tb, P_DIM), lambda i: (i, 0)),
        pl.BlockSpec((tb, D_DIM), lambda i: (i, 0)),
        pl.BlockSpec((tb, Z_DIM), lambda i: (i, 0)),
    ]
    # weights / packed bias: full block, constant index -> resident across grid steps
    for arr in weights:
        in_specs.append(pl.BlockSpec(arr.shape, lambda i: (0, 0)))
    in_specs.append(pl.BlockSpec(bias_packed.shape, lambda i: (0, 0)))

    out_specs = pl.BlockSpec((tb, 1 + COLOR_DIM), lambda i: (i, 0))
    out_shape = jax.ShapeDtypeStruct((Bp, 1 + COLOR_DIM), jnp.float32)

    weight_bytes = sum(int(w.size) * 2 for w in weights) + BIAS_TOTAL * 4
    cost = pl.CostEstimate(
        flops=2 * Bp * _MACS_PER_SAMPLE,
        transcendentals=Bp,
        bytes_accessed=Bp * (P_DIM + D_DIM + Z_DIM + 1 + COLOR_DIM) * 4 + weight_bytes,
    )

    fn = pl.pallas_call(
        nerf_kernel,
        grid=(Bp // tb,),
        in_specs=in_specs,
        out_specs=out_specs,
        out_shape=out_shape,
        compiler_params=pltpu.CompilerParams(dimension_semantics=("parallel",)),
        cost_estimate=cost,
    )
    out = fn(p, d, z, *weights, bias_packed)
    return out[:B, 0:1], out[:B, 1:1 + COLOR_DIM]


# --------------------------- pure-JAX reference -------------------------------
def nerf_reference(p, d, z, params):
    relu = lambda v: jnp.maximum(v, 0.0)
    lrelu = lambda v: jnp.where(v >= 0.0, v, LEAKY_SLOPE * v)

    def linear(x, wb, gamma=None, beta=None, actv=None):
        w, b = wb
        y = x @ w + b
        if gamma is not None:
            y = gamma * y
        if beta is not None:
            y = y + beta
        if actv is not None:
            y = actv(y)
        return y

    zn = z / jnp.maximum(jnp.sqrt(jnp.sum(z * z, -1, keepdims=True)), 1e-12)
    h = zn
    for l in range(FILM_N):
        h = linear(h, params["film"][l], actv=lrelu)
    out = linear(h, params["film"][FILM_N])
    gamma_all, beta_all = out[:, :FILM_OUT], out[:, FILM_OUT:]

    def chunk(k):
        return (gamma_all[:, _OFFS[k]:_OFFS[k] + SPLIT[k]],
                beta_all[:, _OFFS[k]:_OFFS[k] + SPLIT[k]])

    k = 0
    x = p
    for i in range(N_SIGMA):
        if (i + 1) in SKIPS:
            x = jnp.concatenate([x, p], -1)
        g, b = chunk(k)
        x = linear(x, params["sigma"][i], g, b, relu)
        k += 1
    sigma = linear(x, params["sigma_out"])
    g, b = chunk(k)
    x = linear(x, params["feat"], g, b)
    k += 1
    x = jnp.concatenate([x, d], -1)
    for i in range(N_COLOR):
        g, b = chunk(k)
        x = linear(x, params["color"][i], g, b, relu)
        k += 1
    color = linear(x, params["color_out"])
    return sigma, color


# ---------------------------------- main --------------------------------------
if __name__ == "__main__":
    key = jax.random.PRNGKey(0)
    kp, kd, kz, kw = jax.random.split(key, 4)
    B = 512          # small test batch; grid = B // tb = 2
    p = jax.random.normal(kp, (B, P_DIM), jnp.float32)
    d = jax.random.normal(kd, (B, D_DIM), jnp.float32)
    z = jax.random.normal(kz, (B, Z_DIM), jnp.float32)
    params = init_params(kw)

    fwd = jax.jit(nerf_pallas)
    sigma, color = fwd(p, d, z, params)
    jax.block_until_ready((sigma, color))
    sigma_ref, color_ref = nerf_reference(p, d, z, params)

    assert sigma.shape == (B, 1) and color.shape == (B, COLOR_DIM)
    # bf16 matmul inputs (f32 accumulation) -> loosened tolerance vs pure-f32 ref
    assert jnp.allclose(sigma, sigma_ref, atol=5e-2, rtol=5e-2), "sigma mismatch"
    assert jnp.allclose(color, color_ref, atol=5e-2, rtol=5e-2), "color mismatch"
    print("KERNEL_OK")
</pallas_src>

<mosaic_0001>
module attributes {stable_mosaic.version = 11 : i64} {
  func.func @nerf_kernel(%arg0: i32, %arg1: memref<256x16xf32, #tpu.memory_space<vmem>>, %arg2: memref<256x16xf32, #tpu.memory_space<vmem>>, %arg3: memref<256x16xf32, #tpu.memory_space<vmem>>, %arg4: memref<16x32xbf16, #tpu.memory_space<vmem>>, %arg5: memref<32x32xbf16, #tpu.memory_space<vmem>>, %arg6: memref<32x32xbf16, #tpu.memory_space<vmem>>, %arg7: memref<32x608xbf16, #tpu.memory_space<vmem>>, %arg8: memref<16x32xbf16, #tpu.memory_space<vmem>>, %arg9: memref<32x32xbf16, #tpu.memory_space<vmem>>, %arg10: memref<32x32xbf16, #tpu.memory_space<vmem>>, %arg11: memref<32x32xbf16, #tpu.memory_space<vmem>>, %arg12: memref<32x32xbf16, #tpu.memory_space<vmem>>, %arg13: memref<16x32xbf16, #tpu.memory_space<vmem>>, %arg14: memref<32x32xbf16, #tpu.memory_space<vmem>>, %arg15: memref<32x32xbf16, #tpu.memory_space<vmem>>, %arg16: memref<32x32xbf16, #tpu.memory_space<vmem>>, %arg17: memref<32x33xbf16, #tpu.memory_space<vmem>>, %arg18: memref<32x16xbf16, #tpu.memory_space<vmem>>, %arg19: memref<16x16xbf16, #tpu.memory_space<vmem>>, %arg20: memref<16x3xbf16, #tpu.memory_space<vmem>>, %arg21: memref<1x1012xf32, #tpu.memory_space<vmem>>, %arg22: memref<256x4xf32, #tpu.memory_space<vmem>>) attributes {dimension_semantics = [#tpu.dimension_semantics<parallel>], iteration_bounds = array<i64: 2>, scalar_prefetch = 0 : i64, scratch_operands = 0 : i64, tpu.core_type = #tpu.core_type<tc>, window_params = [{transform_indices = @transform_0, window_bounds = array<i64: 256, 16>}, {transform_indices = @transform_1, window_bounds = array<i64: 256, 16>}, {transform_indices = @transform_2, window_bounds = array<i64: 256, 16>}, {pipeline_mode = #tpu.pipeline_mode<synchronous>, transform_indices = @transform_3, window_bounds = array<i64: 16, 32>}, {pipeline_mode = #tpu.pipeline_mode<synchronous>, transform_indices = @transform_4, window_bounds = array<i64: 32, 32>}, {pipeline_mode = #tpu.pipeline_mode<synchronous>, transform_indices = @transform_5, window_bounds = array<i64: 32, 32>}, {pipeline_mode = #tpu.pipeline_mode<synchronous>, transform_indices = @transform_6, window_bounds = array<i64: 32, 608>}, {pipeline_mode = #tpu.pipeline_mode<synchronous>, transform_indices = @transform_7, window_bounds = array<i64: 16, 32>}, {pipeline_mode = #tpu.pipeline_mode<synchronous>, transform_indices = @transform_8, window_bounds = array<i64: 32, 32>}, {pipeline_mode = #tpu.pipeline_mode<synchronous>, transform_indices = @transform_9, window_bounds = array<i64: 32, 32>}, {pipeline_mode = #tpu.pipeline_mode<synchronous>, transform_indices = @transform_10, window_bounds = array<i64: 32, 32>}, {pipeline_mode = #tpu.pipeline_mode<synchronous>, transform_indices = @transform_11, window_bounds = array<i64: 32, 32>}, {pipeline_mode = #tpu.pipeline_mode<synchronous>, transform_indices = @transform_12, window_bounds = array<i64: 16, 32>}, {pipeline_mode = #tpu.pipeline_mode<synchronous>, transform_indices = @transform_13, window_bounds = array<i64: 32, 32>}, {pipeline_mode = #tpu.pipeline_mode<synchronous>, transform_indices = @transform_14, window_bounds = array<i64: 32, 32>}, {pipeline_mode = #tpu.pipeline_mode<synchronous>, transform_indices = @transform_15, window_bounds = array<i64: 32, 32>}, {pipeline_mode = #tpu.pipeline_mode<synchronous>, transform_indices = @transform_16, window_bounds = array<i64: 32, 33>}, {pipeline_mode = #tpu.pipeline_mode<synchronous>, transform_indices = @transform_17, window_bounds = array<i64: 32, 16>}, {pipeline_mode = #tpu.pipeline_mode<synchronous>, transform_indices = @transform_18, window_bounds = array<i64: 16, 16>}, {pipeline_mode = #tpu.pipeline_mode<synchronous>, transform_indices = @transform_19, window_bounds = array<i64: 16, 3>}, {pipeline_mode = #tpu.pipeline_mode<synchronous>, transform_indices = @transform_20, window_bounds = array<i64: 1, 1012>}, {transform_indices = @transform_21, window_bounds = array<i64: 256, 4>}]} {
    %c0 = arith.constant 0 : index
    %c0_0 = arith.constant 0 : index
    %0 = vector.load %arg1[%c0, %c0_0] : memref<256x16xf32, #tpu.memory_space<vmem>>, vector<256x16xf32>
    %c0_1 = arith.constant 0 : index
    %c0_2 = arith.constant 0 : index
    %1 = vector.load %arg2[%c0_1, %c0_2] : memref<256x16xf32, #tpu.memory_space<vmem>>, vector<256x16xf32>
    %c0_3 = arith.constant 0 : index
    %c0_4 = arith.constant 0 : index
    %2 = vector.load %arg3[%c0_3, %c0_4] : memref<256x16xf32, #tpu.memory_space<vmem>>, vector<256x16xf32>
    %3 = arith.mulf %2, %2 : vector<256x16xf32>
    %cst = arith.constant dense<0.000000e+00> : vector<256xf32>
    %4 = vector.multi_reduction <add>, %3, %cst [1] : vector<256x16xf32> to vector<256xf32>
    %5 = vector.shape_cast %4 : vector<256xf32> to vector<256x1xf32>
    %cst_5 = arith.constant 1.000000e-24 : f32
    %6 = vector.broadcast %cst_5 : f32 to vector<256x1xf32>
    %7 = arith.maximumf %5, %6 : vector<256x1xf32>
    %8 = math.rsqrt %7 : vector<256x1xf32>
    %9 = vector.broadcast %8 : vector<256x1xf32> to vector<256x16xf32>
    %10 = arith.mulf %2, %9 : vector<256x16xf32>
    %11 = arith.truncf %10 : vector<256x16xf32> to vector<256x16xbf16>
    %c0_6 = arith.constant 0 : index
    %c0_7 = arith.constant 0 : index
    %12 = vector.load %arg4[%c0_6, %c0_7] : memref<16x32xbf16, #tpu.memory_space<vmem>>, vector<16x32xbf16>
    %cst_8 = arith.constant dense<0.000000e+00> : vector<256x32xf32>
    %13 = tpu.matmul %11, %12, %cst_8 {dimension_numbers = #tpu.dot_dimension_numbers<[1], [0], [0], [1], [0, 0, 1, 1], [], []>} : vector<256x16xbf16>, vector<16x32xbf16>, vector<256x32xf32> -> vector<256x32xf32>
    %c0_9 = arith.constant 0 : index
    %c0_10 = arith.constant 0 : index
    %14 = vector.load %arg21[%c0_9, %c0_10] : memref<1x1012xf32, #tpu.memory_space<vmem>>, vector<1x32xf32>
    %15 = vector.broadcast %14 : vector<1x32xf32> to vector<256x32xf32>
    %16 = arith.addf %13, %15 : vector<256x32xf32>
    %cst_11 = arith.constant 0.000000e+00 : f32
    %17 = vector.broadcast %cst_11 : f32 to vector<256x32xf32>
    %18 = arith.cmpf oge, %16, %17 : vector<256x32xf32>
    %cst_12 = arith.constant 2.000000e-01 : f32
    %19 = vector.broadcast %cst_12 : f32 to vector<256x32xf32>
    %20 = arith.mulf %19, %16 : vector<256x32xf32>
    %21 = arith.select %18, %16, %20 : vector<256x32xi1>, vector<256x32xf32>
    %22 = arith.truncf %21 : vector<256x32xf32> to vector<256x32xbf16>
    %c0_13 = arith.constant 0 : index
    %c0_14 = arith.constant 0 : index
    %23 = vector.load %arg5[%c0_13, %c0_14] : memref<32x32xbf16, #tpu.memory_space<vmem>>, vector<32x32xbf16>
    %cst_15 = arith.constant dense<0.000000e+00> : vector<256x32xf32>
    %24 = tpu.matmul %22, %23, %cst_15 {dimension_numbers = #tpu.dot_dimension_numbers<[1], [0], [0], [1], [0, 0, 1, 1], [], []>} : vector<256x32xbf16>, vector<32x32xbf16>, vector<256x32xf32> -> vector<256x32xf32>
    %c0_16 = arith.constant 0 : index
    %c32 = arith.constant 32 : index
    %25 = vector.load %arg21[%c0_16, %c32] : memref<1x1012xf32, #tpu.memory_space<vmem>>, vector<1x32xf32>
    %26 = vector.broadcast %25 : vector<1x32xf32> to vector<256x32xf32>
    %27 = arith.addf %24, %26 : vector<256x32xf32>
    %cst_17 = arith.constant 0.000000e+00 : f32
    %28 = vector.broadcast %cst_17 : f32 to vector<256x32xf32>
    %29 = arith.cmpf oge, %27, %28 : vector<256x32xf32>
    %cst_18 = arith.constant 2.000000e-01 : f32
    %30 = vector.broadcast %cst_18 : f32 to vector<256x32xf32>
    %31 = arith.mulf %30, %27 : vector<256x32xf32>
    %32 = arith.select %29, %27, %31 : vector<256x32xi1>, vector<256x32xf32>
    %33 = arith.truncf %32 : vector<256x32xf32> to vector<256x32xbf16>
    %c0_19 = arith.constant 0 : index
    %c0_20 = arith.constant 0 : index
    %34 = vector.load %arg6[%c0_19, %c0_20] : memref<32x32xbf16, #tpu.memory_space<vmem>>, vector<32x32xbf16>
    %cst_21 = arith.constant dense<0.000000e+00> : vector<256x32xf32>
    %35 = tpu.matmul %33, %34, %cst_21 {dimension_numbers = #tpu.dot_dimension_numbers<[1], [0], [0], [1], [0, 0, 1, 1], [], []>} : vector<256x32xbf16>, vector<32x32xbf16>, vector<256x32xf32> -> vector<256x32xf32>
    %c0_22 = arith.constant 0 : index
    %c64 = arith.constant 64 : index
    %36 = vector.load %arg21[%c0_22, %c64] : memref<1x1012xf32, #tpu.memory_space<vmem>>, vector<1x32xf32>
    %37 = vector.broadcast %36 : vector<1x32xf32> to vector<256x32xf32>
    %38 = arith.addf %35, %37 : vector<256x32xf32>
    %cst_23 = arith.constant 0.000000e+00 : f32
    %39 = vector.broadcast %cst_23 : f32 to vector<256x32xf32>
    %40 = arith.cmpf oge, %38, %39 : vector<256x32xf32>
    %cst_24 = arith.constant 2.000000e-01 : f32
    %41 = vector.broadcast %cst_24 : f32 to vector<256x32xf32>
    %42 = arith.mulf %41, %38 : vector<256x32xf32>
    %43 = arith.select %40, %38, %42 : vector<256x32xi1>, vector<256x32xf32>
    %44 = arith.truncf %43 : vector<256x32xf32> to vector<256x32xbf16>
    %c0_25 = arith.constant 0 : index
    %c0_26 = arith.constant 0 : index
    %45 = vector.load %arg7[%c0_25, %c0_26] : memref<32x608xbf16, #tpu.memory_space<vmem>>, vector<32x608xbf16>
    %cst_27 = arith.constant dense<0.000000e+00> : vector<256x608xf32>
    %46 = tpu.matmul %44, %45, %cst_27 {dimension_numbers = #tpu.dot_dimension_numbers<[1], [0], [0], [1], [0, 0, 1, 1], [], []>} : vector<256x32xbf16>, vector<32x608xbf16>, vector<256x608xf32> -> vector<256x608xf32>
    %c0_28 = arith.constant 0 : index
    %c96 = arith.constant 96 : index
    %47 = vector.load %arg21[%c0_28, %c96] : memref<1x1012xf32, #tpu.memory_space<vmem>>, vector<1x608xf32>
    %48 = vector.broadcast %47 : vector<1x608xf32> to vector<256x608xf32>
    %49 = arith.addf %46, %48 : vector<256x608xf32>
    %50 = arith.truncf %0 : vector<256x16xf32> to vector<256x16xbf16>
    %c0_29 = arith.constant 0 : index
    %c0_30 = arith.constant 0 : index
    %51 = vector.load %arg8[%c0_29, %c0_30] : memref<16x32xbf16, #tpu.memory_space<vmem>>, vector<16x32xbf16>
    %cst_31 = arith.constant dense<0.000000e+00> : vector<256x32xf32>
    %52 = tpu.matmul %50, %51, %cst_31 {dimension_numbers = #tpu.dot_dimension_numbers<[1], [0], [0], [1], [0, 0, 1, 1], [], []>} : vector<256x16xbf16>, vector<16x32xbf16>, vector<256x32xf32> -> vector<256x32xf32>
    %c0_32 = arith.constant 0 : index
    %c704 = arith.constant 704 : index
    %53 = vector.load %arg21[%c0_32, %c704] : memref<1x1012xf32, #tpu.memory_space<vmem>>, vector<1x32xf32>
    %54 = vector.broadcast %53 : vector<1x32xf32> to vector<256x32xf32>
    %55 = arith.addf %52, %54 : vector<256x32xf32>
    %56 = vector.extract_strided_slice %49 {offsets = [0, 0], sizes = [256, 32], strides = [1, 1]} : vector<256x608xf32> to vector<256x32xf32>
    %57 = vector.extract_strided_slice %49 {offsets = [0, 32], sizes = [256, 32], strides = [1, 1]} : vector<256x608xf32> to vector<256x32xf32>
    %58 = arith.mulf %56, %55 : vector<256x32xf32>
    %59 = arith.addf %58, %57 : vector<256x32xf32>
    %cst_33 = arith.constant 0.000000e+00 : f32
    %60 = vector.broadcast %cst_33 : f32 to vector<256x32xf32>
    %61 = arith.maximumf %59, %60 : vector<256x32xf32>
    %62 = arith.truncf %61 : vector<256x32xf32> to vector<256x32xbf16>
    %c0_34 = arith.constant 0 : index
    %c0_35 = arith.constant 0 : index
    %63 = vector.load %arg9[%c0_34, %c0_35] : memref<32x32xbf16, #tpu.memory_space<vmem>>, vector<32x32xbf16>
    %cst_36 = arith.constant dense<0.000000e+00> : vector<256x32xf32>
    %64 = tpu.matmul %62, %63, %cst_36 {dimension_numbers = #tpu.dot_dimension_numbers<[1], [0], [0], [1], [0, 0, 1, 1], [], []>} : vector<256x32xbf16>, vector<32x32xbf16>, vector<256x32xf32> -> vector<256x32xf32>
    %c0_37 = arith.constant 0 : index
    %c736 = arith.constant 736 : index
    %65 = vector.load %arg21[%c0_37, %c736] : memref<1x1012xf32, #tpu.memory_space<vmem>>, vector<1x32xf32>
    %66 = vector.broadcast %65 : vector<1x32xf32> to vector<256x32xf32>
    %67 = arith.addf %64, %66 : vector<256x32xf32>
    %68 = vector.extract_strided_slice %49 {offsets = [0, 64], sizes = [256, 32], strides = [1, 1]} : vector<256x608xf32> to vector<256x32xf32>
    %69 = vector.extract_strided_slice %49 {offsets = [0, 96], sizes = [256, 32], strides = [1, 1]} : vector<256x608xf32> to vector<256x32xf32>
    %70 = arith.mulf %68, %67 : vector<256x32xf32>
    %71 = arith.addf %70, %69 : vector<256x32xf32>
    %cst_38 = arith.constant 0.000000e+00 : f32
    %72 = vector.broadcast %cst_38 : f32 to vector<256x32xf32>
    %73 = arith.maximumf %71, %72 : vector<256x32xf32>
    %74 = arith.truncf %73 : vector<256x32xf32> to vector<256x32xbf16>
    %c0_39 = arith.constant 0 : index
    %c0_40 = arith.constant 0 : index
    %75 = vector.load %arg10[%c0_39, %c0_40] : memref<32x32xbf16, #tpu.memory_space<vmem>>, vector<32x32xbf16>
    %cst_41 = arith.constant dense<0.000000e+00> : vector<256x32xf32>
    %76 = tpu.matmul %74, %75, %cst_41 {dimension_numbers = #tpu.dot_dimension_numbers<[1], [0], [0], [1], [0, 0, 1, 1], [], []>} : vector<256x32xbf16>, vector<32x32xbf16>, vector<256x32xf32> -> vector<256x32xf32>
    %c0_42 = arith.constant 0 : index
    %c768 = arith.constant 768 : index
    %77 = vector.load %arg21[%c0_42, %c768] : memref<1x1012xf32, #tpu.memory_space<vmem>>, vector<1x32xf32>
    %78 = vector.broadcast %77 : vector<1x32xf32> to vector<256x32xf32>
    %79 = arith.addf %76, %78 : vector<256x32xf32>
    %80 = vector.extract_strided_slice %49 {offsets = [0, 128], sizes = [256, 32], strides = [1, 1]} : vector<256x608xf32> to vector<256x32xf32>
    %81 = vector.extract_strided_slice %49 {offsets = [0, 160], sizes = [256, 32], strides = [1, 1]} : vector<256x608xf32> to vector<256x32xf32>
    %82 = arith.mulf %80, %79 : vector<256x32xf32>
    %83 = arith.addf %82, %81 : vector<256x32xf32>
    %cst_43 = arith.constant 0.000000e+00 : f32
    %84 = vector.broadcast %cst_43 : f32 to vector<256x32xf32>
    %85 = arith.maximumf %83, %84 : vector<256x32xf32>
    %86 = arith.truncf %85 : vector<256x32xf32> to vector<256x32xbf16>
    %c0_44 = arith.constant 0 : index
    %c0_45 = arith.constant 0 : index
    %87 = vector.load %arg11[%c0_44, %c0_45] : memref<32x32xbf16, #tpu.memory_space<vmem>>, vector<32x32xbf16>
    %cst_46 = arith.constant dense<0.000000e+00> : vector<256x32xf32>
    %88 = tpu.matmul %86, %87, %cst_46 {dimension_numbers = #tpu.dot_dimension_numbers<[1], [0], [0], [1], [0, 0, 1, 1], [], []>} : vector<256x32xbf16>, vector<32x32xbf16>, vector<256x32xf32> -> vector<256x32xf32>
    %c0_47 = arith.constant 0 : index
    %c800 = arith.constant 800 : index
    %89 = vector.load %arg21[%c0_47, %c800] : memref<1x1012xf32, #tpu.memory_space<vmem>>, vector<1x32xf32>
    %90 = vector.broadcast %89 : vector<1x32xf32> to vector<256x32xf32>
    %91 = arith.addf %88, %90 : vector<256x32xf32>
    %92 = vector.extract_strided_slice %49 {offsets = [0, 192], sizes = [256, 32], strides = [1, 1]} : vector<256x608xf32> to vector<256x32xf32>
    %93 = vector.extract_strided_slice %49 {offsets = [0, 224], sizes = [256, 32], strides = [1, 1]} : vector<256x608xf32> to vector<256x32xf32>
    %94 = arith.mulf %92, %91 : vector<256x32xf32>
    %95 = arith.addf %94, %93 : vector<256x32xf32>
    %cst_48 = arith.constant 0.000000e+00 : f32
    %96 = vector.broadcast %cst_48 : f32 to vector<256x32xf32>
    %97 = arith.maximumf %95, %96 : vector<256x32xf32>
    %98 = arith.truncf %97 : vector<256x32xf32> to vector<256x32xbf16>
    %c0_49 = arith.constant 0 : index
    %c0_50 = arith.constant 0 : index
    %99 = vector.load %arg12[%c0_49, %c0_50] : memref<32x32xbf16, #tpu.memory_space<vmem>>, vector<32x32xbf16>
    %cst_51 = arith.constant dense<0.000000e+00> : vector<256x32xf32>
    %100 = tpu.matmul %98, %99, %cst_51 {dimension_numbers = #tpu.dot_dimension_numbers<[1], [0], [0], [1], [0, 0, 1, 1], [], []>} : vector<256x32xbf16>, vector<32x32xbf16>, vector<256x32xf32> -> vector<256x32xf32>
    %101 = arith.truncf %0 : vector<256x16xf32> to vector<256x16xbf16>
    %c0_52 = arith.constant 0 : index
    %c0_53 = arith.constant 0 : index
    %102 = vector.load %arg13[%c0_52, %c0_53] : memref<16x32xbf16, #tpu.memory_space<vmem>>, vector<16x32xbf16>
    %cst_54 = arith.constant dense<0.000000e+00> : vector<256x32xf32>
    %103 = tpu.matmul %101, %102, %cst_54 {dimension_numbers = #tpu.dot_dimension_numbers<[1], [0], [0], [1], [0, 0, 1, 1], [], []>} : vector<256x16xbf16>, vector<16x32xbf16>, vector<256x32xf32> -> vector<256x32xf32>
    %104 = arith.addf %100, %103 : vector<256x32xf32>
    %c0_55 = arith.constant 0 : index
    %c832 = arith.constant 832 : index
    %105 = vector.load %arg21[%c0_55, %c832] : memref<1x1012xf32, #tpu.memory_space<vmem>>, vector<1x32xf32>
    %106 = vector.broadcast %105 : vector<1x32xf32> to vector<256x32xf32>
    %107 = arith.addf %104, %106 : vector<256x32xf32>
    %108 = vector.extract_strided_slice %49 {offsets = [0, 256], sizes = [256, 32], strides = [1, 1]} : vector<256x608xf32> to vector<256x32xf32>
    %109 = vector.extract_strided_slice %49 {offsets = [0, 288], sizes = [256, 32], strides = [1, 1]} : vector<256x608xf32> to vector<256x32xf32>
    %110 = arith.mulf %108, %107 : vector<256x32xf32>
    %111 = arith.addf %110, %109 : vector<256x32xf32>
    %cst_56 = arith.constant 0.000000e+00 : f32
    %112 = vector.broadcast %cst_56 : f32 to vector<256x32xf32>
    %113 = arith.maximumf %111, %112 : vector<256x32xf32>
    %114 = arith.truncf %113 : vector<256x32xf32> to vector<256x32xbf16>
    %c0_57 = arith.constant 0 : index
    %c0_58 = arith.constant 0 : index
    %115 = vector.load %arg14[%c0_57, %c0_58] : memref<32x32xbf16, #tpu.memory_space<vmem>>, vector<32x32xbf16>
    %cst_59 = arith.constant dense<0.000000e+00> : vector<256x32xf32>
    %116 = tpu.matmul %114, %115, %cst_59 {dimension_numbers = #tpu.dot_dimension_numbers<[1], [0], [0], [1], [0, 0, 1, 1], [], []>} : vector<256x32xbf16>, vector<32x32xbf16>, vector<256x32xf32> -> vector<256x32xf32>
    %c0_60 = arith.constant 0 : index
    %c864 = arith.constant 864 : index
    %117 = vector.load %arg21[%c0_60, %c864] : memref<1x1012xf32, #tpu.memory_space<vmem>>, vector<1x32xf32>
    %118 = vector.broadcast %117 : vector<1x32xf32> to vector<256x32xf32>
    %119 = arith.addf %116, %118 : vector<256x32xf32>
    %120 = vector.extract_strided_slice %49 {offsets = [0, 320], sizes = [256, 32], strides = [1, 1]} : vector<256x608xf32> to vector<256x32xf32>
    %121 = vector.extract_strided_slice %49 {offsets = [0, 352], sizes = [256, 32], strides = [1, 1]} : vector<256x608xf32> to vector<256x32xf32>
    %122 = arith.mulf %120, %119 : vector<256x32xf32>
    %123 = arith.addf %122, %121 : vector<256x32xf32>
    %cst_61 = arith.constant 0.000000e+00 : f32
    %124 = vector.broadcast %cst_61 : f32 to vector<256x32xf32>
    %125 = arith.maximumf %123, %124 : vector<256x32xf32>
    %126 = arith.truncf %125 : vector<256x32xf32> to vector<256x32xbf16>
    %c0_62 = arith.constant 0 : index
    %c0_63 = arith.constant 0 : index
    %127 = vector.load %arg15[%c0_62, %c0_63] : memref<32x32xbf16, #tpu.memory_space<vmem>>, vector<32x32xbf16>
    %cst_64 = arith.constant dense<0.000000e+00> : vector<256x32xf32>
    %128 = tpu.matmul %126, %127, %cst_64 {dimension_numbers = #tpu.dot_dimension_numbers<[1], [0], [0], [1], [0, 0, 1, 1], [], []>} : vector<256x32xbf16>, vector<32x32xbf16>, vector<256x32xf32> -> vector<256x32xf32>
    %c0_65 = arith.constant 0 : index
    %c896 = arith.constant 896 : index
    %129 = vector.load %arg21[%c0_65, %c896] : memref<1x1012xf32, #tpu.memory_space<vmem>>, vector<1x32xf32>
    %130 = vector.broadcast %129 : vector<1x32xf32> to vector<256x32xf32>
    %131 = arith.addf %128, %130 : vector<256x32xf32>
    %132 = vector.extract_strided_slice %49 {offsets = [0, 384], sizes = [256, 32], strides = [1, 1]} : vector<256x608xf32> to vector<256x32xf32>
    %133 = vector.extract_strided_slice %49 {offsets = [0, 416], sizes = [256, 32], strides = [1, 1]} : vector<256x608xf32> to vector<256x32xf32>
    %134 = arith.mulf %132, %131 : vector<256x32xf32>
    %135 = arith.addf %134, %133 : vector<256x32xf32>
    %cst_66 = arith.constant 0.000000e+00 : f32
    %136 = vector.broadcast %cst_66 : f32 to vector<256x32xf32>
    %137 = arith.maximumf %135, %136 : vector<256x32xf32>
    %138 = arith.truncf %137 : vector<256x32xf32> to vector<256x32xbf16>
    %c0_67 = arith.constant 0 : index
    %c0_68 = arith.constant 0 : index
    %139 = vector.load %arg16[%c0_67, %c0_68] : memref<32x32xbf16, #tpu.memory_space<vmem>>, vector<32x32xbf16>
    %cst_69 = arith.constant dense<0.000000e+00> : vector<256x32xf32>
    %140 = tpu.matmul %138, %139, %cst_69 {dimension_numbers = #tpu.dot_dimension_numbers<[1], [0], [0], [1], [0, 0, 1, 1], [], []>} : vector<256x32xbf16>, vector<32x32xbf16>, vector<256x32xf32> -> vector<256x32xf32>
    %c0_70 = arith.constant 0 : index
    %c928 = arith.constant 928 : index
    %141 = vector.load %arg21[%c0_70, %c928] : memref<1x1012xf32, #tpu.memory_space<vmem>>, vector<1x32xf32>
    %142 = vector.broadcast %141 : vector<1x32xf32> to vector<256x32xf32>
    %143 = arith.addf %140, %142 : vector<256x32xf32>
    %144 = vector.extract_strided_slice %49 {offsets = [0, 448], sizes = [256, 32], strides = [1, 1]} : vector<256x608xf32> to vector<256x32xf32>
    %145 = vector.extract_strided_slice %49 {offsets = [0, 480], sizes = [256, 32], strides = [1, 1]} : vector<256x608xf32> to vector<256x32xf32>
    %146 = arith.mulf %144, %143 : vector<256x32xf32>
    %147 = arith.addf %146, %145 : vector<256x32xf32>
    %cst_71 = arith.constant 0.000000e+00 : f32
    %148 = vector.broadcast %cst_71 : f32 to vector<256x32xf32>
    %149 = arith.maximumf %147, %148 : vector<256x32xf32>
    %150 = arith.truncf %149 : vector<256x32xf32> to vector<256x32xbf16>
    %c0_72 = arith.constant 0 : index
    %c0_73 = arith.constant 0 : index
    %151 = vector.load %arg17[%c0_72, %c0_73] : memref<32x33xbf16, #tpu.memory_space<vmem>>, vector<32x33xbf16>
    %cst_74 = arith.constant dense<0.000000e+00> : vector<256x33xf32>
    %152 = tpu.matmul %150, %151, %cst_74 {dimension_numbers = #tpu.dot_dimension_numbers<[1], [0], [0], [1], [0, 0, 1, 1], [], []>} : vector<256x32xbf16>, vector<32x33xbf16>, vector<256x33xf32> -> vector<256x33xf32>
    %c0_75 = arith.constant 0 : index
    %c960 = arith.constant 960 : index
    %153 = vector.load %arg21[%c0_75, %c960] : memref<1x1012xf32, #tpu.memory_space<vmem>>, vector<1x33xf32>
    %154 = vector.broadcast %153 : vector<1x33xf32> to vector<256x33xf32>
    %155 = arith.addf %152, %154 : vector<256x33xf32>
    %156 = vector.extract_strided_slice %155 {offsets = [0, 0], sizes = [256, 1], strides = [1, 1]} : vector<256x33xf32> to vector<256x1xf32>
    %157 = vector.extract_strided_slice %49 {offsets = [0, 512], sizes = [256, 32], strides = [1, 1]} : vector<256x608xf32> to vector<256x32xf32>
    %158 = vector.extract_strided_slice %49 {offsets = [0, 544], sizes = [256, 32], strides = [1, 1]} : vector<256x608xf32> to vector<256x32xf32>
    %159 = vector.extract_strided_slice %155 {offsets = [0, 1], sizes = [256, 32], strides = [1, 1]} : vector<256x33xf32> to vector<256x32xf32>
    %160 = arith.mulf %157, %159 : vector<256x32xf32>
    %161 = arith.addf %160, %158 : vector<256x32xf32>
    %162 = vector.extract_strided_slice %49 {offsets = [0, 576], sizes = [256, 16], strides = [1, 1]} : vector<256x608xf32> to vector<256x16xf32>
    %163 = vector.extract_strided_slice %49 {offsets = [0, 592], sizes = [256, 16], strides = [1, 1]} : vector<256x608xf32> to vector<256x16xf32>
    %164 = arith.truncf %161 : vector<256x32xf32> to vector<256x32xbf16>
    %c0_76 = arith.constant 0 : index
    %c0_77 = arith.constant 0 : index
    %165 = vector.load %arg18[%c0_76, %c0_77] : memref<32x16xbf16, #tpu.memory_space<vmem>>, vector<32x16xbf16>
    %cst_78 = arith.constant dense<0.000000e+00> : vector<256x16xf32>
    %166 = tpu.matmul %164, %165, %cst_78 {dimension_numbers = #tpu.dot_dimension_numbers<[1], [0], [0], [1], [0, 0, 1, 1], [], []>} : vector<256x32xbf16>, vector<32x16xbf16>, vector<256x16xf32> -> vector<256x16xf32>
    %167 = arith.truncf %1 : vector<256x16xf32> to vector<256x16xbf16>
    %c0_79 = arith.constant 0 : index
    %c0_80 = arith.constant 0 : index
    %168 = vector.load %arg19[%c0_79, %c0_80] : memref<16x16xbf16, #tpu.memory_space<vmem>>, vector<16x16xbf16>
    %cst_81 = arith.constant dense<0.000000e+00> : vector<256x16xf32>
    %169 = tpu.matmul %167, %168, %cst_81 {dimension_numbers = #tpu.dot_dimension_numbers<[1], [0], [0], [1], [0, 0, 1, 1], [], []>} : vector<256x16xbf16>, vector<16x16xbf16>, vector<256x16xf32> -> vector<256x16xf32>
    %170 = arith.addf %166, %169 : vector<256x16xf32>
    %c0_82 = arith.constant 0 : index
    %c993 = arith.constant 993 : index
    %171 = vector.load %arg21[%c0_82, %c993] : memref<1x1012xf32, #tpu.memory_space<vmem>>, vector<1x16xf32>
    %172 = vector.broadcast %171 : vector<1x16xf32> to vector<256x16xf32>
    %173 = arith.addf %170, %172 : vector<256x16xf32>
    %174 = arith.mulf %162, %173 : vector<256x16xf32>
    %175 = arith.addf %174, %163 : vector<256x16xf32>
    %cst_83 = arith.constant 0.000000e+00 : f32
    %176 = vector.broadcast %cst_83 : f32 to vector<256x16xf32>
    %177 = arith.maximumf %175, %176 : vector<256x16xf32>
    %178 = arith.truncf %177 : vector<256x16xf32> to vector<256x16xbf16>
    %c0_84 = arith.constant 0 : index
    %c0_85 = arith.constant 0 : index
    %179 = vector.load %arg20[%c0_84, %c0_85] : memref<16x3xbf16, #tpu.memory_space<vmem>>, vector<16x3xbf16>
    %cst_86 = arith.constant dense<0.000000e+00> : vector<256x3xf32>
    %180 = tpu.matmul %178, %179, %cst_86 {dimension_numbers = #tpu.dot_dimension_numbers<[1], [0], [0], [1], [0, 0, 1, 1], [], []>} : vector<256x16xbf16>, vector<16x3xbf16>, vector<256x3xf32> -> vector<256x3xf32>
    %c0_87 = arith.constant 0 : index
    %c1009 = arith.constant 1009 : index
    %181 = vector.load %arg21[%c0_87, %c1009] : memref<1x1012xf32, #tpu.memory_space<vmem>>, vector<1x3xf32>
    %182 = vector.broadcast %181 : vector<1x3xf32> to vector<256x3xf32>
    %183 = arith.addf %180, %182 : vector<256x3xf32>
    %184 = tpu.concatenate %156, %183 in 1 : vector<256x1xf32>, vector<256x3xf32> -> vector<256x4xf32>
    %c0_88 = arith.constant 0 : index
    %c0_89 = arith.constant 0 : index
    %185 = vector.load %arg22[%c0_88, %c0_89] : memref<256x4xf32, #tpu.memory_space<vmem>>, vector<256x4xf32>
    tpu.vector_store %arg22[%c0_88, %c0_89], %184 {strides = array<i32>} : memref<256x4xf32, #tpu.memory_space<vmem>>, vector<256x4xf32>,
    return
  }
  func.func @transform_0(%arg0: i32) -> (i32, i32) {
    %c0_i32 = arith.constant 0 : i32
    %c0_i32_0 = arith.constant 0 : i32
    return %arg0, %c0_i32 : i32, i32
  }
  func.func @transform_1(%arg0: i32) -> (i32, i32) {
    %c0_i32 = arith.constant 0 : i32
    %c0_i32_0 = arith.constant 0 : i32
    return %arg0, %c0_i32 : i32, i32
  }
  func.func @transform_2(%arg0: i32) -> (i32, i32) {
    %c0_i32 = arith.constant 0 : i32
    %c0_i32_0 = arith.constant 0 : i32
    return %arg0, %c0_i32 : i32, i32
  }
  func.func @transform_3(%arg0: i32) -> (i32, i32) {
    %c0_i32 = arith.constant 0 : i32
    %c0_i32_0 = arith.constant 0 : i32
    %c0_i32_1 = arith.constant 0 : i32
    return %c0_i32, %c0_i32_0 : i32, i32
  }
  func.func @transform_4(%arg0: i32) -> (i32, i32) {
    %c0_i32 = arith.constant 0 : i32
    %c0_i32_0 = arith.constant 0 : i32
    %c0_i32_1 = arith.constant 0 : i32
    return %c0_i32, %c0_i32_0 : i32, i32
  }
  func.func @transform_5(%arg0: i32) -> (i32, i32) {
    %c0_i32 = arith.constant 0 : i32
    %c0_i32_0 = arith.constant 0 : i32
    %c0_i32_1 = arith.constant 0 : i32
    return %c0_i32, %c0_i32_0 : i32, i32
  }
  func.func @transform_6(%arg0: i32) -> (i32, i32) {
    %c0_i32 = arith.constant 0 : i32
    %c0_i32_0 = arith.constant 0 : i32
    %c0_i32_1 = arith.constant 0 : i32
    return %c0_i32, %c0_i32_0 : i32, i32
  }
  func.func @transform_7(%arg0: i32) -> (i32, i32) {
    %c0_i32 = arith.constant 0 : i32
    %c0_i32_0 = arith.constant 0 : i32
    %c0_i32_1 = arith.constant 0 : i32
    return %c0_i32, %c0_i32_0 : i32, i32
  }
  func.func @transform_8(%arg0: i32) -> (i32, i32) {
    %c0_i32 = arith.constant 0 : i32
    %c0_i32_0 = arith.constant 0 : i32
    %c0_i32_1 = arith.constant 0 : i32
    return %c0_i32, %c0_i32_0 : i32, i32
  }
  func.func @transform_9(%arg0: i32) -> (i32, i32) {
    %c0_i32 = arith.constant 0 : i32
    %c0_i32_0 = arith.constant 0 : i32
    %c0_i32_1 = arith.constant 0 : i32
    return %c0_i32, %c0_i32_0 : i32, i32
  }
  func.func @transform_10(%arg0: i32) -> (i32, i32) {
    %c0_i32 = arith.constant 0 : i32
    %c0_i32_0 = arith.constant 0 : i32
    %c0_i32_1 = arith.constant 0 : i32
    return %c0_i32, %c0_i32_0 : i32, i32
  }
  func.func @transform_11(%arg0: i32) -> (i32, i32) {
    %c0_i32 = arith.constant 0 : i32
    %c0_i32_0 = arith.constant 0 : i32
    %c0_i32_1 = arith.constant 0 : i32
    return %c0_i32, %c0_i32_0 : i32, i32
  }
  func.func @transform_12(%arg0: i32) -> (i32, i32) {
    %c0_i32 = arith.constant 0 : i32
    %c0_i32_0 = arith.constant 0 : i32
    %c0_i32_1 = arith.constant 0 : i32
    return %c0_i32, %c0_i32_0 : i32, i32
  }
  func.func @transform_13(%arg0: i32) -> (i32, i32) {
    %c0_i32 = arith.constant 0 : i32
    %c0_i32_0 = arith.constant 0 : i32
    %c0_i32_1 = arith.constant 0 : i32
    return %c0_i32, %c0_i32_0 : i32, i32
  }
  func.func @transform_14(%arg0: i32) -> (i32, i32) {
    %c0_i32 = arith.constant 0 : i32
    %c0_i32_0 = arith.constant 0 : i32
    %c0_i32_1 = arith.constant 0 : i32
    return %c0_i32, %c0_i32_0 : i32, i32
  }
  func.func @transform_15(%arg0: i32) -> (i32, i32) {
    %c0_i32 = arith.constant 0 : i32
    %c0_i32_0 = arith.constant 0 : i32
    %c0_i32_1 = arith.constant 0 : i32
    return %c0_i32, %c0_i32_0 : i32, i32
  }
  func.func @transform_16(%arg0: i32) -> (i32, i32) {
    %c0_i32 = arith.constant 0 : i32
    %c0_i32_0 = arith.constant 0 : i32
    %c0_i32_1 = arith.constant 0 : i32
    return %c0_i32, %c0_i32_0 : i32, i32
  }
  func.func @transform_17(%arg0: i32) -> (i32, i32) {
    %c0_i32 = arith.constant 0 : i32
    %c0_i32_0 = arith.constant 0 : i32
    %c0_i32_1 = arith.constant 0 : i32
    return %c0_i32, %c0_i32_0 : i32, i32
  }
  func.func @transform_18(%arg0: i32) -> (i32, i32) {
    %c0_i32 = arith.constant 0 : i32
    %c0_i32_0 = arith.constant 0 : i32
    %c0_i32_1 = arith.constant 0 : i32
    return %c0_i32, %c0_i32_0 : i32, i32
  }
  func.func @transform_19(%arg0: i32) -> (i32, i32) {
    %c0_i32 = arith.constant 0 : i32
    %c0_i32_0 = arith.constant 0 : i32
    %c0_i32_1 = arith.constant 0 : i32
    return %c0_i32, %c0_i32_0 : i32, i32
  }
  func.func @transform_20(%arg0: i32) -> (i32, i32) {
    %c0_i32 = arith.constant 0 : i32
    %c0_i32_0 = arith.constant 0 : i32
    %c0_i32_1 = arith.constant 0 : i32
    return %c0_i32, %c0_i32_0 : i32, i32
  }
  func.func @transform_21(%arg0: i32) -> (i32, i32) {
    %c0_i32 = arith.constant 0 : i32
    %c0_i32_0 = arith.constant 0 : i32
    return %arg0, %c0_i32 : i32, i32
  }
}

</mosaic_0001>

<bundles_post_ra>
// kernel: nerf_pallas.1
= control target key start
LH: loop header
LB: loop body
LE: loop exit
PB: predicated region body
PF: predicated region fallthrough
CT: control target
= control target key end

     0   :  { %s14668_s0 = inlined_call_operand.vmem [shape: f32[512,16], index: 0, kind: input, shape index: {}]   ;;  %s14669_s1 = inlined_call_operand.vmem [shape: f32[512,16], index: 1, kind: input, shape index: {}]   ;;  %s14670_s2 = inlined_call_operand.vmem [shape: f32[512,16], index: 2, kind: input, shape index: {}]   ;;  %s14671_s3 = inlined_call_operand.vmem [shape: bf16[16,32], index: 3, kind: input, shape index: {}]   ;;  %s14672_s4 = inlined_call_operand.vmem [shape: bf16[32,32], index: 4, kind: input, shape index: {}]   ;;  %s14673_s5 = inlined_call_operand.vmem [shape: bf16[32,32], index: 5, kind: input, shape index: {}]   ;;  %s14674_s6 = inlined_call_operand.vmem [shape: bf16[32,608], index: 6, kind: input, shape index: {}]   ;;  %s14675_s7 = inlined_call_operand.vmem [shape: bf16[16,32], index: 7, kind: input, shape index: {}]   ;;  %s14676_s8 = inlined_call_operand.vmem [shape: bf16[32,32], index: 8, kind: input, shape index: {}]   ;;  %s14677_s9 = inlined_call_operand.vmem [shape: bf16[32,32], index: 9, kind: input, shape index: {}]   ;;  %s14678_s10 = inlined_call_operand.vmem [shape: bf16[32,32], index: 10, kind: input, shape index: {}]   ;;  %s14679_s11 = inlined_call_operand.vmem [shape: bf16[32,32], index: 11, kind: input, shape index: {}]   ;;  %s14680_s12 = inlined_call_operand.vmem [shape: bf16[16,32], index: 12, kind: input, shape index: {}]   ;;  %s14681_s13 = inlined_call_operand.vmem [shape: bf16[32,32], index: 13, kind: input, shape index: {}]   ;;  %s14682_s14 = inlined_call_operand.vmem [shape: bf16[32,32], index: 14, kind: input, shape index: {}]   ;;  %s14683_s15 = inlined_call_operand.vmem [shape: bf16[32,32], index: 15, kind: input, shape index: {}]   ;;  %s14684_s16 = inlined_call_operand.vmem [shape: bf16[32,33], index: 16, kind: input, shape index: {}]   ;;  %s14685_s17 = inlined_call_operand.vmem [shape: bf16[32,16], index: 17, kind: input, shape index: {}]   ;;  %s14686_s18 = inlined_call_operand.vmem [shape: bf16[16,16], index: 18, kind: input, shape index: {}]   ;;  %s14687_s19 = inlined_call_operand.vmem [shape: bf16[16,3], index: 19, kind: input, shape index: {}]   ;;  %s14688_s20 = inlined_call_operand.vmem [shape: f32[1,1012], index: 20, kind: input, shape index: {}]   ;;  %s14689_s21 = inlined_call_operand.vmem [shape: f32[512,4], index: 21, kind: output, shape index: {}]  }
   0x1   :  { %14829 = sst [smem:[#allocation163_spill]] %s14668_s0 }
   0x2   :  { %14830 = sst [smem:[#allocation164_spill]] %s14669_s1 }
   0x3   :  { %14831 = sst [smem:[#allocation165_spill]] %s14670_s2  ;;  %s10381_s2 = smov 0  }
   0x4   :  { %14832 = sst [smem:[#allocation166_spill]] %s14671_s3 }
   0x5   :  { %14833 = sst [smem:[#allocation167_spill]] %s14672_s4 }
   0x6   :  { %14834 = sst [smem:[#allocation168_spill]] %s14673_s5 }
   0x7 LB: > { %s8860_s25 = sadd.s32 4294967295, %s10260_s2   ;;  %p8864_p0 = scmp.ge.s32.totalorder %s10260_s2, 1  ;;  %s10260_s2 = sphi %s10381_s2, %s31_s2  }
   0x8   : > { %p610_p1 = scmp.lt.s32.totalorder %s10260_s2, 3 }
   0xa   : > { %p611_p2 = pnand %p8864_p0, %p610_p1 }
   0xc   : > { %614 = sbr.rel (%p611_p2) target bundleno = 4749 (0x128d), region = 104 }
  0x11   : > { %s8865_s26 = sshll.u32 %s8860_s25, 5  ;;  %s14835_s29 = sld [smem:[#allocation165_spill]]  ;;  %vm833_vm0 = vcmask 130048   ;;  %vm1397_vm5 = vcmask 261120  }
  0x12   : > { %p681_p3 = scmp.lt.s32.totalorder %s8865_s26, 63  ;;  %s14836_s5 = sld [smem:[#allocation166_spill]] }
  0x13   : > { %s14837_s1 = sld [smem:[#allocation167_spill]]  ;;  %s10265_s24 = smov 32  }
  0x14   : > { %s15393_s26 = smov (!%p681_p3, %s8865_s26), 63  ;;  %s14840_s25 = sld [smem:[#allocation163_spill]] }
  0x15   : > { %s10389_s27 = sshll.u32 %s15393_s26, 3  ;;  %s10263_s26 = smov 64  }
  0x16   : > { %s10266_s23 = smov 127   ;;  %s10267_s30 = smov 31  }
  0x17   : > { %s10395_s0 = scalar_lea.vmem %s14835_s29, %s10389_s27  ;;  %s10268_s22 = smov 112  }
  0x18   : > { %v10398_v0 = vld [vmem:[%s10395_s0 + $0x10] sm:$0xff]  ;;  %v10401_v1 = vld [vmem:[%s10395_s0] sm:$0xff]  ;;  %v10404_v2 = vld [vmem:[%s10395_s0 + $0x18] sm:$0xff]  ;;  %s14535_s4 = scalar_lea.vmem %s14689_s21, %s10389_s27 }
  0x19   : > { %v803_v3 = vmul.f32 %v10398_v0, %v10398_v0  ;;  %v801_v4 = vmul.f32 %v10401_v1, %v10401_v1  ;;  %v804_v5 = vmul.f32 %v10404_v2, %v10404_v2  ;;  %v10413_v6 = vld [vmem:[%s10395_s0 + $0x8] sm:$0xff]  ;;  %v10421_v9 = vld [vmem:[%s10395_s0 + $0x20] sm:$0xff]  ;;  %v10432_v16 = vld [vmem:[%s10395_s0 + $0x38] sm:$0xff] }
  0x1a   : > { %v802_v7 = vmul.f32 %v10413_v6, %v10413_v6  ;;  %v10418_v8 = vld [vmem:[%s10395_s0 + $0x28] sm:$0xff]  ;;  %v805_v15 = vmul.f32 %v10421_v9, %v10421_v9  ;;  %v10435_v17 = vld [vmem:[%s10395_s0 + $0x30] sm:$0xff]  ;;  %v808_v21 = vmul.f32 %v10432_v16, %v10432_v16  ;;  %v10447_v23 = vld [vmem:[%s10395_s0 + $0x40] sm:$0xff]  ;;  %s10966_s3 = scalar_lea.vmem %s14840_s25, %s10389_s27 }
  0x1b   : > { %v840_v10 = vsel %vm833_vm0, %v803_v3, 0.0  ;;  %v834_v11 = vsel %vm833_vm0, %v801_v4, 0.0  ;;  %v843_v12 = vsel %vm833_vm0, %v804_v5, 0.0  ;;  %v806_v14 = vmul.f32 %v10418_v8, %v10418_v8  ;;  %v10438_v18 = vld [vmem:[%s10395_s0 + $0x48] sm:$0xff]  ;;  %v10450_v24 = vld [vmem:[%s10395_s0 + $0x58] sm:$0xff]  ;;  %v10453_v25 = vld [vmem:[%s10395_s0 + $0x50] sm:$0xff] }
  0x1c   : > { %841 = vadd.xlane.f32.xlu1 %v840_v10  ;;  %835 = vadd.xlane.f32.xlu0 %v834_v11  ;;  %v837_v13 = vsel %vm833_vm0, %v802_v7, 0.0  ;;  %v846_v20 = vsel %vm833_vm0, %v805_v15, 0.0  ;;  %v807_v22 = vmul.f32 %v10435_v17, %v10435_v17  ;;  %v10456_v26 = vld [vmem:[%s10395_s0 + $0x68] sm:$0xff]  ;;  %v10459_v27 = vld [vmem:[%s10395_s0 + $0x60] sm:$0xff]  ;;  %v810_v28 = vmul.f32 %v10438_v18, %v10438_v18  ;;  %v10464_v29 = vld [vmem:[%s10395_s0 + $0x78] sm:$0xff] }
  0x1d   : > { %v849_v19 = vsel %vm833_vm0, %v806_v14, 0.0  ;;  %v10467_v30 = vld [vmem:[%s10395_s0 + $0x70] sm:$0xff]  ;;  %v809_v31 = vmul.f32 %v10447_v23, %v10447_v23  ;;  %v812_v32 = vmul.f32 %v10450_v24, %v10450_v24  ;;  %v811_v33 = vmul.f32 %v10453_v25, %v10453_v25  ;;  %v10494_v48 = vld [vmem:[%s10395_s0 + $0x88] sm:$0xff]  ;;  %v10497_v49 = vld [vmem:[%s10395_s0 + $0x80] sm:$0xff] }
  0x1e   : > { %v855_v34 = vsel %vm833_vm0, %v808_v21, 0.0  ;;  %v852_v35 = vsel %vm833_vm0, %v807_v22, 0.0  ;;  %v814_v36 = vmul.f32 %v10456_v26, %v10456_v26  ;;  %v813_v37 = vmul.f32 %v10459_v27, %v10459_v27  ;;  %v10504_v52 = vld [vmem:[%s10395_s0 + $0x98] sm:$0xff]  ;;  %v10507_v53 = vld [vmem:[%s10395_s0 + $0x90] sm:$0xff]  ;;  %v10516_v58 = vld [vmem:[%s10395_s0 + $0xa8] sm:$0xff] }
  0x1f   : > { %v816_v38 = vmul.f32 %v10464_v29, %v10464_v29  ;;  %v815_v39 = vmul.f32 %v10467_v30, %v10467_v30  ;;  %v861_v40 = vsel %vm833_vm0, %v810_v28, 0.0  ;;  %v858_v41 = vsel %vm833_vm0, %v809_v31, 0.0  ;;  %v10519_v59 = vld [vmem:[%s10395_s0 + $0xa0] sm:$0xff]  ;;  %v10531_v4 = vld [vmem:[%s10395_s0 + $0xb8] sm:$0xff]  ;;  %v10534_v5 = vld [vmem:[%s10395_s0 + $0xb0] sm:$0xff] }
  0x20   : > { %844 = vadd.xlane.f32.xlu1 %v843_v12  ;;  %838 = vadd.xlane.f32.xlu0 %v837_v13  ;;  %v867_v42 = vsel %vm833_vm0, %v812_v32, 0.0  ;;  %v864_v43 = vsel %vm833_vm0, %v811_v33, 0.0  ;;  %v873_v44 = vsel %vm833_vm0, %v814_v36, 0.0  ;;  %v870_v45 = vsel %vm833_vm0, %v813_v37, 0.0  ;;  %v10142_v60 = vld [vmem:[%s14836_s5] sm:$0xff]   ;;  %v10543_v13 = vld [vmem:[%s10395_s0 + $0xc8] sm:$0xff] }
  0x21   : > { %v879_v46 = vsel %vm833_vm0, %v816_v38, 0.0  ;;  %v876_v47 = vsel %vm833_vm0, %v815_v39, 0.0  ;;  %v818_v50 = vmul.f32 %v10494_v48, %v10494_v48  ;;  %v817_v51 = vmul.f32 %v10497_v49, %v10497_v49  ;;  %9521 = vmatprep.subr.bf16.mxu0 %v10142_v60  ;;  %10123 = vmatprep.subr.bf16.mxu1 %v10142_v60  ;;  %v10546_v14 = vld [vmem:[%s10395_s0 + $0xc0] sm:$0xff]  ;;  %v10555_v22 = vld [vmem:[%s10395_s0 + $0xd8] sm:$0xff]  ;;  %v10558_v28 = vld [vmem:[%s10395_s0 + $0xd0] sm:$0xff]  ;;  %s10262_s5 = smov 96  }
  0x22   : > { %v820_v56 = vmul.f32 %v10504_v52, %v10504_v52  ;;  %v819_v57 = vmul.f32 %v10507_v53, %v10507_v53  ;;  %v822_v63 = vmul.f32 %v10516_v58, %v10516_v58  ;;  %v821_v3 = vmul.f32 %v10519_v59, %v10519_v59  ;;  %9522 = vmatpush3.bf16.msra.mxu0 %v10142_v60  ;;  %v10570_v36 = vld [vmem:[%s10395_s0 + $0xe0] sm:$0xff] }
  0x23   : > { %v885_v54 = vsel %vm833_vm0, %v818_v50, 0.0  ;;  %v882_v55 = vsel %vm833_vm0, %v817_v51, 0.0  ;;  %10124 = vmatpush3.bf16.msra.mxu1 %v10142_v60  ;;  %v824_v11 = vmul.f32 %v10531_v4, %v10531_v4  ;;  %v823_v12 = vmul.f32 %v10534_v5, %v10534_v5  ;;  %v10595_v51 = vld [vmem:[%s14837_s1 + $0x8] sm:$0xff]  }
  0x24   : > { %850 = vadd.xlane.f32.xlu1 %v849_v19  ;;  %847 = vadd.xlane.f32.xlu0 %v846_v20  ;;  %v891_v61 = vsel %vm833_vm0, %v820_v56, 0.0  ;;  %v888_v62 = vsel %vm833_vm0, %v819_v57, 0.0  ;;  %v897_v7 = vsel %vm833_vm0, %v822_v63, 0.0  ;;  %v894_v10 = vsel %vm833_vm0, %v821_v3, 0.0 }
  0x25   : > { %v903_v15 = vsel %vm833_vm0, %v824_v11, 0.0  ;;  %v900_v19 = vsel %vm833_vm0, %v823_v12, 0.0  ;;  %v826_v20 = vmul.f32 %v10543_v13, %v10543_v13  ;;  %v825_v21 = vmul.f32 %v10546_v14, %v10546_v14  ;;  %9555 = vmatprep.subr.bf16.mxu1 %v10595_v51 }
  0x26   : > { %v828_v33 = vmul.f32 %v10555_v22, %v10555_v22 }
  0x27   : > { %v909_v31 = vsel %vm833_vm0, %v826_v20, 0.0  ;;  %v906_v32 = vsel %vm833_vm0, %v825_v21, 0.0 }
  0x28   : > { %856 = vadd.xlane.f32.xlu1 %v855_v34  ;;  %853 = vadd.xlane.f32.xlu0 %v852_v35  ;;  %v827_v34 = vmul.f32 %v10558_v28, %v10558_v28  ;;  %v10567_v35 = vld [vmem:[%s10395_s0 + $0xe8] sm:$0xff]  ;;  %v915_v37 = vsel %vm833_vm0, %v828_v33, 0.0 }
  0x29   : > { %v830_v39 = vmul.f32 %v10567_v35, %v10567_v35 }
  0x2a   : > { %v912_v38 = vsel %vm833_vm0, %v827_v34, 0.0 }
  0x2c   : > { %862 = vadd.xlane.f32.xlu1 %v861_v40  ;;  %859 = vadd.xlane.f32.xlu0 %v858_v41  ;;  %v829_v40 = vmul.f32 %v10570_v36, %v10570_v36  ;;  %v10579_v41 = vld [vmem:[%s10395_s0 + $0xf8] sm:$0xff] }
  0x30   : > { %868 = vadd.xlane.f32.xlu1 %v867_v42  ;;  %865 = vadd.xlane.f32.xlu0 %v864_v43  ;;  %v10582_v42 = vld [vmem:[%s10395_s0 + $0xf0] sm:$0xff]  ;;  %v921_v43 = vsel %vm833_vm0, %v830_v39, 0.0  ;;  %s14838_s0 = sld [smem:[#allocation168_spill]] }
  0x34   : > { %874 = vadd.xlane.f32.xlu1 %v873_v44  ;;  %871 = vadd.xlane.f32.xlu0 %v870_v45  ;;  %v918_v44 = vsel %vm833_vm0, %v829_v40, 0.0  ;;  %v832_v45 = vmul.f32 %v10579_v41, %v10579_v41 }
  0x38   : > { %880 = vadd.xlane.f32.xlu1 %v879_v46  ;;  %877 = vadd.xlane.f32.xlu0 %v876_v47  ;;  %v831_v46 = vmul.f32 %v10582_v42, %v10582_v42  ;;  %v927_v47 = vsel %vm833_vm0, %v832_v45, 0.0 }
  0x3a   : > { %v924_v50 = vsel %vm833_vm0, %v831_v46, 0.0 }
  0x3c   : > { %886 = vadd.xlane.f32.xlu1 %v885_v54  ;;  %883 = vadd.xlane.f32.xlu0 %v882_v55 }
  0x40   : > { %892 = vadd.xlane.f32.xlu1 %v891_v61  ;;  %889 = vadd.xlane.f32.xlu0 %v888_v62 }
  0x44   : > { %898 = vadd.xlane.f32.xlu1 %v897_v7  ;;  %895 = vadd.xlane.f32.xlu0 %v894_v10 }
  0x48   : > { %904 = vadd.xlane.f32.xlu1 %v903_v15  ;;  %901 = vadd.xlane.f32.xlu0 %v900_v19 }
  0x4c   : > { %910 = vadd.xlane.f32.xlu1 %v909_v31  ;;  %907 = vadd.xlane.f32.xlu0 %v906_v32 }
  0x50   : > { %916 = vadd.xlane.f32.xlu1 %v915_v37  ;;  %913 = vadd.xlane.f32.xlu0 %v912_v38 }
  0x54   : > { %922 = vadd.xlane.f32.xlu1 %v921_v43  ;;  %919 = vadd.xlane.f32.xlu0 %v918_v44 }
  0x58   : > { %928 = vadd.xlane.f32.xlu1 %v927_v47  ;;  %925 = vadd.xlane.f32.xlu0 %v924_v50 }
  0xa5   : > { %v842_v54 = vpop.xlane.xlu1 %841  ;;  %v836_v55 = vpop.xlane.xlu0 %835 }
  0xa6   : > { %v932_v56 = vmax.f32 %v842_v54, 1e-24  ;;  %v930_v57 = vmax.f32 %v836_v55, 1e-24 }
  0xa8   : > { %10183 = vrsqrt.f32 %v932_v56 }
  0xa9   : > { %v845_v60 = vpop.xlane.xlu1 %844  ;;  %v839_v61 = vpop.xlane.xlu0 %838  ;;  %10185 = vrsqrt.f32 %v930_v57 }
  0xaa   : > { %v933_v62 = vmax.f32 %v845_v60, 1e-24  ;;  %v931_v63 = vmax.f32 %v839_v61, 1e-24 }
  0xac   : > { %10187 = vrsqrt.f32 %v933_v62 }
  0xad   : > { %10189 = vrsqrt.f32 %v931_v63  ;;  %v851_v3 = vpop.xlane.xlu1 %850  ;;  %v848_v7 = vpop.xlane.xlu0 %847 }
  0xae   : > { %v935_v10 = vmax.f32 %v851_v3, 1e-24  ;;  %v934_v11 = vmax.f32 %v848_v7, 1e-24 }
  0xb0   : > { %10191 = vrsqrt.f32 %v935_v10 }
  0xb1   : > { %10193 = vrsqrt.f32 %v934_v11  ;;  %v857_v12 = vpop.xlane.xlu1 %856  ;;  %v854_v15 = vpop.xlane.xlu0 %853 }
  0xb2   : > { %v937_v19 = vmax.f32 %v857_v12, 1e-24  ;;  %v936_v20 = vmax.f32 %v854_v15, 1e-24 }
  0xb4   : > { %10195 = vrsqrt.f32 %v937_v19 }
  0xb5   : > { %10197 = vrsqrt.f32 %v936_v20  ;;  %v863_v21 = vpop.xlane.xlu1 %862  ;;  %v860_v31 = vpop.xlane.xlu0 %859 }
  0xb6   : > { %v939_v32 = vmax.f32 %v863_v21, 1e-24  ;;  %v938_v33 = vmax.f32 %v860_v31, 1e-24  ;;  %v10184_v34 = vpop.eup %10183 }
  0xb7   : > { %v10186_v37 = vpop.eup %10185  ;;  %v996_v46 = vmul.f32 %v10184_v34, %v10398_v0 }
  0xb8   : > { %10199 = vrsqrt.f32 %v939_v32  ;;  %v994_v50 = vmul.f32 %v10186_v37, %v10401_v1 }
  0xb9   : > { %v10188_v38 = vpop.eup %10187  ;;  %10201 = vrsqrt.f32 %v938_v33  ;;  %v869_v39 = vpop.xlane.xlu1 %868 }
  0xba   : > { %v866_v40 = vpop.xlane.xlu0 %865  ;;  %v10190_v43 = vpop.eup %10189  ;;  %v941_v44 = vmax.f32 %v869_v39, 1e-24  ;;  %v997_v47 = vmul.f32 %v10188_v38, %v10404_v2 }
  0xbb   : > { %v940_v45 = vmax.f32 %v866_v40, 1e-24  ;;  %v995_v54 = vmul.f32 %v10190_v43, %v10413_v6 }
  0xbc   : > { %10203 = vrsqrt.f32 %v941_v44  ;;  %v1027_v55 = vpack.c.bf16 %v997_v47, %v996_v46 }
  0xbd   : > { %v10192_v56 = vpop.eup %10191  ;;  %10205 = vrsqrt.f32 %v940_v45  ;;  %v875_v57 = vpop.xlane.xlu1 %874  ;;  %v1026_v60 = vpack.c.bf16 %v995_v54, %v994_v50 }
  0xbe   : > { %v872_v61 = vpop.xlane.xlu0 %871  ;;  %v10194_v62 = vpop.eup %10193  ;;  %v943_v63 = vmax.f32 %v875_v57, 1e-24  ;;  %v999_v7 = vmul.f32 %v10192_v56, %v10418_v8 }
  0xbf   : > { %v942_v3 = vmax.f32 %v872_v61, 1e-24  ;;  %9523 = vmatprep.mubr.msk.bf16.mxu0 %vm833_vm0, %v1026_v60  ;;  %v998_v0 = vmul.f32 %v10194_v62, %v10421_v9 }
  0xc0   : > { %10207 = vrsqrt.f32 %v943_v63  ;;  %9524 = vmatmul.mubr.msk.bf16.vlgmr.msra.gmra.mxu0 %vm833_vm0, %v1027_v55 }
  0xc1   : > { %v10196_v1 = vpop.eup %10195  ;;  %10209 = vrsqrt.f32 %v942_v3  ;;  %v881_v2 = vpop.xlane.xlu1 %880  ;;  %v1028_v10 = vpack.c.bf16 %v999_v7, %v998_v0 }
  0xc2   : > { %v878_v6 = vpop.xlane.xlu0 %877  ;;  %v10198_v11 = vpop.eup %10197  ;;  %v945_v12 = vmax.f32 %v881_v2, 1e-24  ;;  %v1001_v19 = vmul.f32 %v10196_v1, %v10432_v16 }
  0xc3   : > { %v944_v15 = vmax.f32 %v878_v6, 1e-24  ;;  %9527 = vmatprep.mubr.msk.bf16.mxu0 %vm833_vm0, %v1028_v10  ;;  %v1000_v8 = vmul.f32 %v10198_v11, %v10435_v17 }
  0xc4   : > { %10211 = vrsqrt.f32 %v945_v12 }
  0xc5   : > { %v10200_v20 = vpop.eup %10199  ;;  %10213 = vrsqrt.f32 %v944_v15  ;;  %v887_v9 = vpop.xlane.xlu1 %886  ;;  %v1029_v31 = vpack.c.bf16 %v1001_v19, %v1000_v8 }
  0xc6   : > { %v884_v21 = vpop.xlane.xlu0 %883  ;;  %v10202_v32 = vpop.eup %10201  ;;  %v947_v33 = vmax.f32 %v887_v9, 1e-24  ;;  %v1003_v37 = vmul.f32 %v10200_v20, %v10438_v18 }
  0xc7   : > { %v946_v34 = vmax.f32 %v884_v21, 1e-24  ;;  %v1002_v38 = vmul.f32 %v10202_v32, %v10447_v23 }
  0xc8   : > { %10215 = vrsqrt.f32 %v947_v33  ;;  %9528 = vmatmul.mubr.msk.bf16.gmra.mxu0 %vm833_vm0, %v1029_v31 }
  0xc9   : > { %v10204_v16 = vpop.eup %10203  ;;  %10217 = vrsqrt.f32 %v946_v34  ;;  %v893_v39 = vpop.xlane.xlu1 %892  ;;  %v1030_v40 = vpack.c.bf16 %v1003_v37, %v1002_v38 }
  0xca   : > { %v890_v17 = vpop.xlane.xlu0 %889  ;;  %v10206_v43 = vpop.eup %10205  ;;  %v949_v44 = vmax.f32 %v893_v39, 1e-24  ;;  %v1005_v46 = vmul.f32 %v10204_v16, %v10450_v24  ;;  %v10144_v16 = vld [vmem:[%s14837_s1] sm:$0xff]  }
  0xcb   : > { %v948_v45 = vmax.f32 %v890_v17, 1e-24  ;;  %9531 = vmatprep.mubr.msk.bf16.mxu0 %vm833_vm0, %v1030_v40  ;;  %v1004_v47 = vmul.f32 %v10206_v43, %v10453_v25 }
  0xcc   : > { %10219 = vrsqrt.f32 %v949_v44 }
  0xcd   : > { %v10208_v18 = vpop.eup %10207  ;;  %10221 = vrsqrt.f32 %v948_v45  ;;  %v899_v23 = vpop.xlane.xlu1 %898  ;;  %v1031_v54 = vpack.c.bf16 %v1005_v46, %v1004_v47 }
  0xce   : > { %v896_v50 = vpop.xlane.xlu0 %895  ;;  %v10210_v55 = vpop.eup %10209  ;;  %v951_v56 = vmax.f32 %v899_v23, 1e-24  ;;  %v1007_v60 = vmul.f32 %v10208_v18, %v10456_v26 }
  0xcf   : > { %v950_v57 = vmax.f32 %v896_v50, 1e-24  ;;  %v1006_v61 = vmul.f32 %v10210_v55, %v10459_v27 }
  0xd0   : > { %10223 = vrsqrt.f32 %v951_v56  ;;  %9532 = vmatmul.mubr.msk.bf16.gmra.mxu0 %vm833_vm0, %v1031_v54 }
  0xd1   : > { %v10212_v24 = vpop.eup %10211  ;;  %10225 = vrsqrt.f32 %v950_v57  ;;  %v905_v62 = vpop.xlane.xlu1 %904  ;;  %v1032_v63 = vpack.c.bf16 %v1007_v60, %v1006_v61 }
  0xd2   : > { %v902_v25 = vpop.xlane.xlu0 %901  ;;  %v10214_v3 = vpop.eup %10213  ;;  %v953_v7 = vmax.f32 %v905_v62, 1e-24  ;;  %v1009_v1 = vmul.f32 %v10212_v24, %v10464_v29 }
  0xd3   : > { %v952_v0 = vmax.f32 %v902_v25, 1e-24  ;;  %9535 = vmatprep.mubr.msk.bf16.mxu0 %vm833_vm0, %v1032_v63  ;;  %v1008_v2 = vmul.f32 %v10214_v3, %v10467_v30 }
  0xd4   : > { %10227 = vrsqrt.f32 %v953_v7 }
  0xd5   : > { %v10216_v26 = vpop.eup %10215  ;;  %10229 = vrsqrt.f32 %v952_v0  ;;  %v911_v27 = vpop.xlane.xlu1 %910  ;;  %v1033_v10 = vpack.c.bf16 %v1009_v1, %v1008_v2 }
  0xd6   : > { %v908_v6 = vpop.xlane.xlu0 %907  ;;  %v10218_v11 = vpop.eup %10217  ;;  %v955_v12 = vmax.f32 %v911_v27, 1e-24  ;;  %v1011_v19 = vmul.f32 %v10216_v26, %v10494_v48 }
  0xd7   : > { %v954_v15 = vmax.f32 %v908_v6, 1e-24  ;;  %v1010_v8 = vmul.f32 %v10218_v11, %v10497_v49 }
  0xd8   : > { %10231 = vrsqrt.f32 %v955_v12  ;;  %9536 = vmatmul.mubr.msk.bf16.gmra.mxu0 %vm833_vm0, %v1033_v10 }
  0xd9   : > { %v10220_v29 = vpop.eup %10219  ;;  %10233 = vrsqrt.f32 %v954_v15  ;;  %v917_v20 = vpop.xlane.xlu1 %916  ;;  %v1034_v9 = vpack.c.bf16 %v1011_v19, %v1010_v8 }
  0xda   : > { %v914_v30 = vpop.xlane.xlu0 %913  ;;  %v10222_v21 = vpop.eup %10221  ;;  %v957_v31 = vmax.f32 %v917_v20, 1e-24  ;;  %v1013_v33 = vmul.f32 %v10220_v29, %v10504_v52 }
  0xdb   : > { %v956_v32 = vmax.f32 %v914_v30, 1e-24  ;;  %9539 = vmatprep.mubr.msk.bf16.mxu1 %vm833_vm0, %v1034_v9  ;;  %v1012_v34 = vmul.f32 %v10222_v21, %v10507_v53 }
  0xdc   : > { %10235 = vrsqrt.f32 %v957_v31 }
  0xdd   : > { %v10224_v48 = vpop.eup %10223  ;;  %10237 = vrsqrt.f32 %v956_v32  ;;  %v923_v49 = vpop.xlane.xlu1 %922  ;;  %v1035_v38 = vpack.c.bf16 %v1013_v33, %v1012_v34 }
  0xde   : > { %v920_v37 = vpop.xlane.xlu0 %919  ;;  %v10226_v39 = vpop.eup %10225  ;;  %v959_v17 = vmax.f32 %v923_v49, 1e-24  ;;  %v1015_v43 = vmul.f32 %v10224_v48, %v10516_v58 }
  0xdf   : > { %v958_v40 = vmax.f32 %v920_v37, 1e-24  ;;  %9540 = vmatmul.mubr.msk.bf16.vlgmr.msra.gmra.mxu1 %vm833_vm0, %v1035_v38  ;;  %v1014_v52 = vmul.f32 %v10226_v39, %v10519_v59 }
  0xe0   : > { %10239 = vrsqrt.f32 %v959_v17  ;;  %9556 = vmatpush3.bf16.msra.mxu1 %v10595_v51 }
  0xe1   : > { %v10228_v53 = vpop.eup %10227  ;;  %10241 = vrsqrt.f32 %v958_v40  ;;  %v929_v44 = vpop.xlane.xlu1 %928  ;;  %v1036_v46 = vpack.c.bf16 %v1015_v43, %v1014_v52  ;;  %9557 = vmatprep.subr.bf16.mxu1 %v10144_v16 }
  0xe2   : > { %v926_v45 = vpop.xlane.xlu0 %925  ;;  %v10230_v47 = vpop.eup %10229  ;;  %v961_v18 = vmax.f32 %v929_v44, 1e-24  ;;  %v1017_v50 = vmul.f32 %v10228_v53, %v10531_v4 }
  0xe3   : > { %v960_v23 = vmax.f32 %v926_v45, 1e-24  ;;  %9543 = vmatprep.mubr.msk.bf16.mxu1 %vm833_vm0, %v1036_v46  ;;  %v1016_v58 = vmul.f32 %v10230_v47, %v10534_v5 }
  0xe4   : > { %10243 = vrsqrt.f32 %v961_v18  ;;  %9558 = vmatpush3.bf16.msra.mxu1 %v10144_v16 }
  0xe5   : > { %v10232_v59 = vpop.eup %10231  ;;  %10245 = vrsqrt.f32 %v960_v23  ;;  %v1037_v51 = vpack.c.bf16 %v1017_v50, %v1016_v58 }
  0xe6   : > { %v10234_v54 = vpop.eup %10233  ;;  %v1019_v55 = vmul.f32 %v10232_v59, %v10543_v13 }
  0xe7   : > { %9544 = vmatmul.mubr.msk.bf16.gmra.mxu1 %vm833_vm0, %v1037_v51  ;;  %v1018_v56 = vmul.f32 %v10234_v54, %v10546_v14 }
  0xe9   : > { %v10236_v57 = vpop.eup %10235  ;;  %v1038_v60 = vpack.c.bf16 %v1019_v55, %v1018_v56 }
  0xea   : > { %v10238_v61 = vpop.eup %10237  ;;  %v1021_v4 = vmul.f32 %v10236_v57, %v10555_v22 }
  0xeb   : > { %9547 = vmatprep.mubr.msk.bf16.mxu1 %vm833_vm0, %v1038_v60  ;;  %v1020_v5 = vmul.f32 %v10238_v61, %v10558_v28  ;;  %v10653_v28 = vld [vmem:[%s14688_s20] ss:$0 sm:$0xff] }
  0xec   : > { %1394 = vrot.lane.b32.xlu0 %v10653_v28, %s10262_s5  ;;  %1735 = vrot.lane.b32.xlu1 %v10653_v28, %s10263_s26 }
  0xed   : > { %v10240_v24 = vpop.eup %10239  ;;  %v1039_v62 = vpack.c.bf16 %v1021_v4, %v1020_v5 }
  0xee   : > { %v10242_v25 = vpop.eup %10241  ;;  %v1023_v63 = vmul.f32 %v10240_v24, %v10567_v35  ;;  %v10145_v35 = vld [vmem:[%s14838_s0 + $0x8] sm:$0xff]  }
  0xef   : > { %9548 = vmatmul.mubr.msk.bf16.gmra.mxu1 %vm833_vm0, %v1039_v62  ;;  %v1022_v13 = vmul.f32 %v10242_v25, %v10570_v36  ;;  %v10146_v36 = vld [vmem:[%s14838_s0] sm:$0xff]   ;;  %9591 = vmatprep.subr.bf16.mxu0 %v10145_v35 }
  0xf0   : > { %9592 = vmatpush3.bf16.msra.mxu0 %v10145_v35 }
  0xf1   : > { %v10244_v3 = vpop.eup %10243  ;;  %v1040_v14 = vpack.c.bf16 %v1023_v63, %v1022_v13  ;;  %9593 = vmatprep.subr.bf16.mxu0 %v10146_v36 }
  0xf2   : > { %v10246_v7 = vpop.eup %10245  ;;  %v1025_v0 = vmul.f32 %v10244_v3, %v10579_v41 }
  0xf3   : > { %9551 = vmatprep.mubr.msk.bf16.mxu1 %vm833_vm0, %v1040_v14  ;;  %v1024_v22 = vmul.f32 %v10246_v7, %v10582_v42 }
  0xf4   : > { %9594 = vmatpush3.bf16.msra.mxu0 %v10146_v36 }
  0xf5   : > { %v1041_v1 = vpack.c.bf16 %v1025_v0, %v1024_v22 }
  0xf7   : > { %9552 = vmatmul.mubr.msk.bf16.gmra.mxu1 %vm833_vm0, %v1041_v1 }
 0x180   : > { %v9525_v41 = vpop.f32.mrf.mxu0 }
 0x181   : > { %v1148_v42 = vadd.f32 %v9525_v41, %v10653_v28 }
 0x182   : > { %v1139_v2 = vpop.f32.mrf.mxu0 }
 0x183   : > { %v1140_v26 = vadd.f32 %v10653_v28, %v1139_v2  ;;  %v1300_v10 = vmul.f32 0.2, %v1148_v42  ;;  %vm1268_vm2 = vcmp.ge.f32.partialorder %v1148_v42, 0.0 }
 0x184   : > { %v9526_v27 = vpop.f32.mrf.mxu0 }
 0x185   : > { %v1151_v6 = vadd.f32 %v9526_v27, %v10653_v28  ;;  %v1298_v12 = vmul.f32 0.2, %v1140_v26  ;;  %vm1266_vm3 = vcmp.ge.f32.partialorder %v1140_v26, 0.0  ;;  %v1332_v21 = vsel %vm1268_vm2, %v1148_v42, %v1300_v10 }
 0x186   : > { %v1142_v11 = vpop.f32.mrf.mxu0 }
 0x187   : > { %vm1269_vm1 = vcmp.ge.f32.partialorder %v1151_v6, 0.0  ;;  %v1301_v15 = vmul.f32 0.2, %v1151_v6  ;;  %v1143_v19 = vadd.f32 %v10653_v28, %v1142_v11  ;;  %v1330_v31 = vsel %vm1266_vm3, %v1140_v26, %v1298_v12 }
 0x188   : > { %v9529_v8 = vpop.f32.mrf.mxu0 }
 0x189   : > { %v1333_v29 = vsel %vm1269_vm1, %v1151_v6, %v1301_v15  ;;  %vm1267_vm4 = vcmp.ge.f32.partialorder %v1143_v19, 0.0  ;;  %v1299_v20 = vmul.f32 0.2, %v1143_v19  ;;  %v1164_v30 = vadd.f32 %v9529_v8, %v10653_v28 }
 0x18a   : > { %v1155_v9 = vpop.f32.mrf.mxu0  ;;  %v1363_v34 = vpack.c.bf16 %v1333_v29, %v1332_v21 }
 0x18b   : > { %v1331_v32 = vsel %vm1267_vm4, %v1143_v19, %v1299_v20  ;;  %v1156_v33 = vadd.f32 %v10653_v28, %v1155_v9  ;;  %v1304_v49 = vmul.f32 0.2, %v1164_v30  ;;  %vm1272_vm6 = vcmp.ge.f32.partialorder %v1164_v30, 0.0 }
 0x18c   : > { %v1362_v48 = vpack.c.bf16 %v1331_v32, %v1330_v31  ;;  %v9530_v37 = vpop.f32.mrf.mxu0 }
 0x18d   : > { %vm1270_vm7 = vcmp.ge.f32.partialorder %v1156_v33, 0.0  ;;  %v1302_v38 = vmul.f32 0.2, %v1156_v33  ;;  %v1167_v16 = vadd.f32 %v9530_v37, %v10653_v28  ;;  %v1336_v43 = vsel %vm1272_vm6, %v1164_v30, %v1304_v49 }
 0x18e   : > { %v1158_v39 = vpop.f32.mrf.mxu0  ;;  %9559 = vmatprep.mubr.msk.bf16.mxu1 %vm1397_vm5, %v1362_v48 }
 0x18f   : > { %vm1273_vm8 = vcmp.ge.f32.partialorder %v1167_v16, 0.0  ;;  %v1305_v17 = vmul.f32 0.2, %v1167_v16  ;;  %v1159_v40 = vadd.f32 %v10653_v28, %v1158_v39  ;;  %9560 = vmatmul.mubr.msk.bf16.vlgmr.msra.gmra.mxu1 %vm1397_vm5, %v1363_v34  ;;  %v1334_v52 = vsel %vm1270_vm7, %v1156_v33, %v1302_v38 }
 0x190   : > { %v9533_v53 = vpop.f32.mrf.mxu0 }
 0x191   : > { %v1337_v44 = vsel %vm1273_vm8, %v1167_v16, %v1305_v17  ;;  %vm1271_vm9 = vcmp.ge.f32.partialorder %v1159_v40, 0.0  ;;  %v1303_v45 = vmul.f32 0.2, %v1159_v40  ;;  %v1180_v46 = vadd.f32 %v9533_v53, %v10653_v28 }
 0x192   : > { %v1171_v47 = vpop.f32.mrf.mxu0  ;;  %v1365_v18 = vpack.c.bf16 %v1337_v44, %v1336_v43 }
 0x193   : > { %v1335_v23 = vsel %vm1271_vm9, %v1159_v40, %v1303_v45  ;;  %v1172_v50 = vadd.f32 %v10653_v28, %v1171_v47  ;;  %v1308_v59 = vmul.f32 0.2, %v1180_v46  ;;  %vm1276_vm10 = vcmp.ge.f32.partialorder %v1180_v46, 0.0 }
 0x194   : > { %v1364_v58 = vpack.c.bf16 %v1335_v23, %v1334_v52  ;;  %v9534_v51 = vpop.f32.mrf.mxu0 }
 0x195   : > { %vm1274_vm11 = vcmp.ge.f32.partialorder %v1172_v50, 0.0  ;;  %v1306_v54 = vmul.f32 0.2, %v1172_v50  ;;  %v1183_v55 = vadd.f32 %v9534_v51, %v10653_v28  ;;  %v1340_v61 = vsel %vm1276_vm10, %v1180_v46, %v1308_v59 }
 0x196   : > { %v1174_v56 = vpop.f32.mrf.mxu0  ;;  %9563 = vmatprep.mubr.msk.bf16.mxu1 %vm1397_vm5, %v1364_v58 }
 0x197   : > { %vm1277_vm12 = vcmp.ge.f32.partialorder %v1183_v55, 0.0  ;;  %v1309_v57 = vmul.f32 0.2, %v1183_v55  ;;  %v1175_v60 = vadd.f32 %v10653_v28, %v1174_v56  ;;  %9564 = vmatmul.mubr.msk.bf16.gmra.mxu1 %vm1397_vm5, %v1365_v18  ;;  %v1338_v4 = vsel %vm1274_vm11, %v1172_v50, %v1306_v54 }
 0x198   : > { %v9537_v5 = vpop.f32.mrf.mxu0 }
 0x199   : > { %v1341_v24 = vsel %vm1277_vm12, %v1183_v55, %v1309_v57  ;;  %vm1275_vm13 = vcmp.ge.f32.partialorder %v1175_v60, 0.0  ;;  %v1307_v62 = vmul.f32 0.2, %v1175_v60  ;;  %v1196_v25 = vadd.f32 %v9537_v5, %v10653_v28 }
 0x19a   : > { %v1187_v63 = vpop.f32.mrf.mxu0  ;;  %v1367_v13 = vpack.c.bf16 %v1341_v24, %v1340_v61 }
 0x19b   : > { %v1339_v3 = vsel %vm1275_vm13, %v1175_v60, %v1307_v62  ;;  %v1188_v14 = vadd.f32 %v10653_v28, %v1187_v63  ;;  %v1312_v0 = vmul.f32 0.2, %v1196_v25  ;;  %vm1280_vm14 = vcmp.ge.f32.partialorder %v1196_v25, 0.0 }
 0x19c   : > { %v1366_v7 = vpack.c.bf16 %v1339_v3, %v1338_v4  ;;  %v9538_v22 = vpop.f32.mrf.mxu0 }
 0x19d   : > { %v1310_v1 = vmul.f32 0.2, %v1188_v14  ;;  %v1199_v35 = vadd.f32 %v9538_v22, %v10653_v28  ;;  %vm1278_vm15 = vcmp.ge.f32.partialorder %v1188_v14, 0.0  ;;  %v1344_v26 = vsel %vm1280_vm14, %v1196_v25, %v1312_v0 }
 0x19e   : > { %v1190_v36 = vpop.f32.mrf.mxu0  ;;  %9567 = vmatprep.mubr.msk.bf16.mxu1 %vm1397_vm5, %v1366_v7 }
 0x19f   : > { %vm1281_vm1 = vcmp.ge.f32.partialorder %v1199_v35, 0.0  ;;  %v1313_v41 = vmul.f32 0.2, %v1199_v35  ;;  %v1191_v42 = vadd.f32 %v10653_v28, %v1190_v36  ;;  %9568 = vmatmul.mubr.msk.bf16.gmra.mxu1 %vm1397_vm5, %v1367_v13  ;;  %v9541_v2 = vpop.f32.mrf.mxu1  ;;  %v1342_v6 = vsel %vm1278_vm15, %v1188_v14, %v1310_v1 }
 0x1a0   : > { %v1212_v27 = vadd.f32 %v9541_v2, %v10653_v28 }
 0x1a1   : > { %v1345_v10 = vsel %vm1281_vm1, %v1199_v35, %v1313_v41  ;;  %vm1279_vm2 = vcmp.ge.f32.partialorder %v1191_v42, 0.0  ;;  %v1311_v11 = vmul.f32 0.2, %v1191_v42  ;;  %v1203_v12 = vpop.f32.mrf.mxu1 }
 0x1a2   : > { %v1204_v15 = vadd.f32 %v10653_v28, %v1203_v12  ;;  %v1369_v19 = vpack.c.bf16 %v1345_v10, %v1344_v26  ;;  %v1316_v29 = vmul.f32 0.2, %v1212_v27  ;;  %vm1284_vm3 = vcmp.ge.f32.partialorder %v1212_v27, 0.0 }
 0x1a3   : > { %v1343_v8 = vsel %vm1279_vm2, %v1191_v42, %v1311_v11  ;;  %v9542_v20 = vpop.f32.mrf.mxu1 }
 0x1a4   : > { %v1368_v30 = vpack.c.bf16 %v1343_v8, %v1342_v6  ;;  %v1314_v9 = vmul.f32 0.2, %v1204_v15  ;;  %vm1282_vm4 = vcmp.ge.f32.partialorder %v1204_v15, 0.0  ;;  %v1215_v21 = vadd.f32 %v9542_v20, %v10653_v28 }
 0x1a5   : > { %v1206_v31 = vpop.f32.mrf.mxu1  ;;  %v1348_v33 = vsel %vm1284_vm3, %v1212_v27, %v1316_v29 }
 0x1a6   : > { %v1207_v32 = vadd.f32 %v10653_v28, %v1206_v31  ;;  %9571 = vmatprep.mubr.msk.bf16.mxu1 %vm1397_vm5, %v1368_v30  ;;  %vm1285_vm6 = vcmp.ge.f32.partialorder %v1215_v21, 0.0  ;;  %v1317_v34 = vmul.f32 0.2, %v1215_v21  ;;  %v1346_v49 = vsel %vm1282_vm4, %v1204_v15, %v1314_v9 }
 0x1a7   : > { %9572 = vmatmul.mubr.msk.bf16.gmra.mxu1 %vm1397_vm5, %v1369_v19  ;;  %v9545_v48 = vpop.f32.mrf.mxu1 }
 0x1a8   : > { %vm1283_vm7 = vcmp.ge.f32.partialorder %v1207_v32, 0.0  ;;  %v1315_v37 = vmul.f32 0.2, %v1207_v32  ;;  %v1228_v38 = vadd.f32 %v9545_v48, %v10653_v28  ;;  %v1349_v16 = vsel %vm1285_vm6, %v1215_v21, %v1317_v34  ;;  %v10152_v34 = vld [vmem:[%s14674_s6 + $0x4] ss:$20 sps:$4 sm:$0xff]  }
 0x1a9   : > { %v1219_v39 = vpop.f32.mrf.mxu1  ;;  %v1371_v40 = vpack.c.bf16 %v1349_v16, %v1348_v33  ;;  %v10149_v33 = vld [vmem:[%s14674_s6 + $0x2c] ss:$20 sps:$4 sm:$0xff]   ;;  %v10155_v48 = vld [vmem:[%s14674_s6 + $0x34] ss:$20 sps:$4 sm:$0xff]  }
 0x1aa   : > { %v1347_v17 = vsel %vm1283_vm7, %v1207_v32, %v1315_v37  ;;  %v1320_v52 = vmul.f32 0.2, %v1228_v38  ;;  %v1220_v53 = vadd.f32 %v10653_v28, %v1219_v39  ;;  %vm1288_vm8 = vcmp.ge.f32.partialorder %v1228_v38, 0.0  ;;  %v10147_v32 = vld [vmem:[%s14674_s6 + $0x28] ss:$20 sps:$4 sm:$0xff]   ;;  %2231 = vmatprep.subr.bf16.mxu1 %v10149_v33  ;;  %2424 = vmatprep.subr.bf16.mxu0 %v10155_v48 }
 0x1ab   : > { %v1370_v43 = vpack.c.bf16 %v1347_v17, %v1346_v49  ;;  %v9546_v44 = vpop.f32.mrf.mxu1  ;;  %2232 = vmatpush1.bf16.msra.mxu1 %v10147_v32  ;;  %v10150_v49 = vld [vmem:[%s14674_s6] ss:$20 sps:$4 sm:$0xff]  }
 0x1ac   : > { %v1231_v45 = vadd.f32 %v9546_v44, %v10653_v28  ;;  %vm1286_vm9 = vcmp.ge.f32.partialorder %v1220_v53, 0.0  ;;  %v1318_v46 = vmul.f32 0.2, %v1220_v53  ;;  %v1352_v50 = vsel %vm1288_vm8, %v1228_v38, %v1320_v52  ;;  %2233 = vmatprep.subr.bf16.mxu1 %v10152_v34  ;;  %v10728_v38 = vpop.permute.xlu0 %1394 }
 0x1ad   : > { %v1222_v47 = vpop.f32.mrf.mxu1  ;;  %9575 = vmatprep.mubr.msk.bf16.mxu1 %vm1397_vm5, %v1370_v43 }
 0x1ae   : > { %vm1289_vm10 = vcmp.ge.f32.partialorder %v1231_v45, 0.0  ;;  %v1321_v18 = vmul.f32 0.2, %v1231_v45  ;;  %v1223_v23 = vadd.f32 %v10653_v28, %v1222_v47  ;;  %v1350_v58 = vsel %vm1286_vm9, %v1220_v53, %v1318_v46 }
 0x1af   : > { %9576 = vmatmul.mubr.msk.bf16.gmra.mxu1 %vm1397_vm5, %v1371_v40  ;;  %v9549_v59 = vpop.f32.mrf.mxu1 }
 0x1b0   : > { %v1353_v51 = vsel %vm1289_vm10, %v1231_v45, %v1321_v18  ;;  %vm1287_vm11 = vcmp.ge.f32.partialorder %v1223_v23, 0.0  ;;  %v1319_v54 = vmul.f32 0.2, %v1223_v23  ;;  %v1244_v55 = vadd.f32 %v9549_v59, %v10653_v28  ;;  %2234 = vmatpush1.bf16.msra.mxu1 %v10150_v49 }
 0x1b1   : > { %v1235_v56 = vpop.f32.mrf.mxu1  ;;  %v1373_v61 = vpack.c.bf16 %v1353_v51, %v1352_v50 }
 0x1b2   : > { %v1351_v57 = vsel %vm1287_vm11, %v1223_v23, %v1319_v54  ;;  %v1236_v60 = vadd.f32 %v10653_v28, %v1235_v56  ;;  %v1324_v5 = vmul.f32 0.2, %v1244_v55  ;;  %vm1292_vm12 = vcmp.ge.f32.partialorder %v1244_v55, 0.0 }
 0x1b3   : > { %v1372_v4 = vpack.c.bf16 %v1351_v57, %v1350_v58  ;;  %v9550_v24 = vpop.f32.mrf.mxu1  ;;  %v10153_v57 = vld [vmem:[%s14674_s6 + $0x30] ss:$20 sps:$4 sm:$0xff]  }
 0x1b4   : > { %vm1290_vm13 = vcmp.ge.f32.partialorder %v1236_v60, 0.0  ;;  %v1322_v62 = vmul.f32 0.2, %v1236_v60  ;;  %v1247_v25 = vadd.f32 %v9550_v24, %v10653_v28  ;;  %v1356_v14 = vsel %vm1292_vm12, %v1244_v55, %v1324_v5 }
 0x1b5   : > { %v1238_v63 = vpop.f32.mrf.mxu1  ;;  %9579 = vmatprep.mubr.msk.bf16.mxu1 %vm1397_vm5, %v1372_v4 }
 0x1b6   : > { %vm1293_vm14 = vcmp.ge.f32.partialorder %v1247_v25, 0.0  ;;  %v1325_v13 = vmul.f32 0.2, %v1247_v25  ;;  %v1239_v3 = vadd.f32 %v10653_v28, %v1238_v63  ;;  %v1354_v7 = vsel %vm1290_vm13, %v1236_v60, %v1322_v62 }
 0x1b7   : > { %9580 = vmatmul.mubr.msk.bf16.gmra.mxu1 %vm1397_vm5, %v1373_v61  ;;  %v9553_v0 = vpop.f32.mrf.mxu1 }
 0x1b8   : > { %v1357_v22 = vsel %vm1293_vm14, %v1247_v25, %v1325_v13  ;;  %vm1291_vm15 = vcmp.ge.f32.partialorder %v1239_v3, 0.0  ;;  %v1323_v1 = vmul.f32 0.2, %v1239_v3  ;;  %v1260_v35 = vadd.f32 %v9553_v0, %v10653_v28 }
 0x1b9   : > { %v1251_v36 = vpop.f32.mrf.mxu1  ;;  %v1375_v2 = vpack.c.bf16 %v1357_v22, %v1356_v14 }
 0x1ba   : > { %v1355_v41 = vsel %vm1291_vm15, %v1239_v3, %v1323_v1  ;;  %v1252_v42 = vadd.f32 %v10653_v28, %v1251_v36  ;;  %v1328_v27 = vmul.f32 0.2, %v1260_v35  ;;  %vm1296_vm1 = vcmp.ge.f32.partialorder %v1260_v35, 0.0 }
 0x1bb   : > { %v1374_v26 = vpack.c.bf16 %v1355_v41, %v1354_v7  ;;  %v9554_v6 = vpop.f32.mrf.mxu1 }
 0x1bc   : > { %v1326_v10 = vmul.f32 0.2, %v1252_v42  ;;  %v1263_v11 = vadd.f32 %v9554_v6, %v10653_v28  ;;  %vm1294_vm2 = vcmp.ge.f32.partialorder %v1252_v42, 0.0  ;;  %v1360_v8 = vsel %vm1296_vm1, %v1260_v35, %v1328_v27 }
 0x1bd   : > { %v1254_v12 = vpop.f32.mrf.mxu1  ;;  %9583 = vmatprep.mubr.msk.bf16.mxu1 %vm1397_vm5, %v1374_v26 }
 0x1be   : > { %vm1297_vm3 = vcmp.ge.f32.partialorder %v1263_v11, 0.0  ;;  %v1329_v15 = vmul.f32 0.2, %v1263_v11  ;;  %v1255_v19 = vadd.f32 %v10653_v28, %v1254_v12  ;;  %v1358_v29 = vsel %vm1294_vm2, %v1252_v42, %v1326_v10 }
 0x1bf   : > { %9584 = vmatmul.mubr.msk.bf16.gmra.mxu1 %vm1397_vm5, %v1375_v2 }
 0x1c0   : > { %v1361_v20 = vsel %vm1297_vm3, %v1263_v11, %v1329_v15  ;;  %vm1295_vm4 = vcmp.ge.f32.partialorder %v1255_v19, 0.0  ;;  %v1327_v30 = vmul.f32 0.2, %v1255_v19 }
 0x1c1   : > { %v1377_v21 = vpack.c.bf16 %v1361_v20, %v1360_v8 }
 0x1c2   : > { %v1359_v9 = vsel %vm1295_vm4, %v1255_v19, %v1327_v30 }
 0x1c3   : > { %v1376_v31 = vpack.c.bf16 %v1359_v9, %v1358_v29 }
 0x1c5   : > { %9587 = vmatprep.mubr.msk.bf16.mxu1 %vm1397_vm5, %v1376_v31 }
 0x1c7   : > { %9588 = vmatmul.mubr.msk.bf16.gmra.mxu1 %vm1397_vm5, %v1377_v21 }
 0x24f   : > { %v9561_v37 = vpop.f32.mrf.mxu1 }
 0x250   : > { %v1489_v39 = vadd.f32 %v9561_v37, %v10728_v38 }
 0x251   : > { %v1480_v28 = vpop.f32.mrf.mxu1 }
 0x252   : > { %v1481_v16 = vadd.f32 %v1480_v28, %v10728_v38  ;;  %v1641_v45 = vmul.f32 0.2, %v1489_v39  ;;  %vm1609_vm8 = vcmp.ge.f32.partialorder %v1489_v39, 0.0 }
 0x253   : > { %v9562_v17 = vpop.f32.mrf.mxu1 }
 0x254   : > { %v1492_v40 = vadd.f32 %v9562_v17, %v10728_v38  ;;  %v1639_v52 = vmul.f32 0.2, %v1481_v16  ;;  %vm1607_vm7 = vcmp.ge.f32.partialorder %v1481_v16, 0.0  ;;  %v1673_v51 = vsel %vm1609_vm8, %v1489_v39, %v1641_v45 }
 0x255   : > { %v1483_v43 = vpop.f32.mrf.mxu1 }
 0x256   : > { %vm1610_vm6 = vcmp.ge.f32.partialorder %v1492_v40, 0.0  ;;  %v1642_v53 = vmul.f32 0.2, %v1492_v40  ;;  %v1484_v44 = vadd.f32 %v1483_v43, %v10728_v38  ;;  %v1671_v50 = vsel %vm1607_vm7, %v1481_v16, %v1639_v52 }
 0x257   : > { %v9565_v46 = vpop.f32.mrf.mxu1 }
 0x258   : > { %vm1608_vm9 = vcmp.ge.f32.partialorder %v1484_v44, 0.0  ;;  %v1640_v47 = vmul.f32 0.2, %v1484_v44  ;;  %v1674_v18 = vsel %vm1610_vm6, %v1492_v40, %v1642_v53  ;;  %v1505_v55 = vadd.f32 %v9565_v46, %v10728_v38 }
 0x259   : > { %v1496_v23 = vpop.f32.mrf.mxu1  ;;  %v1704_v60 = vpack.c.bf16 %v1674_v18, %v1673_v51 }
 0x25a   : > { %v1672_v58 = vsel %vm1608_vm9, %v1484_v44, %v1640_v47  ;;  %v1497_v59 = vadd.f32 %v1496_v23, %v10728_v38  ;;  %v1645_v25 = vmul.f32 0.2, %v1505_v55  ;;  %vm1613_vm12 = vcmp.ge.f32.partialorder %v1505_v55, 0.0 }
 0x25b   : > { %v1703_v54 = vpack.c.bf16 %v1672_v58, %v1671_v50  ;;  %v9566_v56 = vpop.f32.mrf.mxu1 }
 0x25c   : > { %v1508_v61 = vadd.f32 %v9566_v56, %v10728_v38  ;;  %v1643_v5 = vmul.f32 0.2, %v1497_v59  ;;  %vm1611_vm11 = vcmp.ge.f32.partialorder %v1497_v59, 0.0  ;;  %v1677_v1 = vsel %vm1613_vm12, %v1505_v55, %v1645_v25 }
 0x25d   : > { %v1499_v4 = vpop.f32.mrf.mxu1  ;;  %9595 = vmatprep.mubr.msk.bf16.mxu0 %vm1397_vm5, %v1703_v54 }
 0x25e   : > { %vm1614_vm10 = vcmp.ge.f32.partialorder %v1508_v61, 0.0  ;;  %v1646_v24 = vmul.f32 0.2, %v1508_v61  ;;  %v1500_v62 = vadd.f32 %v1499_v4, %v10728_v38  ;;  %9596 = vmatmul.mubr.msk.bf16.vlgmr.msra.gmra.mxu0 %vm1397_vm5, %v1704_v60  ;;  %v1675_v7 = vsel %vm1611_vm11, %v1497_v59, %v1643_v5 }
 0x25f   : > { %v9569_v63 = vpop.f32.mrf.mxu1  ;;  %2425 = vmatpush1.bf16.msra.mxu0 %v10153_v57 }
 0x260   : > { %vm1612_vm13 = vcmp.ge.f32.partialorder %v1500_v62, 0.0  ;;  %v1644_v13 = vmul.f32 0.2, %v1500_v62  ;;  %v1678_v3 = vsel %vm1614_vm10, %v1508_v61, %v1646_v24  ;;  %v1521_v36 = vadd.f32 %v9569_v63, %v10728_v38 }
 0x261   : > { %v1512_v14 = vpop.f32.mrf.mxu1  ;;  %v1706_v42 = vpack.c.bf16 %v1678_v3, %v1677_v1 }
 0x262   : > { %v1676_v0 = vsel %vm1612_vm13, %v1500_v62, %v1644_v13  ;;  %v1513_v22 = vadd.f32 %v1512_v14, %v10728_v38  ;;  %v1649_v11 = vmul.f32 0.2, %v1521_v36  ;;  %vm1617_vm1 = vcmp.ge.f32.partialorder %v1521_v36, 0.0 }
 0x263   : > { %v1705_v35 = vpack.c.bf16 %v1676_v0, %v1675_v7  ;;  %v9570_v41 = vpop.f32.mrf.mxu1 }
 0x264   : > { %v1524_v2 = vadd.f32 %v9570_v41, %v10728_v38  ;;  %v1647_v27 = vmul.f32 0.2, %v1513_v22  ;;  %vm1615_vm15 = vcmp.ge.f32.partialorder %v1513_v22, 0.0  ;;  %v1681_v9 = vsel %vm1617_vm1, %v1521_v36, %v1649_v11 }
 0x265   : > { %v1515_v26 = vpop.f32.mrf.mxu1  ;;  %9599 = vmatprep.mubr.msk.bf16.mxu0 %vm1397_vm5, %v1705_v35 }
 0x266   : > { %vm1618_vm14 = vcmp.ge.f32.partialorder %v1524_v2, 0.0  ;;  %v1650_v6 = vmul.f32 0.2, %v1524_v2  ;;  %v1516_v10 = vadd.f32 %v1515_v26, %v10728_v38  ;;  %9600 = vmatmul.mubr.msk.bf16.gmra.mxu0 %vm1397_vm5, %v1706_v42  ;;  %v1679_v29 = vsel %vm1615_vm15, %v1513_v22, %v1647_v27 }
 0x267   : > { %v9573_v12 = vpop.f32.mrf.mxu1 }
 0x268   : > { %vm1616_vm2 = vcmp.ge.f32.partialorder %v1516_v10, 0.0  ;;  %v1648_v15 = vmul.f32 0.2, %v1516_v10  ;;  %v1682_v19 = vsel %vm1618_vm14, %v1524_v2, %v1650_v6  ;;  %v1537_v31 = vadd.f32 %v9573_v12, %v10728_v38 }
 0x269   : > { %v1528_v8 = vpop.f32.mrf.mxu1  ;;  %v1708_v33 = vpack.c.bf16 %v1682_v19, %v1681_v9 }
 0x26a   : > { %v1680_v20 = vsel %vm1616_vm2, %v1516_v10, %v1648_v15  ;;  %v1529_v30 = vadd.f32 %v1528_v8, %v10728_v38  ;;  %v1653_v16 = vmul.f32 0.2, %v1537_v31  ;;  %vm1621_vm6 = vcmp.ge.f32.partialorder %v1537_v31, 0.0 }
 0x26b   : > { %v1707_v21 = vpack.c.bf16 %v1680_v20, %v1679_v29  ;;  %v9574_v32 = vpop.f32.mrf.mxu1 }
 0x26c   : > { %v1540_v34 = vadd.f32 %v9574_v32, %v10728_v38  ;;  %v1651_v49 = vmul.f32 0.2, %v1529_v30  ;;  %vm1619_vm4 = vcmp.ge.f32.partialorder %v1529_v30, 0.0  ;;  %v1685_v45 = vsel %vm1621_vm6, %v1537_v31, %v1653_v16 }
 0x26d   : > { %v1531_v48 = vpop.f32.mrf.mxu1  ;;  %9603 = vmatprep.mubr.msk.bf16.mxu0 %vm1397_vm5, %v1707_v21 }
 0x26e   : > { %vm1622_vm3 = vcmp.ge.f32.partialorder %v1540_v34, 0.0  ;;  %v1654_v37 = vmul.f32 0.2, %v1540_v34  ;;  %v1532_v28 = vadd.f32 %v1531_v48, %v10728_v38  ;;  %9604 = vmatmul.mubr.msk.bf16.gmra.mxu0 %vm1397_vm5, %v1708_v33  ;;  %v1683_v52 = vsel %vm1619_vm4, %v1529_v30, %v1651_v49 }
 0x26f   : > { %v9577_v39 = vpop.f32.mrf.mxu1 }
 0x270   : > { %vm1620_vm7 = vcmp.ge.f32.partialorder %v1532_v28, 0.0  ;;  %v1652_v17 = vmul.f32 0.2, %v1532_v28  ;;  %v1686_v40 = vsel %vm1622_vm3, %v1540_v34, %v1654_v37  ;;  %v1553_v47 = vadd.f32 %v9577_v39, %v10728_v38 }
 0x271   : > { %v1544_v43 = vpop.f32.mrf.mxu1  ;;  %v1710_v23 = vpack.c.bf16 %v1686_v40, %v1685_v45 }
 0x272   : > { %v1684_v53 = vsel %vm1620_vm7, %v1532_v28, %v1652_v17  ;;  %v1545_v44 = vadd.f32 %v1544_v43, %v10728_v38  ;;  %v1657_v55 = vmul.f32 0.2, %v1553_v47  ;;  %vm1625_vm10 = vcmp.ge.f32.partialorder %v1553_v47, 0.0 }
 0x273   : > { %v1709_v46 = vpack.c.bf16 %v1684_v53, %v1683_v52  ;;  %v9578_v18 = vpop.f32.mrf.mxu1 }
 0x274   : > { %v1556_v50 = vadd.f32 %v9578_v18, %v10728_v38  ;;  %v1655_v59 = vmul.f32 0.2, %v1545_v44  ;;  %vm1623_vm9 = vcmp.ge.f32.partialorder %v1545_v44, 0.0  ;;  %v1689_v62 = vsel %vm1625_vm10, %v1553_v47, %v1657_v55 }
 0x275   : > { %v1547_v58 = vpop.f32.mrf.mxu1  ;;  %9607 = vmatprep.mubr.msk.bf16.mxu0 %vm1397_vm5, %v1709_v46  ;;  %v10264_v55 = vmov 0  }
 0x276   : > { %vm1626_vm8 = vcmp.ge.f32.partialorder %v1556_v50, 0.0  ;;  %v1658_v51 = vmul.f32 0.2, %v1556_v50  ;;  %v1548_v54 = vadd.f32 %v1547_v58, %v10728_v38  ;;  %9608 = vmatmul.mubr.msk.bf16.gmra.mxu0 %vm1397_vm5, %v1710_v23  ;;  %v1687_v4 = vsel %vm1623_vm9, %v1545_v44, %v1655_v59  ;;  %2251 = vmatprep.mubr.bf16.mxu1 %v10264_v55 }
 0x277   : > { %v9581_v56 = vpop.f32.mrf.mxu1 }
 0x278   : > { %vm1624_vm11 = vcmp.ge.f32.partialorder %v1548_v54, 0.0  ;;  %v1656_v57 = vmul.f32 0.2, %v1548_v54  ;;  %v1690_v60 = vsel %vm1626_vm8, %v1556_v50, %v1658_v51  ;;  %v1569_v63 = vadd.f32 %v9581_v56, %v10728_v38  ;;  %v10159_v56 = vld [vmem:[%s14675_s7] sm:$0xff]  }
 0x279   : > { %v1560_v61 = vpop.f32.mrf.mxu1  ;;  %v1712_v3 = vpack.c.bf16 %v1690_v60, %v1689_v62 }
 0x27a   : > { %v1688_v5 = vsel %vm1624_vm11, %v1548_v54, %v1656_v57  ;;  %v1561_v24 = vadd.f32 %v1560_v61, %v10728_v38  ;;  %v1661_v35 = vmul.f32 0.2, %v1569_v63  ;;  %vm1629_vm14 = vcmp.ge.f32.partialorder %v1569_v63, 0.0  ;;  %v10156_v54 = vld [vmem:[%s14674_s6 + $0x8] ss:$20 sps:$4 sm:$0xff]  }
 0x27b   : > { %v1711_v25 = vpack.c.bf16 %v1688_v5, %v1687_v4  ;;  %v9582_v13 = vpop.f32.mrf.mxu1  ;;  %v2073_v57 = vlaneseq  ;;  %v2071_v4 = vld [vmem:[%s14688_s20] sm:$0x3f] }
 0x27c   : > { %v1572_v14 = vadd.f32 %v9582_v13, %v10728_v38  ;;  %v1659_v0 = vmul.f32 0.2, %v1561_v24  ;;  %vm1627_vm13 = vcmp.ge.f32.partialorder %v1561_v24, 0.0  ;;  %v1693_v10 = vsel %vm1629_vm14, %v1569_v63, %v1661_v35  ;;  %v10801_v63 = vpop.permute.xlu1 %1735 }
 0x27d   : > { %v1563_v7 = vpop.f32.mrf.mxu1  ;;  %9611 = vmatprep.mubr.msk.bf16.mxu0 %vm1397_vm5, %v1711_v25  ;;  %v10792_v60 = vshrl.u32 %v2073_v57, 7 }
 0x27e   : > { %vm1630_vm12 = vcmp.ge.f32.partialorder %v1572_v14, 0.0  ;;  %v1662_v22 = vmul.f32 0.2, %v1572_v14  ;;  %v1564_v1 = vadd.f32 %v1563_v7, %v10728_v38  ;;  %9612 = vmatmul.mubr.msk.bf16.gmra.mxu0 %vm1397_vm5, %v1712_v3  ;;  %v1691_v26 = vsel %vm1627_vm13, %v1561_v24, %v1659_v0  ;;  %v10160_v7 = vld [vmem:[%s14674_s6 + $0x38] ss:$20 sps:$4 sm:$0xff]  }
 0x27f   : > { %v9585_v36 = vpop.f32.mrf.mxu1  ;;  %14839 = vst [vmem:[#allocation2_spill] sm:$0xff] %v10792_v60  ;;  %v2075_v61 = vsub.s32 0, %v10792_v60  ;;  %v2079_v24 = vsub.s32 1, %v10792_v60  ;;  %9627 = vmatprep.subr.bf16.mxu1 %v10160_v7 }
 0x280   : > { %vm1628_vm15 = vcmp.ge.f32.partialorder %v1564_v1, 0.0  ;;  %v1660_v41 = vmul.f32 0.2, %v1564_v1  ;;  %v1694_v42 = vsel %vm1630_vm12, %v1572_v14, %v1662_v22  ;;  %v1585_v12 = vadd.f32 %v9585_v36, %v10728_v38 }
 0x281   : > { %v1576_v2 = vpop.f32.mrf.mxu1  ;;  %v1714_v19 = vpack.c.bf16 %v1694_v42, %v1693_v10  ;;  %v2076_v5 = vrot.slane %v2071_v4, %v2075_v61  ;;  %v2080_v62 = vrot.slane %v2071_v4, %v2079_v24 }
 0x282   : > { %v1692_v27 = vsel %vm1628_vm15, %v1564_v1, %v1660_v41  ;;  %v1577_v6 = vadd.f32 %v1576_v2, %v10728_v38  ;;  %v1665_v21 = vmul.f32 0.2, %v1585_v12  ;;  %vm1633_vm3 = vcmp.ge.f32.partialorder %v1585_v12, 0.0 }
 0x283   : > { %v1713_v11 = vpack.c.bf16 %v1692_v27, %v1691_v26  ;;  %v9586_v15 = vpop.f32.mrf.mxu1  ;;  %2149 = vrot.lane.b32.xlu1 %v2076_v5, %s10265_s24 }
 0x284   : > { %v1588_v8 = vadd.f32 %v9586_v15, %v10728_v38  ;;  %v1663_v20 = vmul.f32 0.2, %v1577_v6  ;;  %vm1631_vm2 = vcmp.ge.f32.partialorder %v1577_v6, 0.0  ;;  %v1697_v28 = vsel %vm1633_vm3, %v1585_v12, %v1665_v21  ;;  %v10161_v12 = vld [vmem:[%s14674_s6 + $0x10] ss:$20 sps:$4 sm:$0xff]  }
 0x285   : > { %v1579_v29 = vpop.f32.mrf.mxu1  ;;  %9615 = vmatprep.mubr.msk.bf16.mxu0 %vm1397_vm5, %v1713_v11 }
 0x286   : > { %vm1634_vm1 = vcmp.ge.f32.partialorder %v1588_v8, 0.0  ;;  %v1666_v30 = vmul.f32 0.2, %v1588_v8  ;;  %v1580_v9 = vadd.f32 %v1579_v29, %v10728_v38  ;;  %9616 = vmatmul.mubr.msk.bf16.gmra.mxu0 %vm1397_vm5, %v1714_v19  ;;  %v1695_v48 = vsel %vm1631_vm2, %v1577_v6, %v1663_v20 }
 0x287   : > { %v9589_v31 = vpop.f32.mrf.mxu1  ;;  %2151 = vrot.lane.b32.xlu1 %v2080_v62, %s10265_s24 }
 0x288   : > { %vm1632_vm4 = vcmp.ge.f32.partialorder %v1580_v9, 0.0  ;;  %v1664_v32 = vmul.f32 0.2, %v1580_v9  ;;  %v1698_v33 = vsel %vm1634_vm1, %v1588_v8, %v1666_v30  ;;  %v1601_v39 = vadd.f32 %v9589_v31, %v10728_v38 }
 0x289   : > { %v1592_v34 = vpop.f32.mrf.mxu1  ;;  %v1716_v40 = vpack.c.bf16 %v1698_v33, %v1697_v28 }
 0x28a   : > { %v1696_v49 = vsel %vm1632_vm4, %v1580_v9, %v1664_v32  ;;  %v1593_v37 = vadd.f32 %v1592_v34, %v10728_v38  ;;  %v1669_v46 = vmul.f32 0.2, %v1601_v39  ;;  %vm1637_vm8 = vcmp.ge.f32.partialorder %v1601_v39, 0.0 }
 0x28b   : > { %v1715_v16 = vpack.c.bf16 %v1696_v49, %v1695_v48  ;;  %v9590_v17 = vpop.f32.mrf.mxu1 }
 0x28c   : > { %v1604_v43 = vadd.f32 %v9590_v17, %v10728_v38  ;;  %v1667_v53 = vmul.f32 0.2, %v1593_v37  ;;  %vm1635_vm7 = vcmp.ge.f32.partialorder %v1593_v37, 0.0  ;;  %v1701_v58 = vsel %vm1637_vm8, %v1601_v39, %v1669_v46 }
 0x28d   : > { %v1595_v52 = vpop.f32.mrf.mxu1  ;;  %9619 = vmatprep.mubr.msk.bf16.mxu0 %vm1397_vm5, %v1715_v16 }
 0x28e   : > { %vm1638_vm6 = vcmp.ge.f32.partialorder %v1604_v43, 0.0  ;;  %v1670_v44 = vmul.f32 0.2, %v1604_v43  ;;  %v1596_v45 = vadd.f32 %v1595_v52, %v10728_v38  ;;  %9620 = vmatmul.mubr.msk.bf16.gmra.mxu0 %vm1397_vm5, %v1716_v40  ;;  %v1699_v23 = vsel %vm1635_vm7, %v1593_v37, %v1667_v53  ;;  %v10158_v38 = vld [vmem:[%s14674_s6 + $0xc] ss:$20 sps:$4 sm:$0xff]  }
 0x28f   : > { %2426 = vmatprep.subr.bf16.mxu0 %v10158_v38 }
 0x290   : > { %vm1636_vm9 = vcmp.ge.f32.partialorder %v1596_v45, 0.0  ;;  %v1668_v47 = vmul.f32 0.2, %v1596_v45  ;;  %v1702_v18 = vsel %vm1638_vm6, %v1604_v43, %v1670_v44  ;;  %2427 = vmatpush1.bf16.msra.mxu0 %v10156_v54 }
 0x291   : > { %v1718_v51 = vpack.c.bf16 %v1702_v18, %v1701_v58  ;;  %9663 = vmatprep.subr.bf16.mxu0 %v10159_v56 }
 0x292   : > { %v1700_v50 = vsel %vm1636_vm9, %v1596_v45, %v1668_v47 }
 0x293   : > { %v1717_v59 = vpack.c.bf16 %v1700_v50, %v1699_v23 }
 0x295   : > { %9623 = vmatprep.mubr.msk.bf16.mxu0 %vm1397_vm5, %v1717_v59 }
 0x296   : > { %9624 = vmatmul.mubr.msk.bf16.gmra.mxu0 %vm1397_vm5, %v1718_v51 }
 0x297   : > { %2444 = vmatprep.mubr.bf16.mxu0 %v10264_v55 }
 0x31e   : > { %v9597_v25 = vpop.f32.mrf.mxu0 }
 0x31f   : > { %v1829_v2 = vadd.f32 %v9597_v25, %v10801_v63 }
 0x320   : > { %v1820_v13 = vpop.f32.mrf.mxu0 }
 0x321   : > { %v1821_v3 = vadd.f32 %v1820_v13, %v10801_v63  ;;  %v1981_v19 = vmul.f32 0.2, %v1829_v2  ;;  %vm1949_vm13 = vcmp.ge.f32.partialorder %v1829_v2, 0.0 }
 0x322   : > { %v9598_v14 = vpop.f32.mrf.mxu0 }
 0x323   : > { %v1979_v22 = vmul.f32 0.2, %v1821_v3  ;;  %vm1947_vm10 = vcmp.ge.f32.partialorder %v1821_v3, 0.0  ;;  %v1832_v36 = vadd.f32 %v9598_v14, %v10801_v63  ;;  %v2013_v30 = vsel %vm1949_vm13, %v1829_v2, %v1981_v19 }
 0x324   : > { %v1823_v0 = vpop.f32.mrf.mxu0 }
 0x325   : > { %v1824_v1 = vadd.f32 %v1823_v0, %v10801_v63  ;;  %v2011_v26 = vsel %vm1947_vm10, %v1821_v3, %v1979_v22  ;;  %v1982_v11 = vmul.f32 0.2, %v1832_v36  ;;  %vm1950_vm12 = vcmp.ge.f32.partialorder %v1832_v36, 0.0 }
 0x326   : > { %v9601_v35 = vpop.f32.mrf.mxu0 }
 0x327   : > { %vm1948_vm11 = vcmp.ge.f32.partialorder %v1824_v1, 0.0  ;;  %v1980_v41 = vmul.f32 0.2, %v1824_v1  ;;  %v2014_v8 = vsel %vm1950_vm12, %v1832_v36, %v1982_v11  ;;  %v1845_v37 = vadd.f32 %v9601_v35, %v10801_v63 }
 0x328   : > { %v1836_v42 = vpop.f32.mrf.mxu0  ;;  %v10823_v21 = vpack.c.bf16 %v2014_v8, %v2013_v30 }
 0x329   : > { %v2012_v27 = vsel %vm1948_vm11, %v1824_v1, %v1980_v41  ;;  %v1837_v9 = vadd.f32 %v1836_v42, %v10801_v63  ;;  %v1985_v40 = vmul.f32 0.2, %v1845_v37  ;;  %vm1953_vm2 = vcmp.ge.f32.partialorder %v1845_v37, 0.0 }
 0x32a   : > { %v10810_v6 = vpack.c.bf16 %v2012_v27, %v2011_v26  ;;  %v9602_v10 = vpop.f32.mrf.mxu0 }
 0x32b   : > { %v1983_v33 = vmul.f32 0.2, %v1837_v9  ;;  %vm1951_vm15 = vcmp.ge.f32.partialorder %v1837_v9, 0.0  ;;  %v1848_v34 = vadd.f32 %v9602_v10, %v10801_v63  ;;  %v2017_v44 = vsel %vm1953_vm2, %v1845_v37, %v1985_v40 }
 0x32c   : > { %v1839_v15 = vpop.f32.mrf.mxu0  ;;  %8937 = vmatmul.mubr.msk.bf16.vlgmr.msra.gmra.mxu1 %vm1397_vm5, %v10810_v6  ;;  %8953 = vmatmul.mubr.msk.bf16.vlgmr.msra.gmra.mxu0 %vm1397_vm5, %v10810_v6 }
 0x32d   : > { %2261 = vmatprep.mubr.bf16.mxu1 %v10264_v55  ;;  %2454 = vmatprep.mubr.bf16.mxu0 %v10264_v55  ;;  %v1840_v29 = vadd.f32 %v1839_v15, %v10801_v63  ;;  %v2015_v28 = vsel %vm1951_vm15, %v1837_v9, %v1983_v33  ;;  %v1986_v39 = vmul.f32 0.2, %v1848_v34  ;;  %vm1954_vm1 = vcmp.ge.f32.partialorder %v1848_v34, 0.0 }
 0x32e   : > { %9664 = vmatpush3.bf16.msra.mxu0 %v10159_v56  ;;  %9628 = vmatpush3.bf16.msra.mxu1 %v10160_v7  ;;  %v9605_v20 = vpop.f32.mrf.mxu0 }
 0x32f   : > { %9629 = vmatprep.subr.bf16.mxu1 %v10161_v12  ;;  %v1984_v31 = vmul.f32 0.2, %v1840_v29  ;;  %vm1952_vm14 = vcmp.ge.f32.partialorder %v1840_v29, 0.0  ;;  %v2018_v43 = vsel %vm1954_vm1, %v1848_v34, %v1986_v39  ;;  %v1861_v51 = vadd.f32 %v9605_v20, %v10801_v63 }
 0x330   : > { %v1852_v32 = vpop.f32.mrf.mxu0  ;;  %v10843_v46 = vpack.c.bf16 %v2018_v43, %v2017_v44 }
 0x331   : > { %v2016_v48 = vsel %vm1952_vm14, %v1840_v29, %v1984_v31  ;;  %v1853_v45 = vadd.f32 %v1852_v32, %v10801_v63  ;;  %v1989_v61 = vmul.f32 0.2, %v1861_v51  ;;  %vm1957_vm7 = vcmp.ge.f32.partialorder %v1861_v51, 0.0 }
 0x332   : > { %9630 = vmatpush3.bf16.msra.mxu1 %v10161_v12  ;;  %v9606_v49 = vpop.f32.mrf.mxu0  ;;  %v10833_v16 = vpack.c.bf16 %v2016_v48, %v2015_v28  ;;  %v10904_v28 = vld [vmem:[%s14688_s20 + $0x5] ss:$0 sm:$0xff] }
 0x333   : > { %v1987_v23 = vmul.f32 0.2, %v1853_v45  ;;  %vm1955_vm4 = vcmp.ge.f32.partialorder %v1853_v45, 0.0  ;;  %v1864_v50 = vadd.f32 %v9606_v49, %v10801_v63  ;;  %v2021_v62 = vsel %vm1957_vm7, %v1861_v51, %v1989_v61  ;;  %2796 = vrot.lane.b32.xlu0 %v10904_v28, %s10263_s26 }
 0x334   : > { %8938 = vmatmul.mubr.msk.bf16.gmra.mxu1 %vm1397_vm5, %v10823_v21  ;;  %8954 = vmatmul.mubr.msk.bf16.gmra.mxu0 %vm1397_vm5, %v10823_v21  ;;  %v1855_v17 = vpop.f32.mrf.mxu0 }
 0x335   : > { %2271 = vmatprep.mubr.bf16.mxu1 %v10264_v55  ;;  %2464 = vmatprep.mubr.bf16.mxu0 %v10264_v55  ;;  %v1856_v52 = vadd.f32 %v1855_v17, %v10801_v63  ;;  %v2019_v38 = vsel %vm1955_vm4, %v1853_v45, %v1987_v23  ;;  %v1990_v56 = vmul.f32 0.2, %v1864_v50  ;;  %vm1958_vm6 = vcmp.ge.f32.partialorder %v1864_v50, 0.0 }
 0x336   : > { %v9609_v53 = vpop.f32.mrf.mxu0 }
 0x337   : > { %v1988_v47 = vmul.f32 0.2, %v1856_v52  ;;  %vm1956_vm3 = vcmp.ge.f32.partialorder %v1856_v52, 0.0  ;;  %v2022_v4 = vsel %vm1958_vm6, %v1864_v50, %v1990_v56  ;;  %v1877_v35 = vadd.f32 %v9609_v53, %v10801_v63 }
 0x338   : > { %v1868_v18 = vpop.f32.mrf.mxu0  ;;  %v10863_v13 = vpack.c.bf16 %v2022_v4, %v2021_v62 }
 0x339   : > { %v2020_v58 = vsel %vm1956_vm3, %v1856_v52, %v1988_v47  ;;  %v1869_v25 = vadd.f32 %v1868_v18, %v10801_v63  ;;  %v1993_v26 = vmul.f32 0.2, %v1877_v35  ;;  %vm1961_vm11 = vcmp.ge.f32.partialorder %v1877_v35, 0.0 }
 0x33a   : > { %v9610_v59 = vpop.f32.mrf.mxu0  ;;  %v10853_v54 = vpack.c.bf16 %v2020_v58, %v2019_v38 }
 0x33b   : > { %v1991_v7 = vmul.f32 0.2, %v1869_v25  ;;  %vm1959_vm9 = vcmp.ge.f32.partialorder %v1869_v25, 0.0  ;;  %v1880_v0 = vadd.f32 %v9610_v59, %v10801_v63  ;;  %v2025_v12 = vsel %vm1961_vm11, %v1877_v35, %v1993_v26 }
 0x33c   : > { %8939 = vmatmul.mubr.msk.bf16.gmra.mxu1 %vm1397_vm5, %v10833_v16  ;;  %8955 = vmatmul.mubr.msk.bf16.gmra.mxu0 %vm1397_vm5, %v10833_v16  ;;  %v1871_v57 = vpop.f32.mrf.mxu0 }
 0x33d   : > { %2281 = vmatprep.mubr.bf16.mxu1 %v10264_v55  ;;  %2474 = vmatprep.mubr.bf16.mxu0 %v10264_v55  ;;  %v1872_v5 = vadd.f32 %v1871_v57, %v10801_v63  ;;  %v2023_v36 = vsel %vm1959_vm9, %v1869_v25, %v1991_v7  ;;  %v1994_v42 = vmul.f32 0.2, %v1880_v0  ;;  %vm1962_vm10 = vcmp.ge.f32.partialorder %v1880_v0, 0.0 }
 0x33e   : > { %v9613_v24 = vpop.f32.mrf.mxu0 }
 0x33f   : > { %v1992_v3 = vmul.f32 0.2, %v1872_v5  ;;  %vm1960_vm8 = vcmp.ge.f32.partialorder %v1872_v5, 0.0  ;;  %v2026_v27 = vsel %vm1962_vm10, %v1880_v0, %v1994_v42  ;;  %v1893_v32 = vadd.f32 %v9613_v24, %v10801_v63 }
 0x340   : > { %v1884_v14 = vpop.f32.mrf.mxu0  ;;  %v10883_v19 = vpack.c.bf16 %v2026_v27, %v2025_v12 }
 0x341   : > { %v2024_v22 = vsel %vm1960_vm8, %v1872_v5, %v1992_v3  ;;  %v1885_v15 = vadd.f32 %v1884_v14, %v10801_v63  ;;  %v1997_v37 = vmul.f32 0.2, %v1893_v32  ;;  %vm1965_vm15 = vcmp.ge.f32.partialorder %v1893_v32, 0.0 }
 0x342   : > { %v9614_v1 = vpop.f32.mrf.mxu0  ;;  %v10873_v41 = vpack.c.bf16 %v2024_v22, %v2023_v36 }
 0x343   : > { %v1995_v20 = vmul.f32 0.2, %v1885_v15  ;;  %vm1963_vm13 = vcmp.ge.f32.partialorder %v1885_v15, 0.0  ;;  %v1896_v30 = vadd.f32 %v9614_v1, %v10801_v63  ;;  %v2029_v43 = vsel %vm1965_vm15, %v1893_v32, %v1997_v37  ;;  %v706_v37 = vld [vmem:[%s10966_s3 + $0x8] sm:$0xff] }
 0x344   : > { %8940 = vmatmul.mubr.msk.bf16.gmra.mxu1 %vm1397_vm5, %v10843_v46  ;;  %8956 = vmatmul.mubr.msk.bf16.gmra.mxu0 %vm1397_vm5, %v10843_v46  ;;  %v1887_v2 = vpop.f32.mrf.mxu0 }
 0x345   : > { %2291 = vmatprep.mubr.bf16.mxu1 %v10264_v55  ;;  %2484 = vmatprep.mubr.bf16.mxu0 %v10264_v55  ;;  %v1888_v10 = vadd.f32 %v1887_v2, %v10801_v63  ;;  %v2027_v33 = vsel %vm1963_vm13, %v1885_v15, %v1995_v20  ;;  %v1998_v48 = vmul.f32 0.2, %v1896_v30  ;;  %vm1966_vm14 = vcmp.ge.f32.partialorder %v1896_v30, 0.0 }
 0x346   : > { %v9617_v11 = vpop.f32.mrf.mxu0 }
 0x347   : > { %v1996_v8 = vmul.f32 0.2, %v1888_v10  ;;  %vm1964_vm12 = vcmp.ge.f32.partialorder %v1888_v10, 0.0  ;;  %v2030_v39 = vsel %vm1966_vm14, %v1896_v30, %v1998_v48  ;;  %v1909_v58 = vadd.f32 %v9617_v11, %v10801_v63 }
 0x348   : > { %v1900_v29 = vpop.f32.mrf.mxu0  ;;  %v10910_v53 = vpack.c.bf16 %v2030_v39, %v2029_v43 }
 0x349   : > { %v2028_v9 = vsel %vm1964_vm12, %v1888_v10, %v1996_v8  ;;  %v1901_v52 = vadd.f32 %v1900_v29, %v10801_v63  ;;  %v2001_v57 = vmul.f32 0.2, %v1909_v58  ;;  %vm1969_vm4 = vcmp.ge.f32.partialorder %v1909_v58, 0.0 }
 0x34a   : > { %v9618_v31 = vpop.f32.mrf.mxu0  ;;  %v10893_v34 = vpack.c.bf16 %v2028_v9, %v2027_v33 }
 0x34b   : > { %v1999_v47 = vmul.f32 0.2, %v1901_v52  ;;  %vm1967_vm2 = vcmp.ge.f32.partialorder %v1901_v52, 0.0  ;;  %v1912_v18 = vadd.f32 %v9618_v31, %v10801_v63  ;;  %v2033_v24 = vsel %vm1969_vm4, %v1909_v58, %v2001_v57  ;;  %v714_v58 = vld [vmem:[%s10966_s3 + $0x48] sm:$0xff] }
 0x34c   : > { %8941 = vmatmul.mubr.msk.bf16.gmra.mxu1 %vm1397_vm5, %v10853_v54  ;;  %8957 = vmatmul.mubr.msk.bf16.gmra.mxu0 %vm1397_vm5, %v10853_v54  ;;  %v1903_v49 = vpop.f32.mrf.mxu0  ;;  %v718_v57 = vld [vmem:[%s10966_s3 + $0x68] sm:$0xff] }
 0x34d   : > { %2301 = vmatprep.mubr.bf16.mxu1 %v10264_v55  ;;  %2494 = vmatprep.mubr.bf16.mxu0 %v10264_v55  ;;  %v1904_v17 = vadd.f32 %v1903_v49, %v10801_v63  ;;  %v2031_v59 = vsel %vm1967_vm2, %v1901_v52, %v1999_v47  ;;  %v2002_v38 = vmul.f32 0.2, %v1912_v18  ;;  %vm1970_vm3 = vcmp.ge.f32.partialorder %v1912_v18, 0.0  ;;  %v705_v49 = vld [vmem:[%s10966_s3] sm:$0xff]  ;;  %v708_v52 = vld [vmem:[%s10966_s3 + $0x18] sm:$0xff] }
 0x34e   : > { %v9621_v40 = vpop.f32.mrf.mxu0 }
 0x34f   : > { %v2000_v44 = vmul.f32 0.2, %v1904_v17  ;;  %vm1968_vm1 = vcmp.ge.f32.partialorder %v1904_v17, 0.0  ;;  %v2034_v61 = vsel %vm1970_vm3, %v1912_v18, %v2002_v38  ;;  %v1925_v35 = vadd.f32 %v9621_v40, %v10801_v63 }
 0x350   : > { %v1916_v45 = vpop.f32.mrf.mxu0  ;;  %v10930_v25 = vpack.c.bf16 %v2034_v61, %v2033_v24  ;;  %v10976_v40 = vpack.c.bf16 %v706_v37, %v705_v49  ;;  %v722_v24 = vld [vmem:[%s10966_s3 + $0x88] sm:$0xff] }
 0x351   : > { %v2032_v23 = vsel %vm1968_vm1, %v1904_v17, %v2000_v44  ;;  %v1917_v62 = vadd.f32 %v1916_v45, %v10801_v63  ;;  %v2005_v27 = vmul.f32 0.2, %v1925_v35  ;;  %vm1973_vm9 = vcmp.ge.f32.partialorder %v1925_v35, 0.0  ;;  %v709_v44 = vld [vmem:[%s10966_s3 + $0x20] sm:$0xff]  ;;  %v710_v45 = vld [vmem:[%s10966_s3 + $0x28] sm:$0xff] }
 0x352   : > { %v9622_v50 = vpop.f32.mrf.mxu0  ;;  %v10920_v51 = vpack.c.bf16 %v2032_v23, %v2031_v59  ;;  %14841 = vst [vmem:[#allocation3_spill] sm:$0xff] %v10976_v40  ;;  %v10994_v18 = vpack.c.bf16 %v710_v45, %v709_v44  ;;  %v712_v23 = vld [vmem:[%s10966_s3 + $0x38] sm:$0xff] }
 0x353   : > { %v2003_v7 = vmul.f32 0.2, %v1917_v62  ;;  %vm1971_vm7 = vcmp.ge.f32.partialorder %v1917_v62, 0.0  ;;  %v1928_v0 = vadd.f32 %v9622_v50, %v10801_v63  ;;  %v2037_v12 = vsel %vm1973_vm9, %v1925_v35, %v2005_v27  ;;  %v713_v50 = vld [vmem:[%s10966_s3 + $0x40] sm:$0xff]  ;;  %v730_v35 = vld [vmem:[%s10966_s3 + $0xc8] sm:$0xff] }
 0x354   : > { %8942 = vmatmul.mubr.msk.bf16.gmra.mxu1 %vm1397_vm5, %v10863_v13  ;;  %8958 = vmatmul.mubr.msk.bf16.gmra.mxu0 %vm1397_vm5, %v10863_v13  ;;  %v1919_v56 = vpop.f32.mrf.mxu0  ;;  %14843 = vst [vmem:[#allocation5_spill] sm:$0xff] %v10994_v18  ;;  %v11010_v38 = vpack.c.bf16 %v714_v58, %v713_v50  ;;  %v734_v27 = vld [vmem:[%s10966_s3 + $0xe8] sm:$0xff] }
 0x355   : > { %2311 = vmatprep.mubr.bf16.mxu1 %v10264_v55  ;;  %2504 = vmatprep.mubr.bf16.mxu0 %v10264_v55  ;;  %v1920_v4 = vadd.f32 %v1919_v56, %v10801_v63  ;;  %v2035_v36 = vsel %vm1971_vm7, %v1917_v62, %v2003_v7  ;;  %v2006_v2 = vmul.f32 0.2, %v1928_v0  ;;  %vm1974_vm8 = vcmp.ge.f32.partialorder %v1928_v0, 0.0  ;;  %v717_v56 = vld [vmem:[%s10966_s3 + $0x60] sm:$0xff]  ;;  %v726_v7 = vld [vmem:[%s10966_s3 + $0xa8] sm:$0xff] }
 0x356   : > { %v9625_v5 = vpop.f32.mrf.mxu0  ;;  %14845 = vst [vmem:[#allocation7_spill] sm:$0xff] %v11010_v38 }
 0x357   : > { %v2004_v3 = vmul.f32 0.2, %v1920_v4  ;;  %vm1972_vm6 = vcmp.ge.f32.partialorder %v1920_v4, 0.0  ;;  %v2038_v10 = vsel %vm1974_vm8, %v1928_v0, %v2006_v2  ;;  %v1941_v31 = vadd.f32 %v9625_v5, %v10801_v63  ;;  %v721_v5 = vld [vmem:[%s10966_s3 + $0x80] sm:$0xff] }
 0x358   : > { %v1932_v14 = vpop.f32.mrf.mxu0  ;;  %v10950_v8 = vpack.c.bf16 %v2038_v10, %v2037_v12 }
 0x359   : > { %v2036_v22 = vsel %vm1972_vm6, %v1920_v4, %v2004_v3  ;;  %v1933_v15 = vadd.f32 %v1932_v14, %v10801_v63  ;;  %vm1977_vm13 = vcmp.ge.f32.partialorder %v1941_v31, 0.0  ;;  %v11026_v4 = vpack.c.bf16 %v718_v57, %v717_v56  ;;  %v725_v14 = vld [vmem:[%s10966_s3 + $0xa0] sm:$0xff] }
 0x35a   : > { %v9626_v1 = vpop.f32.mrf.mxu0  ;;  %v10940_v42 = vpack.c.bf16 %v2036_v22, %v2035_v36  ;;  %v11042_v3 = vpack.c.bf16 %v722_v24, %v721_v5  ;;  %v11058_v22 = vpack.c.bf16 %v726_v7, %v725_v14 }
 0x35b   : > { %v2007_v20 = vmul.f32 0.2, %v1933_v15  ;;  %vm1975_vm11 = vcmp.ge.f32.partialorder %v1933_v15, 0.0  ;;  %v1944_v30 = vadd.f32 %v9626_v1, %v10801_v63  ;;  %14847 = vst [vmem:[#allocation9_spill] sm:$0xff] %v11026_v4  ;;  %v729_v1 = vld [vmem:[%s10966_s3 + $0xc0] sm:$0xff] }
 0x35c   : > { %8943 = vmatmul.mubr.msk.bf16.gmra.mxu1 %vm1397_vm5, %v10873_v41  ;;  %8959 = vmatmul.mubr.msk.bf16.gmra.mxu0 %vm1397_vm5, %v10873_v41  ;;  %v1935_v26 = vpop.f32.mrf.mxu0  ;;  %14849 = vst [vmem:[#allocation11_spill] sm:$0xff] %v11042_v3  ;;  %14851 = vst [vmem:[#allocation13_spill] sm:$0xff] %v11058_v22  ;;  %v11074_v2 = vpack.c.bf16 %v730_v35, %v729_v1 }
 0x35d   : > { %2321 = vmatprep.mubr.bf16.mxu1 %v10264_v55  ;;  %2514 = vmatprep.mubr.bf16.mxu0 %v10264_v55  ;;  %v1936_v11 = vadd.f32 %v1935_v26, %v10801_v63  ;;  %v2039_v32 = vsel %vm1975_vm11, %v1933_v15, %v2007_v20  ;;  %v2010_v48 = vmul.f32 0.2, %v1944_v30  ;;  %vm1978_vm12 = vcmp.ge.f32.partialorder %v1944_v30, 0.0  ;;  %v733_v26 = vld [vmem:[%s10966_s3 + $0xe0] sm:$0xff]  ;;  %v2150_v15 = vpop.permute.xlu1 %2149  ;;  %v10162_v20 = vld [vmem:[%s14676_s8 + $0x8] sm:$0xff]  }
 0x35e   : > { %v2009_v63 = vmul.f32 0.2, %v1941_v31  ;;  %14853 = vst [vmem:[#allocation15_spill] sm:$0xff] %v11074_v2  ;;  %9697 = vmatprep.subr.bf16.mxu1 %v10162_v20 }
 0x35f   : > { %v2008_v29 = vmul.f32 0.2, %v1936_v11  ;;  %vm1976_vm10 = vcmp.ge.f32.partialorder %v1936_v11, 0.0  ;;  %v2042_v39 = vsel %vm1978_vm12, %v1944_v30, %v2010_v48 }
 0x360   : > { %v2041_v17 = vsel %vm1977_vm13, %v1941_v31, %v2009_v63 }
 0x361   : > { %v2040_v9 = vsel %vm1976_vm10, %v1936_v11, %v2008_v29  ;;  %v10978_v43 = vpack.c.bf16 %v2042_v39, %v2041_v17  ;;  %v11090_v11 = vpack.c.bf16 %v734_v27, %v733_v26 }
 0x362   : > { %v10960_v33 = vpack.c.bf16 %v2040_v9, %v2039_v32 }
 0x363   : > { %14855 = vst [vmem:[#allocation17_spill] sm:$0xff] %v11090_v11 }
 0x364   : > { %8944 = vmatmul.mubr.msk.bf16.gmra.mxu1 %vm1397_vm5, %v10883_v19  ;;  %8960 = vmatmul.mubr.msk.bf16.gmra.mxu0 %vm1397_vm5, %v10883_v19 }
 0x365   : > { %2331 = vmatprep.mubr.bf16.mxu1 %v10264_v55  ;;  %2524 = vmatprep.mubr.bf16.mxu0 %v10264_v55 }
 0x36c   : > { %8945 = vmatmul.mubr.msk.bf16.gmra.mxu1 %vm1397_vm5, %v10893_v34  ;;  %8961 = vmatmul.mubr.msk.bf16.gmra.mxu0 %vm1397_vm5, %v10893_v34 }
 0x36d   : > { %2341 = vmatprep.mubr.bf16.mxu1 %v10264_v55  ;;  %2534 = vmatprep.mubr.bf16.mxu0 %v10264_v55 }
 0x374   : > { %8946 = vmatmul.mubr.msk.bf16.gmra.mxu1 %vm1397_vm5, %v10910_v53  ;;  %8962 = vmatmul.mubr.msk.bf16.gmra.mxu0 %vm1397_vm5, %v10910_v53 }
 0x375   : > { %2351 = vmatprep.mubr.bf16.mxu1 %v10264_v55  ;;  %2544 = vmatprep.mubr.bf16.mxu0 %v10264_v55 }
 0x37c   : > { %8947 = vmatmul.mubr.msk.bf16.gmra.mxu1 %vm1397_vm5, %v10920_v51  ;;  %8963 = vmatmul.mubr.msk.bf16.gmra.mxu0 %vm1397_vm5, %v10920_v51 }
 0x37d   : > { %2361 = vmatprep.mubr.bf16.mxu1 %v10264_v55  ;;  %2554 = vmatprep.mubr.bf16.mxu0 %v10264_v55 }
 0x384   : > { %8948 = vmatmul.mubr.msk.bf16.gmra.mxu1 %vm1397_vm5, %v10930_v25  ;;  %8964 = vmatmul.mubr.msk.bf16.gmra.mxu0 %vm1397_vm5, %v10930_v25 }
 0x385   : > { %2371 = vmatprep.mubr.bf16.mxu1 %v10264_v55  ;;  %2564 = vmatprep.mubr.bf16.mxu0 %v10264_v55 }
 0x38c   : > { %8949 = vmatmul.mubr.msk.bf16.gmra.mxu1 %vm1397_vm5, %v10940_v42  ;;  %8965 = vmatmul.mubr.msk.bf16.gmra.mxu0 %vm1397_vm5, %v10940_v42 }
 0x38d   : > { %2381 = vmatprep.mubr.bf16.mxu1 %v10264_v55  ;;  %2574 = vmatprep.mubr.bf16.mxu0 %v10264_v55 }
 0x394   : > { %8950 = vmatmul.mubr.msk.bf16.gmra.mxu1 %vm1397_vm5, %v10950_v8  ;;  %8966 = vmatmul.mubr.msk.bf16.gmra.mxu0 %vm1397_vm5, %v10950_v8 }
 0x395   : > { %2391 = vmatprep.mubr.bf16.mxu1 %v10264_v55  ;;  %2584 = vmatprep.mubr.bf16.mxu0 %v10264_v55 }
 0x39c   : > { %8951 = vmatmul.mubr.msk.bf16.gmra.mxu1 %vm1397_vm5, %v10960_v33  ;;  %8967 = vmatmul.mubr.msk.bf16.gmra.mxu0 %vm1397_vm5, %v10960_v33 }
 0x39d   : > { %2401 = vmatprep.mubr.bf16.mxu1 %v10264_v55  ;;  %2594 = vmatprep.mubr.bf16.mxu0 %v10264_v55  ;;  %v707_v55 = vld [vmem:[%s10966_s3 + $0x10] sm:$0xff] }
 0x39e   : > { %v10992_v47 = vpack.c.bf16 %v708_v52, %v707_v55 }
 0x3a0   : > { %14842 = vst [vmem:[#allocation4_spill] sm:$0xff] %v10992_v47 }
 0x3a4   : > { %8952 = vmatmul.mubr.msk.bf16.gmra.mxu1 %vm1397_vm5, %v10978_v43  ;;  %8968 = vmatmul.mubr.msk.bf16.gmra.mxu0 %vm1397_vm5, %v10978_v43 }
 0x3a5   : > { %9631 = vmatprep.mubr.msk.bf16.mxu1 %vm1397_vm5, %v10810_v6  ;;  %9665 = vmatprep.mubr.msk.bf16.mxu0 %vm833_vm0, %v10976_v40  ;;  %v711_v6 = vld [vmem:[%s10966_s3 + $0x30] sm:$0xff] }
 0x3a6   : > { %v11008_v59 = vpack.c.bf16 %v712_v23, %v711_v6  ;;  %v10163_v23 = vld [vmem:[%s14676_s8] sm:$0xff]  }
 0x3a8   : > { %14844 = vst [vmem:[#allocation6_spill] sm:$0xff] %v11008_v59 }
 0x3ac   : > { %9632 = vmatmul.mubr.msk.bf16.vlgmr.msra.gmra.mxu1 %vm1397_vm5, %v10823_v21  ;;  %9666 = vmatmul.mubr.msk.bf16.vlgmr.msra.gmra.mxu0 %vm833_vm0, %v10992_v47  ;;  %v715_v21 = vld [vmem:[%s10966_s3 + $0x50] sm:$0xff] }
 0x3ad   : > { %9635 = vmatprep.mubr.msk.bf16.mxu1 %vm1397_vm5, %v10833_v16  ;;  %9669 = vmatprep.mubr.msk.bf16.mxu0 %vm833_vm0, %v10994_v18  ;;  %v716_v16 = vld [vmem:[%s10966_s3 + $0x58] sm:$0xff] }
 0x3ae   : > { %v11024_v61 = vpack.c.bf16 %v716_v16, %v715_v21  ;;  %9698 = vmatpush3.bf16.msra.mxu1 %v10162_v20 }
 0x3af   : > { %9699 = vmatprep.subr.bf16.mxu1 %v10163_v23 }
 0x3b0   : > { %14846 = vst [vmem:[#allocation8_spill] sm:$0xff] %v11024_v61 }
 0x3b2   : > { %9700 = vmatpush3.bf16.msra.mxu1 %v10163_v23 }
 0x3b4   : > { %9636 = vmatmul.mubr.msk.bf16.gmra.mxu1 %vm1397_vm5, %v10843_v46  ;;  %9670 = vmatmul.mubr.msk.bf16.gmra.mxu0 %vm833_vm0, %v11008_v59  ;;  %v719_v46 = vld [vmem:[%s10966_s3 + $0x70] sm:$0xff] }
 0x3b5   : > { %9639 = vmatprep.mubr.msk.bf16.mxu1 %vm1397_vm5, %v10853_v54  ;;  %9673 = vmatprep.mubr.msk.bf16.mxu0 %vm833_vm0, %v11010_v38  ;;  %v720_v54 = vld [vmem:[%s10966_s3 + $0x78] sm:$0xff] }
 0x3b6   : > { %v11040_v62 = vpack.c.bf16 %v720_v54, %v719_v46 }
 0x3b8   : > { %14848 = vst [vmem:[#allocation10_spill] sm:$0xff] %v11040_v62 }
 0x3bc   : > { %9640 = vmatmul.mubr.msk.bf16.gmra.mxu1 %vm1397_vm5, %v10863_v13  ;;  %9674 = vmatmul.mubr.msk.bf16.gmra.mxu0 %vm833_vm0, %v11024_v61  ;;  %v723_v13 = vld [vmem:[%s10966_s3 + $0x90] sm:$0xff] }
 0x3bd   : > { %9643 = vmatprep.mubr.msk.bf16.mxu1 %vm1397_vm5, %v10873_v41  ;;  %9677 = vmatprep.mubr.msk.bf16.mxu0 %vm833_vm0, %v11026_v4  ;;  %v724_v41 = vld [vmem:[%s10966_s3 + $0x98] sm:$0xff] }
 0x3be   : > { %v11056_v0 = vpack.c.bf16 %v724_v41, %v723_v13 }
 0x3c0   : > { %14850 = vst [vmem:[#allocation12_spill] sm:$0xff] %v11056_v0 }
 0x3c4   : > { %9644 = vmatmul.mubr.msk.bf16.gmra.mxu1 %vm1397_vm5, %v10883_v19  ;;  %9678 = vmatmul.mubr.msk.bf16.gmra.mxu0 %vm833_vm0, %v11040_v62  ;;  %v727_v19 = vld [vmem:[%s10966_s3 + $0xb0] sm:$0xff] }
 0x3c5   : > { %9647 = vmatprep.mubr.msk.bf16.mxu1 %vm1397_vm5, %v10893_v34  ;;  %9681 = vmatprep.mubr.msk.bf16.mxu0 %vm833_vm0, %v11042_v3  ;;  %v728_v34 = vld [vmem:[%s10966_s3 + $0xb8] sm:$0xff] }
 0x3c6   : > { %v11072_v36 = vpack.c.bf16 %v728_v34, %v727_v19 }
 0x3c8   : > { %14852 = vst [vmem:[#allocation14_spill] sm:$0xff] %v11072_v36 }
 0x3cc   : > { %9648 = vmatmul.mubr.msk.bf16.gmra.mxu1 %vm1397_vm5, %v10910_v53  ;;  %9682 = vmatmul.mubr.msk.bf16.gmra.mxu0 %vm833_vm0, %v11056_v0  ;;  %v731_v53 = vld [vmem:[%s10966_s3 + $0xd0] sm:$0xff] }
 0x3cd   : > { %9651 = vmatprep.mubr.msk.bf16.mxu1 %vm1397_vm5, %v10920_v51  ;;  %9685 = vmatprep.mubr.msk.bf16.mxu0 %vm833_vm0, %v11058_v22  ;;  %v732_v51 = vld [vmem:[%s10966_s3 + $0xd8] sm:$0xff] }
 0x3ce   : > { %v11088_v10 = vpack.c.bf16 %v732_v51, %v731_v53 }
 0x3d0   : > { %14854 = vst [vmem:[#allocation16_spill] sm:$0xff] %v11088_v10 }
 0x3d4   : > { %9652 = vmatmul.mubr.msk.bf16.gmra.mxu1 %vm1397_vm5, %v10930_v25  ;;  %9686 = vmatmul.mubr.msk.bf16.gmra.mxu0 %vm833_vm0, %v11072_v36  ;;  %v735_v25 = vld [vmem:[%s10966_s3 + $0xf0] sm:$0xff] }
 0x3d5   : > { %9655 = vmatprep.mubr.msk.bf16.mxu1 %vm1397_vm5, %v10940_v42  ;;  %9689 = vmatprep.mubr.msk.bf16.mxu0 %vm833_vm0, %v11074_v2  ;;  %v736_v42 = vld [vmem:[%s10966_s3 + $0xf8] sm:$0xff] }
 0x3d6   : > { %v11102_v12 = vpack.c.bf16 %v736_v42, %v735_v25 }
 0x3d8   : > { %14856 = vst [vmem:[#allocation18_spill] sm:$0xff] %v11102_v12 }
 0x3dc   : > { %9656 = vmatmul.mubr.msk.bf16.gmra.mxu1 %vm1397_vm5, %v10950_v8  ;;  %9690 = vmatmul.mubr.msk.bf16.gmra.mxu0 %vm833_vm0, %v11088_v10  ;;  %v11108_v8 = vpop.permute.xlu1 %2151 }
 0x3dd   : > { %9659 = vmatprep.mubr.msk.bf16.mxu1 %vm1397_vm5, %v10960_v33  ;;  %9693 = vmatprep.mubr.msk.bf16.mxu0 %vm833_vm0, %v11090_v11  ;;  %14857 = vst [vmem:[#allocation19_spill] sm:$0xff] %v11108_v8  ;;  %v11112_v29 = vsel %vm1397_vm5, %v2150_v15, %v11108_v8 }
 0x3e4   : > { %9660 = vmatmul.mubr.msk.bf16.gmra.mxu1 %vm1397_vm5, %v10978_v43  ;;  %9694 = vmatmul.mubr.msk.bf16.gmra.mxu0 %vm833_vm0, %v11102_v12 }
 0x3ec   : > { %v2253_v30 = vpop.f32.mrf.mxu1  ;;  %v11117_v9 = vpop.f32.mrf.mxu0 }
 0x3ed   : > { %14858 = vst [vmem:[#allocation20_spill] sm:$0xff] %v11117_v9  ;;  %v11120_v31 = vadd.f32 %v2253_v30, %v11112_v29 }
 0x3ee   : > { %v11122_v32 = vpop.f32.mrf.mxu1  ;;  %v11124_v33 = vpop.f32.mrf.mxu0 }
 0x3ef   : > { %14859 = vst [vmem:[#allocation21_spill] sm:$0xff] %v11122_v32  ;;  %14860 = vst [vmem:[#allocation22_spill] sm:$0xff] %v11124_v33  ;;  %3072 = vrot.lane.b32.xlu1 %v11120_v31, %s10262_s5 }
 0x3f0   : > { %v2257_v48 = vpop.f32.mrf.mxu1  ;;  %v11128_v63 = vpop.f32.mrf.mxu0 }
 0x3f1   : > { %14861 = vst [vmem:[#allocation23_spill] sm:$0xff] %v11128_v63  ;;  %v11131_v49 = vadd.f32 %v2257_v48, %v11112_v29 }
 0x3f2   : > { %v11133_v37 = vpop.f32.mrf.mxu1  ;;  %v11135_v39 = vpop.f32.mrf.mxu0 }
 0x3f3   : > { %14862 = vst [vmem:[#allocation24_spill] sm:$0xff] %v11133_v37  ;;  %14863 = vst [vmem:[#allocation25_spill] sm:$0xff] %v11135_v39  ;;  %3074 = vrot.lane.b32.xlu0 %v11131_v49, %s10262_s5 }
 0x3f4   : > { %v2263_v17 = vpop.f32.mrf.mxu1  ;;  %v11139_v43 = vpop.f32.mrf.mxu0 }
 0x3f5   : > { %14864 = vst [vmem:[#allocation26_spill] sm:$0xff] %v11139_v43  ;;  %v11142_v55 = vadd.f32 %v2263_v17, %v11112_v29 }
 0x3f6   : > { %v11144_v52 = vpop.f32.mrf.mxu1  ;;  %v11146_v44 = vpop.f32.mrf.mxu0 }
 0x3f7   : > { %14865 = vst [vmem:[#allocation27_spill] sm:$0xff] %v11144_v52  ;;  %14866 = vst [vmem:[#allocation28_spill] sm:$0xff] %v11146_v44  ;;  %3076 = vrot.lane.b32.xlu1 %v11142_v55, %s10262_s5 }
 0x3f8   : > { %v2267_v45 = vpop.f32.mrf.mxu1  ;;  %v11150_v6 = vpop.f32.mrf.mxu0 }
 0x3f9   : > { %14867 = vst [vmem:[#allocation29_spill] sm:$0xff] %v11150_v6  ;;  %v11156_v50 = vadd.f32 %v2267_v45, %v11112_v29 }
 0x3fa   : > { %v11158_v58 = vpop.f32.mrf.mxu1  ;;  %v11160_v21 = vpop.f32.mrf.mxu0 }
 0x3fb   : > { %14868 = vst [vmem:[#allocation30_spill] sm:$0xff] %v11158_v58  ;;  %14869 = vst [vmem:[#allocation31_spill] sm:$0xff] %v11160_v21  ;;  %3078 = vrot.lane.b32.xlu0 %v11156_v50, %s10262_s5 }
 0x3fc   : > { %v2273_v16 = vpop.f32.mrf.mxu1  ;;  %v11164_v56 = vpop.f32.mrf.mxu0 }
 0x3fd   : > { %14870 = vst [vmem:[#allocation32_spill] sm:$0xff] %v11164_v56  ;;  %v11167_v57 = vadd.f32 %v2273_v16, %v11112_v29 }
 0x3fe   : > { %v11169_v46 = vpop.f32.mrf.mxu1  ;;  %v11171_v54 = vpop.f32.mrf.mxu0 }
 0x3ff   : > { %14871 = vst [vmem:[#allocation33_spill] sm:$0xff] %v11169_v46  ;;  %14872 = vst [vmem:[#allocation34_spill] sm:$0xff] %v11171_v54  ;;  %3080 = vrot.lane.b32.xlu1 %v11167_v57, %s10262_s5 }
 0x400   : > { %v2277_v5 = vpop.f32.mrf.mxu1  ;;  %v11175_v24 = vpop.f32.mrf.mxu0 }
 0x401   : > { %14873 = vst [vmem:[#allocation35_spill] sm:$0xff] %v11175_v24  ;;  %v11178_v13 = vadd.f32 %v2277_v5, %v11112_v29 }
 0x402   : > { %v11180_v41 = vpop.f32.mrf.mxu1  ;;  %v11182_v14 = vpop.f32.mrf.mxu0 }
 0x403   : > { %14874 = vst [vmem:[#allocation36_spill] sm:$0xff] %v11180_v41  ;;  %14875 = vst [vmem:[#allocation37_spill] sm:$0xff] %v11182_v14  ;;  %3082 = vrot.lane.b32.xlu0 %v11178_v13, %s10262_s5 }
 0x404   : > { %v2283_v7 = vpop.f32.mrf.mxu1  ;;  %v11186_v19 = vpop.f32.mrf.mxu0 }
 0x405   : > { %14876 = vst [vmem:[#allocation38_spill] sm:$0xff] %v11186_v19  ;;  %v11189_v34 = vadd.f32 %v2283_v7, %v11112_v29 }
 0x406   : > { %v11191_v1 = vpop.f32.mrf.mxu1  ;;  %v11193_v35 = vpop.f32.mrf.mxu0 }
 0x407   : > { %14877 = vst [vmem:[#allocation39_spill] sm:$0xff] %v11191_v1  ;;  %14878 = vst [vmem:[#allocation40_spill] sm:$0xff] %v11193_v35  ;;  %3084 = vrot.lane.b32.xlu1 %v11189_v34, %s10262_s5 }
 0x408   : > { %v2287_v53 = vpop.f32.mrf.mxu1  ;;  %v11197_v51 = vpop.f32.mrf.mxu0 }
 0x409   : > { %14879 = vst [vmem:[#allocation41_spill] sm:$0xff] %v11197_v51  ;;  %v11200_v26 = vadd.f32 %v2287_v53, %v11112_v29 }
 0x40a   : > { %v11202_v27 = vpop.f32.mrf.mxu1  ;;  %v11204_v25 = vpop.f32.mrf.mxu0 }
 0x40b   : > { %14880 = vst [vmem:[#allocation42_spill] sm:$0xff] %v11202_v27  ;;  %14881 = vst [vmem:[#allocation43_spill] sm:$0xff] %v11204_v25  ;;  %3086 = vrot.lane.b32.xlu0 %v11200_v26, %s10262_s5 }
 0x40c   : > { %v2293_v42 = vpop.f32.mrf.mxu1  ;;  %v11208_v15 = vpop.f32.mrf.mxu0 }
 0x40d   : > { %14882 = vst [vmem:[#allocation44_spill] sm:$0xff] %v11208_v15  ;;  %v11211_v20 = vadd.f32 %v2293_v42, %v11112_v29 }
 0x40e   : > { %v11213_v30 = vpop.f32.mrf.mxu1  ;;  %v11215_v48 = vpop.f32.mrf.mxu0 }
 0x40f   : > { %14883 = vst [vmem:[#allocation45_spill] sm:$0xff] %v11213_v30  ;;  %14884 = vst [vmem:[#allocation46_spill] sm:$0xff] %v11215_v48  ;;  %3088 = vrot.lane.b32.xlu1 %v11211_v20, %s10262_s5 }
 0x410   : > { %v2297_v17 = vpop.f32.mrf.mxu1  ;;  %v11219_v45 = vpop.f32.mrf.mxu0 }
 0x411   : > { %14885 = vst [vmem:[#allocation47_spill] sm:$0xff] %v11219_v45  ;;  %v11222_v23 = vadd.f32 %v2297_v17, %v11112_v29 }
 0x412   : > { %v11224_v16 = vpop.f32.mrf.mxu1  ;;  %v11226_v5 = vpop.f32.mrf.mxu0 }
 0x413   : > { %14886 = vst [vmem:[#allocation48_spill] sm:$0xff] %v11224_v16  ;;  %14887 = vst [vmem:[#allocation49_spill] sm:$0xff] %v11226_v5  ;;  %3090 = vrot.lane.b32.xlu0 %v11222_v23, %s10262_s5 }
 0x414   : > { %v2303_v7 = vpop.f32.mrf.mxu1  ;;  %v11230_v53 = vpop.f32.mrf.mxu0 }
 0x415   : > { %14888 = vst [vmem:[#allocation50_spill] sm:$0xff] %v11230_v53  ;;  %v11233_v42 = vadd.f32 %v2303_v7, %v11112_v29 }
 0x416   : > { %v11235_v48 = vpop.f32.mrf.mxu1  ;;  %v11237_v35 = vpop.f32.mrf.mxu0 }
 0x417   : > { %14889 = vst [vmem:[#allocation51_spill] sm:$0xff] %v11235_v48  ;;  %14890 = vst [vmem:[#allocation52_spill] sm:$0xff] %v11237_v35  ;;  %3092 = vrot.lane.b32.xlu1 %v11233_v42, %s10262_s5 }
 0x418   : > { %v2307_v17 = vpop.f32.mrf.mxu1  ;;  %v11241_v25 = vpop.f32.mrf.mxu0 }
 0x419   : > { %14891 = vst [vmem:[#allocation53_spill] sm:$0xff] %v11241_v25  ;;  %v11244_v5 = vadd.f32 %v2307_v17, %v11112_v29 }
 0x41a   : > { %v11246_v54 = vpop.f32.mrf.mxu1  ;;  %v11248_v14 = vpop.f32.mrf.mxu0 }
 0x41b   : > { %14892 = vst [vmem:[#allocation54_spill] sm:$0xff] %v11246_v54  ;;  %14893 = vst [vmem:[#allocation55_spill] sm:$0xff] %v11248_v14  ;;  %3094 = vrot.lane.b32.xlu0 %v11244_v5, %s10262_s5 }
 0x41c   : > { %v2313_v7 = vpop.f32.mrf.mxu1  ;;  %v11252_v44 = vpop.f32.mrf.mxu0 }
 0x41d   : > { %14894 = vst [vmem:[#allocation56_spill] sm:$0xff] %v11252_v44  ;;  %v11255_v35 = vadd.f32 %v2313_v7, %v11112_v29 }
 0x41e   : > { %v11257_v21 = vpop.f32.mrf.mxu1  ;;  %v11259_v39 = vpop.f32.mrf.mxu0 }
 0x41f   : > { %14895 = vst [vmem:[#allocation57_spill] sm:$0xff] %v11257_v21  ;;  %14896 = vst [vmem:[#allocation58_spill] sm:$0xff] %v11259_v39  ;;  %3096 = vrot.lane.b32.xlu1 %v11255_v35, %s10262_s5 }
 0x420   : > { %v2317_v17 = vpop.f32.mrf.mxu1  ;;  %v11263_v33 = vpop.f32.mrf.mxu0 }
 0x421   : > { %14897 = vst [vmem:[#allocation59_spill] sm:$0xff] %v11263_v33  ;;  %v11266_v14 = vadd.f32 %v2317_v17, %v11112_v29 }
 0x422   : > { %v11268_v53 = vpop.f32.mrf.mxu1  ;;  %v11270_v25 = vpop.f32.mrf.mxu0 }
 0x423   : > { %14898 = vst [vmem:[#allocation60_spill] sm:$0xff] %v11266_v14  ;;  %14899 = vst [vmem:[#allocation61_spill] sm:$0xff] %v11268_v53  ;;  %3098 = vrot.lane.b32.xlu0 %v11266_v14, %s10262_s5 }
 0x424   : > { %14900 = vst [vmem:[#allocation62_spill] sm:$0xff] %v11270_v25  ;;  %v2323_v7 = vpop.f32.mrf.mxu1  ;;  %v11274_v44 = vpop.f32.mrf.mxu0 }
 0x425   : > { %14901 = vst [vmem:[#allocation63_spill] sm:$0xff] %v11274_v44  ;;  %v11277_v39 = vadd.f32 %v2323_v7, %v11112_v29 }
 0x426   : > { %v11279_v15 = vpop.f32.mrf.mxu1  ;;  %v11281_v45 = vpop.f32.mrf.mxu0 }
 0x427   : > { %14902 = vst [vmem:[#allocation64_spill] sm:$0xff] %v11279_v15  ;;  %14903 = vst [vmem:[#allocation65_spill] sm:$0xff] %v11281_v45  ;;  %3100 = vrot.lane.b32.xlu1 %v11277_v39, %s10262_s5 }
 0x428   : > { %v2327_v17 = vpop.f32.mrf.mxu1  ;;  %v11285_v33 = vpop.f32.mrf.mxu0 }
 0x429   : > { %14904 = vst [vmem:[#allocation66_spill] sm:$0xff] %v11285_v33  ;;  %v11288_v25 = vadd.f32 %v2327_v17, %v11112_v29 }
 0x42a   : > { %v11290_v19 = vpop.f32.mrf.mxu1  ;;  %v11292_v51 = vpop.f32.mrf.mxu0 }
 0x42b   : > { %14905 = vst [vmem:[#allocation67_spill] sm:$0xff] %v11288_v25  ;;  %14906 = vst [vmem:[#allocation68_spill] sm:$0xff] %v11290_v19  ;;  %3102 = vrot.lane.b32.xlu0 %v11288_v25, %s10262_s5 }
 0x42c   : > { %14907 = vst [vmem:[#allocation69_spill] sm:$0xff] %v11292_v51  ;;  %v2333_v7 = vpop.f32.mrf.mxu1  ;;  %v11296_v44 = vpop.f32.mrf.mxu0 }
 0x42d   : > { %14908 = vst [vmem:[#allocation70_spill] sm:$0xff] %v11296_v44  ;;  %v11299_v45 = vadd.f32 %v2333_v7, %v11112_v29 }
 0x42e   : > { %v11301_v56 = vpop.f32.mrf.mxu1  ;;  %v11303_v24 = vpop.f32.mrf.mxu0 }
 0x42f   : > { %14909 = vst [vmem:[#allocation71_spill] sm:$0xff] %v11301_v56  ;;  %14910 = vst [vmem:[#allocation72_spill] sm:$0xff] %v11303_v24  ;;  %3104 = vrot.lane.b32.xlu1 %v11299_v45, %s10262_s5 }
 0x430   : > { %v2337_v17 = vpop.f32.mrf.mxu1  ;;  %v11307_v33 = vpop.f32.mrf.mxu0 }
 0x431   : > { %14911 = vst [vmem:[#allocation73_spill] sm:$0xff] %v11307_v33  ;;  %v11310_v51 = vadd.f32 %v2337_v17, %v11112_v29 }
 0x432   : > { %v11312_v43 = vpop.f32.mrf.mxu1  ;;  %v11314_v6 = vpop.f32.mrf.mxu0 }
 0x433   : > { %14912 = vst [vmem:[#allocation74_spill] sm:$0xff] %v11310_v51  ;;  %14913 = vst [vmem:[#allocation75_spill] sm:$0xff] %v11312_v43  ;;  %3106 = vrot.lane.b32.xlu0 %v11310_v51, %s10262_s5 }
 0x434   : > { %14914 = vst [vmem:[#allocation76_spill] sm:$0xff] %v11314_v6  ;;  %v2343_v7 = vpop.f32.mrf.mxu1  ;;  %v11318_v44 = vpop.f32.mrf.mxu0 }
 0x435   : > { %14915 = vst [vmem:[#allocation77_spill] sm:$0xff] %v11318_v44  ;;  %v11321_v24 = vadd.f32 %v2343_v7, %v11112_v29 }
 0x436   : > { %v11323_v63 = vpop.f32.mrf.mxu1  ;;  %v11325_v9 = vpop.f32.mrf.mxu0 }
 0x437   : > { %14916 = vst [vmem:[#allocation78_spill] sm:$0xff] %v11323_v63  ;;  %14917 = vst [vmem:[#allocation79_spill] sm:$0xff] %v11325_v9  ;;  %3108 = vrot.lane.b32.xlu1 %v11321_v24, %s10262_s5 }
 0x438   : > { %v2347_v17 = vpop.f32.mrf.mxu1  ;;  %v11329_v33 = vpop.f32.mrf.mxu0 }
 0x439   : > { %14918 = vst [vmem:[#allocation80_spill] sm:$0xff] %v11329_v33  ;;  %v11332_v6 = vadd.f32 %v2347_v17, %v11112_v29 }
 0x43a   : > { %v11334_v12 = vpop.f32.mrf.mxu1  ;;  %v11336_v11 = vpop.f32.mrf.mxu0 }
 0x43b   : > { %14919 = vst [vmem:[#allocation81_spill] sm:$0xff] %v11332_v6  ;;  %14920 = vst [vmem:[#allocation82_spill] sm:$0xff] %v11334_v12  ;;  %3110 = vrot.lane.b32.xlu0 %v11332_v6, %s10262_s5 }
 0x43c   : > { %14921 = vst [vmem:[#allocation83_spill] sm:$0xff] %v11336_v11  ;;  %v2353_v7 = vpop.f32.mrf.mxu1  ;;  %v11340_v44 = vpop.f32.mrf.mxu0 }
 0x43d   : > { %14922 = vst [vmem:[#allocation84_spill] sm:$0xff] %v11340_v44  ;;  %v11343_v9 = vadd.f32 %v2353_v7, %v11112_v29 }
 0x43e   : > { %v11345_v10 = vpop.f32.mrf.mxu1  ;;  %v11347_v2 = vpop.f32.mrf.mxu0 }
 0x43f   : > { %14923 = vst [vmem:[#allocation85_spill] sm:$0xff] %v11345_v10  ;;  %14924 = vst [vmem:[#allocation86_spill] sm:$0xff] %v11347_v2  ;;  %3112 = vrot.lane.b32.xlu1 %v11343_v9, %s10262_s5 }
 0x440   : > { %v2357_v17 = vpop.f32.mrf.mxu1  ;;  %v11351_v33 = vpop.f32.mrf.mxu0 }
 0x441   : > { %14925 = vst [vmem:[#allocation87_spill] sm:$0xff] %v11351_v33  ;;  %v11354_v11 = vadd.f32 %v2357_v17, %v11112_v29 }
 0x442   : > { %v11356_v36 = vpop.f32.mrf.mxu1  ;;  %v11358_v22 = vpop.f32.mrf.mxu0 }
 0x443   : > { %14926 = vst [vmem:[#allocation88_spill] sm:$0xff] %v11356_v36  ;;  %14927 = vst [vmem:[#allocation89_spill] sm:$0xff] %v11358_v22  ;;  %3114 = vrot.lane.b32.xlu0 %v11354_v11, %s10262_s5 }
 0x444   : > { %v2363_v7 = vpop.f32.mrf.mxu1  ;;  %v11362_v44 = vpop.f32.mrf.mxu0 }
 0x445   : > { %14928 = vst [vmem:[#allocation90_spill] sm:$0xff] %v11362_v44  ;;  %v11365_v2 = vadd.f32 %v2363_v7, %v11112_v29 }
 0x446   : > { %v11367_v0 = vpop.f32.mrf.mxu1  ;;  %v11369_v3 = vpop.f32.mrf.mxu0 }
 0x447   : > { %14929 = vst [vmem:[#allocation91_spill] sm:$0xff] %v11367_v0  ;;  %14930 = vst [vmem:[#allocation92_spill] sm:$0xff] %v11369_v3  ;;  %3116 = vrot.lane.b32.xlu1 %v11365_v2, %s10262_s5 }
 0x448   : > { %v2367_v17 = vpop.f32.mrf.mxu1  ;;  %v11373_v33 = vpop.f32.mrf.mxu0 }
 0x449   : > { %14931 = vst [vmem:[#allocation93_spill] sm:$0xff] %v11373_v33  ;;  %v11376_v22 = vadd.f32 %v2367_v17, %v11112_v29 }
 0x44a   : > { %v11378_v62 = vpop.f32.mrf.mxu1  ;;  %v11380_v4 = vpop.f32.mrf.mxu0 }
 0x44b   : > { %14932 = vst [vmem:[#allocation94_spill] sm:$0xff] %v11376_v22  ;;  %14933 = vst [vmem:[#allocation95_spill] sm:$0xff] %v11378_v62  ;;  %3118 = vrot.lane.b32.xlu0 %v11376_v22, %s10262_s5 }
 0x44c   : > { %14934 = vst [vmem:[#allocation96_spill] sm:$0xff] %v11380_v4  ;;  %v2373_v7 = vpop.f32.mrf.mxu1  ;;  %v11384_v44 = vpop.f32.mrf.mxu0 }
 0x44d   : > { %14935 = vst [vmem:[#allocation97_spill] sm:$0xff] %v11384_v44  ;;  %v11387_v3 = vadd.f32 %v2373_v7, %v11112_v29 }
 0x44e   : > { %v11389_v61 = vpop.f32.mrf.mxu1  ;;  %v11391_v38 = vpop.f32.mrf.mxu0 }
 0x44f   : > { %14936 = vst [vmem:[#allocation98_spill] sm:$0xff] %v11387_v3  ;;  %14937 = vst [vmem:[#allocation99_spill] sm:$0xff] %v11389_v61  ;;  %3120 = vrot.lane.b32.xlu1 %v11387_v3, %s10262_s5 }
 0x450   : > { %14938 = vst [vmem:[#allocation100_spill] sm:$0xff] %v11391_v38  ;;  %v2377_v17 = vpop.f32.mrf.mxu1  ;;  %v11395_v33 = vpop.f32.mrf.mxu0 }
 0x451   : > { %14939 = vst [vmem:[#allocation101_spill] sm:$0xff] %v11395_v33  ;;  %v11398_v4 = vadd.f32 %v2377_v17, %v11112_v29 }
 0x452   : > { %v11400_v59 = vpop.f32.mrf.mxu1  ;;  %v11402_v18 = vpop.f32.mrf.mxu0 }
 0x453   : > { %14940 = vst [vmem:[#allocation102_spill] sm:$0xff] %v11398_v4  ;;  %14941 = vst [vmem:[#allocation103_spill] sm:$0xff] %v11400_v59  ;;  %3122 = vrot.lane.b32.xlu0 %v11398_v4, %s10262_s5 }
 0x454   : > { %14942 = vst [vmem:[#allocation104_spill] sm:$0xff] %v11402_v18  ;;  %v2383_v7 = vpop.f32.mrf.mxu1  ;;  %v11406_v44 = vpop.f32.mrf.mxu0 }
 0x455   : > { %14943 = vst [vmem:[#allocation105_spill] sm:$0xff] %v11406_v44  ;;  %v11409_v38 = vadd.f32 %v2383_v7, %v11112_v29 }
 0x456   : > { %v11411_v47 = vpop.f32.mrf.mxu1  ;;  %v11413_v61 = vpop.f32.mrf.mxu0 }
 0x457   : > { %14944 = vst [vmem:[#allocation106_spill] sm:$0xff] %v11411_v47  ;;  %14945 = vst [vmem:[#allocation107_spill] sm:$0xff] %v11413_v61  ;;  %3124 = vrot.lane.b32.xlu1 %v11409_v38, %s10262_s5 }
 0x458   : > { %v2387_v17 = vpop.f32.mrf.mxu1  ;;  %v11417_v33 = vpop.f32.mrf.mxu0 }
 0x459   : > { %14946 = vst [vmem:[#allocation108_spill] sm:$0xff] %v11417_v33  ;;  %v11420_v18 = vadd.f32 %v2387_v17, %v11112_v29 }
 0x45a   : > { %v11422_v59 = vpop.f32.mrf.mxu1  ;;  %v11424_v0 = vpop.f32.mrf.mxu0 }
 0x45b   : > { %14947 = vst [vmem:[#allocation109_spill] sm:$0xff] %v11420_v18  ;;  %14948 = vst [vmem:[#allocation110_spill] sm:$0xff] %v11422_v59  ;;  %3126 = vrot.lane.b32.xlu0 %v11420_v18, %s10262_s5 }
 0x45c   : > { %14949 = vst [vmem:[#allocation111_spill] sm:$0xff] %v11424_v0  ;;  %v2393_v7 = vpop.f32.mrf.mxu1  ;;  %v11428_v44 = vpop.f32.mrf.mxu0 }
 0x45d   : > { %14950 = vst [vmem:[#allocation112_spill] sm:$0xff] %v11428_v44  ;;  %v11431_v61 = vadd.f32 %v2393_v7, %v11112_v29 }
 0x45e   : > { %v11433_v47 = vpop.f32.mrf.mxu1  ;;  %v11435_v62 = vpop.f32.mrf.mxu0 }
 0x45f   : > { %14951 = vst [vmem:[#allocation113_spill] sm:$0xff] %v11433_v47  ;;  %14952 = vst [vmem:[#allocation114_spill] sm:$0xff] %v11435_v62  ;;  %3128 = vrot.lane.b32.xlu1 %v11431_v61, %s10262_s5 }
 0x460   : > { %v2397_v17 = vpop.f32.mrf.mxu1  ;;  %v11439_v33 = vpop.f32.mrf.mxu0 }
 0x461   : > { %14953 = vst [vmem:[#allocation115_spill] sm:$0xff] %v11439_v33  ;;  %v11442_v0 = vadd.f32 %v2397_v17, %v11112_v29 }
 0x462   : > { %v11444_v59 = vpop.f32.mrf.mxu1  ;;  %v11446_v10 = vpop.f32.mrf.mxu0 }
 0x463   : > { %14954 = vst [vmem:[#allocation116_spill] sm:$0xff] %v11444_v59  ;;  %14955 = vst [vmem:[#allocation117_spill] sm:$0xff] %v11446_v10  ;;  %3130 = vrot.lane.b32.xlu0 %v11442_v0, %s10262_s5  ;;  %v11466_v59 = vpop.permute.xlu0 %2796 }
 0x464   : > { %v2403_v7 = vpop.f32.mrf.mxu1  ;;  %v11450_v44 = vpop.f32.mrf.mxu0 }
 0x465   : > { %14956 = vst [vmem:[#allocation118_spill] sm:$0xff] %v11450_v44  ;;  %v11453_v62 = vadd.f32 %v2403_v7, %v11112_v29 }
 0x466   : > { %v11455_v47 = vpop.f32.mrf.mxu1  ;;  %v11457_v36 = vpop.f32.mrf.mxu0 }
 0x467   : > { %14957 = vst [vmem:[#allocation119_spill] sm:$0xff] %v11455_v47  ;;  %14958 = vst [vmem:[#allocation120_spill] sm:$0xff] %v11457_v36  ;;  %3132 = vrot.lane.b32.xlu1 %v11453_v62, %s10262_s5  ;;  %v11475_v47 = vpop.permute.xlu1 %3072 }
 0x468   : > { %v2407_v17 = vpop.f32.mrf.mxu1  ;;  %v11461_v33 = vpop.f32.mrf.mxu0 }
 0x469   : > { %14959 = vst [vmem:[#allocation121_spill] sm:$0xff] %v11461_v33  ;;  %v11464_v10 = vadd.f32 %v2407_v17, %v11112_v29  ;;  %v11478_v29 = vpop.permute.xlu0 %3074 }
 0x46a   : > { %v11468_v63 = vpop.f32.mrf.mxu0 }
 0x46b   : > { %14960 = vst [vmem:[#allocation122_spill] sm:$0xff] %v11468_v63  ;;  %3134 = vrot.lane.b32.xlu0 %v11464_v10, %s10262_s5  ;;  %3264 = vrot.lane.b32.xlu1 %v10904_v28, %s10265_s24  ;;  %v11483_v15 = vpop.permute.xlu1 %3076 }
 0x46c   : > { %v9667_v7 = vpop.f32.mrf.mxu0 }
 0x46d   : > { %v2890_v36 = vadd.f32 %v9667_v7, %v11466_v59  ;;  %v11487_v19 = vpop.permute.xlu0 %3078 }
 0x46e   : > { %v2881_v44 = vpop.f32.mrf.mxu0 }
 0x46f   : > { %v2882_v33 = vadd.f32 %v2881_v44, %v11466_v59  ;;  %v3010_v56 = vmul.f32 %v2890_v36, %v11142_v55 }
 0x470   : > { %v9668_v17 = vpop.f32.mrf.mxu0 }
 0x471   : > { %v3008_v12 = vmul.f32 %v2882_v33, %v11120_v31  ;;  %v2893_v63 = vadd.f32 %v9668_v17, %v11466_v59  ;;  %v3170_v17 = vadd.f32 %v11483_v15, %v3010_v56  ;;  %v11494_v54 = vpop.permute.xlu1 %3080 }
 0x472   : > { %v2884_v43 = vpop.f32.mrf.mxu0 }
 0x473   : > { %v3011_v28 = vmul.f32 %v2893_v63, %v11156_v50  ;;  %v2885_v7 = vadd.f32 %v2884_v43, %v11466_v59  ;;  %v3168_v44 = vadd.f32 %v11475_v47, %v3008_v12  ;;  %v3202_v56 = vmax.f32 %v3170_v17, 0.0 }
 0x474   : > { %v9671_v21 = vpop.f32.mrf.mxu0 }
 0x475   : > { %v3171_v53 = vadd.f32 %v11487_v19, %v3011_v28  ;;  %v3009_v33 = vmul.f32 %v2885_v7, %v11131_v49  ;;  %v2906_v36 = vadd.f32 %v9671_v21, %v11466_v59  ;;  %v3200_v1 = vmax.f32 %v3168_v44, 0.0  ;;  %v11498_v12 = vpop.permute.xlu0 %3082 }
 0x476   : > { %v2897_v48 = vpop.f32.mrf.mxu0 }
 0x477   : > { %v3169_v63 = vadd.f32 %v11478_v29, %v3009_v33  ;;  %v2898_v43 = vadd.f32 %v2897_v48, %v11466_v59  ;;  %v3203_v30 = vmax.f32 %v3171_v53, 0.0  ;;  %v3014_v21 = vmul.f32 %v2906_v36, %v11189_v34 }
 0x478   : > { %v9672_v16 = vpop.f32.mrf.mxu0 }
 0x479   : > { %v3201_v27 = vmax.f32 %v3169_v63, 0.0  ;;  %v3012_v28 = vmul.f32 %v2898_v43, %v11167_v57  ;;  %v2909_v7 = vadd.f32 %v9672_v16, %v11466_v59  ;;  %v11504_v52 = vpop.permute.xlu1 %3084  ;;  %v3233_v33 = vpack.c.bf16 %v3203_v30, %v3202_v56 }
 0x47a   : > { %v2900_v46 = vpop.f32.mrf.mxu0  ;;  %v3174_v16 = vadd.f32 %v11504_v52, %v3014_v21 }
 0x47b   : > { %v3015_v41 = vmul.f32 %v2909_v7, %v11200_v26  ;;  %v2901_v48 = vadd.f32 %v2900_v46, %v11466_v59  ;;  %v3232_v53 = vpack.c.bf16 %v3201_v27, %v3200_v1  ;;  %v3172_v63 = vadd.f32 %v11494_v54, %v3012_v28 }
 0x47c   : > { %v9675_v44 = vpop.f32.mrf.mxu0 }
 0x47d   : > { %v3013_v58 = vmul.f32 %v2901_v48, %v11178_v13  ;;  %v11509_v43 = vpop.permute.xlu0 %3086  ;;  %9701 = vmatprep.mubr.msk.bf16.mxu1 %vm1397_vm5, %v3232_v53  ;;  %v3204_v28 = vmax.f32 %v3172_v63, 0.0  ;;  %v3206_v48 = vmax.f32 %v3174_v16, 0.0  ;;  %v2922_v63 = vadd.f32 %v9675_v44, %v11466_v59 }
 0x47e   : > { %v3175_v17 = vadd.f32 %v11509_v43, %v3015_v41  ;;  %v2913_v36 = vpop.f32.mrf.mxu0  ;;  %9702 = vmatmul.mubr.msk.bf16.vlgmr.msra.gmra.mxu1 %vm1397_vm5, %v3233_v33 }
 0x47f   : > { %v3173_v46 = vadd.f32 %v11498_v12, %v3013_v58  ;;  %v2914_v1 = vadd.f32 %v2913_v36, %v11466_v59 }
 0x480   : > { %v3207_v27 = vmax.f32 %v3175_v17, 0.0  ;;  %v9676_v30 = vpop.f32.mrf.mxu0 }
 0x481   : > { %v3205_v7 = vmax.f32 %v3173_v46, 0.0  ;;  %v3016_v56 = vmul.f32 %v2914_v1, %v11211_v20  ;;  %v11518_v40 = vpop.permute.xlu1 %3088  ;;  %v2925_v46 = vadd.f32 %v9676_v30, %v11466_v59 }
 0x482   : > { %v2916_v53 = vpop.f32.mrf.mxu0  ;;  %v3235_v37 = vpack.c.bf16 %v3207_v27, %v3206_v48 }
 0x483   : > { %v2917_v21 = vadd.f32 %v2916_v53, %v11466_v59  ;;  %v3234_v41 = vpack.c.bf16 %v3205_v7, %v3204_v28  ;;  %v3176_v33 = vadd.f32 %v11518_v40, %v3016_v56  ;;  %v3018_v56 = vmul.f32 %v2922_v63, %v11233_v42 }
 0x484   : > { %v9679_v32 = vpop.f32.mrf.mxu0  ;;  %v3019_v53 = vmul.f32 %v2925_v46, %v11244_v5 }
 0x485   : > { %v3017_v58 = vmul.f32 %v2917_v21, %v11222_v23  ;;  %v11523_v36 = vpop.permute.xlu0 %3090  ;;  %9705 = vmatprep.mubr.msk.bf16.mxu1 %vm1397_vm5, %v3234_v41  ;;  %v3208_v1 = vmax.f32 %v3176_v33, 0.0 }
 0x486   : > { %v2929_v17 = vpop.f32.mrf.mxu0  ;;  %9706 = vmatmul.mubr.msk.bf16.gmra.mxu1 %vm1397_vm5, %v3235_v37 }
 0x487   : > { %v3177_v16 = vadd.f32 %v11523_v36, %v3017_v58  ;;  %v2930_v37 = vadd.f32 %v2929_v17, %v11466_v59 }
 0x488   : > { %v9680_v28 = vpop.f32.mrf.mxu0 }
 0x489   : > { %v3209_v27 = vmax.f32 %v3177_v16, 0.0  ;;  %v11530_v7 = vpop.permute.xlu1 %3092  ;;  %v3020_v46 = vmul.f32 %v2930_v37, %v11255_v35 }
 0x48a   : > { %v3178_v21 = vadd.f32 %v11530_v7, %v3018_v56  ;;  %v2932_v44 = vpop.f32.mrf.mxu0 }
 0x48b   : > { %v3236_v48 = vpack.c.bf16 %v3209_v27, %v3208_v1  ;;  %v2933_v58 = vadd.f32 %v2932_v44, %v11466_v59  ;;  %v2941_v44 = vadd.f32 %v9680_v28, %v11466_v59 }
 0x48c   : > { %v3210_v33 = vmax.f32 %v3178_v21, 0.0  ;;  %v9683_v8 = vpop.f32.mrf.mxu0 }
 0x48d   : > { %v11535_v41 = vpop.permute.xlu0 %3094  ;;  %9709 = vmatprep.mubr.msk.bf16.mxu1 %vm1397_vm5, %v3236_v48  ;;  %v3021_v27 = vmul.f32 %v2933_v58, %v11266_v14 }
 0x48e   : > { %14961 = vst [vmem:[#allocation123_spill] sm:$0xff] %v11535_v41  ;;  %v3179_v30 = vadd.f32 %v11535_v41, %v3019_v53  ;;  %v2945_v48 = vpop.f32.mrf.mxu0  ;;  %v2938_v53 = vadd.f32 %v9679_v32, %v11466_v59 }
 0x490   : > { %v3211_v16 = vmax.f32 %v3179_v30, 0.0  ;;  %v9684_v41 = vpop.f32.mrf.mxu0 }
 0x491   : > { %v11541_v63 = vpop.permute.xlu1 %3096 }
 0x492   : > { %v3237_v1 = vpack.c.bf16 %v3211_v16, %v3210_v33  ;;  %v3180_v56 = vadd.f32 %v11541_v63, %v3020_v46  ;;  %v3022_v33 = vmul.f32 %v2938_v53, %v11277_v39  ;;  %v3023_v16 = vmul.f32 %v2941_v44, %v11288_v25 }
 0x494   : > { %9710 = vmatmul.mubr.msk.bf16.gmra.mxu1 %vm1397_vm5, %v3237_v1  ;;  %v3212_v30 = vmax.f32 %v3180_v56, 0.0  ;;  %v2948_v1 = vpop.f32.mrf.mxu0 }
 0x495   : > { %v11547_v17 = vpop.permute.xlu0 %3098  ;;  %v2949_v56 = vadd.f32 %v2948_v1, %v11466_v59  ;;  %v2957_v1 = vadd.f32 %v9684_v41, %v11466_v59 }
 0x496   : > { %14962 = vst [vmem:[#allocation124_spill] sm:$0xff] %v11547_v17  ;;  %v3181_v21 = vadd.f32 %v11547_v17, %v3021_v27  ;;  %v2946_v27 = vadd.f32 %v2945_v48, %v11466_v59  ;;  %v9687_v14 = vpop.f32.mrf.mxu0 }
 0x498   : > { %v3213_v60 = vmax.f32 %v3181_v21, 0.0 }
 0x499   : > { %v11552_v37 = vpop.permute.xlu1 %3100 }
 0x49a   : > { %v3238_v58 = vpack.c.bf16 %v3213_v60, %v3212_v30  ;;  %v3182_v46 = vadd.f32 %v11552_v37, %v3022_v33  ;;  %v3024_v60 = vmul.f32 %v2946_v27, %v11299_v45  ;;  %v3025_v30 = vmul.f32 %v2949_v56, %v11310_v51 }
 0x49c   : > { %9713 = vmatprep.mubr.msk.bf16.mxu1 %vm1397_vm5, %v3238_v58  ;;  %v3214_v21 = vmax.f32 %v3182_v46, 0.0  ;;  %v2961_v58 = vpop.f32.mrf.mxu0 }
 0x49d   : > { %v11558_v32 = vpop.permute.xlu0 %3102 }
 0x49e   : > { %14963 = vst [vmem:[#allocation125_spill] sm:$0xff] %v11558_v32  ;;  %v3183_v28 = vadd.f32 %v11558_v32, %v3023_v16  ;;  %v2954_v16 = vadd.f32 %v9683_v8, %v11466_v59  ;;  %v9688_v25 = vpop.f32.mrf.mxu0 }
 0x4a0   : > { %v3215_v17 = vmax.f32 %v3183_v28, 0.0 }
 0x4a1   : > { %v11563_v53 = vpop.permute.xlu1 %3104 }
 0x4a2   : > { %v3239_v44 = vpack.c.bf16 %v3215_v17, %v3214_v21  ;;  %v3184_v33 = vadd.f32 %v11563_v53, %v3024_v60  ;;  %v3026_v17 = vmul.f32 %v2954_v16, %v11321_v24  ;;  %v3027_v21 = vmul.f32 %v2957_v1, %v11332_v6 }
 0x4a4   : > { %9714 = vmatmul.mubr.msk.bf16.gmra.mxu1 %vm1397_vm5, %v3239_v44  ;;  %v3216_v28 = vmax.f32 %v3184_v33, 0.0  ;;  %v2964_v44 = vpop.f32.mrf.mxu0 }
 0x4a5   : > { %v11569_v48 = vpop.permute.xlu0 %3106  ;;  %v2965_v33 = vadd.f32 %v2964_v44, %v11466_v59  ;;  %v2973_v44 = vadd.f32 %v9688_v25, %v11466_v59 }
 0x4a6   : > { %14964 = vst [vmem:[#allocation126_spill] sm:$0xff] %v11569_v48  ;;  %v3185_v46 = vadd.f32 %v11569_v48, %v3025_v30  ;;  %v2962_v30 = vadd.f32 %v2961_v58, %v11466_v59  ;;  %v9691_v51 = vpop.f32.mrf.mxu0 }
 0x4a8   : > { %v3217_v32 = vmax.f32 %v3185_v46, 0.0 }
 0x4a9   : > { %v11574_v27 = vpop.permute.xlu1 %3108 }
 0x4aa   : > { %v3240_v56 = vpack.c.bf16 %v3217_v32, %v3216_v28  ;;  %v3186_v60 = vadd.f32 %v11574_v27, %v3026_v17  ;;  %v3028_v32 = vmul.f32 %v2962_v30, %v11343_v9  ;;  %v3029_v28 = vmul.f32 %v2965_v33, %v11354_v11 }
 0x4ac   : > { %9717 = vmatprep.mubr.msk.bf16.mxu1 %vm1397_vm5, %v3240_v56  ;;  %v3218_v46 = vmax.f32 %v3186_v60, 0.0  ;;  %v2977_v56 = vpop.f32.mrf.mxu0 }
 0x4ad   : > { %v11580_v8 = vpop.permute.xlu0 %3110  ;;  %v2978_v25 = vadd.f32 %v2977_v56, %v11466_v59 }
 0x4ae   : > { %14965 = vst [vmem:[#allocation127_spill] sm:$0xff] %v11580_v8  ;;  %v3187_v41 = vadd.f32 %v11580_v8, %v3027_v21  ;;  %v2970_v21 = vadd.f32 %v9687_v14, %v11466_v59  ;;  %v9692_v6 = vpop.f32.mrf.mxu0 }
 0x4b0   : > { %v3219_v48 = vmax.f32 %v3187_v41, 0.0  ;;  %v2980_v14 = vpop.f32.mrf.mxu0 }
 0x4b1   : > { %v11585_v16 = vpop.permute.xlu1 %3112 }
 0x4b2   : > { %v3241_v1 = vpack.c.bf16 %v3219_v48, %v3218_v46  ;;  %v3188_v17 = vadd.f32 %v11585_v16, %v3028_v32  ;;  %v3030_v48 = vmul.f32 %v2970_v21, %v11365_v2  ;;  %v11599_v46 = vpop.f32.mrf.mxu1  ;;  %v3031_v32 = vmul.f32 %v2973_v44, %v11376_v22 }
 0x4b3   : > { %14967 = vst [vmem:[#allocation129_spill] sm:$0xff] %v11599_v46  ;;  %v2981_v21 = vadd.f32 %v2980_v14, %v11466_v59  ;;  %v9695_v46 = vpop.f32.mrf.mxu0  ;;  %v3032_v44 = vmul.f32 %v2978_v25, %v11387_v3  ;;  %v2989_v25 = vadd.f32 %v9692_v6, %v11466_v59 }
 0x4b4   : > { %9718 = vmatmul.mubr.msk.bf16.gmra.mxu1 %vm1397_vm5, %v3241_v1  ;;  %v3220_v41 = vmax.f32 %v3188_v17, 0.0 }
 0x4b5   : > { %v11591_v58 = vpop.permute.xlu0 %3114  ;;  %v3033_v22 = vmul.f32 %v2981_v21, %v11398_v4  ;;  %v3035_v4 = vmul.f32 %v2989_v25, %v11420_v18 }
 0x4b6   : > { %14966 = vst [vmem:[#allocation128_spill] sm:$0xff] %v11591_v58  ;;  %v3189_v60 = vadd.f32 %v11591_v58, %v3029_v28 }
 0x4b8   : > { %v3221_v8 = vmax.f32 %v3189_v60, 0.0  ;;  %v11608_v60 = vpop.f32.mrf.mxu1 }
 0x4b9   : > { %v11596_v30 = vpop.permute.xlu1 %3116  ;;  %14968 = vst [vmem:[#allocation130_spill] sm:$0xff] %v11608_v60 }
 0x4ba   : > { %v3242_v33 = vpack.c.bf16 %v3221_v8, %v3220_v41  ;;  %v3190_v1 = vadd.f32 %v11596_v30, %v3030_v48 }
 0x4bc   : > { %9721 = vmatprep.mubr.msk.bf16.mxu1 %vm1397_vm5, %v3242_v33  ;;  %v3222_v8 = vmax.f32 %v3190_v1, 0.0  ;;  %v11614_v33 = vpop.f32.mrf.mxu1  ;;  %v2986_v1 = vadd.f32 %v9691_v51, %v11466_v59 }
 0x4bd   : > { %v11604_v28 = vpop.permute.xlu0 %3118  ;;  %14969 = vst [vmem:[#allocation131_spill] sm:$0xff] %v11614_v33 }
 0x4be   : > { %v3191_v17 = vadd.f32 %v11604_v28, %v3031_v32  ;;  %v2993_v32 = vpop.f32.mrf.mxu0  ;;  %v3034_v21 = vmul.f32 %v2986_v1, %v11409_v38 }
 0x4bf   : > { %v2994_v6 = vadd.f32 %v2993_v32, %v11466_v59  ;;  %v3002_v32 = vadd.f32 %v9695_v46, %v11466_v59 }
 0x4c0   : > { %v3223_v41 = vmax.f32 %v3191_v17, 0.0  ;;  %v11623_v17 = vpop.f32.mrf.mxu1  ;;  %v9696_v33 = vpop.f32.mrf.mxu0 }
 0x4c1   : > { %v11611_v58 = vpop.permute.xlu1 %3120  ;;  %14970 = vst [vmem:[#allocation132_spill] sm:$0xff] %v11623_v17  ;;  %v3036_v25 = vmul.f32 %v2994_v6, %v11431_v61 }
 0x4c2   : > { %v3243_v48 = vpack.c.bf16 %v3223_v41, %v3222_v8  ;;  %v3192_v56 = vadd.f32 %v11611_v58, %v3032_v44 }
 0x4c4   : > { %9722 = vmatmul.mubr.msk.bf16.gmra.mxu1 %vm1397_vm5, %v3243_v48  ;;  %v3224_v8 = vmax.f32 %v3192_v56, 0.0  ;;  %v11629_v48 = vpop.f32.mrf.mxu1 }
 0x4c5   : > { %v11619_v60 = vpop.permute.xlu0 %3122  ;;  %14972 = vst [vmem:[#allocation134_spill] sm:$0xff] %v11629_v48 }
 0x4c6   : > { %v3193_v14 = vadd.f32 %v11619_v60, %v3033_v22  ;;  %v2996_v22 = vpop.f32.mrf.mxu0 }
 0x4c7   : > { %v2997_v1 = vadd.f32 %v2996_v22, %v11466_v59 }
 0x4c8   : > { %v3225_v41 = vmax.f32 %v3193_v14, 0.0  ;;  %v11638_v14 = vpop.f32.mrf.mxu1 }
 0x4c9   : > { %v11626_v3 = vpop.permute.xlu1 %3124  ;;  %14973 = vst [vmem:[#allocation135_spill] sm:$0xff] %v11638_v14 }
 0x4ca   : > { %14971 = vst [vmem:[#allocation133_spill] sm:$0xff] %v11626_v3  ;;  %v3244_v44 = vpack.c.bf16 %v3225_v41, %v3224_v8  ;;  %v3194_v51 = vadd.f32 %v11626_v3, %v3034_v21  ;;  %v11644_v18 = vpop.f32.mrf.mxu1 }
 0x4cb   : > { %14974 = vst [vmem:[#allocation136_spill] sm:$0xff] %v11644_v18 }
 0x4cc   : > { %9725 = vmatprep.mubr.msk.bf16.mxu1 %vm1397_vm5, %v3244_v44  ;;  %v3226_v8 = vmax.f32 %v3194_v51, 0.0  ;;  %v3037_v44 = vmul.f32 %v2997_v1, %v11442_v0  ;;  %v11653_v22 = vpop.f32.mrf.mxu1  ;;  %v3038_v1 = vmul.f32 %v3002_v32, %v11453_v62 }
 0x4cd   : > { %v11634_v17 = vpop.permute.xlu0 %3126  ;;  %14975 = vst [vmem:[#allocation137_spill] sm:$0xff] %v11653_v22 }
 0x4ce   : > { %v3195_v56 = vadd.f32 %v11634_v17, %v3035_v4 }
 0x4d0   : > { %v3227_v41 = vmax.f32 %v3195_v56, 0.0  ;;  %v3005_v56 = vadd.f32 %v9696_v33, %v11466_v59 }
 0x4d1   : > { %v11641_v48 = vpop.permute.xlu1 %3128 }
 0x4d2   : > { %v3245_v21 = vpack.c.bf16 %v3227_v41, %v3226_v8  ;;  %v3196_v3 = vadd.f32 %v11641_v48, %v3036_v25  ;;  %v11659_v25 = vpop.f32.mrf.mxu1 }
 0x4d3   : > { %14976 = vst [vmem:[#allocation138_spill] sm:$0xff] %v11659_v25 }
 0x4d4   : > { %9726 = vmatmul.mubr.msk.bf16.gmra.mxu1 %vm1397_vm5, %v3245_v21  ;;  %v3228_v6 = vmax.f32 %v3196_v3, 0.0  ;;  %v3039_v21 = vmul.f32 %v3005_v56, %v11464_v10  ;;  %v11667_v59 = vpop.f32.mrf.mxu1 }
 0x4d5   : > { %v11649_v4 = vpop.permute.xlu0 %3130  ;;  %14977 = vst [vmem:[#allocation139_spill] sm:$0xff] %v11667_v59 }
 0x4d6   : > { %v3197_v51 = vadd.f32 %v11649_v4, %v3037_v44  ;;  %v11669_v22 = vpop.f32.mrf.mxu1 }
 0x4d7   : > { %14978 = vst [vmem:[#allocation140_spill] sm:$0xff] %v11669_v22 }
 0x4d8   : > { %v3229_v8 = vmax.f32 %v3197_v51, 0.0  ;;  %v11672_v32 = vpop.f32.mrf.mxu1 }
 0x4d9   : > { %v11656_v41 = vpop.permute.xlu1 %3132  ;;  %14979 = vst [vmem:[#allocation141_spill] sm:$0xff] %v11672_v32 }
 0x4da   : > { %v3246_v14 = vpack.c.bf16 %v3229_v8, %v3228_v6  ;;  %v3198_v18 = vadd.f32 %v11656_v41, %v3038_v1  ;;  %v11674_v56 = vpop.f32.mrf.mxu1 }
 0x4db   : > { %14980 = vst [vmem:[#allocation142_spill] sm:$0xff] %v11674_v56 }
 0x4dc   : > { %9729 = vmatprep.mubr.msk.bf16.mxu1 %vm1397_vm5, %v3246_v14  ;;  %v3230_v3 = vmax.f32 %v3198_v18, 0.0  ;;  %v11676_v6 = vpop.f32.mrf.mxu1 }
 0x4dd   : > { %v11664_v46 = vpop.permute.xlu0 %3134  ;;  %14981 = vst [vmem:[#allocation143_spill] sm:$0xff] %v11676_v6 }
 0x4de   : > { %v3199_v44 = vadd.f32 %v11664_v46, %v3039_v21  ;;  %v11678_v14 = vpop.f32.mrf.mxu1 }
 0x4df   : > { %14982 = vst [vmem:[#allocation144_spill] sm:$0xff] %v11678_v14 }
 0x4e0   : > { %v3231_v33 = vmax.f32 %v3199_v44, 0.0  ;;  %v11680_v8 = vpop.f32.mrf.mxu1 }
 0x4e1   : > { %14983 = vst [vmem:[#allocation145_spill] sm:$0xff] %v11680_v8 }
 0x4e2   : > { %v3247_v51 = vpack.c.bf16 %v3231_v33, %v3230_v3  ;;  %v11682_v1 = vpop.f32.mrf.mxu1 }
 0x4e3   : > { %14984 = vst [vmem:[#allocation146_spill] sm:$0xff] %v11682_v1 }
 0x4e4   : > { %9730 = vmatmul.mubr.msk.bf16.gmra.mxu1 %vm1397_vm5, %v3247_v51  ;;  %v11684_v21 = vpop.f32.mrf.mxu1 }
 0x4e5   : > { %14985 = vst [vmem:[#allocation147_spill] sm:$0xff] %v11684_v21 }
 0x4e6   : > { %v11686_v18 = vpop.f32.mrf.mxu1 }
 0x4e7   : > { %14986 = vst [vmem:[#allocation148_spill] sm:$0xff] %v11686_v18 }
 0x4e8   : > { %v11688_v44 = vpop.f32.mrf.mxu1 }
 0x4e9   : > { %14987 = vst [vmem:[#allocation149_spill] sm:$0xff] %v11688_v44 }
 0x4ea   : > { %v11690_v3 = vpop.f32.mrf.mxu1 }
 0x4eb   : > { %14988 = vst [vmem:[#allocation150_spill] sm:$0xff] %v11690_v3 }
 0x4ec   : > { %v11692_v33 = vpop.f32.mrf.mxu1 }
 0x4ed   : > { %14989 = vst [vmem:[#allocation151_spill] sm:$0xff] %v11692_v33 }
 0x4ee   : > { %v11694_v51 = vpop.f32.mrf.mxu1 }
 0x4ef   : > { %14990 = vst [vmem:[#allocation152_spill] sm:$0xff] %v11694_v51 }
 0x4f0   : > { %v11696_v59 = vpop.f32.mrf.mxu1 }
 0x4f1   : > { %14991 = vst [vmem:[#allocation153_spill] sm:$0xff] %v11696_v59  ;;  %v11716_v59 = vpop.permute.xlu1 %3264 }
 0x4f2   : > { %v11698_v6 = vpop.f32.mrf.mxu1 }
 0x4f3   : > { %14992 = vst [vmem:[#allocation154_spill] sm:$0xff] %v11698_v6 }
 0x4f4   : > { %v11700_v14 = vpop.f32.mrf.mxu1 }
 0x4f5   : > { %14993 = vst [vmem:[#allocation155_spill] sm:$0xff] %v11700_v14 }
 0x4f6   : > { %v11702_v8 = vpop.f32.mrf.mxu1 }
 0x4f7   : > { %14994 = vst [vmem:[#allocation156_spill] sm:$0xff] %v11702_v8 }
 0x4f8   : > { %v11704_v1 = vpop.f32.mrf.mxu1 }
 0x4f9   : > { %14995 = vst [vmem:[#allocation157_spill] sm:$0xff] %v11704_v1 }
 0x4fa   : > { %v11706_v21 = vpop.f32.mrf.mxu1 }
 0x4fb   : > { %14996 = vst [vmem:[#allocation158_spill] sm:$0xff] %v11706_v21 }
 0x4fc   : > { %v11708_v18 = vpop.f32.mrf.mxu1 }
 0x4fd   : > { %14997 = vst [vmem:[#allocation159_spill] sm:$0xff] %v11708_v18 }
 0x4fe   : > { %v11710_v44 = vpop.f32.mrf.mxu1 }
 0x4ff   : > { %14998 = vst [vmem:[#allocation160_spill] sm:$0xff] %v11710_v44 }
 0x500   : > { %v11712_v3 = vpop.f32.mrf.mxu1 }
 0x501   : > { %14999 = vst [vmem:[#allocation161_spill] sm:$0xff] %v11712_v3 }
 0x502   : > { %v11714_v33 = vpop.f32.mrf.mxu1 }
 0x503   : > { %15000 = vst [vmem:[#allocation162_spill] sm:$0xff] %v11714_v33 }
 0x53e   : > { %v9703_v51 = vpop.f32.mrf.mxu1 }
 0x53f   : > { %v3358_v8 = vadd.f32 %v9703_v51, %v11716_v59 }
 0x540   : > { %v3349_v6 = vpop.f32.mrf.mxu1 }
 0x541   : > { %v3350_v14 = vadd.f32 %v3349_v6, %v11716_v59 }
 0x542   : > { %v9704_v32 = vpop.f32.mrf.mxu1 }
 0x543   : > { %3508 = vrot.lane.b32.xlu0 %v3350_v14, %s10263_s26  ;;  %v3361_v44 = vadd.f32 %v9704_v32, %v11716_v59 }
 0x544   : > { %v3352_v1 = vpop.f32.mrf.mxu1 }
 0x545   : > { %v3353_v18 = vadd.f32 %v3352_v1, %v11716_v59 }
 0x546   : > { %v9707_v21 = vpop.f32.mrf.mxu1 }
 0x547   : > { %3510 = vrot.lane.b32.xlu1 %v3353_v18, %s10263_s26  ;;  %3512 = vrot.lane.b32.xlu0 %v3358_v8, %s10263_s26  ;;  %v3374_v14 = vadd.f32 %v9707_v21, %v11716_v59 }
 0x548   : > { %v3365_v3 = vpop.f32.mrf.mxu1 }
 0x549   : > { %v3366_v33 = vadd.f32 %v3365_v3, %v11716_v59 }
 0x54a   : > { %v9708_v22 = vpop.f32.mrf.mxu1 }
 0x54b   : > { %3514 = vrot.lane.b32.xlu1 %v3361_v44, %s10263_s26  ;;  %3516 = vrot.lane.b32.xlu0 %v3366_v33, %s10263_s26  ;;  %v3377_v8 = vadd.f32 %v9708_v22, %v11716_v59 }
 0x54c   : > { %v3368_v6 = vpop.f32.mrf.mxu1 }
 0x54d   : > { %v3369_v1 = vadd.f32 %v3368_v6, %v11716_v59 }
 0x54f   : > { %3518 = vrot.lane.b32.xlu1 %v3369_v1, %s10263_s26  ;;  %3520 = vrot.lane.b32.xlu0 %v3374_v14, %s10263_s26 }
 0x553   : > { %3522 = vrot.lane.b32.xlu1 %v3377_v8, %s10263_s26 }
 0x554   : > { %v9711_v32 = vpop.f32.mrf.mxu1 }
 0x555   : > { %v3390_v21 = vadd.f32 %v9711_v32, %v11716_v59 }
 0x556   : > { %v3381_v18 = vpop.f32.mrf.mxu1 }
 0x557   : > { %v3382_v3 = vadd.f32 %v3381_v18, %v11716_v59 }
 0x558   : > { %v9712_v44 = vpop.f32.mrf.mxu1 }
 0x559   : > { %3524 = vrot.lane.b32.xlu0 %v3382_v3, %s10263_s26  ;;  %v3393_v22 = vadd.f32 %v9712_v44, %v11716_v59 }
 0x55a   : > { %v3384_v33 = vpop.f32.mrf.mxu1 }
 0x55b   : > { %v3385_v51 = vadd.f32 %v3384_v33, %v11716_v59 }
 0x55d   : > { %3526 = vrot.lane.b32.xlu1 %v3385_v51, %s10263_s26  ;;  %3528 = vrot.lane.b32.xlu0 %v3390_v21, %s10263_s26 }
 0x561   : > { %3530 = vrot.lane.b32.xlu1 %v3393_v22, %s10263_s26 }
 0x564   : > { %v9715_v6 = vpop.f32.mrf.mxu1 }
 0x565   : > { %v3406_v32 = vadd.f32 %v9715_v6, %v11716_v59 }
 0x566   : > { %v3397_v14 = vpop.f32.mrf.mxu1 }
 0x567   : > { %v3398_v1 = vadd.f32 %v3397_v14, %v11716_v59 }
 0x568   : > { %v9716_v8 = vpop.f32.mrf.mxu1 }
 0x569   : > { %3532 = vrot.lane.b32.xlu0 %v3398_v1, %s10263_s26  ;;  %v3409_v44 = vadd.f32 %v9716_v8, %v11716_v59 }
 0x56a   : > { %v3400_v18 = vpop.f32.mrf.mxu1 }
 0x56b   : > { %v3401_v3 = vadd.f32 %v3400_v18, %v11716_v59 }
 0x56d   : > { %3534 = vrot.lane.b32.xlu1 %v3401_v3, %s10263_s26  ;;  %3536 = vrot.lane.b32.xlu0 %v3406_v32, %s10263_s26 }
 0x571   : > { %3538 = vrot.lane.b32.xlu1 %v3409_v44, %s10263_s26 }
 0x574   : > { %v9719_v33 = vpop.f32.mrf.mxu1 }
 0x575   : > { %v3422_v6 = vadd.f32 %v9719_v33, %v11716_v59 }
 0x576   : > { %v3413_v21 = vpop.f32.mrf.mxu1 }
 0x577   : > { %v3414_v51 = vadd.f32 %v3413_v21, %v11716_v59 }
 0x578   : > { %v9720_v22 = vpop.f32.mrf.mxu1 }
 0x579   : > { %3540 = vrot.lane.b32.xlu0 %v3414_v51, %s10263_s26  ;;  %v3425_v8 = vadd.f32 %v9720_v22, %v11716_v59 }
 0x57a   : > { %v3416_v14 = vpop.f32.mrf.mxu1 }
 0x57b   : > { %v3417_v1 = vadd.f32 %v3416_v14, %v11716_v59 }
 0x57d   : > { %3542 = vrot.lane.b32.xlu1 %v3417_v1, %s10263_s26  ;;  %3544 = vrot.lane.b32.xlu0 %v3422_v6, %s10263_s26 }
 0x581   : > { %3546 = vrot.lane.b32.xlu1 %v3425_v8, %s10263_s26 }
 0x584   : > { %v9723_v18 = vpop.f32.mrf.mxu1 }
 0x585   : > { %v3438_v33 = vadd.f32 %v9723_v18, %v11716_v59 }
 0x586   : > { %v3429_v32 = vpop.f32.mrf.mxu1 }
 0x587   : > { %v3430_v3 = vadd.f32 %v3429_v32, %v11716_v59 }
 0x588   : > { %v9724_v44 = vpop.f32.mrf.mxu1 }
 0x589   : > { %3548 = vrot.lane.b32.xlu0 %v3430_v3, %s10263_s26  ;;  %v3441_v22 = vadd.f32 %v9724_v44, %v11716_v59 }
 0x58a   : > { %v3432_v21 = vpop.f32.mrf.mxu1 }
 0x58b   : > { %v3433_v51 = vadd.f32 %v3432_v21, %v11716_v59 }
 0x58d   : > { %3550 = vrot.lane.b32.xlu1 %v3433_v51, %s10263_s26  ;;  %3552 = vrot.lane.b32.xlu0 %v3438_v33, %s10263_s26 }
 0x591   : > { %3554 = vrot.lane.b32.xlu1 %v3441_v22, %s10263_s26 }
 0x594   : > { %v9727_v14 = vpop.f32.mrf.mxu1 }
 0x595   : > { %v3454_v18 = vadd.f32 %v9727_v14, %v11716_v59  ;;  %v10164_v14 = vld [vmem:[%s14677_s9 + $0x8] sm:$0xff]  }
 0x596   : > { %v3445_v6 = vpop.f32.mrf.mxu1  ;;  %9733 = vmatprep.subr.bf16.mxu0 %v10164_v14 }
 0x597   : > { %v3446_v1 = vadd.f32 %v3445_v6, %v11716_v59  ;;  %9734 = vmatpush3.bf16.msra.mxu0 %v10164_v14 }
 0x598   : > { %v9728_v8 = vpop.f32.mrf.mxu1 }
 0x599   : > { %3556 = vrot.lane.b32.xlu0 %v3446_v1, %s10263_s26  ;;  %v3457_v44 = vadd.f32 %v9728_v8, %v11716_v59 }
 0x59a   : > { %v3448_v32 = vpop.f32.mrf.mxu1 }
 0x59b   : > { %v3449_v3 = vadd.f32 %v3448_v32, %v11716_v59 }
 0x59d   : > { %3558 = vrot.lane.b32.xlu1 %v3449_v3, %s10263_s26  ;;  %3560 = vrot.lane.b32.xlu0 %v3454_v18, %s10263_s26  ;;  %v10165_v18 = vld [vmem:[%s14677_s9] sm:$0xff]  }
 0x59e   : > { %9735 = vmatprep.subr.bf16.mxu0 %v10165_v18 }
 0x59f   : > { %9736 = vmatpush3.bf16.msra.mxu0 %v10165_v18 }
 0x5a1   : > { %3562 = vrot.lane.b32.xlu1 %v3457_v44, %s10263_s26 }
 0x5a4   : > { %v9731_v21 = vpop.f32.mrf.mxu1 }
 0x5a5   : > { %v3470_v1 = vadd.f32 %v9731_v21, %v11716_v59 }
 0x5a6   : > { %v3461_v33 = vpop.f32.mrf.mxu1 }
 0x5a7   : > { %v3462_v51 = vadd.f32 %v3461_v33, %v11716_v59 }
 0x5a8   : > { %v9732_v22 = vpop.f32.mrf.mxu1 }
 0x5a9   : > { %3564 = vrot.lane.b32.xlu0 %v3462_v51, %s10263_s26  ;;  %v3473_v8 = vadd.f32 %v9732_v22, %v11716_v59 }
 0x5aa   : > { %v3464_v6 = vpop.f32.mrf.mxu1 }
 0x5ab   : > { %v3465_v32 = vadd.f32 %v3464_v6, %v11716_v59 }
 0x5ad   : > { %3566 = vrot.lane.b32.xlu1 %v3465_v32, %s10263_s26  ;;  %3568 = vrot.lane.b32.xlu0 %v3470_v1, %s10263_s26 }
 0x5b1   : > { %3570 = vrot.lane.b32.xlu1 %v3473_v8, %s10263_s26 }
 0x5b5   : > { %v3509_v3 = vpop.permute.xlu0 %3508 }
 0x5b6   : > { %v3604_v44 = vmul.f32 %v3509_v3, %v11120_v31 }
 0x5b8   : > { %v3636_v51 = vadd.f32 %v3604_v44, %v11475_v47 }
 0x5b9   : > { %v3511_v21 = vpop.permute.xlu1 %3510  ;;  %v3513_v33 = vpop.permute.xlu0 %3512 }
 0x5ba   : > { %v3605_v6 = vmul.f32 %v3511_v21, %v11131_v49  ;;  %v3606_v14 = vmul.f32 %v3513_v33, %v11142_v55  ;;  %v3668_v8 = vmax.f32 %v3636_v51, 0.0 }
 0x5bc   : > { %v3637_v59 = vadd.f32 %v3605_v6, %v11478_v29  ;;  %v3638_v22 = vadd.f32 %v3606_v14, %v11483_v15 }
 0x5bd   : > { %v3515_v1 = vpop.permute.xlu1 %3514  ;;  %v3517_v32 = vpop.permute.xlu0 %3516 }
 0x5be   : > { %v3669_v56 = vmax.f32 %v3637_v59, 0.0  ;;  %v3607_v25 = vmul.f32 %v3515_v1, %v11156_v50  ;;  %v3608_v31 = vmul.f32 %v3517_v32, %v11167_v57  ;;  %v3670_v47 = vmax.f32 %v3638_v22, 0.0 }
 0x5c0   : > { %v3700_v18 = vpack.c.bf16 %v3669_v56, %v3668_v8  ;;  %v3639_v3 = vadd.f32 %v3607_v25, %v11487_v19  ;;  %v3640_v55 = vadd.f32 %v3608_v31, %v11494_v54 }
 0x5c1   : > { %v3519_v44 = vpop.permute.xlu1 %3518  ;;  %v3521_v49 = vpop.permute.xlu0 %3520 }
 0x5c2   : > { %v3671_v21 = vmax.f32 %v3639_v3, 0.0  ;;  %v3609_v29 = vmul.f32 %v3519_v44, %v11178_v13  ;;  %v3610_v15 = vmul.f32 %v3521_v49, %v11189_v34  ;;  %3743 = vrot.lane.b32.xlu0 %v3700_v18, %s10263_s26  ;;  %v3672_v57 = vmax.f32 %v3640_v55, 0.0  ;;  %v15001_v44 = vld [vmem:[#allocation123_spill] sm:$0xff] }
 0x5c4   : > { %v3701_v33 = vpack.c.bf16 %v3671_v21, %v3670_v47  ;;  %v3641_v50 = vadd.f32 %v3609_v29, %v11498_v12  ;;  %v3642_v19 = vadd.f32 %v3610_v15, %v11504_v52 }
 0x5c5   : > { %v3523_v51 = vpop.permute.xlu1 %3522 }
 0x5c6   : > { %v3673_v56 = vmax.f32 %v3641_v50, 0.0  ;;  %v3611_v25 = vmul.f32 %v3523_v51, %v11200_v26  ;;  %3745 = vrot.lane.b32.xlu1 %v3701_v33, %s10263_s26  ;;  %v3674_v13 = vmax.f32 %v3642_v19, 0.0  ;;  %v15003_v50 = vld [vmem:[#allocation124_spill] sm:$0xff] }
 0x5c8   : > { %v3702_v6 = vpack.c.bf16 %v3673_v56, %v3672_v57  ;;  %v3643_v54 = vadd.f32 %v3611_v25, %v11509_v43 }
 0x5ca   : > { %v3675_v14 = vmax.f32 %v3643_v54, 0.0  ;;  %3747 = vrot.lane.b32.xlu0 %v3702_v6, %s10263_s26  ;;  %v15004_v6 = vld [vmem:[#allocation67_spill] sm:$0xff] }
 0x5cb   : > { %v3525_v34 = vpop.permute.xlu0 %3524 }
 0x5cc   : > { %v3703_v59 = vpack.c.bf16 %v3675_v14, %v3674_v13  ;;  %v3612_v12 = vmul.f32 %v3525_v34, %v11211_v20  ;;  %v15005_v13 = vld [vmem:[#allocation125_spill] sm:$0xff] }
 0x5ce   : > { %3749 = vrot.lane.b32.xlu1 %v3703_v59, %s10263_s26  ;;  %v3644_v52 = vadd.f32 %v3612_v12, %v11518_v40 }
 0x5cf   : > { %v3527_v22 = vpop.permute.xlu1 %3526  ;;  %v3529_v1 = vpop.permute.xlu0 %3528 }
 0x5d0   : > { %v3613_v26 = vmul.f32 %v3527_v22, %v11222_v23  ;;  %v3614_v32 = vmul.f32 %v3529_v1, %v11233_v42  ;;  %v3676_v31 = vmax.f32 %v3644_v52, 0.0 }
 0x5d2   : > { %v3645_v43 = vadd.f32 %v3613_v26, %v11523_v36  ;;  %v3646_v3 = vadd.f32 %v3614_v32, %v11530_v7  ;;  %v15002_v7 = vld [vmem:[#allocation60_spill] sm:$0xff] }
 0x5d3   : > { %v3531_v8 = vpop.permute.xlu1 %3530 }
 0x5d4   : > { %v3677_v18 = vmax.f32 %v3645_v43, 0.0  ;;  %v3615_v47 = vmul.f32 %v3531_v8, %v11244_v5  ;;  %v3678_v21 = vmax.f32 %v3646_v3, 0.0  ;;  %v15007_v43 = vld [vmem:[#allocation126_spill] sm:$0xff] }
 0x5d6   : > { %v3704_v20 = vpack.c.bf16 %v3677_v18, %v3676_v31  ;;  %v3647_v49 = vadd.f32 %v3615_v47, %v15001_v44 }
 0x5d8   : > { %v3679_v55 = vmax.f32 %v3647_v49, 0.0  ;;  %3751 = vrot.lane.b32.xlu0 %v3704_v20, %s10263_s26  ;;  %v15008_v20 = vld [vmem:[#allocation81_spill] sm:$0xff]  ;;  %v15009_v49 = vld [vmem:[#allocation127_spill] sm:$0xff] }
 0x5da   : > { %v3705_v40 = vpack.c.bf16 %v3679_v55, %v3678_v21 }
 0x5db   : > { %v3533_v23 = vpop.permute.xlu0 %3532 }
 0x5dc   : > { %v3616_v42 = vmul.f32 %v3533_v23, %v11255_v35  ;;  %3753 = vrot.lane.b32.xlu1 %v3705_v40, %s10263_s26 }
 0x5de   : > { %v3648_v15 = vadd.f32 %v3616_v42, %v11541_v63 }
 0x5df   : > { %v3535_v36 = vpop.permute.xlu1 %3534  ;;  %v3537_v29 = vpop.permute.xlu0 %3536 }
 0x5e0   : > { %v3617_v33 = vmul.f32 %v3535_v36, %v15002_v7  ;;  %v3618_v5 = vmul.f32 %v3537_v29, %v11277_v39  ;;  %v3680_v56 = vmax.f32 %v3648_v15, 0.0  ;;  %v15010_v7 = vld [vmem:[#allocation128_spill] sm:$0xff] }
 0x5e2   : > { %v3649_v51 = vadd.f32 %v3617_v33, %v15003_v50  ;;  %v3650_v25 = vadd.f32 %v3618_v5, %v11552_v37  ;;  %v15006_v37 = vld [vmem:[#allocation74_spill] sm:$0xff] }
 0x5e3   : > { %v3539_v57 = vpop.permute.xlu1 %3538 }
 0x5e4   : > { %v3681_v19 = vmax.f32 %v3649_v51, 0.0  ;;  %v3619_v54 = vmul.f32 %v3539_v57, %v15004_v6  ;;  %v3682_v34 = vmax.f32 %v3650_v25, 0.0 }
 0x5e6   : > { %v3706_v35 = vpack.c.bf16 %v3681_v19, %v3680_v56  ;;  %v3651_v14 = vadd.f32 %v3619_v54, %v15005_v13  ;;  %v15011_v56 = vld [vmem:[#allocation94_spill] sm:$0xff] }
 0x5e8   : > { %v3683_v59 = vmax.f32 %v3651_v14, 0.0  ;;  %3755 = vrot.lane.b32.xlu0 %v3706_v35, %s10263_s26  ;;  %v15012_v35 = vld [vmem:[#allocation98_spill] sm:$0xff] }
 0x5ea   : > { %v3707_v63 = vpack.c.bf16 %v3683_v59, %v3682_v34 }
 0x5eb   : > { %v3541_v12 = vpop.permute.xlu0 %3540 }
 0x5ec   : > { %v3620_v39 = vmul.f32 %v3541_v12, %v11299_v45  ;;  %3757 = vrot.lane.b32.xlu1 %v3707_v63, %s10263_s26 }
 0x5ee   : > { %v3652_v52 = vadd.f32 %v3620_v39, %v11563_v53 }
 0x5ef   : > { %v3543_v22 = vpop.permute.xlu1 %3542  ;;  %v3545_v1 = vpop.permute.xlu0 %3544 }
 0x5f0   : > { %v3621_v26 = vmul.f32 %v3543_v22, %v15006_v37  ;;  %v3622_v32 = vmul.f32 %v3545_v1, %v11321_v24  ;;  %v3684_v18 = vmax.f32 %v3652_v52, 0.0  ;;  %v15014_v1 = vld [vmem:[#allocation133_spill] sm:$0xff] }
 0x5f1   : > { %v15015_v37 = vld [vmem:[#allocation109_spill] sm:$0xff] }
 0x5f2   : > { %v3653_v8 = vadd.f32 %v3621_v26, %v15007_v43  ;;  %v3654_v47 = vadd.f32 %v3622_v32, %v11574_v27 }
 0x5f3   : > { %v3547_v31 = vpop.permute.xlu1 %3546 }
 0x5f4   : > { %v3685_v3 = vmax.f32 %v3653_v8, 0.0  ;;  %v3623_v44 = vmul.f32 %v3547_v31, %v15008_v20  ;;  %v3686_v55 = vmax.f32 %v3654_v47, 0.0 }
 0x5f6   : > { %v3708_v45 = vpack.c.bf16 %v3685_v3, %v3684_v18  ;;  %v3655_v21 = vadd.f32 %v3623_v44, %v15009_v49  ;;  %v15016_v49 = vld [vmem:[#allocation2_spill] sm:$0xff] }
 0x5f8   : > { %v3687_v40 = vmax.f32 %v3655_v21, 0.0  ;;  %3759 = vrot.lane.b32.xlu0 %v3708_v45, %s10263_s26  ;;  %v2083_v21 = vsub.s32 2, %v15016_v49 }
 0x5fa   : > { %v3709_v53 = vpack.c.bf16 %v3687_v40, %v3686_v55 }
 0x5fb   : > { %v3549_v23 = vpop.permute.xlu0 %3548 }
 0x5fc   : > { %v3624_v24 = vmul.f32 %v3549_v23, %v11343_v9  ;;  %3761 = vrot.lane.b32.xlu1 %v3709_v53, %s10263_s26 }
 0x5fe   : > { %v3656_v29 = vadd.f32 %v3624_v24, %v11585_v16 }
 0x5ff   : > { %v3551_v42 = vpop.permute.xlu1 %3550  ;;  %v3553_v36 = vpop.permute.xlu0 %3552 }
 0x600   : > { %v3625_v27 = vmul.f32 %v3551_v42, %v11354_v11  ;;  %v3626_v15 = vmul.f32 %v3553_v36, %v11365_v2  ;;  %v3688_v50 = vmax.f32 %v3656_v29, 0.0 }
 0x602   : > { %v3657_v33 = vadd.f32 %v3625_v27, %v15010_v7  ;;  %v3658_v57 = vadd.f32 %v3626_v15, %v11596_v30  ;;  %v15013_v30 = vld [vmem:[#allocation102_spill] sm:$0xff] }
 0x603   : > { %v3555_v5 = vpop.permute.xlu1 %3554 }
 0x604   : > { %v3689_v51 = vmax.f32 %v3657_v33, 0.0  ;;  %v3627_v19 = vmul.f32 %v3555_v5, %v15011_v56  ;;  %v3690_v6 = vmax.f32 %v3658_v57, 0.0  ;;  %v10166_v33 = vld [vmem:[%s14678_s10 + $0x8] sm:$0xff]  }
 0x605   : > { %9769 = vmatprep.subr.bf16.mxu1 %v10166_v33 }
 0x606   : > { %v3710_v9 = vpack.c.bf16 %v3689_v51, %v3688_v50  ;;  %v3659_v25 = vadd.f32 %v3627_v19, %v11604_v28  ;;  %9770 = vmatpush3.bf16.msra.mxu1 %v10166_v33 }
 0x608   : > { %v3691_v54 = vmax.f32 %v3659_v25, 0.0  ;;  %3763 = vrot.lane.b32.xlu0 %v3710_v9, %s10263_s26  ;;  %v10167_v25 = vld [vmem:[%s14678_s10] sm:$0xff]  }
 0x609   : > { %9771 = vmatprep.subr.bf16.mxu1 %v10167_v25 }
 0x60a   : > { %v3711_v16 = vpack.c.bf16 %v3691_v54, %v3690_v6  ;;  %9772 = vmatpush3.bf16.msra.mxu1 %v10167_v25 }
 0x60b   : > { %v3557_v11 = vpop.permute.xlu0 %3556 }
 0x60c   : > { %v3628_v2 = vmul.f32 %v3557_v11, %v15012_v35  ;;  %3765 = vrot.lane.b32.xlu1 %v3711_v16, %s10263_s26  ;;  %v15018_v16 = vld [vmem:[#allocation19_spill] sm:$0xff]  ;;  %v15019_v35 = vld [vmem:[#allocation21_spill] sm:$0xff] }
 0x60e   : > { %v3660_v34 = vadd.f32 %v3628_v2, %v11611_v58 }
 0x60f   : > { %v3559_v13 = vpop.permute.xlu1 %3558  ;;  %v3561_v14 = vpop.permute.xlu0 %3560 }
 0x610   : > { %v3629_v59 = vmul.f32 %v3559_v13, %v15013_v30  ;;  %v3630_v63 = vmul.f32 %v3561_v14, %v11409_v38  ;;  %v3692_v39 = vmax.f32 %v3660_v34, 0.0  ;;  %v15020_v13 = vld [vmem:[#allocation24_spill] sm:$0xff]  ;;  %v15021_v34 = vld [vmem:[#allocation3_spill] sm:$0xff]  ;;  %v15022_v30 = vld [vmem:[#allocation30_spill] sm:$0xff] }
 0x612   : > { %v3661_v28 = vadd.f32 %v3629_v59, %v11619_v60  ;;  %v3662_v52 = vadd.f32 %v3630_v63, %v15014_v1  ;;  %v15023_v63 = vld [vmem:[#allocation27_spill] sm:$0xff] }
 0x613   : > { %v3563_v12 = vpop.permute.xlu1 %3562 }
 0x614   : > { %v3693_v22 = vmax.f32 %v3661_v28, 0.0  ;;  %v3631_v26 = vmul.f32 %v3563_v12, %v15015_v37  ;;  %v3694_v8 = vmax.f32 %v3662_v52, 0.0  ;;  %v15024_v12 = vld [vmem:[#allocation36_spill] sm:$0xff]  ;;  %v15026_v52 = vld [vmem:[#allocation42_spill] sm:$0xff] }
 0x616   : > { %v3712_v32 = vpack.c.bf16 %v3693_v22, %v3692_v39  ;;  %v3663_v43 = vadd.f32 %v3631_v26, %v11634_v17  ;;  %v15025_v22 = vld [vmem:[#allocation33_spill] sm:$0xff]  ;;  %v15027_v26 = vld [vmem:[#allocation39_spill] sm:$0xff] }
 0x618   : > { %v3695_v31 = vmax.f32 %v3663_v43, 0.0  ;;  %3767 = vrot.lane.b32.xlu0 %v3712_v32, %s10263_s26  ;;  %v15028_v43 = vld [vmem:[#allocation48_spill] sm:$0xff] }
 0x61a   : > { %v3713_v58 = vpack.c.bf16 %v3695_v31, %v3694_v8  ;;  %v15029_v31 = vld [vmem:[#allocation45_spill] sm:$0xff] }
 0x61b   : > { %v3565_v18 = vpop.permute.xlu0 %3564 }
 0x61c   : > { %v3632_v38 = vmul.f32 %v3565_v18, %v11431_v61  ;;  %3769 = vrot.lane.b32.xlu1 %v3713_v58, %s10263_s26  ;;  %v15030_v18 = vld [vmem:[#allocation54_spill] sm:$0xff] }
 0x61e   : > { %v3664_v47 = vadd.f32 %v3632_v38, %v11641_v48 }
 0x61f   : > { %v3567_v60 = vpop.permute.xlu1 %3566  ;;  %v3569_v3 = vpop.permute.xlu0 %3568 }
 0x620   : > { %v3633_v20 = vmul.f32 %v3567_v60, %v11442_v0  ;;  %v3634_v44 = vmul.f32 %v3569_v3, %v11453_v62  ;;  %v3696_v55 = vmax.f32 %v3664_v47, 0.0  ;;  %v10247_v62 = vld [vmem:[%s14688_s20] sm:$0x3f]  ;;  %v15031_v60 = vld [vmem:[#allocation51_spill] sm:$0xff]  ;;  %v15032_v47 = vld [vmem:[#allocation61_spill] sm:$0xff] }
 0x621   : > { %v2084_v0 = vrot.slane %v10247_v62, %v2083_v21  ;;  %v15040_v62 = vld [vmem:[#allocation78_spill] sm:$0xff] }
 0x622   : > { %v3665_v17 = vadd.f32 %v3633_v20, %v11649_v4  ;;  %v3666_v53 = vadd.f32 %v3634_v44, %v11656_v41  ;;  %v15033_v44 = vld [vmem:[#allocation57_spill] sm:$0xff] }
 0x623   : > { %v3571_v45 = vpop.permute.xlu1 %3570 }
 0x624   : > { %v3697_v40 = vmax.f32 %v3665_v17, 0.0  ;;  %v3635_v61 = vmul.f32 %v3571_v45, %v11464_v10  ;;  %v3698_v42 = vmax.f32 %v3666_v53, 0.0  ;;  %v15034_v45 = vld [vmem:[#allocation68_spill] sm:$0xff]  ;;  %v15036_v53 = vld [vmem:[#allocation75_spill] sm:$0xff] }
 0x626   : > { %v3714_v23 = vpack.c.bf16 %v3697_v40, %v3696_v55  ;;  %v3667_v24 = vadd.f32 %v3635_v61, %v11664_v46  ;;  %v15035_v55 = vld [vmem:[#allocation64_spill] sm:$0xff] }
 0x628   : > { %v3699_v48 = vmax.f32 %v3667_v24, 0.0  ;;  %3771 = vrot.lane.b32.xlu0 %v3714_v23, %s10263_s26  ;;  %v15037_v23 = vld [vmem:[#allocation71_spill] sm:$0xff] }
 0x62a   : > { %v3715_v4 = vpack.c.bf16 %v3699_v48, %v3698_v42  ;;  %v15038_v42 = vld [vmem:[#allocation82_spill] sm:$0xff] }
 0x62c   : > { %2153 = vrot.lane.b32.xlu0 %v2084_v0, %s10265_s24  ;;  %3773 = vrot.lane.b32.xlu1 %v3715_v4, %s10263_s26  ;;  %v15042_v4 = vld [vmem:[#allocation88_spill] sm:$0xff] }
 0x634   : > { %v3744_v41 = vpop.permute.xlu0 %3743 }
 0x635   : > { %9737 = vmatprep.mubr.msk.bf16.mxu0 %vm1397_vm5, %v3744_v41 }
 0x638   : > { %v3746_v10 = vpop.permute.xlu1 %3745 }
 0x639   : > { %9738 = vmatmul.mubr.msk.bf16.vlgmr.msra.gmra.mxu0 %vm1397_vm5, %v3746_v10  ;;  %v15043_v10 = vld [vmem:[#allocation85_spill] sm:$0xff] }
 0x63c   : > { %v3748_v46 = vpop.permute.xlu0 %3747 }
 0x63d   : > { %9741 = vmatprep.mubr.msk.bf16.mxu0 %vm1397_vm5, %v3748_v46 }
 0x640   : > { %v3750_v36 = vpop.permute.xlu1 %3749 }
 0x641   : > { %9742 = vmatmul.mubr.msk.bf16.gmra.mxu0 %vm1397_vm5, %v3750_v36  ;;  %v15045_v36 = vld [vmem:[#allocation95_spill] sm:$0xff] }
 0x64a   : > { %v3752_v29 = vpop.permute.xlu0 %3751 }
 0x64b   : > { %9745 = vmatprep.mubr.msk.bf16.mxu0 %vm1397_vm5, %v3752_v29 }
 0x64e   : > { %v3754_v27 = vpop.permute.xlu1 %3753 }
 0x64f   : > { %9746 = vmatmul.mubr.msk.bf16.gmra.mxu0 %vm1397_vm5, %v3754_v27  ;;  %v15047_v27 = vld [vmem:[#allocation91_spill] sm:$0xff] }
 0x65a   : > { %v3756_v15 = vpop.permute.xlu0 %3755 }
 0x65b   : > { %9749 = vmatprep.mubr.msk.bf16.mxu0 %vm1397_vm5, %v3756_v15 }
 0x65e   : > { %v3758_v7 = vpop.permute.xlu1 %3757 }
 0x65f   : > { %9750 = vmatmul.mubr.msk.bf16.gmra.mxu0 %vm1397_vm5, %v3758_v7  ;;  %v15049_v7 = vld [vmem:[#allocation103_spill] sm:$0xff] }
 0x66a   : > { %v3760_v5 = vpop.permute.xlu0 %3759 }
 0x66b   : > { %9753 = vmatprep.mubr.msk.bf16.mxu0 %vm1397_vm5, %v3760_v5  ;;  %v15050_v5 = vld [vmem:[#allocation99_spill] sm:$0xff] }
 0x66e   : > { %v3762_v50 = vpop.permute.xlu1 %3761 }
 0x66f   : > { %9754 = vmatmul.mubr.msk.bf16.gmra.mxu0 %vm1397_vm5, %v3762_v50 }
 0x67a   : > { %v3764_v51 = vpop.permute.xlu0 %3763 }
 0x67b   : > { %9757 = vmatprep.mubr.msk.bf16.mxu0 %vm1397_vm5, %v3764_v51  ;;  %v15052_v51 = vld [vmem:[#allocation110_spill] sm:$0xff] }
 0x67e   : > { %v3766_v57 = vpop.permute.xlu1 %3765 }
 0x67f   : > { %9758 = vmatmul.mubr.msk.bf16.gmra.mxu0 %vm1397_vm5, %v3766_v57 }
 0x68a   : > { %v3768_v56 = vpop.permute.xlu0 %3767 }
 0x68b   : > { %9761 = vmatprep.mubr.msk.bf16.mxu0 %vm1397_vm5, %v3768_v56  ;;  %v15054_v56 = vld [vmem:[#allocation106_spill] sm:$0xff] }
 0x68e   : > { %v3770_v19 = vpop.permute.xlu1 %3769 }
 0x68f   : > { %9762 = vmatmul.mubr.msk.bf16.gmra.mxu0 %vm1397_vm5, %v3770_v19 }
 0x69a   : > { %v3772_v9 = vpop.permute.xlu0 %3771 }
 0x69b   : > { %9765 = vmatprep.mubr.msk.bf16.mxu0 %vm1397_vm5, %v3772_v9  ;;  %v15056_v9 = vld [vmem:[#allocation116_spill] sm:$0xff] }
 0x69e   : > { %v3774_v6 = vpop.permute.xlu1 %3773  ;;  %v11894_v54 = vpop.permute.xlu0 %2153 }
 0x69f   : > { %15017 = vst [vmem:[#allocation123_spill] sm:$0xff] %v11894_v54  ;;  %v11899_v11 = vsel %vm1397_vm5, %v15018_v16, %v11894_v54  ;;  %9766 = vmatmul.mubr.msk.bf16.gmra.mxu0 %vm1397_vm5, %v3774_v6  ;;  %v15057_v6 = vld [vmem:[#allocation113_spill] sm:$0xff] }
 0x6a0   : > { %v11904_v2 = vadd.f32 %v15019_v35, %v11899_v11  ;;  %v11908_v14 = vadd.f32 %v15020_v13, %v11899_v11  ;;  %9807 = vmatprep.mubr.msk.bf16.mxu0 %vm833_vm0, %v15021_v34  ;;  %v11918_v59 = vadd.f32 %v15022_v30, %v11899_v11  ;;  %v11922_v28 = vadd.f32 %v15023_v63, %v11899_v11  ;;  %v15058_v35 = vld [vmem:[#allocation129_spill] sm:$0xff]  ;;  %v15060_v34 = vld [vmem:[#allocation119_spill] sm:$0xff]  ;;  %v12099_v63 = vld [vmem:[%s14688_s20 + $0x6] ss:$0 sm:$0xff] }
 0x6a1   : > { %v11930_v39 = vadd.f32 %v15024_v12, %v11899_v11  ;;  %v11934_v1 = vadd.f32 %v15025_v22, %v11899_v11  ;;  %v11942_v37 = vadd.f32 %v15026_v52, %v11899_v11  ;;  %v11946_v32 = vadd.f32 %v15027_v26, %v11899_v11  ;;  %15062 = vst [vmem:[#allocation98_spill] sm:$0xff] %v12099_v63 }
 0x6a2   : > { %4062 = vrot.lane.b32.xlu0 %v11908_v14, %s10262_s5  ;;  %4060 = vrot.lane.b32.xlu1 %v11904_v2, %s10262_s5  ;;  %v11954_v8 = vadd.f32 %v15028_v43, %v11899_v11  ;;  %v11958_v58 = vadd.f32 %v15029_v31, %v11899_v11  ;;  %v11966_v38 = vadd.f32 %v15030_v18, %v11899_v11 }
 0x6a3   : > { %v11970_v3 = vadd.f32 %v15031_v60, %v11899_v11  ;;  %v11978_v20 = vadd.f32 %v15032_v47, %v11899_v11  ;;  %v11982_v17 = vadd.f32 %v15033_v44, %v11899_v11  ;;  %v11990_v21 = vadd.f32 %v15034_v45, %v11899_v11 }
 0x6a4   : > { %v11994_v40 = vadd.f32 %v15035_v55, %v11899_v11  ;;  %v12002_v61 = vadd.f32 %v15036_v53, %v11899_v11  ;;  %v12006_v24 = vadd.f32 %v15037_v23, %v11899_v11  ;;  %v12014_v48 = vadd.f32 %v15038_v42, %v11899_v11 }
 0x6a5   : > { %v12018_v0 = vadd.f32 %v15040_v62, %v11899_v11  ;;  %v12026_v41 = vadd.f32 %v15042_v4, %v11899_v11  ;;  %v12030_v46 = vadd.f32 %v15043_v10, %v11899_v11  ;;  %v12038_v29 = vadd.f32 %v15045_v36, %v11899_v11 }
 0x6a6   : > { %4066 = vrot.lane.b32.xlu0 %v11918_v59, %s10262_s5  ;;  %4064 = vrot.lane.b32.xlu1 %v11922_v28, %s10262_s5  ;;  %15039 = vst [vmem:[#allocation60_spill] sm:$0xff] %v12014_v48  ;;  %v12042_v15 = vadd.f32 %v15047_v27, %v11899_v11  ;;  %v12050_v33 = vadd.f32 %v15049_v7, %v11899_v11 }
 0x6a7   : > { %15041 = vst [vmem:[#allocation124_spill] sm:$0xff] %v12018_v0  ;;  %15044 = vst [vmem:[#allocation67_spill] sm:$0xff] %v12030_v46  ;;  %v12054_v50 = vadd.f32 %v15050_v5, %v11899_v11  ;;  %v12062_v57 = vadd.f32 %v15052_v51, %v11899_v11  ;;  %v12066_v19 = vadd.f32 %v15054_v56, %v11899_v11 }
 0x6a8   : > { %15046 = vst [vmem:[#allocation125_spill] sm:$0xff] %v12038_v29  ;;  %15048 = vst [vmem:[#allocation74_spill] sm:$0xff] %v12042_v15  ;;  %v12074_v25 = vadd.f32 %v15056_v9, %v11899_v11  ;;  %v12078_v16 = vadd.f32 %v15057_v6, %v11899_v11  ;;  %v12086_v13 = vadd.f32 %v15058_v35, %v11899_v11 }
 0x6a9   : > { %15051 = vst [vmem:[#allocation126_spill] sm:$0xff] %v12054_v50  ;;  %15053 = vst [vmem:[#allocation81_spill] sm:$0xff] %v12062_v57  ;;  %v12090_v30 = vadd.f32 %v15060_v34, %v11899_v11 }
 0x6aa   : > { %4070 = vrot.lane.b32.xlu0 %v11930_v39, %s10262_s5  ;;  %4068 = vrot.lane.b32.xlu1 %v11934_v1, %s10262_s5  ;;  %15055 = vst [vmem:[#allocation127_spill] sm:$0xff] %v12066_v19  ;;  %15059 = vst [vmem:[#allocation128_spill] sm:$0xff] %v12086_v13 }
 0x6ab   : > { %15061 = vst [vmem:[#allocation94_spill] sm:$0xff] %v12090_v30 }
 0x6ae   : > { %4074 = vrot.lane.b32.xlu0 %v11942_v37, %s10262_s5  ;;  %4072 = vrot.lane.b32.xlu1 %v11946_v32, %s10262_s5 }
 0x6b2   : > { %4078 = vrot.lane.b32.xlu0 %v11954_v8, %s10262_s5  ;;  %4076 = vrot.lane.b32.xlu1 %v11958_v58, %s10262_s5 }
 0x6b6   : > { %4082 = vrot.lane.b32.xlu0 %v11966_v38, %s10262_s5  ;;  %4080 = vrot.lane.b32.xlu1 %v11970_v3, %s10262_s5 }
 0x6ba   : > { %4086 = vrot.lane.b32.xlu0 %v11978_v20, %s10262_s5  ;;  %4084 = vrot.lane.b32.xlu1 %v11982_v17, %s10262_s5 }
 0x6be   : > { %4090 = vrot.lane.b32.xlu0 %v11990_v21, %s10262_s5  ;;  %4088 = vrot.lane.b32.xlu1 %v11994_v40, %s10262_s5 }
 0x6c2   : > { %4094 = vrot.lane.b32.xlu0 %v12002_v61, %s10262_s5  ;;  %4092 = vrot.lane.b32.xlu1 %v12006_v24, %s10262_s5 }
 0x6c6   : > { %4098 = vrot.lane.b32.xlu0 %v12014_v48, %s10262_s5  ;;  %4096 = vrot.lane.b32.xlu1 %v12018_v0, %s10262_s5 }
 0x6ca   : > { %4102 = vrot.lane.b32.xlu0 %v12026_v41, %s10262_s5  ;;  %4100 = vrot.lane.b32.xlu1 %v12030_v46, %s10262_s5 }
 0x6ce   : > { %4106 = vrot.lane.b32.xlu0 %v12038_v29, %s10262_s5  ;;  %4104 = vrot.lane.b32.xlu1 %v12042_v15, %s10262_s5 }
 0x6d2   : > { %4110 = vrot.lane.b32.xlu0 %v12050_v33, %s10262_s5  ;;  %4108 = vrot.lane.b32.xlu1 %v12054_v50, %s10262_s5 }
 0x6d6   : > { %4114 = vrot.lane.b32.xlu0 %v12062_v57, %s10262_s5  ;;  %4112 = vrot.lane.b32.xlu1 %v12066_v19, %s10262_s5 }
 0x6da   : > { %4118 = vrot.lane.b32.xlu0 %v12074_v25, %s10262_s5  ;;  %4116 = vrot.lane.b32.xlu1 %v12078_v16, %s10262_s5 }
 0x6de   : > { %4122 = vrot.lane.b32.xlu0 %v12086_v13, %s10262_s5  ;;  %4120 = vrot.lane.b32.xlu1 %v12090_v30, %s10262_s5 }
 0x6e2   : > { %4252 = vrot.lane.b32.xlu1 %v12099_v63, %s10262_s5 }
 0x6f9   : > { %v9739_v12 = vpop.f32.mrf.mxu0 }
 0x6fa   : > { %v3878_v53 = vadd.f32 %v9739_v12, %v12099_v63 }
 0x6fb   : > { %v3869_v22 = vpop.f32.mrf.mxu0 }
 0x6fc   : > { %v3870_v47 = vadd.f32 %v12099_v63, %v3869_v22  ;;  %v3998_v51 = vmul.f32 %v3878_v53, %v11922_v28 }
 0x6fd   : > { %v9740_v52 = vpop.f32.mrf.mxu0 }
 0x6fe   : > { %v3881_v45 = vadd.f32 %v9740_v52, %v12099_v63  ;;  %v3996_v23 = vmul.f32 %v3870_v47, %v11904_v2 }
 0x6ff   : > { %v3872_v26 = vpop.f32.mrf.mxu0 }
 0x700   : > { %v3873_v60 = vadd.f32 %v12099_v63, %v3872_v26  ;;  %v3999_v27 = vmul.f32 %v3881_v45, %v11918_v59 }
 0x701   : > { %v9743_v11 = vpop.f32.mrf.mxu0 }
 0x702   : > { %v3997_v55 = vmul.f32 %v3873_v60, %v11908_v14  ;;  %v3894_v47 = vadd.f32 %v9743_v11, %v12099_v63 }
 0x703   : > { %v3885_v43 = vpop.f32.mrf.mxu0 }
 0x704   : > { %v3886_v56 = vadd.f32 %v12099_v63, %v3885_v43 }
 0x705   : > { %v9744_v31 = vpop.f32.mrf.mxu0 }
 0x706   : > { %v3897_v26 = vadd.f32 %v9744_v31, %v12099_v63  ;;  %v4000_v43 = vmul.f32 %v3886_v56, %v11934_v1 }
 0x707   : > { %v3888_v18 = vpop.f32.mrf.mxu0 }
 0x708   : > { %v3889_v7 = vadd.f32 %v12099_v63, %v3888_v18 }
 0x70a   : > { %v4001_v18 = vmul.f32 %v3889_v7, %v11930_v39 }
 0x70f   : > { %v9747_v44 = vpop.f32.mrf.mxu0 }
 0x711   : > { %v3901_v42 = vpop.f32.mrf.mxu0 }
 0x712   : > { %v3902_v56 = vadd.f32 %v12099_v63, %v3901_v42  ;;  %v3910_v42 = vadd.f32 %v9747_v44, %v12099_v63 }
 0x713   : > { %v9748_v9 = vpop.f32.mrf.mxu0 }
 0x714   : > { %v12109_v62 = vpop.permute.xlu0 %4062  ;;  %v12112_v10 = vpop.permute.xlu1 %4060 }
 0x715   : > { %v4157_v4 = vadd.f32 %v12109_v62, %v3997_v55  ;;  %v4156_v36 = vadd.f32 %v12112_v10, %v3996_v23  ;;  %v3904_v45 = vpop.f32.mrf.mxu0 }
 0x716   : > { %v3905_v7 = vadd.f32 %v12099_v63, %v3904_v45 }
 0x717   : > { %v4189_v5 = vmax.f32 %v4157_v4, 0.0  ;;  %v4188_v6 = vmax.f32 %v4156_v36, 0.0 }
 0x718   : > { %v12119_v35 = vpop.permute.xlu0 %4066  ;;  %v12122_v12 = vpop.permute.xlu1 %4064  ;;  %v4005_v45 = vmul.f32 %v3905_v7, %v11954_v8 }
 0x719   : > { %v4159_v34 = vadd.f32 %v12119_v35, %v3999_v27  ;;  %v4220_v22 = vpack.c.bf16 %v4189_v5, %v4188_v6  ;;  %v4158_v52 = vadd.f32 %v12122_v12, %v3998_v51  ;;  %v4003_v27 = vmul.f32 %v3897_v26, %v11942_v37 }
 0x71a   : > { %v4002_v51 = vmul.f32 %v3894_v47, %v11946_v32 }
 0x71b   : > { %v4191_v60 = vmax.f32 %v4159_v34, 0.0  ;;  %v4190_v55 = vmax.f32 %v4158_v52, 0.0  ;;  %9773 = vmatprep.mubr.msk.bf16.mxu1 %vm1397_vm5, %v4220_v22 }
 0x71c   : > { %v12130_v53 = vpop.permute.xlu0 %4070  ;;  %v12133_v4 = vpop.permute.xlu1 %4068 }
 0x71d   : > { %v4161_v23 = vadd.f32 %v12130_v53, %v4001_v18  ;;  %v4221_v36 = vpack.c.bf16 %v4191_v60, %v4190_v55  ;;  %v4160_v31 = vadd.f32 %v12133_v4, %v4000_v43  ;;  %v3913_v43 = vadd.f32 %v9748_v9, %v12099_v63 }
 0x71f   : > { %v4193_v11 = vmax.f32 %v4161_v23, 0.0  ;;  %v9751_v5 = vpop.f32.mrf.mxu0  ;;  %v4192_v6 = vmax.f32 %v4160_v31, 0.0  ;;  %9774 = vmatmul.mubr.msk.bf16.vlgmr.msra.gmra.mxu1 %vm1397_vm5, %v4221_v36  ;;  %v4004_v23 = vmul.f32 %v3902_v56, %v11958_v58  ;;  %v4007_v7 = vmul.f32 %v3913_v43, %v11966_v38 }
 0x720   : > { %v12141_v34 = vpop.permute.xlu0 %4074  ;;  %v12144_v52 = vpop.permute.xlu1 %4072  ;;  %v4006_v56 = vmul.f32 %v3910_v42, %v11970_v3  ;;  %v3926_v42 = vadd.f32 %v9751_v5, %v12099_v63 }
 0x721   : > { %v4163_v22 = vadd.f32 %v12141_v34, %v4003_v27  ;;  %v3917_v18 = vpop.f32.mrf.mxu0  ;;  %v4222_v60 = vpack.c.bf16 %v4193_v11, %v4192_v6  ;;  %v4162_v26 = vadd.f32 %v12144_v52, %v4002_v51 }
 0x722   : > { %v4010_v5 = vmul.f32 %v3926_v42, %v11994_v40 }
 0x723   : > { %v4195_v47 = vmax.f32 %v4163_v22, 0.0  ;;  %v9752_v55 = vpop.f32.mrf.mxu0  ;;  %v4194_v36 = vmax.f32 %v4162_v26, 0.0  ;;  %9777 = vmatprep.mubr.msk.bf16.mxu1 %vm1397_vm5, %v4222_v60  ;;  %v3918_v26 = vadd.f32 %v12099_v63, %v3917_v18 }
 0x724   : > { %v12152_v31 = vpop.permute.xlu0 %4078  ;;  %v12155_v11 = vpop.permute.xlu1 %4076  ;;  %v3929_v43 = vadd.f32 %v9752_v55, %v12099_v63 }
 0x725   : > { %v4165_v27 = vadd.f32 %v12152_v31, %v4005_v45  ;;  %v3920_v51 = vpop.f32.mrf.mxu0  ;;  %v4223_v6 = vpack.c.bf16 %v4195_v47, %v4194_v36  ;;  %v4164_v9 = vadd.f32 %v12155_v11, %v4004_v23  ;;  %v4008_v18 = vmul.f32 %v3918_v26, %v11982_v17 }
 0x726   : > { %v3921_v44 = vadd.f32 %v12099_v63, %v3920_v51  ;;  %v4011_v55 = vmul.f32 %v3929_v43, %v11990_v21 }
 0x727   : > { %v4197_v22 = vmax.f32 %v4165_v27, 0.0  ;;  %v4196_v60 = vmax.f32 %v4164_v9, 0.0  ;;  %9778 = vmatmul.mubr.msk.bf16.gmra.mxu1 %vm1397_vm5, %v4223_v6 }
 0x728   : > { %v12163_v54 = vpop.permute.xlu0 %4082  ;;  %v12166_v49 = vpop.permute.xlu1 %4080  ;;  %v4009_v36 = vmul.f32 %v3921_v44, %v11978_v20 }
 0x729   : > { %v4167_v45 = vadd.f32 %v12163_v54, %v4007_v7  ;;  %v4224_v47 = vpack.c.bf16 %v4197_v22, %v4196_v60  ;;  %v4166_v23 = vadd.f32 %v12166_v49, %v4006_v56 }
 0x72b   : > { %v4199_v27 = vmax.f32 %v4167_v45, 0.0  ;;  %v4198_v51 = vmax.f32 %v4166_v23, 0.0  ;;  %9781 = vmatprep.mubr.msk.bf16.mxu1 %vm1397_vm5, %v4224_v47 }
 0x72c   : > { %v12174_v6 = vpop.permute.xlu0 %4086  ;;  %v12177_v7 = vpop.permute.xlu1 %4084 }
 0x72d   : > { %15063 = vst [vmem:[#allocation102_spill] sm:$0xff] %v12174_v6  ;;  %v4169_v9 = vadd.f32 %v12174_v6, %v4009_v36  ;;  %v4225_v22 = vpack.c.bf16 %v4199_v27, %v4198_v51  ;;  %v4168_v56 = vadd.f32 %v12177_v7, %v4008_v18 }
 0x72f   : > { %v4201_v44 = vmax.f32 %v4169_v9, 0.0  ;;  %v9755_v60 = vpop.f32.mrf.mxu0  ;;  %v4200_v45 = vmax.f32 %v4168_v56, 0.0  ;;  %9782 = vmatmul.mubr.msk.bf16.gmra.mxu1 %vm1397_vm5, %v4225_v22 }
 0x730   : > { %v12183_v26 = vpop.permute.xlu0 %4090  ;;  %v12186_v23 = vpop.permute.xlu1 %4088  ;;  %v3942_v9 = vadd.f32 %v9755_v60, %v12099_v63 }
 0x731   : > { %15064 = vst [vmem:[#allocation133_spill] sm:$0xff] %v12183_v26  ;;  %v4171_v47 = vadd.f32 %v12183_v26, %v4011_v55  ;;  %v3933_v36 = vpop.f32.mrf.mxu0  ;;  %v4226_v6 = vpack.c.bf16 %v4201_v44, %v4200_v45  ;;  %v4170_v27 = vadd.f32 %v12186_v23, %v4010_v5 }
 0x732   : > { %v3934_v18 = vadd.f32 %v12099_v63, %v3933_v36  ;;  %v4014_v36 = vmul.f32 %v3942_v9, %v12018_v0 }
 0x733   : > { %v4203_v43 = vmax.f32 %v4171_v47, 0.0  ;;  %v9756_v51 = vpop.f32.mrf.mxu0  ;;  %v4202_v42 = vmax.f32 %v4170_v27, 0.0  ;;  %9785 = vmatprep.mubr.msk.bf16.mxu1 %vm1397_vm5, %v4226_v6 }
 0x734   : > { %v4012_v56 = vmul.f32 %v3934_v18, %v12006_v24  ;;  %v3945_v22 = vadd.f32 %v9756_v51, %v12099_v63  ;;  %v12194_v55 = vpop.permute.xlu0 %4094  ;;  %v12196_v26 = vpop.permute.xlu1 %4092 }
 0x735   : > { %15065 = vst [vmem:[#allocation109_spill] sm:$0xff] %v12196_v26  ;;  %v3936_v44 = vpop.f32.mrf.mxu0  ;;  %v4227_v45 = vpack.c.bf16 %v4203_v43, %v4202_v42 }
 0x736   : > { %v4015_v5 = vmul.f32 %v3945_v22, %v12014_v48  ;;  %v3937_v47 = vadd.f32 %v12099_v63, %v3936_v44  ;;  %v4172_v60 = vadd.f32 %v12196_v26, %v4012_v56 }
 0x737   : > { %9786 = vmatmul.mubr.msk.bf16.gmra.mxu1 %vm1397_vm5, %v4227_v45 }
 0x738   : > { %v4013_v27 = vmul.f32 %v3937_v47, %v12002_v61  ;;  %v12204_v18 = vpop.permute.xlu0 %4098  ;;  %v12207_v51 = vpop.permute.xlu1 %4096  ;;  %v4204_v44 = vmax.f32 %v4172_v60, 0.0 }
 0x739   : > { %15066 = vst [vmem:[#allocation19_spill] sm:$0xff] %v12204_v18  ;;  %v4175_v6 = vadd.f32 %v12204_v18, %v4015_v5  ;;  %15067 = vst [vmem:[#allocation21_spill] sm:$0xff] %v12207_v51  ;;  %v4174_v42 = vadd.f32 %v12207_v51, %v4014_v36 }
 0x73a   : > { %v4173_v43 = vadd.f32 %v12194_v55, %v4013_v27 }
 0x73b   : > { %v4207_v22 = vmax.f32 %v4175_v6, 0.0  ;;  %v4206_v9 = vmax.f32 %v4174_v42, 0.0 }
 0x73c   : > { %v4205_v48 = vmax.f32 %v4173_v43, 0.0  ;;  %v12212_v45 = vpop.permute.xlu0 %4102  ;;  %v12216_v18 = vpop.permute.xlu1 %4100 }
 0x73d   : > { %v4229_v56 = vpack.c.bf16 %v4207_v22, %v4206_v9 }
 0x73e   : > { %v4228_v0 = vpack.c.bf16 %v4205_v48, %v4204_v44 }
 0x73f   : > { %v9759_v26 = vpop.f32.mrf.mxu0 }
 0x740   : > { %9789 = vmatprep.mubr.msk.bf16.mxu1 %vm1397_vm5, %v4228_v0  ;;  %v3958_v47 = vadd.f32 %v9759_v26, %v12099_v63  ;;  %v12224_v26 = vpop.permute.xlu0 %4106  ;;  %v12226_v22 = vpop.permute.xlu1 %4104 }
 0x741   : > { %v3949_v5 = vpop.f32.mrf.mxu0  ;;  %9790 = vmatmul.mubr.msk.bf16.gmra.mxu1 %vm1397_vm5, %v4229_v56  ;;  %15068 = vst [vmem:[#allocation24_spill] sm:$0xff] %v12224_v26 }
 0x742   : > { %v3950_v36 = vadd.f32 %v12099_v63, %v3949_v5  ;;  %v4018_v6 = vmul.f32 %v3958_v47, %v12042_v15 }
 0x743   : > { %v9760_v27 = vpop.f32.mrf.mxu0 }
 0x744   : > { %v4016_v60 = vmul.f32 %v3950_v36, %v12030_v46  ;;  %v3961_v48 = vadd.f32 %v9760_v27, %v12099_v63  ;;  %v4178_v5 = vadd.f32 %v12226_v22, %v4018_v6  ;;  %v12234_v51 = vpop.permute.xlu0 %4110 }
 0x745   : > { %v3952_v43 = vpop.f32.mrf.mxu0 }
 0x746   : > { %v4019_v0 = vmul.f32 %v3961_v48, %v12038_v29  ;;  %v3953_v42 = vadd.f32 %v12099_v63, %v3952_v43  ;;  %v4176_v44 = vadd.f32 %v12216_v18, %v4016_v60  ;;  %v4210_v48 = vmax.f32 %v4178_v5, 0.0 }
 0x748   : > { %v4179_v9 = vadd.f32 %v12224_v26, %v4019_v0  ;;  %v4017_v56 = vmul.f32 %v3953_v42, %v12026_v41  ;;  %v4208_v27 = vmax.f32 %v4176_v44, 0.0  ;;  %v12238_v42 = vpop.permute.xlu1 %4108 }
 0x74a   : > { %v4177_v36 = vadd.f32 %v12212_v45, %v4017_v56  ;;  %v4211_v47 = vmax.f32 %v4179_v9, 0.0 }
 0x74c   : > { %v4209_v15 = vmax.f32 %v4177_v36, 0.0  ;;  %v4231_v43 = vpack.c.bf16 %v4211_v47, %v4210_v48  ;;  %v12248_v47 = vpop.permute.xlu1 %4112 }
 0x74e   : > { %v4230_v29 = vpack.c.bf16 %v4209_v15, %v4208_v27 }
 0x74f   : > { %v9763_v46 = vpop.f32.mrf.mxu0 }
 0x750   : > { %9793 = vmatprep.mubr.msk.bf16.mxu1 %vm1397_vm5, %v4230_v29  ;;  %v3974_v60 = vadd.f32 %v9763_v46, %v12099_v63  ;;  %v12246_v46 = vpop.permute.xlu0 %4114 }
 0x751   : > { %v3965_v0 = vpop.f32.mrf.mxu0  ;;  %9794 = vmatmul.mubr.msk.bf16.gmra.mxu1 %vm1397_vm5, %v4231_v43 }
 0x752   : > { %v3966_v6 = vadd.f32 %v12099_v63, %v3965_v0  ;;  %v4022_v56 = vmul.f32 %v3974_v60, %v12066_v19 }
 0x753   : > { %v9764_v9 = vpop.f32.mrf.mxu0 }
 0x754   : > { %v4020_v44 = vmul.f32 %v3966_v6, %v12054_v50  ;;  %v3977_v15 = vadd.f32 %v9764_v9, %v12099_v63  ;;  %v4182_v0 = vadd.f32 %v12248_v47, %v4022_v56  ;;  %v12256_v26 = vpop.permute.xlu0 %4118 }
 0x755   : > { %v3968_v5 = vpop.f32.mrf.mxu0 }
 0x756   : > { %v4023_v29 = vmul.f32 %v3977_v15, %v12062_v57  ;;  %v3969_v36 = vadd.f32 %v12099_v63, %v3968_v5  ;;  %v4180_v27 = vadd.f32 %v12238_v42, %v4020_v44  ;;  %v4214_v15 = vmax.f32 %v4182_v0, 0.0 }
 0x758   : > { %v4183_v48 = vadd.f32 %v12246_v46, %v4023_v29  ;;  %v4021_v43 = vmul.f32 %v3969_v36, %v12050_v33  ;;  %v4212_v9 = vmax.f32 %v4180_v27, 0.0  ;;  %v12260_v36 = vpop.permute.xlu1 %4116 }
 0x75a   : > { %v4181_v6 = vadd.f32 %v12234_v51, %v4021_v43  ;;  %v4215_v60 = vmax.f32 %v4183_v48, 0.0 }
 0x75c   : > { %v4213_v19 = vmax.f32 %v4181_v6, 0.0  ;;  %v4233_v5 = vpack.c.bf16 %v4215_v60, %v4214_v15  ;;  %v12270_v60 = vpop.permute.xlu1 %4120 }
 0x75e   : > { %v4232_v57 = vpack.c.bf16 %v4213_v19, %v4212_v9 }
 0x75f   : > { %v9767_v50 = vpop.f32.mrf.mxu0 }
 0x760   : > { %9797 = vmatprep.mubr.msk.bf16.mxu1 %vm1397_vm5, %v4232_v57  ;;  %v3990_v44 = vadd.f32 %v9767_v50, %v12099_v63  ;;  %v12268_v50 = vpop.permute.xlu0 %4122 }
 0x761   : > { %v3981_v29 = vpop.f32.mrf.mxu0  ;;  %9798 = vmatmul.mubr.msk.bf16.gmra.mxu1 %vm1397_vm5, %v4233_v5  ;;  %15069 = vst [vmem:[#allocation3_spill] sm:$0xff] %v12268_v50 }
 0x762   : > { %v3982_v56 = vadd.f32 %v12099_v63, %v3981_v29  ;;  %v4026_v43 = vmul.f32 %v3990_v44, %v12090_v30 }
 0x763   : > { %v9768_v48 = vpop.f32.mrf.mxu0 }
 0x764   : > { %v4024_v27 = vmul.f32 %v3982_v56, %v12078_v16  ;;  %v3993_v19 = vadd.f32 %v9768_v48, %v12099_v63  ;;  %v4186_v29 = vadd.f32 %v12270_v60, %v4026_v43 }
 0x765   : > { %v3984_v0 = vpop.f32.mrf.mxu0 }
 0x766   : > { %v4027_v57 = vmul.f32 %v3993_v19, %v12086_v13  ;;  %v3985_v6 = vadd.f32 %v12099_v63, %v3984_v0  ;;  %v4184_v9 = vadd.f32 %v12260_v36, %v4024_v27  ;;  %v4218_v19 = vmax.f32 %v4186_v29, 0.0  ;;  %v12279_v27 = vpop.permute.xlu1 %4252 }
 0x768   : > { %v4187_v15 = vadd.f32 %v12268_v50, %v4027_v57  ;;  %v4025_v5 = vmul.f32 %v3985_v6, %v12074_v25  ;;  %v4216_v48 = vmax.f32 %v4184_v9, 0.0 }
 0x76a   : > { %v4185_v56 = vadd.f32 %v12256_v26, %v4025_v5  ;;  %v4219_v44 = vmax.f32 %v4187_v15, 0.0 }
 0x76c   : > { %v4217_v30 = vmax.f32 %v4185_v56, 0.0  ;;  %v4235_v0 = vpack.c.bf16 %v4219_v44, %v4218_v19 }
 0x76e   : > { %v4234_v13 = vpack.c.bf16 %v4217_v30, %v4216_v48 }
 0x770   : > { %9801 = vmatprep.mubr.msk.bf16.mxu1 %vm1397_vm5, %v4234_v13 }
 0x771   : > { %9802 = vmatmul.mubr.msk.bf16.gmra.mxu1 %vm1397_vm5, %v4235_v0 }
 0x7df   : > { %v9775_v63 = vpop.f32.mrf.mxu1 }
 0x7e0   : > { %v4346_v9 = vadd.f32 %v9775_v63, %v12279_v27 }
 0x7e1   : > { %v4337_v57 = vpop.f32.mrf.mxu1 }
 0x7e2   : > { %v4338_v6 = vadd.f32 %v4337_v57, %v12279_v27 }
 0x7e3   : > { %v9776_v50 = vpop.f32.mrf.mxu1 }
 0x7e4   : > { %4496 = vrot.lane.b32.xlu0 %v4338_v6, %s10263_s26  ;;  %v4349_v5 = vadd.f32 %v9776_v50, %v12279_v27 }
 0x7e5   : > { %v4340_v43 = vpop.f32.mrf.mxu1 }
 0x7e6   : > { %v4341_v15 = vadd.f32 %v4340_v43, %v12279_v27 }
 0x7e7   : > { %v9779_v30 = vpop.f32.mrf.mxu1 }
 0x7e8   : > { %4498 = vrot.lane.b32.xlu1 %v4341_v15, %s10263_s26  ;;  %4500 = vrot.lane.b32.xlu0 %v4346_v9, %s10263_s26  ;;  %v4362_v63 = vadd.f32 %v9779_v30, %v12279_v27 }
 0x7e9   : > { %v4353_v13 = vpop.f32.mrf.mxu1 }
 0x7ea   : > { %v4354_v29 = vadd.f32 %v4353_v13, %v12279_v27 }
 0x7eb   : > { %v9780_v56 = vpop.f32.mrf.mxu1 }
 0x7ec   : > { %4502 = vrot.lane.b32.xlu1 %v4349_v5, %s10263_s26  ;;  %4504 = vrot.lane.b32.xlu0 %v4354_v29, %s10263_s26  ;;  %v4365_v50 = vadd.f32 %v9780_v56, %v12279_v27 }
 0x7ed   : > { %v4356_v44 = vpop.f32.mrf.mxu1 }
 0x7ee   : > { %v4357_v48 = vadd.f32 %v4356_v44, %v12279_v27 }
 0x7ef   : > { %v9783_v19 = vpop.f32.mrf.mxu1 }
 0x7f0   : > { %4506 = vrot.lane.b32.xlu1 %v4357_v48, %s10263_s26  ;;  %4508 = vrot.lane.b32.xlu0 %v4362_v63, %s10263_s26  ;;  %v4378_v9 = vadd.f32 %v9783_v19, %v12279_v27 }
 0x7f1   : > { %v4369_v0 = vpop.f32.mrf.mxu1 }
 0x7f2   : > { %v4370_v57 = vadd.f32 %v4369_v0, %v12279_v27 }
 0x7f3   : > { %v9784_v6 = vpop.f32.mrf.mxu1 }
 0x7f4   : > { %4510 = vrot.lane.b32.xlu1 %v4365_v50, %s10263_s26  ;;  %4512 = vrot.lane.b32.xlu0 %v4370_v57, %s10263_s26  ;;  %v4381_v5 = vadd.f32 %v9784_v6, %v12279_v27 }
 0x7f5   : > { %v4372_v43 = vpop.f32.mrf.mxu1 }
 0x7f6   : > { %v4373_v15 = vadd.f32 %v4372_v43, %v12279_v27 }
 0x7f7   : > { %v9787_v30 = vpop.f32.mrf.mxu1 }
 0x7f8   : > { %4514 = vrot.lane.b32.xlu1 %v4373_v15, %s10263_s26  ;;  %4516 = vrot.lane.b32.xlu0 %v4378_v9, %s10263_s26  ;;  %v4394_v63 = vadd.f32 %v9787_v30, %v12279_v27 }
 0x7f9   : > { %v4385_v13 = vpop.f32.mrf.mxu1 }
 0x7fa   : > { %v4386_v29 = vadd.f32 %v4385_v13, %v12279_v27 }
 0x7fb   : > { %v9788_v56 = vpop.f32.mrf.mxu1 }
 0x7fc   : > { %4518 = vrot.lane.b32.xlu1 %v4381_v5, %s10263_s26  ;;  %4520 = vrot.lane.b32.xlu0 %v4386_v29, %s10263_s26  ;;  %v4397_v0 = vadd.f32 %v9788_v56, %v12279_v27 }
 0x7fd   : > { %v4388_v44 = vpop.f32.mrf.mxu1 }
 0x7fe   : > { %v4389_v48 = vadd.f32 %v4388_v44, %v12279_v27 }
 0x800   : > { %4522 = vrot.lane.b32.xlu1 %v4389_v48, %s10263_s26  ;;  %4524 = vrot.lane.b32.xlu0 %v4394_v63, %s10263_s26 }
 0x801   : > { %v9791_v19 = vpop.f32.mrf.mxu1 }
 0x802   : > { %v4410_v9 = vadd.f32 %v9791_v19, %v12279_v27 }
 0x803   : > { %v4401_v50 = vpop.f32.mrf.mxu1 }
 0x804   : > { %v4402_v57 = vadd.f32 %v4401_v50, %v12279_v27  ;;  %4526 = vrot.lane.b32.xlu1 %v4397_v0, %s10263_s26 }
 0x805   : > { %v9792_v6 = vpop.f32.mrf.mxu1 }
 0x806   : > { %4528 = vrot.lane.b32.xlu0 %v4402_v57, %s10263_s26  ;;  %v4413_v30 = vadd.f32 %v9792_v6, %v12279_v27 }
 0x807   : > { %v4404_v43 = vpop.f32.mrf.mxu1 }
 0x808   : > { %v4405_v15 = vadd.f32 %v4404_v43, %v12279_v27 }
 0x80a   : > { %4530 = vrot.lane.b32.xlu1 %v4405_v15, %s10263_s26  ;;  %4532 = vrot.lane.b32.xlu0 %v4410_v9, %s10263_s26 }
 0x80e   : > { %4534 = vrot.lane.b32.xlu1 %v4413_v30, %s10263_s26 }
 0x811   : > { %v9795_v13 = vpop.f32.mrf.mxu1 }
 0x812   : > { %v4426_v63 = vadd.f32 %v9795_v13, %v12279_v27 }
 0x813   : > { %v4417_v5 = vpop.f32.mrf.mxu1 }
 0x814   : > { %v4418_v29 = vadd.f32 %v4417_v5, %v12279_v27 }
 0x815   : > { %v9796_v56 = vpop.f32.mrf.mxu1 }
 0x816   : > { %4536 = vrot.lane.b32.xlu0 %v4418_v29, %s10263_s26  ;;  %v4429_v19 = vadd.f32 %v9796_v56, %v12279_v27 }
 0x817   : > { %v4420_v44 = vpop.f32.mrf.mxu1 }
 0x818   : > { %v4421_v48 = vadd.f32 %v4420_v44, %v12279_v27 }
 0x81a   : > { %4538 = vrot.lane.b32.xlu1 %v4421_v48, %s10263_s26  ;;  %4540 = vrot.lane.b32.xlu0 %v4426_v63, %s10263_s26  ;;  %v10168_v63 = vld [vmem:[%s14680_s12] sm:$0xff]   ;;  %v10169_v48 = vld [vmem:[%s14679_s11 + $0x8] sm:$0xff]  }
 0x81b   : > { %9805 = vmatprep.subr.bf16.mxu0 %v10168_v63  ;;  %9839 = vmatprep.subr.bf16.mxu1 %v10169_v48 }
 0x81c   : > { %9806 = vmatpush3.bf16.msra.mxu0 %v10168_v63  ;;  %9840 = vmatpush3.bf16.msra.mxu1 %v10169_v48 }
 0x81e   : > { %4542 = vrot.lane.b32.xlu1 %v4429_v19, %s10263_s26 }
 0x821   : > { %v9799_v0 = vpop.f32.mrf.mxu1 }
 0x822   : > { %v4442_v9 = vadd.f32 %v9799_v0, %v12279_v27 }
 0x823   : > { %v4433_v50 = vpop.f32.mrf.mxu1 }
 0x824   : > { %v4434_v57 = vadd.f32 %v4433_v50, %v12279_v27  ;;  %v10170_v50 = vld [vmem:[%s14679_s11] sm:$0xff]  }
 0x825   : > { %v9800_v6 = vpop.f32.mrf.mxu1  ;;  %9841 = vmatprep.subr.bf16.mxu1 %v10170_v50 }
 0x826   : > { %4544 = vrot.lane.b32.xlu0 %v4434_v57, %s10263_s26  ;;  %v4445_v30 = vadd.f32 %v9800_v6, %v12279_v27  ;;  %v15070_v6 = vld [vmem:[#allocation4_spill] sm:$0xff]  ;;  %9842 = vmatpush3.bf16.msra.mxu1 %v10170_v50 }
 0x827   : > { %v4436_v43 = vpop.f32.mrf.mxu1  ;;  %9808 = vmatmul.mubr.msk.bf16.vlgmr.msra.gmra.mxu0 %vm833_vm0, %v15070_v6 }
 0x828   : > { %v4437_v15 = vadd.f32 %v4436_v43, %v12279_v27  ;;  %v15071_v43 = vld [vmem:[#allocation5_spill] sm:$0xff] }
 0x829   : > { %9811 = vmatprep.mubr.msk.bf16.mxu0 %vm833_vm0, %v15071_v43 }
 0x82a   : > { %4546 = vrot.lane.b32.xlu1 %v4437_v15, %s10263_s26  ;;  %4548 = vrot.lane.b32.xlu0 %v4442_v9, %s10263_s26  ;;  %v15072_v9 = vld [vmem:[#allocation6_spill] sm:$0xff]  ;;  %v15073_v15 = vld [vmem:[#allocation7_spill] sm:$0xff] }
 0x82e   : > { %4550 = vrot.lane.b32.xlu1 %v4445_v30, %s10263_s26  ;;  %v15074_v30 = vld [vmem:[#allocation8_spill] sm:$0xff] }
 0x82f   : > { %9812 = vmatmul.mubr.msk.bf16.gmra.mxu0 %vm833_vm0, %v15072_v9 }
 0x830   : > { %9815 = vmatprep.mubr.msk.bf16.mxu0 %vm833_vm0, %v15073_v15  ;;  %v15079_v15 = vld [vmem:[#allocation13_spill] sm:$0xff] }
 0x831   : > { %v9803_v13 = vpop.f32.mrf.mxu1 }
 0x832   : > { %v4458_v19 = vadd.f32 %v9803_v13, %v12279_v27  ;;  %v15076_v13 = vld [vmem:[#allocation10_spill] sm:$0xff] }
 0x833   : > { %v4449_v5 = vpop.f32.mrf.mxu1 }
 0x834   : > { %v4450_v29 = vadd.f32 %v4449_v5, %v12279_v27 }
 0x835   : > { %v9804_v56 = vpop.f32.mrf.mxu1 }
 0x836   : > { %4552 = vrot.lane.b32.xlu0 %v4450_v29, %s10263_s26  ;;  %v4461_v57 = vadd.f32 %v9804_v56, %v12279_v27  ;;  %v15077_v29 = vld [vmem:[#allocation11_spill] sm:$0xff] }
 0x837   : > { %v4452_v44 = vpop.f32.mrf.mxu1  ;;  %9816 = vmatmul.mubr.msk.bf16.gmra.mxu0 %vm833_vm0, %v15074_v30 }
 0x838   : > { %v4453_v0 = vadd.f32 %v4452_v44, %v12279_v27  ;;  %v15075_v27 = vld [vmem:[#allocation9_spill] sm:$0xff] }
 0x839   : > { %9819 = vmatprep.mubr.msk.bf16.mxu0 %vm833_vm0, %v15075_v27 }
 0x83a   : > { %4554 = vrot.lane.b32.xlu1 %v4453_v0, %s10263_s26  ;;  %4556 = vrot.lane.b32.xlu0 %v4458_v19, %s10263_s26 }
 0x83e   : > { %4558 = vrot.lane.b32.xlu1 %v4461_v57, %s10263_s26  ;;  %v15078_v57 = vld [vmem:[#allocation12_spill] sm:$0xff] }
 0x83f   : > { %9820 = vmatmul.mubr.msk.bf16.gmra.mxu0 %vm833_vm0, %v15076_v13 }
 0x840   : > { %9823 = vmatprep.mubr.msk.bf16.mxu0 %vm833_vm0, %v15077_v29 }
 0x847   : > { %9824 = vmatmul.mubr.msk.bf16.gmra.mxu0 %vm833_vm0, %v15078_v57 }
 0x848   : > { %9827 = vmatprep.mubr.msk.bf16.mxu0 %vm833_vm0, %v15079_v15 }
 0x856   : > { %v4497_v5 = vpop.permute.xlu0 %4496 }
 0x857   : > { %v4592_v56 = vmul.f32 %v4497_v5, %v11904_v2 }
 0x859   : > { %v4624_v48 = vadd.f32 %v4592_v56, %v12112_v10 }
 0x85a   : > { %v4499_v44 = vpop.permute.xlu1 %4498  ;;  %v4501_v63 = vpop.permute.xlu0 %4500 }
 0x85b   : > { %v4593_v19 = vmul.f32 %v4499_v44, %v11908_v14  ;;  %v4594_v0 = vmul.f32 %v4501_v63, %v11922_v28  ;;  %v4656_v2 = vmax.f32 %v4624_v48, 0.0  ;;  %v15080_v48 = vld [vmem:[#allocation14_spill] sm:$0xff] }
 0x85c   : > { %9828 = vmatmul.mubr.msk.bf16.gmra.mxu0 %vm833_vm0, %v15080_v48  ;;  %v15085_v48 = vld [vmem:[#allocation18_spill] sm:$0xff] }
 0x85d   : > { %v4625_v50 = vadd.f32 %v4593_v19, %v12109_v62  ;;  %v4626_v6 = vadd.f32 %v4594_v0, %v12122_v12  ;;  %v15081_v0 = vld [vmem:[#allocation15_spill] sm:$0xff] }
 0x85e   : > { %v4503_v43 = vpop.permute.xlu1 %4502  ;;  %v4505_v9 = vpop.permute.xlu0 %4504  ;;  %9831 = vmatprep.mubr.msk.bf16.mxu0 %vm833_vm0, %v15081_v0 }
 0x85f   : > { %v4657_v30 = vmax.f32 %v4625_v50, 0.0  ;;  %v4595_v10 = vmul.f32 %v4503_v43, %v11918_v59  ;;  %v4596_v14 = vmul.f32 %v4505_v9, %v11934_v1  ;;  %v4658_v62 = vmax.f32 %v4626_v6, 0.0 }
 0x861   : > { %v4688_v27 = vpack.c.bf16 %v4657_v30, %v4656_v2  ;;  %v4627_v28 = vadd.f32 %v4595_v10, %v12119_v35  ;;  %v4628_v12 = vadd.f32 %v4596_v14, %v12133_v4  ;;  %v15082_v10 = vld [vmem:[#allocation16_spill] sm:$0xff] }
 0x862   : > { %v4507_v13 = vpop.permute.xlu1 %4506  ;;  %v4509_v5 = vpop.permute.xlu0 %4508 }
 0x863   : > { %v4659_v29 = vmax.f32 %v4627_v28, 0.0  ;;  %v4597_v56 = vmul.f32 %v4507_v13, %v11930_v39  ;;  %v4598_v44 = vmul.f32 %v4509_v5, %v11946_v32  ;;  %4893 = vrot.lane.b32.xlu0 %v4688_v27, %s10263_s26  ;;  %v4660_v4 = vmax.f32 %v4628_v12, 0.0  ;;  %v15083_v28 = vld [vmem:[#allocation17_spill] sm:$0xff] }
 0x864   : > { %9832 = vmatmul.mubr.msk.bf16.gmra.mxu0 %vm833_vm0, %v15082_v10  ;;  %v15090_v10 = vld [vmem:[#allocation60_spill] sm:$0xff] }
 0x865   : > { %v4689_v63 = vpack.c.bf16 %v4659_v29, %v4658_v62  ;;  %v4629_v59 = vadd.f32 %v4597_v56, %v12130_v53  ;;  %v4630_v1 = vadd.f32 %v4598_v44, %v12144_v52  ;;  %9835 = vmatprep.mubr.msk.bf16.mxu0 %vm833_vm0, %v15083_v28 }
 0x866   : > { %v4511_v35 = vpop.permute.xlu1 %4510  ;;  %v4513_v19 = vpop.permute.xlu0 %4512 }
 0x867   : > { %v4661_v50 = vmax.f32 %v4629_v59, 0.0  ;;  %v4599_v39 = vmul.f32 %v4511_v35, %v11942_v37  ;;  %v4600_v32 = vmul.f32 %v4513_v19, %v11958_v58  ;;  %4895 = vrot.lane.b32.xlu1 %v4689_v63, %s10263_s26  ;;  %v4662_v6 = vmax.f32 %v4630_v1, 0.0  ;;  %v15084_v59 = vld [vmem:[#allocation102_spill] sm:$0xff] }
 0x869   : > { %v4690_v57 = vpack.c.bf16 %v4661_v50, %v4660_v4  ;;  %v4631_v53 = vadd.f32 %v4599_v39, %v12141_v34  ;;  %v4632_v15 = vadd.f32 %v4600_v32, %v12155_v11  ;;  %v15086_v4 = vld [vmem:[#allocation133_spill] sm:$0xff] }
 0x86a   : > { %v4515_v43 = vpop.permute.xlu1 %4514  ;;  %v4517_v9 = vpop.permute.xlu0 %4516 }
 0x86b   : > { %v4663_v52 = vmax.f32 %v4631_v53, 0.0  ;;  %v4601_v2 = vmul.f32 %v4515_v43, %v11954_v8  ;;  %v4602_v30 = vmul.f32 %v4517_v9, %v11970_v3  ;;  %4897 = vrot.lane.b32.xlu0 %v4690_v57, %s10263_s26  ;;  %v4664_v11 = vmax.f32 %v4632_v15, 0.0  ;;  %v15088_v9 = vld [vmem:[#allocation124_spill] sm:$0xff] }
 0x86c   : > { %9836 = vmatmul.mubr.msk.bf16.gmra.mxu0 %vm833_vm0, %v15085_v48 }
 0x86d   : > { %v4691_v37 = vpack.c.bf16 %v4663_v52, %v4662_v6  ;;  %v4633_v58 = vadd.f32 %v4601_v2, %v12152_v31  ;;  %v4634_v34 = vadd.f32 %v4602_v30, %v12166_v49  ;;  %v15087_v6 = vld [vmem:[#allocation109_spill] sm:$0xff] }
 0x86e   : > { %v4519_v14 = vpop.permute.xlu1 %4518  ;;  %v4521_v27 = vpop.permute.xlu0 %4520 }
 0x86f   : > { %v4665_v62 = vmax.f32 %v4633_v58, 0.0  ;;  %v4603_v8 = vmul.f32 %v4519_v14, %v11966_v38  ;;  %v4604_v3 = vmul.f32 %v4521_v27, %v11982_v17  ;;  %4899 = vrot.lane.b32.xlu1 %v4691_v37, %s10263_s26  ;;  %v4666_v5 = vmax.f32 %v4634_v34, 0.0  ;;  %v15089_v37 = vld [vmem:[#allocation21_spill] sm:$0xff]  ;;  %v15091_v27 = vld [vmem:[#allocation19_spill] sm:$0xff] }
 0x871   : > { %v4692_v13 = vpack.c.bf16 %v4665_v62, %v4664_v11  ;;  %v4635_v31 = vadd.f32 %v4603_v8, %v12163_v54  ;;  %v4636_v56 = vadd.f32 %v4604_v3, %v12177_v7  ;;  %v15092_v3 = vld [vmem:[#allocation67_spill] sm:$0xff] }
 0x872   : > { %v4523_v29 = vpop.permute.xlu1 %4522  ;;  %v4525_v12 = vpop.permute.xlu0 %4524 }
 0x873   : > { %v4667_v49 = vmax.f32 %v4635_v31, 0.0  ;;  %v4605_v44 = vmul.f32 %v4523_v29, %v11978_v20  ;;  %v4606_v63 = vmul.f32 %v4525_v12, %v11994_v40  ;;  %4901 = vrot.lane.b32.xlu0 %v4692_v13, %s10263_s26  ;;  %v4668_v54 = vmax.f32 %v4636_v56, 0.0  ;;  %v15093_v12 = vld [vmem:[#allocation74_spill] sm:$0xff] }
 0x875   : > { %v4693_v38 = vpack.c.bf16 %v4667_v49, %v4666_v5  ;;  %v4637_v17 = vadd.f32 %v4605_v44, %v15084_v59  ;;  %v4638_v19 = vadd.f32 %v4606_v63, %v12186_v23 }
 0x876   : > { %v4527_v1 = vpop.permute.xlu1 %4526 }
 0x877   : > { %v4669_v35 = vmax.f32 %v4637_v17, 0.0  ;;  %v4607_v0 = vmul.f32 %v4527_v1, %v11990_v21  ;;  %4903 = vrot.lane.b32.xlu1 %v4693_v38, %s10263_s26  ;;  %v4670_v39 = vmax.f32 %v4638_v19, 0.0  ;;  %v15094_v17 = vld [vmem:[#allocation125_spill] sm:$0xff] }
 0x878   : > { %v4529_v20 = vpop.permute.xlu0 %4528 }
 0x879   : > { %v4608_v40 = vmul.f32 %v4529_v20, %v12006_v24  ;;  %v4694_v7 = vpack.c.bf16 %v4669_v35, %v4668_v54  ;;  %v4639_v50 = vadd.f32 %v4607_v0, %v15086_v4  ;;  %v15095_v54 = vld [vmem:[#allocation24_spill] sm:$0xff]  ;;  %v15096_v20 = vld [vmem:[#allocation126_spill] sm:$0xff] }
 0x87b   : > { %v4671_v32 = vmax.f32 %v4639_v50, 0.0  ;;  %4905 = vrot.lane.b32.xlu0 %v4694_v7, %s10263_s26  ;;  %v4640_v43 = vadd.f32 %v4608_v40, %v15087_v6  ;;  %v15097_v50 = vld [vmem:[#allocation127_spill] sm:$0xff] }
 0x87c   : > { %v4531_v57 = vpop.permute.xlu1 %4530  ;;  %v4533_v53 = vpop.permute.xlu0 %4532 }
 0x87d   : > { %v4609_v23 = vmul.f32 %v4531_v57, %v12002_v61  ;;  %v4610_v21 = vmul.f32 %v4533_v53, %v15088_v9  ;;  %v4695_v52 = vpack.c.bf16 %v4671_v32, %v4670_v39  ;;  %v4672_v2 = vmax.f32 %v4640_v43, 0.0 }
 0x87f   : > { %v4641_v15 = vadd.f32 %v4609_v23, %v12194_v55  ;;  %4907 = vrot.lane.b32.xlu1 %v4695_v52, %s10263_s26  ;;  %v4642_v58 = vadd.f32 %v4610_v21, %v15089_v37  ;;  %v15098_v23 = vld [vmem:[#allocation81_spill] sm:$0xff] }
 0x880   : > { %v4535_v24 = vpop.permute.xlu1 %4534 }
 0x881   : > { %v4673_v30 = vmax.f32 %v4641_v15, 0.0  ;;  %v4611_v34 = vmul.f32 %v4535_v24, %v15090_v10  ;;  %v4674_v11 = vmax.f32 %v4642_v58, 0.0  ;;  %v15099_v58 = vld [vmem:[#allocation94_spill] sm:$0xff] }
 0x883   : > { %v4696_v14 = vpack.c.bf16 %v4673_v30, %v4672_v2  ;;  %v4643_v28 = vadd.f32 %v4611_v34, %v15091_v27 }
 0x885   : > { %v4675_v62 = vmax.f32 %v4643_v28, 0.0  ;;  %4909 = vrot.lane.b32.xlu0 %v4696_v14, %s10263_s26  ;;  %v15100_v14 = vld [vmem:[#allocation2_spill] sm:$0xff] }
 0x886   : > { %v2087_v27 = vsub.s32 3, %v15100_v14 }
 0x887   : > { %v4697_v61 = vpack.c.bf16 %v4675_v62, %v4674_v11 }
 0x888   : > { %v4537_v8 = vpop.permute.xlu0 %4536 }
 0x889   : > { %v4612_v55 = vmul.f32 %v4537_v8, %v15092_v3  ;;  %4911 = vrot.lane.b32.xlu1 %v4697_v61, %s10263_s26  ;;  %v15102_v3 = vld [vmem:[#allocation3_spill] sm:$0xff] }
 0x88b   : > { %v4644_v5 = vadd.f32 %v4612_v55, %v12216_v18 }
 0x88c   : > { %v4539_v13 = vpop.permute.xlu1 %4538  ;;  %v4541_v31 = vpop.permute.xlu0 %4540 }
 0x88d   : > { %v4613_v29 = vmul.f32 %v4539_v13, %v12026_v41  ;;  %v4614_v49 = vmul.f32 %v4541_v31, %v15093_v12  ;;  %v4676_v63 = vmax.f32 %v4644_v5, 0.0 }
 0x88f   : > { %v4645_v56 = vadd.f32 %v4613_v29, %v12212_v45  ;;  %v4646_v59 = vadd.f32 %v4614_v49, %v12226_v22 }
 0x890   : > { %v4543_v44 = vpop.permute.xlu1 %4542 }
 0x891   : > { %v4677_v38 = vmax.f32 %v4645_v56, 0.0  ;;  %v4615_v48 = vmul.f32 %v4543_v44, %v15094_v17  ;;  %v4678_v19 = vmax.f32 %v4646_v59, 0.0 }
 0x893   : > { %v4698_v1 = vpack.c.bf16 %v4677_v38, %v4676_v63  ;;  %v4647_v35 = vadd.f32 %v4615_v48, %v15095_v54  ;;  %v10171_v63 = vld [vmem:[%s14681_s13 + $0x8] sm:$0xff]  }
 0x894   : > { %9875 = vmatprep.subr.bf16.mxu0 %v10171_v63 }
 0x895   : > { %v4679_v0 = vmax.f32 %v4647_v35, 0.0  ;;  %4913 = vrot.lane.b32.xlu0 %v4698_v1, %s10263_s26  ;;  %9876 = vmatpush3.bf16.msra.mxu0 %v10171_v63  ;;  %v15139_v63 = vld [vmem:[#allocation101_spill] sm:$0xff] }
 0x897   : > { %v4699_v18 = vpack.c.bf16 %v4679_v0, %v4678_v19 }
 0x898   : > { %v4545_v41 = vpop.permute.xlu0 %4544 }
 0x899   : > { %v4616_v40 = vmul.f32 %v4545_v41, %v15096_v20  ;;  %4915 = vrot.lane.b32.xlu1 %v4699_v18, %s10263_s26  ;;  %v15105_v20 = vld [vmem:[#allocation123_spill] sm:$0xff] }
 0x89b   : > { %v4648_v4 = vadd.f32 %v4616_v40, %v12238_v42 }
 0x89c   : > { %v4547_v45 = vpop.permute.xlu1 %4546  ;;  %v4549_v7 = vpop.permute.xlu0 %4548 }
 0x89d   : > { %v4617_v22 = vmul.f32 %v4547_v45, %v12050_v33  ;;  %v4618_v39 = vmul.f32 %v4549_v7, %v15097_v50  ;;  %v4680_v53 = vmax.f32 %v4648_v4, 0.0  ;;  %v10172_v45 = vld [vmem:[%s14681_s13] sm:$0xff]   ;;  %v15106_v7 = vld [vmem:[#allocation20_spill] sm:$0xff] }
 0x89e   : > { %9877 = vmatprep.subr.bf16.mxu0 %v10172_v45 }
 0x89f   : > { %v4649_v32 = vadd.f32 %v4617_v22, %v12234_v51  ;;  %v4650_v43 = vadd.f32 %v4618_v39, %v12248_v47  ;;  %v15107_v22 = vld [vmem:[#allocation23_spill] sm:$0xff]  ;;  %v15108_v39 = vld [vmem:[#allocation29_spill] sm:$0xff]  ;;  %9878 = vmatpush3.bf16.msra.mxu0 %v10172_v45 }
 0x8a0   : > { %v4551_v57 = vpop.permute.xlu1 %4550  ;;  %v15148_v45 = vld [vmem:[#allocation121_spill] sm:$0xff] }
 0x8a1   : > { %v4681_v6 = vmax.f32 %v4649_v32, 0.0  ;;  %v4619_v9 = vmul.f32 %v4551_v57, %v15098_v23  ;;  %v4682_v15 = vmax.f32 %v4650_v43, 0.0  ;;  %v15110_v57 = vld [vmem:[#allocation26_spill] sm:$0xff]  ;;  %v15112_v23 = vld [vmem:[#allocation32_spill] sm:$0xff] }
 0x8a3   : > { %v4700_v21 = vpack.c.bf16 %v4681_v6, %v4680_v53  ;;  %v4651_v52 = vadd.f32 %v4619_v9, %v12246_v46  ;;  %v15111_v6 = vld [vmem:[#allocation35_spill] sm:$0xff] }
 0x8a5   : > { %v4683_v24 = vmax.f32 %v4651_v52, 0.0  ;;  %4917 = vrot.lane.b32.xlu0 %v4700_v21, %s10263_s26  ;;  %v15114_v21 = vld [vmem:[#allocation41_spill] sm:$0xff] }
 0x8a7   : > { %v4701_v42 = vpack.c.bf16 %v4683_v24, %v4682_v15  ;;  %v15115_v15 = vld [vmem:[#allocation38_spill] sm:$0xff] }
 0x8a8   : > { %v4553_v33 = vpop.permute.xlu0 %4552 }
 0x8a9   : > { %v4620_v2 = vmul.f32 %v4553_v33, %v12078_v16  ;;  %4919 = vrot.lane.b32.xlu1 %v4701_v42, %s10263_s26  ;;  %v15101_v16 = vld [vmem:[#allocation128_spill] sm:$0xff]  ;;  %v15116_v42 = vld [vmem:[#allocation47_spill] sm:$0xff] }
 0x8ab   : > { %v4652_v37 = vadd.f32 %v4620_v2, %v12260_v36  ;;  %v15117_v2 = vld [vmem:[#allocation44_spill] sm:$0xff] }
 0x8ac   : > { %v4555_v51 = vpop.permute.xlu1 %4554  ;;  %v4557_v30 = vpop.permute.xlu0 %4556 }
 0x8ad   : > { %v4621_v47 = vmul.f32 %v4555_v51, %v12074_v25  ;;  %v4622_v10 = vmul.f32 %v4557_v30, %v15099_v58  ;;  %v4684_v28 = vmax.f32 %v4652_v37, 0.0  ;;  %v10248_v25 = vld [vmem:[%s14688_s20] sm:$0x3f]  ;;  %v15119_v30 = vld [vmem:[#allocation53_spill] sm:$0xff] }
 0x8af   : > { %v4653_v46 = vadd.f32 %v4621_v47, %v12256_v26  ;;  %v4654_v62 = vadd.f32 %v4622_v10, %v12270_v60  ;;  %v2088_v26 = vrot.slane %v10248_v25, %v2087_v27  ;;  %v15103_v60 = vld [vmem:[#allocation98_spill] sm:$0xff]  ;;  %v15122_v10 = vld [vmem:[#allocation59_spill] sm:$0xff]  ;;  %v15130_v25 = vld [vmem:[#allocation77_spill] sm:$0xff] }
 0x8b0   : > { %v4559_v34 = vpop.permute.xlu1 %4558  ;;  %v15121_v47 = vld [vmem:[#allocation50_spill] sm:$0xff] }
 0x8b1   : > { %v4685_v11 = vmax.f32 %v4653_v46, 0.0  ;;  %v4623_v61 = vmul.f32 %v4559_v34, %v15101_v16  ;;  %v4686_v13 = vmax.f32 %v4654_v62, 0.0  ;;  %v15123_v34 = vld [vmem:[#allocation56_spill] sm:$0xff]  ;;  %v15125_v62 = vld [vmem:[#allocation63_spill] sm:$0xff] }
 0x8b3   : > { %v4702_v8 = vpack.c.bf16 %v4685_v11, %v4684_v28  ;;  %v4655_v55 = vadd.f32 %v4623_v61, %v15102_v3  ;;  %v15124_v28 = vld [vmem:[#allocation66_spill] sm:$0xff]  ;;  %v15126_v61 = vld [vmem:[#allocation73_spill] sm:$0xff] }
 0x8b4   : > { %v15127_v3 = vld [vmem:[#allocation70_spill] sm:$0xff] }
 0x8b5   : > { %v4687_v36 = vmax.f32 %v4655_v55, 0.0  ;;  %4921 = vrot.lane.b32.xlu0 %v4702_v8, %s10263_s26 }
 0x8b7   : > { %v4703_v31 = vpack.c.bf16 %v4687_v36, %v4686_v13  ;;  %v15128_v13 = vld [vmem:[#allocation80_spill] sm:$0xff] }
 0x8b9   : > { %2155 = vrot.lane.b32.xlu0 %v2088_v26, %s10265_s24  ;;  %4923 = vrot.lane.b32.xlu1 %v4703_v31, %s10263_s26  ;;  %v15132_v31 = vld [vmem:[#allocation87_spill] sm:$0xff] }
 0x8bd   : > { %5146 = vrot.lane.b32.xlu1 %v15103_v60, %s10263_s26 }
 0x8d5   : > { %v4894_v5 = vpop.permute.xlu0 %4893 }
 0x8d6   : > { %9843 = vmatprep.mubr.msk.bf16.mxu1 %vm1397_vm5, %v4894_v5  ;;  %v15133_v5 = vld [vmem:[#allocation84_spill] sm:$0xff] }
 0x8d9   : > { %v4896_v29 = vpop.permute.xlu1 %4895 }
 0x8da   : > { %9844 = vmatmul.mubr.msk.bf16.vlgmr.msra.gmra.mxu1 %vm1397_vm5, %v4896_v29 }
 0x8dd   : > { %v4898_v12 = vpop.permute.xlu0 %4897 }
 0x8de   : > { %9847 = vmatprep.mubr.msk.bf16.mxu1 %vm1397_vm5, %v4898_v12  ;;  %v15135_v12 = vld [vmem:[#allocation93_spill] sm:$0xff] }
 0x8e1   : > { %v4900_v49 = vpop.permute.xlu1 %4899 }
 0x8e2   : > { %9848 = vmatmul.mubr.msk.bf16.gmra.mxu1 %vm1397_vm5, %v4900_v49 }
 0x8e5   : > { %v4902_v56 = vpop.permute.xlu0 %4901 }
 0x8e6   : > { %9851 = vmatprep.mubr.msk.bf16.mxu1 %vm1397_vm5, %v4902_v56  ;;  %v15137_v56 = vld [vmem:[#allocation90_spill] sm:$0xff] }
 0x8e9   : > { %v4904_v44 = vpop.permute.xlu1 %4903 }
 0x8ea   : > { %9852 = vmatmul.mubr.msk.bf16.gmra.mxu1 %vm1397_vm5, %v4904_v44 }
 0x8ed   : > { %v4906_v38 = vpop.permute.xlu0 %4905 }
 0x8ee   : > { %9855 = vmatprep.mubr.msk.bf16.mxu1 %vm1397_vm5, %v4906_v38 }
 0x8f1   : > { %v4908_v59 = vpop.permute.xlu1 %4907 }
 0x8f2   : > { %9856 = vmatmul.mubr.msk.bf16.gmra.mxu1 %vm1397_vm5, %v4908_v59  ;;  %v15140_v59 = vld [vmem:[#allocation97_spill] sm:$0xff] }
 0x8f7   : > { %v4910_v17 = vpop.permute.xlu0 %4909 }
 0x8f8   : > { %9859 = vmatprep.mubr.msk.bf16.mxu1 %vm1397_vm5, %v4910_v17 }
 0x8fb   : > { %v4912_v48 = vpop.permute.xlu1 %4911 }
 0x8fc   : > { %9860 = vmatmul.mubr.msk.bf16.gmra.mxu1 %vm1397_vm5, %v4912_v48  ;;  %v15142_v48 = vld [vmem:[#allocation108_spill] sm:$0xff] }
 0x907   : > { %v4914_v1 = vpop.permute.xlu0 %4913 }
 0x908   : > { %9863 = vmatprep.mubr.msk.bf16.mxu1 %vm1397_vm5, %v4914_v1 }
 0x90b   : > { %v4916_v54 = vpop.permute.xlu1 %4915 }
 0x90c   : > { %9864 = vmatmul.mubr.msk.bf16.gmra.mxu1 %vm1397_vm5, %v4916_v54  ;;  %v15144_v54 = vld [vmem:[#allocation105_spill] sm:$0xff] }
 0x917   : > { %v4918_v35 = vpop.permute.xlu0 %4917 }
 0x918   : > { %9867 = vmatprep.mubr.msk.bf16.mxu1 %vm1397_vm5, %v4918_v35 }
 0x91b   : > { %v4920_v19 = vpop.permute.xlu1 %4919 }
 0x91c   : > { %9868 = vmatmul.mubr.msk.bf16.gmra.mxu1 %vm1397_vm5, %v4920_v19  ;;  %v15146_v19 = vld [vmem:[#allocation115_spill] sm:$0xff] }
 0x927   : > { %v4922_v0 = vpop.permute.xlu0 %4921 }
 0x928   : > { %9871 = vmatprep.mubr.msk.bf16.mxu1 %vm1397_vm5, %v4922_v0 }
 0x92b   : > { %v4924_v18 = vpop.permute.xlu1 %4923  ;;  %v12489_v41 = vpop.permute.xlu0 %2155 }
 0x92c   : > { %15104 = vst [vmem:[#allocation30_spill] sm:$0xff] %v12489_v41  ;;  %v12494_v40 = vsel %vm1397_vm5, %v15105_v20, %v12489_v41  ;;  %9872 = vmatmul.mubr.msk.bf16.gmra.mxu1 %vm1397_vm5, %v4924_v18  ;;  %v15147_v18 = vld [vmem:[#allocation112_spill] sm:$0xff] }
 0x92d   : > { %v12502_v4 = vadd.f32 %v15106_v7, %v12494_v40  ;;  %v12506_v50 = vadd.f32 %v15107_v22, %v12494_v40  ;;  %v12514_v32 = vadd.f32 %v15108_v39, %v12494_v40  ;;  %v12518_v53 = vadd.f32 %v15110_v57, %v12494_v40  ;;  %v15149_v22 = vld [vmem:[#allocation118_spill] sm:$0xff] }
 0x92e   : > { %v12526_v43 = vadd.f32 %v15111_v6, %v12494_v40  ;;  %v12530_v9 = vadd.f32 %v15112_v23, %v12494_v40  ;;  %v12538_v52 = vadd.f32 %v15114_v21, %v12494_v40  ;;  %v12542_v24 = vadd.f32 %v15115_v15, %v12494_v40  ;;  %v10249_v57 = vld [vmem:[%s14688_s20 + $0x6] ss:$0 sm:$0xff]  ;;  %v9809_v6 = vpop.f32.mrf.mxu0 }
 0x92f   : > { %5247 = vrot.lane.b32.xlu1 %v12506_v50, %s10262_s5  ;;  %5245 = vrot.lane.b32.xlu0 %v12502_v4, %s10262_s5  ;;  %15109 = vst [vmem:[#allocation27_spill] sm:$0xff] %v12514_v32  ;;  %v12550_v33 = vadd.f32 %v15116_v42, %v12494_v40  ;;  %v12554_v51 = vadd.f32 %v15117_v2, %v12494_v40 }
 0x930   : > { %15113 = vst [vmem:[#allocation36_spill] sm:$0xff] %v12530_v9  ;;  %v12562_v37 = vadd.f32 %v15119_v30, %v12494_v40  ;;  %v12566_v58 = vadd.f32 %v15121_v47, %v12494_v40  ;;  %v12574_v46 = vadd.f32 %v15122_v10, %v12494_v40  ;;  %v12578_v27 = vadd.f32 %v15123_v34, %v12494_v40  ;;  %v4750_v23 = vpop.f32.mrf.mxu0 }
 0x931   : > { %15118 = vst [vmem:[#allocation33_spill] sm:$0xff] %v12554_v51  ;;  %v12586_v11 = vadd.f32 %v15124_v28, %v12494_v40  ;;  %v12590_v16 = vadd.f32 %v15125_v62, %v12494_v40  ;;  %v12598_v8 = vadd.f32 %v15126_v61, %v12494_v40  ;;  %v12602_v55 = vadd.f32 %v15127_v3, %v12494_v40  ;;  %v12696_v28 = vpop.permute.xlu1 %5146 }
 0x932   : > { %15120 = vst [vmem:[#allocation42_spill] sm:$0xff] %v12562_v37  ;;  %v12610_v36 = vadd.f32 %v15128_v13, %v12494_v40  ;;  %v12614_v26 = vadd.f32 %v15130_v25, %v12494_v40  ;;  %v12622_v60 = vadd.f32 %v15132_v31, %v12494_v40  ;;  %v12626_v29 = vadd.f32 %v15133_v5, %v12494_v40  ;;  %v9810_v21 = vpop.f32.mrf.mxu0 }
 0x933   : > { %5251 = vrot.lane.b32.xlu1 %v12514_v32, %s10262_s5  ;;  %5249 = vrot.lane.b32.xlu0 %v12518_v53, %s10262_s5  ;;  %v12634_v49 = vadd.f32 %v15135_v12, %v12494_v40  ;;  %v12638_v44 = vadd.f32 %v15137_v56, %v12494_v40  ;;  %v12646_v38 = vadd.f32 %v15139_v63, %v12494_v40 }
 0x934   : > { %15129 = vst [vmem:[#allocation39_spill] sm:$0xff] %v12610_v36  ;;  %15131 = vst [vmem:[#allocation48_spill] sm:$0xff] %v12614_v26  ;;  %v12650_v17 = vadd.f32 %v15140_v59, %v12494_v40  ;;  %v12658_v1 = vadd.f32 %v15142_v48, %v12494_v40  ;;  %v12662_v35 = vadd.f32 %v15144_v54, %v12494_v40  ;;  %v4753_v15 = vpop.f32.mrf.mxu0 }
 0x935   : > { %15134 = vst [vmem:[#allocation45_spill] sm:$0xff] %v12626_v29  ;;  %15136 = vst [vmem:[#allocation54_spill] sm:$0xff] %v12634_v49  ;;  %v12670_v0 = vadd.f32 %v15146_v19, %v12494_v40  ;;  %v12674_v20 = vadd.f32 %v15147_v18, %v12494_v40  ;;  %v12682_v7 = vadd.f32 %v15148_v45, %v12494_v40 }
 0x936   : > { %15138 = vst [vmem:[#allocation51_spill] sm:$0xff] %v12638_v44  ;;  %15141 = vst [vmem:[#allocation61_spill] sm:$0xff] %v12650_v17  ;;  %v12686_v39 = vadd.f32 %v15149_v22, %v12494_v40  ;;  %v9813_v42 = vpop.f32.mrf.mxu0 }
 0x937   : > { %5255 = vrot.lane.b32.xlu1 %v12526_v43, %s10262_s5  ;;  %5253 = vrot.lane.b32.xlu0 %v12530_v9, %s10262_s5  ;;  %15143 = vst [vmem:[#allocation57_spill] sm:$0xff] %v12658_v1  ;;  %15145 = vst [vmem:[#allocation68_spill] sm:$0xff] %v12662_v35 }
 0x938   : > { %v4766_v2 = vpop.f32.mrf.mxu0 }
 0x93a   : > { %v9814_v40 = vpop.f32.mrf.mxu0 }
 0x93b   : > { %5259 = vrot.lane.b32.xlu1 %v12538_v52, %s10262_s5  ;;  %5257 = vrot.lane.b32.xlu0 %v12542_v24, %s10262_s5 }
 0x93c   : > { %v4769_v30 = vpop.f32.mrf.mxu0 }
 0x93e   : > { %v9817_v47 = vpop.f32.mrf.mxu0 }
 0x93f   : > { %5263 = vrot.lane.b32.xlu1 %v12550_v33, %s10262_s5  ;;  %5261 = vrot.lane.b32.xlu0 %v12554_v51, %s10262_s5 }
 0x940   : > { %v4782_v10 = vpop.f32.mrf.mxu0 }
 0x942   : > { %v12698_v13 = vpop.f32.mrf.mxu0 }
 0x943   : > { %5267 = vrot.lane.b32.xlu1 %v12562_v37, %s10262_s5  ;;  %5265 = vrot.lane.b32.xlu0 %v12566_v58, %s10262_s5 }
 0x944   : > { %v4785_v18 = vpop.f32.mrf.mxu0 }
 0x947   : > { %5271 = vrot.lane.b32.xlu1 %v12574_v46, %s10262_s5  ;;  %5269 = vrot.lane.b32.xlu0 %v12578_v27, %s10262_s5 }
 0x94b   : > { %5275 = vrot.lane.b32.xlu1 %v12586_v11, %s10262_s5  ;;  %5273 = vrot.lane.b32.xlu0 %v12590_v16, %s10262_s5 }
 0x94f   : > { %5279 = vrot.lane.b32.xlu1 %v12598_v8, %s10262_s5  ;;  %5277 = vrot.lane.b32.xlu0 %v12602_v55, %s10262_s5 }
 0x953   : > { %5283 = vrot.lane.b32.xlu1 %v12610_v36, %s10262_s5  ;;  %5281 = vrot.lane.b32.xlu0 %v12614_v26, %s10262_s5 }
 0x957   : > { %5287 = vrot.lane.b32.xlu1 %v12622_v60, %s10262_s5  ;;  %5285 = vrot.lane.b32.xlu0 %v12626_v29, %s10262_s5 }
 0x95b   : > { %5291 = vrot.lane.b32.xlu1 %v12634_v49, %s10262_s5  ;;  %5289 = vrot.lane.b32.xlu0 %v12638_v44, %s10262_s5 }
 0x95f   : > { %5295 = vrot.lane.b32.xlu1 %v12646_v38, %s10262_s5  ;;  %5293 = vrot.lane.b32.xlu0 %v12650_v17, %s10262_s5 }
 0x963   : > { %5299 = vrot.lane.b32.xlu1 %v12658_v1, %s10262_s5  ;;  %5297 = vrot.lane.b32.xlu0 %v12662_v35, %s10262_s5 }
 0x967   : > { %5303 = vrot.lane.b32.xlu1 %v12670_v0, %s10262_s5  ;;  %5301 = vrot.lane.b32.xlu0 %v12674_v20, %s10262_s5 }
 0x96b   : > { %5307 = vrot.lane.b32.xlu1 %v12682_v7, %s10262_s5  ;;  %5305 = vrot.lane.b32.xlu0 %v12686_v39, %s10262_s5 }
 0x96f   : > { %5437 = vrot.lane.b32.xlu0 %v10249_v57, %s10265_s24 }
 0x99a   : > { %v9845_v34 = vpop.f32.mrf.mxu1 }
 0x99b   : > { %v5028_v62 = vadd.f32 %v9845_v34, %v9809_v6 }
 0x99c   : > { %v5019_v61 = vpop.f32.mrf.mxu1 }
 0x99d   : > { %v5020_v3 = vadd.f32 %v5019_v61, %v4750_v23  ;;  %v5151_v63 = vadd.f32 %v12696_v28, %v5028_v62 }
 0x99e   : > { %v9846_v25 = vpop.f32.mrf.mxu1 }
 0x99f   : > { %v5149_v31 = vadd.f32 %v12696_v28, %v5020_v3  ;;  %v5031_v5 = vadd.f32 %v9846_v25, %v9810_v21  ;;  %v5183_v62 = vmul.f32 %v5151_v63, %v12518_v53  ;;  %v9821_v25 = vpop.f32.mrf.mxu0 }
 0x9a0   : > { %v5022_v12 = vpop.f32.mrf.mxu1 }
 0x9a1   : > { %v12701_v56 = vpop.permute.xlu1 %5247  ;;  %v5181_v59 = vmul.f32 %v5149_v31, %v12502_v4  ;;  %v5152_v48 = vadd.f32 %v12696_v28, %v5031_v5  ;;  %v5023_v54 = vadd.f32 %v5022_v12, %v4753_v15  ;;  %v12706_v19 = vpop.permute.xlu0 %5245 }
 0x9a2   : > { %v9849_v45 = vpop.f32.mrf.mxu1 }
 0x9a3   : > { %v5184_v22 = vmul.f32 %v5152_v48, %v12514_v32  ;;  %v5150_v57 = vadd.f32 %v12696_v28, %v5023_v54  ;;  %v5341_v6 = vadd.f32 %v12706_v19, %v5181_v59  ;;  %v5044_v23 = vadd.f32 %v9849_v45, %v9813_v42 }
 0x9a4   : > { %v5035_v21 = vpop.f32.mrf.mxu1 }
 0x9a5   : > { %v12711_v34 = vpop.permute.xlu1 %5251  ;;  %v5182_v61 = vmul.f32 %v5150_v57, %v12506_v50  ;;  %v5036_v3 = vadd.f32 %v5035_v21, %v4766_v2  ;;  %v12715_v15 = vpop.permute.xlu0 %5249  ;;  %v5373_v54 = vmax.f32 %v5341_v6, 0.0  ;;  %v5155_v45 = vadd.f32 %v12696_v28, %v5044_v23 }
 0x9a6   : > { %15150 = vst [vmem:[#allocation64_spill] sm:$0xff] %v12711_v34  ;;  %v5344_v31 = vadd.f32 %v12711_v34, %v5184_v22  ;;  %v5343_v5 = vadd.f32 %v12715_v15, %v5183_v62  ;;  %v9850_v12 = vpop.f32.mrf.mxu1 }
 0x9a7   : > { %v5342_v48 = vadd.f32 %v12701_v56, %v5182_v61  ;;  %v5153_v42 = vadd.f32 %v12696_v28, %v5036_v3  ;;  %v5047_v59 = vadd.f32 %v9850_v12, %v9814_v40  ;;  %v4798_v61 = vpop.f32.mrf.mxu0  ;;  %v5187_v23 = vmul.f32 %v5155_v45, %v12542_v24 }
 0x9a8   : > { %v5376_v63 = vmax.f32 %v5344_v31, 0.0  ;;  %v5375_v41 = vmax.f32 %v5343_v5, 0.0  ;;  %v5038_v57 = vpop.f32.mrf.mxu1 }
 0x9a9   : > { %v12722_v2 = vpop.permute.xlu1 %5255  ;;  %v5374_v21 = vmax.f32 %v5342_v48, 0.0  ;;  %v5185_v14 = vmul.f32 %v5153_v42, %v12530_v9  ;;  %v5156_v22 = vadd.f32 %v12696_v28, %v5047_v59  ;;  %v5039_v62 = vadd.f32 %v5038_v57, %v4769_v30  ;;  %v12726_v34 = vpop.permute.xlu0 %5253 }
 0x9aa   : > { %v9853_v32 = vpop.f32.mrf.mxu1  ;;  %v5406_v31 = vpack.c.bf16 %v5376_v63, %v5375_v41 }
 0x9ab   : > { %v5405_v3 = vpack.c.bf16 %v5374_v21, %v5373_v54  ;;  %v5188_v40 = vmul.f32 %v5156_v22, %v12538_v52  ;;  %v5154_v6 = vadd.f32 %v12696_v28, %v5039_v62  ;;  %v5345_v5 = vadd.f32 %v12726_v34, %v5185_v14  ;;  %v9822_v54 = vpop.f32.mrf.mxu0 }
 0x9ac   : > { %v5060_v12 = vadd.f32 %v9853_v32, %v9817_v47  ;;  %v5051_v48 = vpop.f32.mrf.mxu1 }
 0x9ad   : > { %v12732_v42 = vpop.permute.xlu1 %5259  ;;  %v5186_v30 = vmul.f32 %v5154_v6, %v12526_v43  ;;  %v5052_v59 = vadd.f32 %v5051_v48, %v4782_v10  ;;  %v12736_v9 = vpop.permute.xlu0 %5257  ;;  %9879 = vmatprep.mubr.msk.bf16.mxu0 %vm1397_vm5, %v5405_v3  ;;  %v5377_v47 = vmax.f32 %v5345_v5, 0.0 }
 0x9ae   : > { %15151 = vst [vmem:[#allocation75_spill] sm:$0xff] %v12732_v42  ;;  %v5348_v57 = vadd.f32 %v12732_v42, %v5188_v40  ;;  %v5347_v21 = vadd.f32 %v12736_v9, %v5187_v23  ;;  %v9854_v45 = vpop.f32.mrf.mxu1  ;;  %9880 = vmatmul.mubr.msk.bf16.vlgmr.msra.gmra.mxu0 %vm1397_vm5, %v5406_v31  ;;  %v5159_v10 = vadd.f32 %v12696_v28, %v5060_v12 }
 0x9af   : > { %v5346_v14 = vadd.f32 %v12722_v2, %v5186_v30  ;;  %v5157_v41 = vadd.f32 %v12696_v28, %v5052_v59  ;;  %v5063_v32 = vadd.f32 %v9854_v45, %v12698_v13  ;;  %v4801_v30 = vpop.f32.mrf.mxu0 }
 0x9b0   : > { %v5380_v63 = vmax.f32 %v5348_v57, 0.0  ;;  %v5379_v22 = vmax.f32 %v5347_v21, 0.0  ;;  %v5054_v62 = vpop.f32.mrf.mxu1  ;;  %v5191_v57 = vmul.f32 %v5159_v10, %v12566_v58 }
 0x9b1   : > { %v12745_v40 = vpop.permute.xlu1 %5263  ;;  %v5378_v3 = vmax.f32 %v5346_v14, 0.0  ;;  %v5189_v6 = vmul.f32 %v5157_v41, %v12554_v51  ;;  %v5160_v23 = vadd.f32 %v12696_v28, %v5063_v32  ;;  %v5055_v31 = vadd.f32 %v5054_v62, %v4785_v18  ;;  %v12749_v48 = vpop.permute.xlu0 %5261 }
 0x9b2   : > { %v9857_v59 = vpop.f32.mrf.mxu1  ;;  %v9825_v12 = vpop.f32.mrf.mxu0  ;;  %v5408_v21 = vpack.c.bf16 %v5380_v63, %v5379_v22 }
 0x9b3   : > { %v5407_v42 = vpack.c.bf16 %v5378_v3, %v5377_v47  ;;  %v5192_v13 = vmul.f32 %v5160_v23, %v12562_v37  ;;  %v5158_v5 = vadd.f32 %v12696_v28, %v5055_v31  ;;  %v5349_v45 = vadd.f32 %v12749_v48, %v5189_v6 }
 0x9b4   : > { %v5076_v14 = vadd.f32 %v9857_v59, %v9821_v25  ;;  %v5067_v41 = vpop.f32.mrf.mxu1  ;;  %v4814_v22 = vpop.f32.mrf.mxu0 }
 0x9b5   : > { %v12755_v51 = vpop.permute.xlu1 %5267  ;;  %v5190_v18 = vmul.f32 %v5158_v5, %v12550_v33  ;;  %v5068_v32 = vadd.f32 %v5067_v41, %v4798_v61  ;;  %v12759_v47 = vpop.permute.xlu0 %5265  ;;  %9883 = vmatprep.mubr.msk.bf16.mxu0 %vm1397_vm5, %v5407_v42  ;;  %v5381_v6 = vmax.f32 %v5349_v45, 0.0 }
 0x9b6   : > { %15152 = vst [vmem:[#allocation71_spill] sm:$0xff] %v12755_v51  ;;  %v5352_v62 = vadd.f32 %v12755_v51, %v5192_v13  ;;  %v5351_v3 = vadd.f32 %v12759_v47, %v5191_v57  ;;  %v9858_v23 = vpop.f32.mrf.mxu1  ;;  %9884 = vmatmul.mubr.msk.bf16.gmra.mxu0 %vm1397_vm5, %v5408_v21  ;;  %v5163_v61 = vadd.f32 %v12696_v28, %v5076_v14  ;;  %v9826_v14 = vpop.f32.mrf.mxu0 }
 0x9b7   : > { %v5350_v10 = vadd.f32 %v12745_v40, %v5190_v18  ;;  %v5161_v25 = vadd.f32 %v12696_v28, %v5068_v32  ;;  %v5079_v63 = vadd.f32 %v9858_v23, %v9822_v54 }
 0x9b8   : > { %v5384_v31 = vmax.f32 %v5352_v62, 0.0  ;;  %v5383_v59 = vmax.f32 %v5351_v3, 0.0  ;;  %v5070_v13 = vpop.f32.mrf.mxu1  ;;  %v5195_v62 = vmul.f32 %v5163_v61, %v12590_v16 }
 0x9b9   : > { %v12767_v5 = vpop.permute.xlu1 %5271  ;;  %v5382_v42 = vmax.f32 %v5350_v10, 0.0  ;;  %v5193_v57 = vmul.f32 %v5161_v25, %v12578_v27  ;;  %v5164_v41 = vadd.f32 %v12696_v28, %v5079_v63  ;;  %v5071_v21 = vadd.f32 %v5070_v13, %v4801_v30  ;;  %v12771_v51 = vpop.permute.xlu0 %5269 }
 0x9ba   : > { %v5410_v3 = vpack.c.bf16 %v5384_v31, %v5383_v59  ;;  %v4817_v59 = vpop.f32.mrf.mxu0 }
 0x9bb   : > { %v5409_v18 = vpack.c.bf16 %v5382_v42, %v5381_v6  ;;  %v5196_v54 = vmul.f32 %v5164_v41, %v12586_v11  ;;  %v5162_v45 = vadd.f32 %v12696_v28, %v5071_v21  ;;  %v5353_v25 = vadd.f32 %v12771_v51, %v5193_v57 }
 0x9bc   : > { %v9861_v32 = vpop.f32.mrf.mxu1 }
 0x9bd   : > { %v5092_v23 = vadd.f32 %v9861_v32, %v9825_v12  ;;  %v12776_v37 = vpop.permute.xlu1 %5275  ;;  %v5194_v10 = vmul.f32 %v5162_v45, %v12574_v46  ;;  %v12781_v63 = vpop.permute.xlu0 %5273  ;;  %9887 = vmatprep.mubr.msk.bf16.mxu0 %vm1397_vm5, %v5409_v18  ;;  %v5385_v32 = vmax.f32 %v5353_v25, 0.0 }
 0x9be   : > { %15153 = vst [vmem:[#allocation82_spill] sm:$0xff] %v12776_v37  ;;  %v5356_v30 = vadd.f32 %v12776_v37, %v5196_v54  ;;  %v5083_v6 = vpop.f32.mrf.mxu1  ;;  %v5355_v13 = vadd.f32 %v12781_v63, %v5195_v62  ;;  %9888 = vmatmul.mubr.msk.bf16.gmra.mxu0 %vm1397_vm5, %v5410_v3 }
 0x9bf   : > { %v5084_v42 = vadd.f32 %v5083_v6, %v4814_v22  ;;  %v5354_v12 = vadd.f32 %v12767_v5, %v5194_v10  ;;  %v5167_v61 = vadd.f32 %v12696_v28, %v5092_v23  ;;  %v9829_v23 = vpop.f32.mrf.mxu0 }
 0x9c0   : > { %v9862_v31 = vpop.f32.mrf.mxu1  ;;  %v5388_v41 = vmax.f32 %v5356_v30, 0.0  ;;  %v5387_v57 = vmax.f32 %v5355_v13, 0.0 }
 0x9c1   : > { %v5165_v21 = vadd.f32 %v12696_v28, %v5084_v42  ;;  %v5095_v54 = vadd.f32 %v9862_v31, %v9826_v14  ;;  %v12789_v45 = vpop.permute.xlu1 %5279  ;;  %v5386_v18 = vmax.f32 %v5354_v12, 0.0  ;;  %v12791_v37 = vpop.permute.xlu0 %5277  ;;  %v5199_v30 = vmul.f32 %v5167_v61, %v12614_v26 }
 0x9c2   : > { %v5086_v22 = vpop.f32.mrf.mxu1  ;;  %v5412_v13 = vpack.c.bf16 %v5388_v41, %v5387_v57  ;;  %v4830_v61 = vpop.f32.mrf.mxu0 }
 0x9c3   : > { %v5197_v62 = vmul.f32 %v5165_v21, %v12602_v55  ;;  %v5168_v3 = vadd.f32 %v12696_v28, %v5095_v54  ;;  %v5087_v10 = vadd.f32 %v5086_v22, %v4817_v59  ;;  %v5411_v6 = vpack.c.bf16 %v5386_v18, %v5385_v32 }
 0x9c5   : > { %v5200_v42 = vmul.f32 %v5168_v3, %v12610_v36  ;;  %v5166_v14 = vadd.f32 %v12696_v28, %v5087_v10  ;;  %v12798_v31 = vpop.permute.xlu1 %5283  ;;  %v12800_v25 = vpop.permute.xlu0 %5281  ;;  %9891 = vmatprep.mubr.msk.bf16.mxu0 %vm1397_vm5, %v5411_v6  ;;  %v5357_v12 = vadd.f32 %v12791_v37, %v5197_v62 }
 0x9c6   : > { %15154 = vst [vmem:[#allocation78_spill] sm:$0xff] %v12798_v31  ;;  %v5359_v54 = vadd.f32 %v12800_v25, %v5199_v30  ;;  %9892 = vmatmul.mubr.msk.bf16.gmra.mxu0 %vm1397_vm5, %v5412_v13  ;;  %v9830_v3 = vpop.f32.mrf.mxu0 }
 0x9c7   : > { %v5198_v21 = vmul.f32 %v5166_v14, %v12598_v8  ;;  %v5360_v59 = vadd.f32 %v12798_v31, %v5200_v42  ;;  %v5389_v32 = vmax.f32 %v5357_v12, 0.0 }
 0x9c8   : > { %v5391_v18 = vmax.f32 %v5359_v54, 0.0  ;;  %v4833_v42 = vpop.f32.mrf.mxu0 }
 0x9c9   : > { %v5358_v41 = vadd.f32 %v12789_v45, %v5198_v21  ;;  %v5392_v57 = vmax.f32 %v5360_v59, 0.0  ;;  %v12810_v30 = vpop.permute.xlu1 %5287  ;;  %v12814_v21 = vpop.permute.xlu0 %5285 }
 0x9cb   : > { %v5390_v22 = vmax.f32 %v5358_v41, 0.0  ;;  %v5414_v62 = vpack.c.bf16 %v5392_v57, %v5391_v18 }
 0x9cc   : > { %v9865_v10 = vpop.f32.mrf.mxu1 }
 0x9cd   : > { %v5108_v6 = vadd.f32 %v9865_v10, %v9829_v23  ;;  %v5413_v36 = vpack.c.bf16 %v5390_v22, %v5389_v32  ;;  %v12822_v32 = vpop.permute.xlu1 %5291  ;;  %v12824_v22 = vpop.permute.xlu0 %5289 }
 0x9ce   : > { %v5099_v26 = vpop.f32.mrf.mxu1  ;;  %15155 = vst [vmem:[#allocation88_spill] sm:$0xff] %v12822_v32 }
 0x9cf   : > { %v5100_v14 = vadd.f32 %v5099_v26, %v4830_v61  ;;  %9895 = vmatprep.mubr.msk.bf16.mxu0 %vm1397_vm5, %v5413_v36  ;;  %v5171_v13 = vadd.f32 %v12696_v28, %v5108_v6  ;;  %v9833_v36 = vpop.f32.mrf.mxu0 }
 0x9d0   : > { %v9866_v31 = vpop.f32.mrf.mxu1  ;;  %9896 = vmatmul.mubr.msk.bf16.gmra.mxu0 %vm1397_vm5, %v5414_v62 }
 0x9d1   : > { %v5169_v12 = vadd.f32 %v12696_v28, %v5100_v14  ;;  %v5111_v59 = vadd.f32 %v9866_v31, %v9830_v3  ;;  %v5203_v41 = vmul.f32 %v5171_v13, %v12638_v44  ;;  %v4846_v6 = vpop.f32.mrf.mxu0 }
 0x9d2   : > { %v5102_v23 = vpop.f32.mrf.mxu1 }
 0x9d3   : > { %v5201_v54 = vmul.f32 %v5169_v12, %v12626_v29  ;;  %v5172_v26 = vadd.f32 %v12696_v28, %v5111_v59  ;;  %v5103_v61 = vadd.f32 %v5102_v23, %v4833_v42  ;;  %v5363_v62 = vadd.f32 %v12824_v22, %v5203_v41  ;;  %v9834_v59 = vpop.f32.mrf.mxu0 }
 0x9d5   : > { %v5204_v57 = vmul.f32 %v5172_v26, %v12634_v49  ;;  %v5170_v18 = vadd.f32 %v12696_v28, %v5103_v61  ;;  %v5361_v10 = vadd.f32 %v12814_v21, %v5201_v54  ;;  %v5395_v23 = vmax.f32 %v5363_v62, 0.0 }
 0x9d7   : > { %v5364_v31 = vadd.f32 %v12822_v32, %v5204_v57  ;;  %v5202_v3 = vmul.f32 %v5170_v18, %v12622_v60  ;;  %v5393_v13 = vmax.f32 %v5361_v10, 0.0  ;;  %v4849_v57 = vpop.f32.mrf.mxu0  ;;  %v12832_v18 = vpop.permute.xlu1 %5295 }
 0x9d8   : > { %v12836_v10 = vpop.permute.xlu0 %5293 }
 0x9d9   : > { %v5362_v14 = vadd.f32 %v12810_v30, %v5202_v3  ;;  %v5396_v42 = vmax.f32 %v5364_v31, 0.0 }
 0x9db   : > { %v5394_v12 = vmax.f32 %v5362_v14, 0.0  ;;  %v5416_v44 = vpack.c.bf16 %v5396_v42, %v5395_v23 }
 0x9dc   : > { %v9869_v26 = vpop.f32.mrf.mxu1 }
 0x9dd   : > { %v5124_v61 = vadd.f32 %v9869_v26, %v9833_v36  ;;  %v5415_v49 = vpack.c.bf16 %v5394_v12, %v5393_v13  ;;  %v12844_v13 = vpop.permute.xlu1 %5299  ;;  %v12846_v12 = vpop.permute.xlu0 %5297 }
 0x9de   : > { %v5115_v29 = vpop.f32.mrf.mxu1 }
 0x9df   : > { %v5116_v54 = vadd.f32 %v5115_v29, %v4846_v6  ;;  %9899 = vmatprep.mubr.msk.bf16.mxu0 %vm1397_vm5, %v5415_v49  ;;  %v5175_v41 = vadd.f32 %v12696_v28, %v5124_v61 }
 0x9e0   : > { %v9870_v32 = vpop.f32.mrf.mxu1  ;;  %9900 = vmatmul.mubr.msk.bf16.gmra.mxu0 %vm1397_vm5, %v5416_v44  ;;  %v9837_v44 = vpop.f32.mrf.mxu0 }
 0x9e1   : > { %v5173_v31 = vadd.f32 %v12696_v28, %v5116_v54  ;;  %v5127_v3 = vadd.f32 %v9870_v32, %v9834_v59  ;;  %v5207_v49 = vmul.f32 %v5175_v41, %v12662_v35 }
 0x9e2   : > { %v5118_v36 = vpop.f32.mrf.mxu1 }
 0x9e3   : > { %v5205_v62 = vmul.f32 %v5173_v31, %v12650_v17  ;;  %v5176_v29 = vadd.f32 %v12696_v28, %v5127_v3  ;;  %v5119_v6 = vadd.f32 %v5118_v36, %v4849_v57  ;;  %v5367_v26 = vadd.f32 %v12846_v12, %v5207_v49  ;;  %v4862_v57 = vpop.f32.mrf.mxu0 }
 0x9e5   : > { %v5208_v14 = vmul.f32 %v5176_v29, %v12658_v1  ;;  %v5174_v42 = vadd.f32 %v12696_v28, %v5119_v6  ;;  %v5365_v23 = vadd.f32 %v12836_v10, %v5205_v62  ;;  %v5399_v3 = vmax.f32 %v5367_v26, 0.0  ;;  %v9838_v35 = vpop.f32.mrf.mxu0 }
 0x9e7   : > { %v5368_v32 = vadd.f32 %v12844_v13, %v5208_v14  ;;  %v5206_v59 = vmul.f32 %v5174_v42, %v12646_v38  ;;  %v5397_v41 = vmax.f32 %v5365_v23, 0.0  ;;  %v12854_v14 = vpop.permute.xlu1 %5303 }
 0x9e9   : > { %v5366_v61 = vadd.f32 %v12832_v18, %v5206_v59  ;;  %v5400_v54 = vmax.f32 %v5368_v32, 0.0  ;;  %v12858_v32 = vpop.permute.xlu0 %5301 }
 0x9eb   : > { %v5398_v31 = vmax.f32 %v5366_v61, 0.0  ;;  %v5418_v1 = vpack.c.bf16 %v5400_v54, %v5399_v3  ;;  %v12866_v3 = vpop.permute.xlu1 %5307 }
 0x9ec   : > { %v9873_v36 = vpop.f32.mrf.mxu1 }
 0x9ed   : > { %v5140_v29 = vadd.f32 %v9873_v36, %v9837_v44  ;;  %v5417_v6 = vpack.c.bf16 %v5398_v31, %v5397_v41  ;;  %v4865_v44 = vpop.f32.mrf.mxu0 }
 0x9ee   : > { %v5131_v17 = vpop.f32.mrf.mxu1 }
 0x9ef   : > { %v5132_v62 = vadd.f32 %v5131_v17, %v4862_v57  ;;  %9903 = vmatprep.mubr.msk.bf16.mxu0 %vm1397_vm5, %v5417_v6  ;;  %v5179_v49 = vadd.f32 %v12696_v28, %v5140_v29 }
 0x9f0   : > { %v9874_v42 = vpop.f32.mrf.mxu1  ;;  %9904 = vmatmul.mubr.msk.bf16.gmra.mxu0 %vm1397_vm5, %v5418_v1  ;;  %v12868_v1 = vpop.permute.xlu0 %5305 }
 0x9f1   : > { %v5177_v23 = vadd.f32 %v12696_v28, %v5132_v62  ;;  %v5143_v59 = vadd.f32 %v9874_v42, %v9838_v35  ;;  %v5211_v57 = vmul.f32 %v5179_v49, %v12686_v39 }
 0x9f2   : > { %v5134_v26 = vpop.f32.mrf.mxu1 }
 0x9f3   : > { %v5209_v61 = vmul.f32 %v5177_v23, %v12674_v20  ;;  %v5180_v17 = vadd.f32 %v12696_v28, %v5143_v59  ;;  %v5135_v54 = vadd.f32 %v5134_v26, %v4865_v44  ;;  %v5371_v6 = vadd.f32 %v12868_v1, %v5211_v57 }
 0x9f5   : > { %v5212_v41 = vmul.f32 %v5180_v17, %v12682_v7  ;;  %v5178_v31 = vadd.f32 %v12696_v28, %v5135_v54  ;;  %v5369_v36 = vadd.f32 %v12858_v32, %v5209_v61  ;;  %v5403_v59 = vmax.f32 %v5371_v6, 0.0  ;;  %v12877_v61 = vpop.permute.xlu0 %5437 }
 0x9f7   : > { %v5372_v35 = vadd.f32 %v12866_v3, %v5212_v41  ;;  %v5210_v29 = vmul.f32 %v5178_v31, %v12670_v0  ;;  %v5401_v49 = vmax.f32 %v5369_v36, 0.0 }
 0x9f9   : > { %v5370_v62 = vadd.f32 %v12854_v14, %v5210_v29  ;;  %v5404_v42 = vmax.f32 %v5372_v35, 0.0 }
 0x9fb   : > { %v5402_v23 = vmax.f32 %v5370_v62, 0.0  ;;  %v5420_v28 = vpack.c.bf16 %v5404_v42, %v5403_v59 }
 0x9fd   : > { %v5419_v44 = vpack.c.bf16 %v5402_v23, %v5401_v49 }
 0x9ff   : > { %9907 = vmatprep.mubr.msk.bf16.mxu0 %vm1397_vm5, %v5419_v44 }
 0xa00   : > { %9908 = vmatmul.mubr.msk.bf16.gmra.mxu0 %vm1397_vm5, %v5420_v28 }
 0xa6e   : > { %v9881_v26 = vpop.f32.mrf.mxu0 }
 0xa6f   : > { %v5531_v31 = vadd.f32 %v9881_v26, %v12877_v61 }
 0xa70   : > { %v5522_v17 = vpop.f32.mrf.mxu0 }
 0xa71   : > { %v5523_v54 = vadd.f32 %v5522_v17, %v12877_v61 }
 0xa72   : > { %v9882_v41 = vpop.f32.mrf.mxu0 }
 0xa73   : > { %5681 = vrot.lane.b32.xlu1 %v5523_v54, %s10263_s26  ;;  %v5534_v6 = vadd.f32 %v9882_v41, %v12877_v61 }
 0xa74   : > { %v5525_v57 = vpop.f32.mrf.mxu0 }
 0xa75   : > { %v5526_v36 = vadd.f32 %v5525_v57, %v12877_v61 }
 0xa76   : > { %v9885_v35 = vpop.f32.mrf.mxu0 }
 0xa77   : > { %5683 = vrot.lane.b32.xlu0 %v5526_v36, %s10263_s26  ;;  %5685 = vrot.lane.b32.xlu1 %v5531_v31, %s10263_s26  ;;  %v5547_v23 = vadd.f32 %v9885_v35, %v12877_v61 }
 0xa78   : > { %v5538_v29 = vpop.f32.mrf.mxu0 }
 0xa79   : > { %v5539_v62 = vadd.f32 %v5538_v29, %v12877_v61 }
 0xa7a   : > { %v9886_v42 = vpop.f32.mrf.mxu0 }
 0xa7b   : > { %5687 = vrot.lane.b32.xlu0 %v5534_v6, %s10263_s26  ;;  %5689 = vrot.lane.b32.xlu1 %v5539_v62, %s10263_s26  ;;  %v5550_v26 = vadd.f32 %v9886_v42, %v12877_v61 }
 0xa7c   : > { %v5541_v49 = vpop.f32.mrf.mxu0 }
 0xa7d   : > { %v5542_v59 = vadd.f32 %v5541_v49, %v12877_v61 }
 0xa7e   : > { %v9889_v44 = vpop.f32.mrf.mxu0 }
 0xa7f   : > { %5691 = vrot.lane.b32.xlu0 %v5542_v59, %s10263_s26  ;;  %5693 = vrot.lane.b32.xlu1 %v5547_v23, %s10263_s26  ;;  %v5563_v57 = vadd.f32 %v9889_v44, %v12877_v61 }
 0xa80   : > { %v5554_v28 = vpop.f32.mrf.mxu0 }
 0xa81   : > { %v5555_v17 = vadd.f32 %v5554_v28, %v12877_v61 }
 0xa82   : > { %v9890_v54 = vpop.f32.mrf.mxu0 }
 0xa83   : > { %5695 = vrot.lane.b32.xlu0 %v5550_v26, %s10263_s26  ;;  %5697 = vrot.lane.b32.xlu1 %v5555_v17, %s10263_s26  ;;  %v5566_v29 = vadd.f32 %v9890_v54, %v12877_v61 }
 0xa84   : > { %v5557_v41 = vpop.f32.mrf.mxu0 }
 0xa85   : > { %v5558_v31 = vadd.f32 %v5557_v41, %v12877_v61 }
 0xa86   : > { %v9893_v36 = vpop.f32.mrf.mxu0 }
 0xa87   : > { %5699 = vrot.lane.b32.xlu0 %v5558_v31, %s10263_s26  ;;  %5701 = vrot.lane.b32.xlu1 %v5563_v57, %s10263_s26  ;;  %v5579_v49 = vadd.f32 %v9893_v36, %v12877_v61 }
 0xa88   : > { %v5570_v35 = vpop.f32.mrf.mxu0 }
 0xa89   : > { %v5571_v6 = vadd.f32 %v5570_v35, %v12877_v61 }
 0xa8a   : > { %v9894_v62 = vpop.f32.mrf.mxu0 }
 0xa8b   : > { %5703 = vrot.lane.b32.xlu0 %v5566_v29, %s10263_s26  ;;  %5705 = vrot.lane.b32.xlu1 %v5571_v6, %s10263_s26  ;;  %v5582_v44 = vadd.f32 %v9894_v62, %v12877_v61 }
 0xa8c   : > { %v5573_v42 = vpop.f32.mrf.mxu0 }
 0xa8d   : > { %v5574_v23 = vadd.f32 %v5573_v42, %v12877_v61 }
 0xa8f   : > { %5707 = vrot.lane.b32.xlu0 %v5574_v23, %s10263_s26  ;;  %5709 = vrot.lane.b32.xlu1 %v5579_v49, %s10263_s26 }
 0xa90   : > { %v9897_v59 = vpop.f32.mrf.mxu0 }
 0xa91   : > { %v5595_v41 = vadd.f32 %v9897_v59, %v12877_v61 }
 0xa92   : > { %v5586_v28 = vpop.f32.mrf.mxu0 }
 0xa93   : > { %v5587_v26 = vadd.f32 %v5586_v28, %v12877_v61  ;;  %5711 = vrot.lane.b32.xlu0 %v5582_v44, %s10263_s26 }
 0xa94   : > { %v9898_v17 = vpop.f32.mrf.mxu0 }
 0xa95   : > { %5713 = vrot.lane.b32.xlu1 %v5587_v26, %s10263_s26  ;;  %v5598_v31 = vadd.f32 %v9898_v17, %v12877_v61 }
 0xa96   : > { %v5589_v54 = vpop.f32.mrf.mxu0 }
 0xa97   : > { %v5590_v57 = vadd.f32 %v5589_v54, %v12877_v61 }
 0xa99   : > { %5715 = vrot.lane.b32.xlu0 %v5590_v57, %s10263_s26  ;;  %5717 = vrot.lane.b32.xlu1 %v5595_v41, %s10263_s26 }
 0xa9d   : > { %5719 = vrot.lane.b32.xlu0 %v5598_v31, %s10263_s26 }
 0xaa0   : > { %v9901_v36 = vpop.f32.mrf.mxu0 }
 0xaa1   : > { %v5611_v42 = vadd.f32 %v9901_v36, %v12877_v61 }
 0xaa2   : > { %v5602_v35 = vpop.f32.mrf.mxu0 }
 0xaa3   : > { %v5603_v29 = vadd.f32 %v5602_v35, %v12877_v61 }
 0xaa4   : > { %v9902_v6 = vpop.f32.mrf.mxu0 }
 0xaa5   : > { %5721 = vrot.lane.b32.xlu1 %v5603_v29, %s10263_s26  ;;  %v5614_v23 = vadd.f32 %v9902_v6, %v12877_v61 }
 0xaa6   : > { %v5605_v62 = vpop.f32.mrf.mxu0 }
 0xaa7   : > { %v5606_v49 = vadd.f32 %v5605_v62, %v12877_v61  ;;  %v10173_v62 = vld [vmem:[%s14682_s14 + $0x8] sm:$0xff]  }
 0xaa8   : > { %9911 = vmatprep.subr.bf16.mxu1 %v10173_v62 }
 0xaa9   : > { %5723 = vrot.lane.b32.xlu0 %v5606_v49, %s10263_s26  ;;  %5725 = vrot.lane.b32.xlu1 %v5611_v42, %s10263_s26 }
 0xaaa   : > { %9912 = vmatpush3.bf16.msra.mxu1 %v10173_v62  ;;  %v15156_v62 = vld [vmem:[#allocation27_spill] sm:$0xff] }
 0xaad   : > { %5727 = vrot.lane.b32.xlu0 %v5614_v23, %s10263_s26  ;;  %v10174_v23 = vld [vmem:[%s14682_s14] sm:$0xff]  }
 0xaae   : > { %9913 = vmatprep.subr.bf16.mxu1 %v10174_v23 }
 0xaaf   : > { %9914 = vmatpush3.bf16.msra.mxu1 %v10174_v23 }
 0xab0   : > { %v9905_v59 = vpop.f32.mrf.mxu0 }
 0xab1   : > { %v5627_v54 = vadd.f32 %v9905_v59, %v12877_v61 }
 0xab2   : > { %v5618_v44 = vpop.f32.mrf.mxu0 }
 0xab3   : > { %v5619_v28 = vadd.f32 %v5618_v44, %v12877_v61 }
 0xab4   : > { %v9906_v26 = vpop.f32.mrf.mxu0 }
 0xab5   : > { %5729 = vrot.lane.b32.xlu1 %v5619_v28, %s10263_s26  ;;  %v5630_v57 = vadd.f32 %v9906_v26, %v12877_v61 }
 0xab6   : > { %v5621_v17 = vpop.f32.mrf.mxu0 }
 0xab7   : > { %v5622_v41 = vadd.f32 %v5621_v17, %v12877_v61 }
 0xab9   : > { %5731 = vrot.lane.b32.xlu0 %v5622_v41, %s10263_s26  ;;  %5733 = vrot.lane.b32.xlu1 %v5627_v54, %s10263_s26 }
 0xabd   : > { %5735 = vrot.lane.b32.xlu0 %v5630_v57, %s10263_s26 }
 0xac0   : > { %v9909_v31 = vpop.f32.mrf.mxu0 }
 0xac1   : > { %v5643_v42 = vadd.f32 %v9909_v31, %v12877_v61 }
 0xac2   : > { %v5634_v36 = vpop.f32.mrf.mxu0 }
 0xac3   : > { %v5635_v35 = vadd.f32 %v5634_v36, %v12877_v61 }
 0xac4   : > { %v9910_v29 = vpop.f32.mrf.mxu0 }
 0xac5   : > { %5737 = vrot.lane.b32.xlu1 %v5635_v35, %s10263_s26  ;;  %v5646_v59 = vadd.f32 %v9910_v29, %v12877_v61 }
 0xac6   : > { %v5637_v6 = vpop.f32.mrf.mxu0 }
 0xac7   : > { %v5638_v49 = vadd.f32 %v5637_v6, %v12877_v61 }
 0xac9   : > { %5739 = vrot.lane.b32.xlu0 %v5638_v49, %s10263_s26  ;;  %5741 = vrot.lane.b32.xlu1 %v5643_v42, %s10263_s26  ;;  %v15157_v49 = vld [vmem:[#allocation36_spill] sm:$0xff] }
 0xacd   : > { %5743 = vrot.lane.b32.xlu0 %v5646_v59, %s10263_s26  ;;  %v15158_v59 = vld [vmem:[#allocation64_spill] sm:$0xff] }
 0xae5   : > { %v5682_v44 = vpop.permute.xlu1 %5681 }
 0xae6   : > { %v5777_v28 = vmul.f32 %v5682_v44, %v12502_v4 }
 0xae8   : > { %v5809_v54 = vadd.f32 %v5777_v28, %v12706_v19 }
 0xae9   : > { %v5684_v26 = vpop.permute.xlu0 %5683  ;;  %v5686_v17 = vpop.permute.xlu1 %5685 }
 0xaea   : > { %v5778_v41 = vmul.f32 %v5684_v26, %v12506_v50  ;;  %v5779_v57 = vmul.f32 %v5686_v17, %v12518_v53  ;;  %v5841_v29 = vmax.f32 %v5809_v54, 0.0 }
 0xaec   : > { %v5810_v31 = vadd.f32 %v5778_v41, %v12701_v56  ;;  %v5811_v36 = vadd.f32 %v5779_v57, %v12715_v15 }
 0xaed   : > { %v5688_v61 = vpop.permute.xlu0 %5687  ;;  %v5690_v35 = vpop.permute.xlu1 %5689 }
 0xaee   : > { %v5842_v6 = vmax.f32 %v5810_v31, 0.0  ;;  %v5780_v42 = vmul.f32 %v5688_v61, %v15156_v62  ;;  %v5781_v4 = vmul.f32 %v5690_v35, %v15157_v49  ;;  %v5843_v19 = vmax.f32 %v5811_v36, 0.0 }
 0xaf0   : > { %v5873_v23 = vpack.c.bf16 %v5842_v6, %v5841_v29  ;;  %v5812_v44 = vadd.f32 %v5780_v42, %v15158_v59  ;;  %v5813_v53 = vadd.f32 %v5781_v4, %v12726_v34  ;;  %v15159_v29 = vld [vmem:[#allocation33_spill] sm:$0xff]  ;;  %v15160_v34 = vld [vmem:[#allocation75_spill] sm:$0xff] }
 0xaf1   : > { %v5692_v28 = vpop.permute.xlu0 %5691  ;;  %v5694_v50 = vpop.permute.xlu1 %5693 }
 0xaf2   : > { %v5844_v26 = vmax.f32 %v5812_v44, 0.0  ;;  %v5782_v56 = vmul.f32 %v5692_v28, %v12526_v43  ;;  %v5783_v15 = vmul.f32 %v5694_v50, %v12542_v24  ;;  %5916 = vrot.lane.b32.xlu1 %v5873_v23, %s10263_s26  ;;  %v5845_v61 = vmax.f32 %v5813_v53, 0.0  ;;  %v15161_v53 = vld [vmem:[#allocation42_spill] sm:$0xff] }
 0xaf4   : > { %v5874_v17 = vpack.c.bf16 %v5844_v26, %v5843_v19  ;;  %v5814_v54 = vadd.f32 %v5782_v56, %v12722_v2  ;;  %v5815_v41 = vadd.f32 %v5783_v15, %v12736_v9 }
 0xaf5   : > { %v5696_v57 = vpop.permute.xlu0 %5695  ;;  %v5698_v31 = vpop.permute.xlu1 %5697 }
 0xaf6   : > { %v5846_v36 = vmax.f32 %v5814_v54, 0.0  ;;  %v5784_v35 = vmul.f32 %v5696_v57, %v12538_v52  ;;  %v5785_v6 = vmul.f32 %v5698_v31, %v15159_v29  ;;  %5918 = vrot.lane.b32.xlu0 %v5874_v17, %s10263_s26  ;;  %v5847_v62 = vmax.f32 %v5815_v41, 0.0 }
 0xaf8   : > { %v5875_v43 = vpack.c.bf16 %v5846_v36, %v5845_v61  ;;  %v5816_v24 = vadd.f32 %v5784_v35, %v15160_v34  ;;  %v5817_v2 = vadd.f32 %v5785_v6, %v12749_v48  ;;  %v15162_v48 = vld [vmem:[#allocation71_spill] sm:$0xff] }
 0xaf9   : > { %v5700_v42 = vpop.permute.xlu0 %5699  ;;  %v5702_v49 = vpop.permute.xlu1 %5701 }
 0xafa   : > { %v5848_v4 = vmax.f32 %v5816_v24, 0.0  ;;  %v5786_v9 = vmul.f32 %v5700_v42, %v12550_v33  ;;  %v5787_v23 = vmul.f32 %v5702_v49, %v12566_v58  ;;  %5920 = vrot.lane.b32.xlu1 %v5875_v43, %s10263_s26  ;;  %v5849_v50 = vmax.f32 %v5817_v2, 0.0  ;;  %v15163_v24 = vld [vmem:[#allocation82_spill] sm:$0xff]  ;;  %v15164_v2 = vld [vmem:[#allocation48_spill] sm:$0xff] }
 0xafc   : > { %v5876_v52 = vpack.c.bf16 %v5848_v4, %v5847_v62  ;;  %v5818_v59 = vadd.f32 %v5786_v9, %v12745_v40  ;;  %v5819_v44 = vadd.f32 %v5787_v23, %v12759_v47 }
 0xafd   : > { %v5704_v19 = vpop.permute.xlu0 %5703  ;;  %v5706_v28 = vpop.permute.xlu1 %5705 }
 0xafe   : > { %v5850_v26 = vmax.f32 %v5818_v59, 0.0  ;;  %v5788_v56 = vmul.f32 %v5704_v19, %v15161_v53  ;;  %v5789_v15 = vmul.f32 %v5706_v28, %v12578_v27  ;;  %5922 = vrot.lane.b32.xlu0 %v5876_v52, %s10263_s26  ;;  %v5851_v17 = vmax.f32 %v5819_v44, 0.0  ;;  %v15165_v19 = vld [vmem:[#allocation39_spill] sm:$0xff] }
 0xb00   : > { %v5877_v33 = vpack.c.bf16 %v5850_v26, %v5849_v50  ;;  %v5820_v58 = vadd.f32 %v5788_v56, %v15162_v48  ;;  %v5821_v40 = vadd.f32 %v5789_v15, %v12771_v51  ;;  %v15166_v26 = vld [vmem:[#allocation78_spill] sm:$0xff] }
 0xb01   : > { %v5708_v54 = vpop.permute.xlu0 %5707  ;;  %v5710_v41 = vpop.permute.xlu1 %5709 }
 0xb02   : > { %v5852_v57 = vmax.f32 %v5820_v58, 0.0  ;;  %v5790_v47 = vmul.f32 %v5708_v54, %v12574_v46  ;;  %v5791_v31 = vmul.f32 %v5710_v41, %v12590_v16  ;;  %5924 = vrot.lane.b32.xlu1 %v5877_v33, %s10263_s26  ;;  %v5853_v35 = vmax.f32 %v5821_v40, 0.0  ;;  %v15167_v33 = vld [vmem:[#allocation45_spill] sm:$0xff]  ;;  %v15168_v54 = vld [vmem:[#allocation51_spill] sm:$0xff] }
 0xb04   : > { %v5878_v61 = vpack.c.bf16 %v5852_v57, %v5851_v17  ;;  %v5822_v27 = vadd.f32 %v5790_v47, %v12767_v5  ;;  %v5823_v6 = vadd.f32 %v5791_v31, %v12781_v63 }
 0xb05   : > { %v5712_v36 = vpop.permute.xlu0 %5711 }
 0xb06   : > { %v5854_v29 = vmax.f32 %v5822_v27, 0.0  ;;  %v5792_v43 = vmul.f32 %v5712_v36, %v12586_v11  ;;  %5926 = vrot.lane.b32.xlu0 %v5878_v61, %s10263_s26  ;;  %v5855_v62 = vmax.f32 %v5823_v6, 0.0  ;;  %v15169_v27 = vld [vmem:[#allocation54_spill] sm:$0xff] }
 0xb07   : > { %v5714_v34 = vpop.permute.xlu1 %5713 }
 0xb08   : > { %v5793_v51 = vmul.f32 %v5714_v34, %v12602_v55  ;;  %v5879_v46 = vpack.c.bf16 %v5854_v29, %v5853_v35  ;;  %v5824_v16 = vadd.f32 %v5792_v43, %v15163_v24  ;;  %v15170_v29 = vld [vmem:[#allocation88_spill] sm:$0xff] }
 0xb0a   : > { %v5856_v42 = vmax.f32 %v5824_v16, 0.0  ;;  %5928 = vrot.lane.b32.xlu1 %v5879_v46, %s10263_s26  ;;  %v5825_v4 = vadd.f32 %v5793_v51, %v12791_v37  ;;  %v15171_v51 = vld [vmem:[#allocation61_spill] sm:$0xff] }
 0xb0b   : > { %v5716_v5 = vpop.permute.xlu0 %5715  ;;  %v5718_v49 = vpop.permute.xlu1 %5717 }
 0xb0c   : > { %v5794_v63 = vmul.f32 %v5716_v5, %v12598_v8  ;;  %v5795_v11 = vmul.f32 %v5718_v49, %v15164_v2  ;;  %v5880_v9 = vpack.c.bf16 %v5856_v42, %v5855_v62  ;;  %v5857_v52 = vmax.f32 %v5825_v4, 0.0  ;;  %v15172_v62 = vld [vmem:[#allocation68_spill] sm:$0xff] }
 0xb0e   : > { %v5826_v23 = vadd.f32 %v5794_v63, %v12789_v45  ;;  %5930 = vrot.lane.b32.xlu0 %v5880_v9, %s10263_s26  ;;  %v5827_v44 = vadd.f32 %v5795_v11, %v12800_v25  ;;  %v15173_v11 = vld [vmem:[#allocation57_spill] sm:$0xff] }
 0xb0f   : > { %v5720_v55 = vpop.permute.xlu0 %5719 }
 0xb10   : > { %v5858_v59 = vmax.f32 %v5826_v23, 0.0  ;;  %v5796_v28 = vmul.f32 %v5720_v55, %v15165_v19  ;;  %v5859_v37 = vmax.f32 %v5827_v44, 0.0 }
 0xb12   : > { %v5881_v50 = vpack.c.bf16 %v5858_v59, %v5857_v52  ;;  %v5828_v53 = vadd.f32 %v5796_v28, %v15166_v26 }
 0xb14   : > { %v5860_v56 = vmax.f32 %v5828_v53, 0.0  ;;  %5932 = vrot.lane.b32.xlu1 %v5881_v50, %s10263_s26  ;;  %v15174_v53 = vld [vmem:[#allocation2_spill] sm:$0xff] }
 0xb16   : > { %v5882_v8 = vpack.c.bf16 %v5860_v56, %v5859_v37  ;;  %v2091_v37 = vsub.s32 4, %v15174_v53 }
 0xb17   : > { %v5722_v15 = vpop.permute.xlu1 %5721 }
 0xb18   : > { %v5797_v45 = vmul.f32 %v5722_v15, %v15167_v33  ;;  %5934 = vrot.lane.b32.xlu0 %v5882_v8, %s10263_s26 }
 0xb1a   : > { %v5829_v17 = vadd.f32 %v5797_v45, %v12814_v21 }
 0xb1b   : > { %v5724_v48 = vpop.permute.xlu0 %5723  ;;  %v5726_v58 = vpop.permute.xlu1 %5725 }
 0xb1c   : > { %v5798_v25 = vmul.f32 %v5724_v48, %v12622_v60  ;;  %v5799_v41 = vmul.f32 %v5726_v58, %v15168_v54  ;;  %v5861_v47 = vmax.f32 %v5829_v17, 0.0  ;;  %v10175_v54 = vld [vmem:[%s14683_s15 + $0x8] sm:$0xff]  }
 0xb1d   : > { %9947 = vmatprep.subr.bf16.mxu0 %v10175_v54 }
 0xb1e   : > { %v5830_v57 = vadd.f32 %v5798_v25, %v12810_v30  ;;  %v5831_v61 = vadd.f32 %v5799_v41, %v12824_v22  ;;  %9948 = vmatpush3.bf16.msra.mxu0 %v10175_v54  ;;  %v15207_v54 = vld [vmem:[#allocation104_spill] sm:$0xff] }
 0xb1f   : > { %v5728_v40 = vpop.permute.xlu0 %5727 }
 0xb20   : > { %v5862_v31 = vmax.f32 %v5830_v57, 0.0  ;;  %v5800_v36 = vmul.f32 %v5728_v40, %v15169_v27  ;;  %v5863_v43 = vmax.f32 %v5831_v61, 0.0 }
 0xb22   : > { %v5883_v35 = vpack.c.bf16 %v5862_v31, %v5861_v47  ;;  %v5832_v6 = vadd.f32 %v5800_v36, %v15170_v29  ;;  %v10176_v29 = vld [vmem:[%s14683_s15] sm:$0xff]  }
 0xb23   : > { %9949 = vmatprep.subr.bf16.mxu0 %v10176_v29 }
 0xb24   : > { %v5864_v34 = vmax.f32 %v5832_v6, 0.0  ;;  %5936 = vrot.lane.b32.xlu1 %v5883_v35, %s10263_s26  ;;  %9950 = vmatpush3.bf16.msra.mxu0 %v10176_v29  ;;  %v15215_v29 = vld [vmem:[#allocation114_spill] sm:$0xff] }
 0xb26   : > { %v5884_v21 = vpack.c.bf16 %v5864_v34, %v5863_v43  ;;  %v15176_v34 = vld [vmem:[#allocation30_spill] sm:$0xff] }
 0xb27   : > { %v5730_v60 = vpop.permute.xlu1 %5729 }
 0xb28   : > { %v5801_v46 = vmul.f32 %v5730_v60, %v15171_v51  ;;  %5938 = vrot.lane.b32.xlu0 %v5884_v21, %s10263_s26  ;;  %v15177_v60 = vld [vmem:[#allocation22_spill] sm:$0xff] }
 0xb2a   : > { %v5833_v16 = vadd.f32 %v5801_v46, %v12836_v10  ;;  %v15178_v46 = vld [vmem:[#allocation25_spill] sm:$0xff] }
 0xb2b   : > { %v5732_v30 = vpop.permute.xlu0 %5731  ;;  %v5734_v24 = vpop.permute.xlu1 %5733 }
 0xb2c   : > { %v5802_v22 = vmul.f32 %v5732_v30, %v12646_v38  ;;  %v5803_v42 = vmul.f32 %v5734_v24, %v15172_v62  ;;  %v5865_v4 = vmax.f32 %v5833_v16, 0.0  ;;  %v15179_v24 = vld [vmem:[#allocation31_spill] sm:$0xff] }
 0xb2e   : > { %v5834_v5 = vadd.f32 %v5802_v22, %v12832_v18  ;;  %v5835_v2 = vadd.f32 %v5803_v42, %v12846_v12  ;;  %v15180_v22 = vld [vmem:[#allocation28_spill] sm:$0xff]  ;;  %v15181_v42 = vld [vmem:[#allocation37_spill] sm:$0xff] }
 0xb2f   : > { %v5736_v49 = vpop.permute.xlu0 %5735 }
 0xb30   : > { %v5866_v63 = vmax.f32 %v5834_v5, 0.0  ;;  %v5804_v9 = vmul.f32 %v5736_v49, %v15173_v11  ;;  %v5867_v52 = vmax.f32 %v5835_v2, 0.0  ;;  %v15182_v49 = vld [vmem:[#allocation34_spill] sm:$0xff]  ;;  %v15184_v11 = vld [vmem:[#allocation40_spill] sm:$0xff] }
 0xb32   : > { %v5885_v23 = vpack.c.bf16 %v5866_v63, %v5865_v4  ;;  %v5836_v55 = vadd.f32 %v5804_v9, %v12844_v13  ;;  %v15183_v63 = vld [vmem:[#allocation43_spill] sm:$0xff] }
 0xb34   : > { %v5868_v59 = vmax.f32 %v5836_v55, 0.0  ;;  %5940 = vrot.lane.b32.xlu1 %v5885_v23, %s10263_s26  ;;  %v15185_v23 = vld [vmem:[#allocation49_spill] sm:$0xff] }
 0xb36   : > { %v5886_v10 = vpack.c.bf16 %v5868_v59, %v5867_v52  ;;  %v15186_v52 = vld [vmem:[#allocation46_spill] sm:$0xff] }
 0xb37   : > { %v5738_v38 = vpop.permute.xlu1 %5737 }
 0xb38   : > { %v5805_v44 = vmul.f32 %v5738_v38, %v12674_v20  ;;  %5942 = vrot.lane.b32.xlu0 %v5886_v10, %s10263_s26  ;;  %v15187_v10 = vld [vmem:[#allocation55_spill] sm:$0xff] }
 0xb3a   : > { %v5837_v28 = vadd.f32 %v5805_v44, %v12858_v32  ;;  %v15188_v44 = vld [vmem:[#allocation52_spill] sm:$0xff] }
 0xb3b   : > { %v5740_v18 = vpop.permute.xlu0 %5739  ;;  %v5742_v19 = vpop.permute.xlu1 %5741 }
 0xb3c   : > { %v5806_v12 = vmul.f32 %v5740_v18, %v12670_v0  ;;  %v5807_v50 = vmul.f32 %v5742_v19, %v12686_v39  ;;  %v5869_v56 = vmax.f32 %v5837_v28, 0.0  ;;  %v10250_v0 = vld [vmem:[%s14688_s20] sm:$0x3f] }
 0xb3d   : > { %v2092_v39 = vrot.slane %v10250_v0, %v2091_v37  ;;  %v15189_v19 = vld [vmem:[#allocation62_spill] sm:$0xff]  ;;  %v15193_v37 = vld [vmem:[#allocation65_spill] sm:$0xff] }
 0xb3e   : > { %v5838_v13 = vadd.f32 %v5806_v12, %v12854_v14  ;;  %v5839_v15 = vadd.f32 %v5807_v50, %v12868_v1  ;;  %v15190_v12 = vld [vmem:[#allocation58_spill] sm:$0xff] }
 0xb3f   : > { %v5744_v26 = vpop.permute.xlu0 %5743 }
 0xb40   : > { %v5870_v8 = vmax.f32 %v5838_v13, 0.0  ;;  %v5808_v20 = vmul.f32 %v5744_v26, %v12682_v7  ;;  %v5871_v48 = vmax.f32 %v5839_v15, 0.0  ;;  %v15191_v13 = vld [vmem:[#allocation69_spill] sm:$0xff] }
 0xb42   : > { %v5887_v33 = vpack.c.bf16 %v5870_v8, %v5869_v56  ;;  %v5840_v45 = vadd.f32 %v5808_v20, %v12866_v3  ;;  %v15195_v8 = vld [vmem:[#allocation76_spill] sm:$0xff] }
 0xb43   : > { %v15196_v20 = vld [vmem:[#allocation72_spill] sm:$0xff] }
 0xb44   : > { %v5872_v32 = vmax.f32 %v5840_v45, 0.0  ;;  %5944 = vrot.lane.b32.xlu1 %v5887_v33, %s10263_s26  ;;  %v15197_v45 = vld [vmem:[#allocation83_spill] sm:$0xff] }
 0xb46   : > { %v5888_v14 = vpack.c.bf16 %v5872_v32, %v5871_v48  ;;  %v15199_v32 = vld [vmem:[#allocation79_spill] sm:$0xff] }
 0xb48   : > { %2157 = vrot.lane.b32.xlu1 %v2092_v39, %s10265_s24  ;;  %5946 = vrot.lane.b32.xlu0 %v5888_v14, %s10263_s26  ;;  %v15200_v39 = vld [vmem:[#allocation89_spill] sm:$0xff] }
 0xb64   : > { %v5917_v1 = vpop.permute.xlu1 %5916 }
 0xb65   : > { %9915 = vmatprep.mubr.msk.bf16.mxu1 %vm1397_vm5, %v5917_v1  ;;  %v15201_v1 = vld [vmem:[#allocation86_spill] sm:$0xff] }
 0xb68   : > { %v5919_v7 = vpop.permute.xlu0 %5918 }
 0xb69   : > { %9916 = vmatmul.mubr.msk.bf16.vlgmr.msra.gmra.mxu1 %vm1397_vm5, %v5919_v7 }
 0xb6c   : > { %v5921_v3 = vpop.permute.xlu1 %5920 }
 0xb6d   : > { %9919 = vmatprep.mubr.msk.bf16.mxu1 %vm1397_vm5, %v5921_v3  ;;  %v15203_v3 = vld [vmem:[#allocation96_spill] sm:$0xff] }
 0xb70   : > { %v5923_v58 = vpop.permute.xlu0 %5922 }
 0xb71   : > { %9920 = vmatmul.mubr.msk.bf16.gmra.mxu1 %vm1397_vm5, %v5923_v58 }
 0xb74   : > { %v5925_v17 = vpop.permute.xlu1 %5924 }
 0xb75   : > { %9923 = vmatprep.mubr.msk.bf16.mxu1 %vm1397_vm5, %v5925_v17  ;;  %v15205_v17 = vld [vmem:[#allocation92_spill] sm:$0xff] }
 0xb78   : > { %v5927_v25 = vpop.permute.xlu0 %5926 }
 0xb79   : > { %9924 = vmatmul.mubr.msk.bf16.gmra.mxu1 %vm1397_vm5, %v5927_v25 }
 0xb7c   : > { %v5929_v41 = vpop.permute.xlu1 %5928 }
 0xb7d   : > { %9927 = vmatprep.mubr.msk.bf16.mxu1 %vm1397_vm5, %v5929_v41 }
 0xb80   : > { %v5931_v57 = vpop.permute.xlu0 %5930 }
 0xb81   : > { %9928 = vmatmul.mubr.msk.bf16.gmra.mxu1 %vm1397_vm5, %v5931_v57  ;;  %v15208_v57 = vld [vmem:[#allocation100_spill] sm:$0xff] }
 0xb86   : > { %v5933_v40 = vpop.permute.xlu1 %5932 }
 0xb87   : > { %9931 = vmatprep.mubr.msk.bf16.mxu1 %vm1397_vm5, %v5933_v40 }
 0xb8a   : > { %v5935_v47 = vpop.permute.xlu0 %5934 }
 0xb8b   : > { %9932 = vmatmul.mubr.msk.bf16.gmra.mxu1 %vm1397_vm5, %v5935_v47  ;;  %v15210_v47 = vld [vmem:[#allocation111_spill] sm:$0xff] }
 0xb96   : > { %v5937_v31 = vpop.permute.xlu1 %5936 }
 0xb97   : > { %9935 = vmatprep.mubr.msk.bf16.mxu1 %vm1397_vm5, %v5937_v31 }
 0xb9a   : > { %v5939_v61 = vpop.permute.xlu0 %5938 }
 0xb9b   : > { %9936 = vmatmul.mubr.msk.bf16.gmra.mxu1 %vm1397_vm5, %v5939_v61  ;;  %v15212_v61 = vld [vmem:[#allocation107_spill] sm:$0xff] }
 0xba6   : > { %v5941_v27 = vpop.permute.xlu1 %5940 }
 0xba7   : > { %9939 = vmatprep.mubr.msk.bf16.mxu1 %vm1397_vm5, %v5941_v27 }
 0xbaa   : > { %v5943_v36 = vpop.permute.xlu0 %5942 }
 0xbab   : > { %9940 = vmatmul.mubr.msk.bf16.gmra.mxu1 %vm1397_vm5, %v5943_v36  ;;  %v15214_v36 = vld [vmem:[#allocation117_spill] sm:$0xff] }
 0xbb6   : > { %v5945_v35 = vpop.permute.xlu1 %5944 }
 0xbb7   : > { %9943 = vmatprep.mubr.msk.bf16.mxu1 %vm1397_vm5, %v5945_v35 }
 0xbba   : > { %v5947_v6 = vpop.permute.xlu0 %5946  ;;  %v13055_v43 = vpop.permute.xlu1 %2157 }
 0xbbb   : > { %15175 = vst [vmem:[#allocation85_spill] sm:$0xff] %v13055_v43  ;;  %v13060_v21 = vsel %vm1397_vm5, %v15176_v34, %v13055_v43  ;;  %9944 = vmatmul.mubr.msk.bf16.gmra.mxu1 %vm1397_vm5, %v5947_v6  ;;  %v15216_v34 = vld [vmem:[#allocation122_spill] sm:$0xff] }
 0xbbc   : > { %v13065_v51 = vadd.f32 %v15177_v60, %v13060_v21  ;;  %v13069_v30 = vadd.f32 %v15178_v46, %v13060_v21  ;;  %v13077_v16 = vadd.f32 %v15179_v24, %v13060_v21  ;;  %v13081_v62 = vadd.f32 %v15180_v22, %v13060_v21  ;;  %v15218_v46 = vld [vmem:[#allocation120_spill] sm:$0xff]  ;;  %v13258_v22 = vld [vmem:[%s14688_s20 + $0x7] ss:$0 sm:$0xff] }
 0xbbd   : > { %v13089_v5 = vadd.f32 %v15181_v42, %v13060_v21  ;;  %v13093_v4 = vadd.f32 %v15182_v49, %v13060_v21  ;;  %v13101_v2 = vadd.f32 %v15183_v63, %v13060_v21  ;;  %v13105_v9 = vadd.f32 %v15184_v11, %v13060_v21  ;;  %15220 = vst [vmem:[#allocation5_spill] sm:$0xff] %v13258_v22 }
 0xbbe   : > { %6235 = vrot.lane.b32.xlu1 %v13069_v30, %s10262_s5  ;;  %6233 = vrot.lane.b32.xlu0 %v13065_v51, %s10262_s5  ;;  %v13113_v55 = vadd.f32 %v15185_v23, %v13060_v21  ;;  %v13117_v59 = vadd.f32 %v15186_v52, %v13060_v21  ;;  %v13125_v38 = vadd.f32 %v15187_v10, %v13060_v21 }
 0xbbf   : > { %v13129_v18 = vadd.f32 %v15188_v44, %v13060_v21  ;;  %v13137_v28 = vadd.f32 %v15189_v19, %v13060_v21  ;;  %v13141_v50 = vadd.f32 %v15190_v12, %v13060_v21  ;;  %v13149_v26 = vadd.f32 %v15191_v13, %v13060_v21 }
 0xbc0   : > { %v13153_v56 = vadd.f32 %v15193_v37, %v13060_v21  ;;  %v13161_v15 = vadd.f32 %v15195_v8, %v13060_v21  ;;  %v13165_v33 = vadd.f32 %v15196_v20, %v13060_v21  ;;  %v13173_v48 = vadd.f32 %v15197_v45, %v13060_v21 }
 0xbc1   : > { %15192 = vst [vmem:[#allocation95_spill] sm:$0xff] %v13149_v26  ;;  %v13177_v0 = vadd.f32 %v15199_v32, %v13060_v21  ;;  %v13185_v14 = vadd.f32 %v15200_v39, %v13060_v21  ;;  %v13189_v7 = vadd.f32 %v15201_v1, %v13060_v21  ;;  %v13197_v58 = vadd.f32 %v15203_v3, %v13060_v21 }
 0xbc2   : > { %6239 = vrot.lane.b32.xlu1 %v13077_v16, %s10262_s5  ;;  %6237 = vrot.lane.b32.xlu0 %v13081_v62, %s10262_s5  ;;  %15194 = vst [vmem:[#allocation91_spill] sm:$0xff] %v13153_v56  ;;  %15198 = vst [vmem:[#allocation103_spill] sm:$0xff] %v13173_v48  ;;  %v13201_v25 = vadd.f32 %v15205_v17, %v13060_v21  ;;  %v13209_v41 = vadd.f32 %v15207_v54, %v13060_v21 }
 0xbc3   : > { %15202 = vst [vmem:[#allocation99_spill] sm:$0xff] %v13189_v7  ;;  %15204 = vst [vmem:[#allocation110_spill] sm:$0xff] %v13197_v58  ;;  %v13213_v40 = vadd.f32 %v15208_v57, %v13060_v21  ;;  %v13221_v31 = vadd.f32 %v15210_v47, %v13060_v21  ;;  %v13225_v27 = vadd.f32 %v15212_v61, %v13060_v21 }
 0xbc4   : > { %15206 = vst [vmem:[#allocation106_spill] sm:$0xff] %v13201_v25  ;;  %v13233_v35 = vadd.f32 %v15214_v36, %v13060_v21  ;;  %v13237_v6 = vadd.f32 %v15215_v29, %v13060_v21  ;;  %v13245_v60 = vadd.f32 %v15216_v34, %v13060_v21  ;;  %v13249_v24 = vadd.f32 %v15218_v46, %v13060_v21 }
 0xbc5   : > { %15209 = vst [vmem:[#allocation116_spill] sm:$0xff] %v13213_v40  ;;  %15211 = vst [vmem:[#allocation113_spill] sm:$0xff] %v13221_v31 }
 0xbc6   : > { %6243 = vrot.lane.b32.xlu1 %v13089_v5, %s10262_s5  ;;  %6241 = vrot.lane.b32.xlu0 %v13093_v4, %s10262_s5  ;;  %15213 = vst [vmem:[#allocation129_spill] sm:$0xff] %v13225_v27  ;;  %15217 = vst [vmem:[#allocation119_spill] sm:$0xff] %v13245_v60 }
 0xbc7   : > { %15219 = vst [vmem:[#allocation4_spill] sm:$0xff] %v13249_v24 }
 0xbca   : > { %6247 = vrot.lane.b32.xlu1 %v13101_v2, %s10262_s5  ;;  %6245 = vrot.lane.b32.xlu0 %v13105_v9, %s10262_s5 }
 0xbce   : > { %6251 = vrot.lane.b32.xlu1 %v13113_v55, %s10262_s5  ;;  %6249 = vrot.lane.b32.xlu0 %v13117_v59, %s10262_s5 }
 0xbd2   : > { %6255 = vrot.lane.b32.xlu1 %v13125_v38, %s10262_s5  ;;  %6253 = vrot.lane.b32.xlu0 %v13129_v18, %s10262_s5 }
 0xbd6   : > { %6259 = vrot.lane.b32.xlu1 %v13137_v28, %s10262_s5  ;;  %6257 = vrot.lane.b32.xlu0 %v13141_v50, %s10262_s5 }
 0xbda   : > { %6263 = vrot.lane.b32.xlu1 %v13149_v26, %s10262_s5  ;;  %6261 = vrot.lane.b32.xlu0 %v13153_v56, %s10262_s5 }
 0xbde   : > { %6267 = vrot.lane.b32.xlu1 %v13161_v15, %s10262_s5  ;;  %6265 = vrot.lane.b32.xlu0 %v13165_v33, %s10262_s5 }
 0xbe2   : > { %6271 = vrot.lane.b32.xlu1 %v13173_v48, %s10262_s5  ;;  %6269 = vrot.lane.b32.xlu0 %v13177_v0, %s10262_s5 }
 0xbe6   : > { %6275 = vrot.lane.b32.xlu1 %v13185_v14, %s10262_s5  ;;  %6273 = vrot.lane.b32.xlu0 %v13189_v7, %s10262_s5 }
 0xbea   : > { %6279 = vrot.lane.b32.xlu1 %v13197_v58, %s10262_s5  ;;  %6277 = vrot.lane.b32.xlu0 %v13201_v25, %s10262_s5 }
 0xbee   : > { %6283 = vrot.lane.b32.xlu1 %v13209_v41, %s10262_s5  ;;  %6281 = vrot.lane.b32.xlu0 %v13213_v40, %s10262_s5 }
 0xbf2   : > { %6287 = vrot.lane.b32.xlu1 %v13221_v31, %s10262_s5  ;;  %6285 = vrot.lane.b32.xlu0 %v13225_v27, %s10262_s5 }
 0xbf6   : > { %6291 = vrot.lane.b32.xlu1 %v13233_v35, %s10262_s5  ;;  %6289 = vrot.lane.b32.xlu0 %v13237_v6, %s10262_s5 }
 0xbfa   : > { %6295 = vrot.lane.b32.xlu1 %v13245_v60, %s10262_s5  ;;  %6293 = vrot.lane.b32.xlu0 %v13249_v24, %s10262_s5 }
 0xbfe   : > { %6425 = vrot.lane.b32.xlu0 %v13258_v22, %s10262_s5 }
 0xc29   : > { %v9917_v42 = vpop.f32.mrf.mxu1 }
 0xc2a   : > { %v6051_v52 = vadd.f32 %v9917_v42, %v13258_v22 }
 0xc2b   : > { %v6042_v49 = vpop.f32.mrf.mxu1 }
 0xc2c   : > { %v6043_v63 = vadd.f32 %v13258_v22, %v6042_v49  ;;  %v6171_v45 = vmul.f32 %v6051_v52, %v13081_v62 }
 0xc2d   : > { %v9918_v21 = vpop.f32.mrf.mxu1 }
 0xc2e   : > { %v6169_v11 = vmul.f32 %v6043_v63, %v13065_v51  ;;  %v6054_v23 = vadd.f32 %v9918_v21, %v13258_v22 }
 0xc2f   : > { %v6045_v10 = vpop.f32.mrf.mxu1 }
 0xc30   : > { %v13266_v44 = vpop.permute.xlu1 %6235  ;;  %v6046_v19 = vadd.f32 %v13258_v22, %v6045_v10  ;;  %v13269_v12 = vpop.permute.xlu0 %6233  ;;  %v6172_v8 = vmul.f32 %v6054_v23, %v13077_v16 }
 0xc31   : > { %v6329_v13 = vadd.f32 %v13269_v12, %v6169_v11  ;;  %v9921_v37 = vpop.f32.mrf.mxu1 }
 0xc32   : > { %v6170_v20 = vmul.f32 %v6046_v19, %v13069_v30  ;;  %v6067_v42 = vadd.f32 %v9921_v37, %v13258_v22 }
 0xc33   : > { %v6058_v32 = vpop.f32.mrf.mxu1  ;;  %v6361_v57 = vmax.f32 %v6329_v13, 0.0 }
 0xc34   : > { %v13275_v39 = vpop.permute.xlu1 %6239  ;;  %v6330_v1 = vadd.f32 %v13266_v44, %v6170_v20  ;;  %v6059_v3 = vadd.f32 %v13258_v22, %v6058_v32  ;;  %v13280_v54 = vpop.permute.xlu0 %6237  ;;  %v6175_v37 = vmul.f32 %v6067_v42, %v13105_v9 }
 0xc35   : > { %v6332_v17 = vadd.f32 %v13275_v39, %v6172_v8  ;;  %v6331_v47 = vadd.f32 %v13280_v54, %v6171_v45  ;;  %v9922_v61 = vpop.f32.mrf.mxu1 }
 0xc36   : > { %v6362_v36 = vmax.f32 %v6330_v1, 0.0  ;;  %v6173_v29 = vmul.f32 %v6059_v3, %v13093_v4  ;;  %v6070_v46 = vadd.f32 %v9922_v61, %v13258_v22 }
 0xc37   : > { %v6364_v34 = vmax.f32 %v6332_v17, 0.0  ;;  %v6363_v49 = vmax.f32 %v6331_v47, 0.0  ;;  %v6061_v63 = vpop.f32.mrf.mxu1 }
 0xc38   : > { %v13286_v21 = vpop.permute.xlu1 %6243  ;;  %v6393_v11 = vpack.c.bf16 %v6362_v36, %v6361_v57  ;;  %v6062_v23 = vadd.f32 %v13258_v22, %v6061_v63  ;;  %v13289_v52 = vpop.permute.xlu0 %6241  ;;  %v6176_v8 = vmul.f32 %v6070_v46, %v13101_v2 }
 0xc39   : > { %v6394_v10 = vpack.c.bf16 %v6364_v34, %v6363_v49  ;;  %v6333_v19 = vadd.f32 %v13289_v52, %v6173_v29  ;;  %v9925_v13 = vpop.f32.mrf.mxu1 }
 0xc3a   : > { %v6174_v20 = vmul.f32 %v6062_v23, %v13089_v5  ;;  %9951 = vmatprep.mubr.msk.bf16.mxu0 %vm1397_vm5, %v6393_v11  ;;  %v6083_v49 = vadd.f32 %v9925_v13, %v13258_v22 }
 0xc3b   : > { %v6074_v45 = vpop.f32.mrf.mxu1  ;;  %9952 = vmatmul.mubr.msk.bf16.vlgmr.msra.gmra.mxu0 %vm1397_vm5, %v6394_v10  ;;  %v6365_v47 = vmax.f32 %v6333_v19, 0.0 }
 0xc3c   : > { %v13297_v32 = vpop.permute.xlu1 %6247  ;;  %v6334_v1 = vadd.f32 %v13286_v21, %v6174_v20  ;;  %v6075_v3 = vadd.f32 %v13258_v22, %v6074_v45  ;;  %v13302_v57 = vpop.permute.xlu0 %6245  ;;  %v6179_v13 = vmul.f32 %v6083_v49, %v13129_v18 }
 0xc3d   : > { %v6336_v17 = vadd.f32 %v13297_v32, %v6176_v8  ;;  %v6335_v61 = vadd.f32 %v13302_v57, %v6175_v37  ;;  %v9926_v36 = vpop.f32.mrf.mxu1 }
 0xc3e   : > { %v6366_v29 = vmax.f32 %v6334_v1, 0.0  ;;  %v6177_v34 = vmul.f32 %v6075_v3, %v13117_v59  ;;  %v6086_v42 = vadd.f32 %v9926_v36, %v13258_v22 }
 0xc3f   : > { %v6368_v46 = vmax.f32 %v6336_v17, 0.0  ;;  %v6367_v63 = vmax.f32 %v6335_v61, 0.0  ;;  %v6077_v11 = vpop.f32.mrf.mxu1 }
 0xc40   : > { %v13308_v23 = vpop.permute.xlu1 %6251  ;;  %v6395_v10 = vpack.c.bf16 %v6366_v29, %v6365_v47  ;;  %v6078_v8 = vadd.f32 %v13258_v22, %v6077_v11  ;;  %v13311_v20 = vpop.permute.xlu0 %6249  ;;  %v6180_v1 = vmul.f32 %v6086_v42, %v13125_v38 }
 0xc41   : > { %v6396_v19 = vpack.c.bf16 %v6368_v46, %v6367_v63  ;;  %v6337_v37 = vadd.f32 %v13311_v20, %v6177_v34  ;;  %v9929_v45 = vpop.f32.mrf.mxu1 }
 0xc42   : > { %v6178_v3 = vmul.f32 %v6078_v8, %v13113_v55  ;;  %9955 = vmatprep.mubr.msk.bf16.mxu0 %vm1397_vm5, %v6395_v10 }
 0xc43   : > { %v6090_v17 = vpop.f32.mrf.mxu1  ;;  %9956 = vmatmul.mubr.msk.bf16.gmra.mxu0 %vm1397_vm5, %v6396_v19  ;;  %v6369_v46 = vmax.f32 %v6337_v37, 0.0  ;;  %v6099_v19 = vadd.f32 %v9929_v45, %v13258_v22 }
 0xc44   : > { %v13319_v47 = vpop.permute.xlu1 %6255  ;;  %v6338_v61 = vadd.f32 %v13308_v23, %v6178_v3  ;;  %v6091_v36 = vadd.f32 %v13258_v22, %v6090_v17  ;;  %v13324_v34 = vpop.permute.xlu0 %6253 }
 0xc45   : > { %15221 = vst [vmem:[#allocation6_spill] sm:$0xff] %v13319_v47  ;;  %v6340_v29 = vadd.f32 %v13319_v47, %v6180_v1  ;;  %v6339_v42 = vadd.f32 %v13324_v34, %v6179_v13  ;;  %v9930_v63 = vpop.f32.mrf.mxu1  ;;  %v6183_v45 = vmul.f32 %v6099_v19, %v13153_v56 }
 0xc46   : > { %v6370_v11 = vmax.f32 %v6338_v61, 0.0  ;;  %v6181_v49 = vmul.f32 %v6091_v36, %v13141_v50  ;;  %v6102_v8 = vadd.f32 %v9930_v63, %v13258_v22 }
 0xc47   : > { %v6372_v10 = vmax.f32 %v6340_v29, 0.0  ;;  %v6371_v43 = vmax.f32 %v6339_v42, 0.0  ;;  %v6093_v3 = vpop.f32.mrf.mxu1 }
 0xc48   : > { %v13330_v53 = vpop.permute.xlu1 %6259  ;;  %v6397_v17 = vpack.c.bf16 %v6370_v11, %v6369_v46  ;;  %v6094_v1 = vadd.f32 %v13258_v22, %v6093_v3  ;;  %v13333_v47 = vpop.permute.xlu0 %6257  ;;  %v6184_v13 = vmul.f32 %v6102_v8, %v13149_v26 }
 0xc49   : > { %15222 = vst [vmem:[#allocation7_spill] sm:$0xff] %v13330_v53  ;;  %v6398_v37 = vpack.c.bf16 %v6372_v10, %v6371_v43  ;;  %v6341_v36 = vadd.f32 %v13333_v47, %v6181_v49 }
 0xc4a   : > { %v6182_v61 = vmul.f32 %v6094_v1, %v13137_v28  ;;  %9959 = vmatprep.mubr.msk.bf16.mxu0 %vm1397_vm5, %v6397_v17 }
 0xc4b   : > { %v9933_v29 = vpop.f32.mrf.mxu1  ;;  %9960 = vmatmul.mubr.msk.bf16.gmra.mxu0 %vm1397_vm5, %v6398_v37  ;;  %v6373_v3 = vmax.f32 %v6341_v36, 0.0 }
 0xc4c   : > { %v13341_v42 = vpop.permute.xlu1 %6263  ;;  %v6342_v46 = vadd.f32 %v13330_v53, %v6182_v61  ;;  %v13345_v43 = vpop.permute.xlu0 %6261  ;;  %v6115_v19 = vadd.f32 %v9933_v29, %v13258_v22 }
 0xc4d   : > { %15223 = vst [vmem:[#allocation8_spill] sm:$0xff] %v13341_v42  ;;  %v6344_v63 = vadd.f32 %v13341_v42, %v6184_v13  ;;  %v6106_v11 = vpop.f32.mrf.mxu1  ;;  %v6343_v10 = vadd.f32 %v13345_v43, %v6183_v45 }
 0xc4e   : > { %v6107_v49 = vadd.f32 %v13258_v22, %v6106_v11  ;;  %v6374_v8 = vmax.f32 %v6342_v46, 0.0  ;;  %v6187_v29 = vmul.f32 %v6115_v19, %v13177_v0 }
 0xc4f   : > { %v6376_v17 = vmax.f32 %v6344_v63, 0.0  ;;  %v9934_v1 = vpop.f32.mrf.mxu1  ;;  %v6375_v37 = vmax.f32 %v6343_v10, 0.0 }
 0xc50   : > { %v6185_v26 = vmul.f32 %v6107_v49, %v13165_v33  ;;  %v6118_v61 = vadd.f32 %v9934_v1, %v13258_v22  ;;  %v13352_v53 = vpop.permute.xlu1 %6267  ;;  %v6399_v13 = vpack.c.bf16 %v6374_v8, %v6373_v3  ;;  %v13354_v42 = vpop.permute.xlu0 %6265 }
 0xc51   : > { %v6109_v56 = vpop.f32.mrf.mxu1  ;;  %v6400_v45 = vpack.c.bf16 %v6376_v17, %v6375_v37 }
 0xc52   : > { %v6188_v11 = vmul.f32 %v6118_v61, %v13173_v48  ;;  %v6110_v36 = vadd.f32 %v13258_v22, %v6109_v56  ;;  %9963 = vmatprep.mubr.msk.bf16.mxu0 %vm1397_vm5, %v6399_v13  ;;  %v6345_v46 = vadd.f32 %v13354_v42, %v6185_v26 }
 0xc53   : > { %9964 = vmatmul.mubr.msk.bf16.gmra.mxu0 %vm1397_vm5, %v6400_v45 }
 0xc54   : > { %v6186_v63 = vmul.f32 %v6110_v36, %v13161_v15  ;;  %v13363_v10 = vpop.permute.xlu1 %6271  ;;  %v13366_v8 = vpop.permute.xlu0 %6269  ;;  %v6377_v1 = vmax.f32 %v6345_v46, 0.0 }
 0xc55   : > { %15224 = vst [vmem:[#allocation9_spill] sm:$0xff] %v13363_v10  ;;  %v6348_v49 = vadd.f32 %v13363_v10, %v6188_v11  ;;  %v6347_v56 = vadd.f32 %v13366_v8, %v6187_v29 }
 0xc56   : > { %v6346_v3 = vadd.f32 %v13352_v53, %v6186_v63 }
 0xc57   : > { %v6380_v17 = vmax.f32 %v6348_v49, 0.0  ;;  %v6379_v19 = vmax.f32 %v6347_v56, 0.0 }
 0xc58   : > { %v6378_v37 = vmax.f32 %v6346_v3, 0.0  ;;  %v13371_v45 = vpop.permute.xlu1 %6275  ;;  %v13375_v10 = vpop.permute.xlu0 %6273 }
 0xc59   : > { %v6402_v26 = vpack.c.bf16 %v6380_v17, %v6379_v19 }
 0xc5a   : > { %v6401_v61 = vpack.c.bf16 %v6378_v37, %v6377_v1 }
 0xc5b   : > { %v9937_v13 = vpop.f32.mrf.mxu1 }
 0xc5c   : > { %9967 = vmatprep.mubr.msk.bf16.mxu0 %vm1397_vm5, %v6401_v61  ;;  %v6131_v36 = vadd.f32 %v9937_v13, %v13258_v22  ;;  %v13383_v37 = vpop.permute.xlu1 %6279  ;;  %v13385_v19 = vpop.permute.xlu0 %6277 }
 0xc5d   : > { %v6122_v11 = vpop.f32.mrf.mxu1  ;;  %9968 = vmatmul.mubr.msk.bf16.gmra.mxu0 %vm1397_vm5, %v6402_v26  ;;  %15225 = vst [vmem:[#allocation10_spill] sm:$0xff] %v13383_v37 }
 0xc5e   : > { %v6123_v29 = vadd.f32 %v13258_v22, %v6122_v11  ;;  %v6191_v3 = vmul.f32 %v6131_v36, %v13201_v25 }
 0xc5f   : > { %v9938_v63 = vpop.f32.mrf.mxu1 }
 0xc60   : > { %v6189_v46 = vmul.f32 %v6123_v29, %v13189_v7  ;;  %v6134_v49 = vadd.f32 %v9938_v63, %v13258_v22  ;;  %v6351_v11 = vadd.f32 %v13385_v19, %v6191_v3  ;;  %v13393_v48 = vpop.permute.xlu1 %6283 }
 0xc61   : > { %v6125_v56 = vpop.f32.mrf.mxu1 }
 0xc62   : > { %v6192_v17 = vmul.f32 %v6134_v49, %v13197_v58  ;;  %v6126_v1 = vadd.f32 %v13258_v22, %v6125_v56  ;;  %v6349_v61 = vadd.f32 %v13375_v10, %v6189_v46  ;;  %v6383_v49 = vmax.f32 %v6351_v11, 0.0 }
 0xc64   : > { %v6352_v26 = vadd.f32 %v13383_v37, %v6192_v17  ;;  %v6190_v13 = vmul.f32 %v6126_v1, %v13185_v14  ;;  %v6381_v63 = vmax.f32 %v6349_v61, 0.0  ;;  %v13397_v1 = vpop.permute.xlu0 %6281 }
 0xc66   : > { %v6350_v29 = vadd.f32 %v13371_v45, %v6190_v13  ;;  %v6384_v36 = vmax.f32 %v6352_v26, 0.0 }
 0xc68   : > { %v6382_v25 = vmax.f32 %v6350_v29, 0.0  ;;  %v6404_v56 = vpack.c.bf16 %v6384_v36, %v6383_v49  ;;  %v13407_v36 = vpop.permute.xlu0 %6285 }
 0xc6a   : > { %v6403_v58 = vpack.c.bf16 %v6382_v25, %v6381_v63 }
 0xc6b   : > { %v9941_v7 = vpop.f32.mrf.mxu1 }
 0xc6c   : > { %9971 = vmatprep.mubr.msk.bf16.mxu0 %vm1397_vm5, %v6403_v58  ;;  %v6147_v46 = vadd.f32 %v9941_v7, %v13258_v22  ;;  %v13405_v7 = vpop.permute.xlu1 %6287 }
 0xc6d   : > { %v6138_v17 = vpop.f32.mrf.mxu1  ;;  %9972 = vmatmul.mubr.msk.bf16.gmra.mxu0 %vm1397_vm5, %v6404_v56 }
 0xc6e   : > { %v6139_v3 = vadd.f32 %v13258_v22, %v6138_v17  ;;  %v6195_v13 = vmul.f32 %v6147_v46, %v13225_v27 }
 0xc6f   : > { %v9942_v26 = vpop.f32.mrf.mxu1 }
 0xc70   : > { %v6193_v61 = vmul.f32 %v6139_v3, %v13213_v40  ;;  %v6150_v25 = vadd.f32 %v9942_v26, %v13258_v22  ;;  %v6355_v17 = vadd.f32 %v13407_v36, %v6195_v13  ;;  %v13415_v37 = vpop.permute.xlu1 %6291 }
 0xc71   : > { %v6141_v11 = vpop.f32.mrf.mxu1 }
 0xc72   : > { %v6196_v58 = vmul.f32 %v6150_v25, %v13221_v31  ;;  %v6142_v29 = vadd.f32 %v13258_v22, %v6141_v11  ;;  %v6353_v63 = vadd.f32 %v13397_v1, %v6193_v61  ;;  %v6387_v25 = vmax.f32 %v6355_v17, 0.0 }
 0xc74   : > { %v6356_v49 = vadd.f32 %v13405_v7, %v6196_v58  ;;  %v6194_v56 = vmul.f32 %v6142_v29, %v13209_v41  ;;  %v6385_v26 = vmax.f32 %v6353_v63, 0.0  ;;  %v13419_v29 = vpop.permute.xlu0 %6289 }
 0xc76   : > { %v6354_v3 = vadd.f32 %v13393_v48, %v6194_v56  ;;  %v6388_v46 = vmax.f32 %v6356_v49, 0.0 }
 0xc78   : > { %v6386_v27 = vmax.f32 %v6354_v3, 0.0  ;;  %v6406_v11 = vpack.c.bf16 %v6388_v46, %v6387_v25  ;;  %v13429_v46 = vpop.permute.xlu0 %6293 }
 0xc7a   : > { %v6405_v31 = vpack.c.bf16 %v6386_v27, %v6385_v26 }
 0xc7b   : > { %v9945_v40 = vpop.f32.mrf.mxu1 }
 0xc7c   : > { %9975 = vmatprep.mubr.msk.bf16.mxu0 %vm1397_vm5, %v6405_v31  ;;  %v6163_v61 = vadd.f32 %v9945_v40, %v13258_v22  ;;  %v13427_v40 = vpop.permute.xlu1 %6295 }
 0xc7d   : > { %v6154_v58 = vpop.f32.mrf.mxu1  ;;  %9976 = vmatmul.mubr.msk.bf16.gmra.mxu0 %vm1397_vm5, %v6406_v11  ;;  %15226 = vst [vmem:[#allocation11_spill] sm:$0xff] %v13427_v40 }
 0xc7e   : > { %v6155_v13 = vadd.f32 %v13258_v22, %v6154_v58  ;;  %v6199_v56 = vmul.f32 %v6163_v61, %v13249_v24 }
 0xc7f   : > { %v9946_v49 = vpop.f32.mrf.mxu1 }
 0xc80   : > { %v6197_v63 = vmul.f32 %v6155_v13, %v13237_v6  ;;  %v6166_v27 = vadd.f32 %v9946_v49, %v13258_v22  ;;  %v6359_v58 = vadd.f32 %v13429_v46, %v6199_v56 }
 0xc81   : > { %v6157_v17 = vpop.f32.mrf.mxu1 }
 0xc82   : > { %v6200_v31 = vmul.f32 %v6166_v27, %v13245_v60  ;;  %v6158_v3 = vadd.f32 %v13258_v22, %v6157_v17  ;;  %v6357_v26 = vadd.f32 %v13419_v29, %v6197_v63  ;;  %v6391_v27 = vmax.f32 %v6359_v58, 0.0  ;;  %v13438_v63 = vpop.permute.xlu0 %6425 }
 0xc84   : > { %v6360_v25 = vadd.f32 %v13427_v40, %v6200_v31  ;;  %v6198_v11 = vmul.f32 %v6158_v3, %v13233_v35  ;;  %v6389_v49 = vmax.f32 %v6357_v26, 0.0 }
 0xc86   : > { %v6358_v13 = vadd.f32 %v13415_v37, %v6198_v11  ;;  %v6392_v61 = vmax.f32 %v6360_v25, 0.0 }
 0xc88   : > { %v6390_v24 = vmax.f32 %v6358_v13, 0.0  ;;  %v6408_v17 = vpack.c.bf16 %v6392_v61, %v6391_v27 }
 0xc8a   : > { %v6407_v60 = vpack.c.bf16 %v6390_v24, %v6389_v49 }
 0xc8c   : > { %9979 = vmatprep.mubr.msk.bf16.mxu0 %vm1397_vm5, %v6407_v60 }
 0xc8d   : > { %9980 = vmatmul.mubr.msk.bf16.gmra.mxu0 %vm1397_vm5, %v6408_v17 }
 0xcfb   : > { %v9953_v22 = vpop.f32.mrf.mxu0 }
 0xcfc   : > { %v6519_v26 = vadd.f32 %v9953_v22, %v13438_v63 }
 0xcfd   : > { %v6510_v31 = vpop.f32.mrf.mxu0 }
 0xcfe   : > { %v6511_v3 = vadd.f32 %v6510_v31, %v13438_v63 }
 0xcff   : > { %v9954_v40 = vpop.f32.mrf.mxu0 }
 0xd00   : > { %6669 = vrot.lane.b32.xlu1 %v6511_v3, %s10263_s26  ;;  %v6522_v11 = vadd.f32 %v9954_v40, %v13438_v63 }
 0xd01   : > { %v6513_v56 = vpop.f32.mrf.mxu0 }
 0xd02   : > { %v6514_v25 = vadd.f32 %v6513_v56, %v13438_v63 }
 0xd03   : > { %v9957_v24 = vpop.f32.mrf.mxu0 }
 0xd04   : > { %6671 = vrot.lane.b32.xlu0 %v6514_v25, %s10263_s26  ;;  %6673 = vrot.lane.b32.xlu1 %v6519_v26, %s10263_s26  ;;  %v6535_v22 = vadd.f32 %v9957_v24, %v13438_v63 }
 0xd05   : > { %v6526_v60 = vpop.f32.mrf.mxu0 }
 0xd06   : > { %v6527_v58 = vadd.f32 %v6526_v60, %v13438_v63 }
 0xd07   : > { %v9958_v13 = vpop.f32.mrf.mxu0 }
 0xd08   : > { %6675 = vrot.lane.b32.xlu0 %v6522_v11, %s10263_s26  ;;  %6677 = vrot.lane.b32.xlu1 %v6527_v58, %s10263_s26  ;;  %v6538_v40 = vadd.f32 %v9958_v13, %v13438_v63 }
 0xd09   : > { %v6529_v61 = vpop.f32.mrf.mxu0 }
 0xd0a   : > { %v6530_v49 = vadd.f32 %v6529_v61, %v13438_v63 }
 0xd0b   : > { %v9961_v27 = vpop.f32.mrf.mxu0 }
 0xd0c   : > { %6679 = vrot.lane.b32.xlu0 %v6530_v49, %s10263_s26  ;;  %6681 = vrot.lane.b32.xlu1 %v6535_v22, %s10263_s26  ;;  %v6551_v26 = vadd.f32 %v9961_v27, %v13438_v63 }
 0xd0d   : > { %v6542_v17 = vpop.f32.mrf.mxu0 }
 0xd0e   : > { %v6543_v31 = vadd.f32 %v6542_v17, %v13438_v63 }
 0xd0f   : > { %v9962_v3 = vpop.f32.mrf.mxu0 }
 0xd10   : > { %6683 = vrot.lane.b32.xlu0 %v6538_v40, %s10263_s26  ;;  %6685 = vrot.lane.b32.xlu1 %v6543_v31, %s10263_s26  ;;  %v6554_v11 = vadd.f32 %v9962_v3, %v13438_v63 }
 0xd11   : > { %v6545_v56 = vpop.f32.mrf.mxu0 }
 0xd12   : > { %v6546_v25 = vadd.f32 %v6545_v56, %v13438_v63 }
 0xd13   : > { %v9965_v24 = vpop.f32.mrf.mxu0 }
 0xd14   : > { %6687 = vrot.lane.b32.xlu0 %v6546_v25, %s10263_s26  ;;  %6689 = vrot.lane.b32.xlu1 %v6551_v26, %s10263_s26  ;;  %v6567_v22 = vadd.f32 %v9965_v24, %v13438_v63 }
 0xd15   : > { %v6558_v60 = vpop.f32.mrf.mxu0 }
 0xd16   : > { %v6559_v58 = vadd.f32 %v6558_v60, %v13438_v63 }
 0xd17   : > { %v9966_v13 = vpop.f32.mrf.mxu0 }
 0xd18   : > { %6691 = vrot.lane.b32.xlu0 %v6554_v11, %s10263_s26  ;;  %6693 = vrot.lane.b32.xlu1 %v6559_v58, %s10263_s26  ;;  %v6570_v17 = vadd.f32 %v9966_v13, %v13438_v63 }
 0xd19   : > { %v6561_v61 = vpop.f32.mrf.mxu0 }
 0xd1a   : > { %v6562_v49 = vadd.f32 %v6561_v61, %v13438_v63 }
 0xd1c   : > { %6695 = vrot.lane.b32.xlu0 %v6562_v49, %s10263_s26  ;;  %6697 = vrot.lane.b32.xlu1 %v6567_v22, %s10263_s26 }
 0xd1d   : > { %v9969_v27 = vpop.f32.mrf.mxu0 }
 0xd1e   : > { %v6583_v26 = vadd.f32 %v9969_v27, %v13438_v63 }
 0xd1f   : > { %v6574_v40 = vpop.f32.mrf.mxu0 }
 0xd20   : > { %v6575_v31 = vadd.f32 %v6574_v40, %v13438_v63  ;;  %6699 = vrot.lane.b32.xlu0 %v6570_v17, %s10263_s26 }
 0xd21   : > { %v9970_v3 = vpop.f32.mrf.mxu0 }
 0xd22   : > { %6701 = vrot.lane.b32.xlu1 %v6575_v31, %s10263_s26  ;;  %v6586_v24 = vadd.f32 %v9970_v3, %v13438_v63 }
 0xd23   : > { %v6577_v56 = vpop.f32.mrf.mxu0 }
 0xd24   : > { %v6578_v25 = vadd.f32 %v6577_v56, %v13438_v63 }
 0xd26   : > { %6703 = vrot.lane.b32.xlu0 %v6578_v25, %s10263_s26  ;;  %6705 = vrot.lane.b32.xlu1 %v6583_v26, %s10263_s26 }
 0xd2a   : > { %6707 = vrot.lane.b32.xlu0 %v6586_v24, %s10263_s26 }
 0xd2d   : > { %v9973_v60 = vpop.f32.mrf.mxu0 }
 0xd2e   : > { %v6599_v22 = vadd.f32 %v9973_v60, %v13438_v63 }
 0xd2f   : > { %v6590_v11 = vpop.f32.mrf.mxu0 }
 0xd30   : > { %v6591_v58 = vadd.f32 %v6590_v11, %v13438_v63 }
 0xd31   : > { %v9974_v13 = vpop.f32.mrf.mxu0 }
 0xd32   : > { %6709 = vrot.lane.b32.xlu1 %v6591_v58, %s10263_s26  ;;  %v6602_v27 = vadd.f32 %v9974_v13, %v13438_v63 }
 0xd33   : > { %v6593_v61 = vpop.f32.mrf.mxu0 }
 0xd34   : > { %v6594_v49 = vadd.f32 %v6593_v61, %v13438_v63 }
 0xd36   : > { %6711 = vrot.lane.b32.xlu0 %v6594_v49, %s10263_s26  ;;  %6713 = vrot.lane.b32.xlu1 %v6599_v22, %s10263_s26  ;;  %v10177_v22 = vld [vmem:[%s14684_s16 + $0x8] sm:$0xff]  }
 0xd37   : > { %9983 = vmatprep.subr.bf16.mxu1 %v10177_v22 }
 0xd38   : > { %9984 = vmatpush3.bf16.msra.mxu1 %v10177_v22 }
 0xd3a   : > { %6715 = vrot.lane.b32.xlu0 %v6602_v27, %s10263_s26 }
 0xd3d   : > { %v9977_v17 = vpop.f32.mrf.mxu0 }
 0xd3e   : > { %v6615_v26 = vadd.f32 %v9977_v17, %v13438_v63 }
 0xd3f   : > { %v6606_v40 = vpop.f32.mrf.mxu0 }
 0xd40   : > { %v6607_v31 = vadd.f32 %v6606_v40, %v13438_v63  ;;  %v10178_v40 = vld [vmem:[%s14684_s16] sm:$0xff]  }
 0xd41   : > { %v9978_v3 = vpop.f32.mrf.mxu0  ;;  %9985 = vmatprep.subr.bf16.mxu1 %v10178_v40 }
 0xd42   : > { %6717 = vrot.lane.b32.xlu1 %v6607_v31, %s10263_s26  ;;  %v6618_v24 = vadd.f32 %v9978_v3, %v13438_v63  ;;  %9986 = vmatpush3.bf16.msra.mxu1 %v10178_v40 }
 0xd43   : > { %v6609_v56 = vpop.f32.mrf.mxu0 }
 0xd44   : > { %v6610_v25 = vadd.f32 %v6609_v56, %v13438_v63 }
 0xd46   : > { %6719 = vrot.lane.b32.xlu0 %v6610_v25, %s10263_s26  ;;  %6721 = vrot.lane.b32.xlu1 %v6615_v26, %s10263_s26 }
 0xd4a   : > { %6723 = vrot.lane.b32.xlu0 %v6618_v24, %s10263_s26 }
 0xd4d   : > { %v9981_v60 = vpop.f32.mrf.mxu0 }
 0xd4e   : > { %v6631_v49 = vadd.f32 %v9981_v60, %v13438_v63 }
 0xd4f   : > { %v6622_v11 = vpop.f32.mrf.mxu0 }
 0xd50   : > { %v6623_v58 = vadd.f32 %v6622_v11, %v13438_v63 }
 0xd51   : > { %v9982_v13 = vpop.f32.mrf.mxu0 }
 0xd52   : > { %6725 = vrot.lane.b32.xlu1 %v6623_v58, %s10263_s26  ;;  %v6634_v17 = vadd.f32 %v9982_v13, %v13438_v63 }
 0xd53   : > { %v6625_v61 = vpop.f32.mrf.mxu0 }
 0xd54   : > { %v6626_v27 = vadd.f32 %v6625_v61, %v13438_v63 }
 0xd56   : > { %6727 = vrot.lane.b32.xlu0 %v6626_v27, %s10263_s26  ;;  %6729 = vrot.lane.b32.xlu1 %v6631_v49, %s10263_s26 }
 0xd5a   : > { %6731 = vrot.lane.b32.xlu0 %v6634_v17, %s10263_s26 }
 0xd72   : > { %v6670_v31 = vpop.permute.xlu1 %6669 }
 0xd73   : > { %v6765_v3 = vmul.f32 %v6670_v31, %v13065_v51 }
 0xd75   : > { %v6797_v25 = vadd.f32 %v6765_v3, %v13269_v12 }
 0xd76   : > { %v6672_v56 = vpop.permute.xlu0 %6671  ;;  %v6674_v26 = vpop.permute.xlu1 %6673 }
 0xd77   : > { %v6766_v24 = vmul.f32 %v6672_v56, %v13069_v30  ;;  %v6767_v60 = vmul.f32 %v6674_v26, %v13081_v62  ;;  %v6829_v61 = vmax.f32 %v6797_v25, 0.0 }
 0xd79   : > { %v6798_v63 = vadd.f32 %v6766_v24, %v13266_v44  ;;  %v6799_v11 = vadd.f32 %v6767_v60, %v13280_v54 }
 0xd7a   : > { %v6676_v58 = vpop.permute.xlu0 %6675  ;;  %v6678_v13 = vpop.permute.xlu1 %6677 }
 0xd7b   : > { %v6830_v22 = vmax.f32 %v6798_v63, 0.0  ;;  %v6768_v49 = vmul.f32 %v6676_v58, %v13077_v16  ;;  %v6769_v51 = vmul.f32 %v6678_v13, %v13093_v4  ;;  %v6831_v12 = vmax.f32 %v6799_v11, 0.0 }
 0xd7d   : > { %v6861_v27 = vpack.c.bf16 %v6830_v22, %v6829_v61  ;;  %v6800_v17 = vadd.f32 %v6768_v49, %v13275_v39  ;;  %v6801_v62 = vadd.f32 %v6769_v51, %v13289_v52 }
 0xd7e   : > { %v6680_v40 = vpop.permute.xlu0 %6679  ;;  %v6682_v30 = vpop.permute.xlu1 %6681 }
 0xd7f   : > { %v6832_v31 = vmax.f32 %v6800_v17, 0.0  ;;  %v6770_v44 = vmul.f32 %v6680_v40, %v13089_v5  ;;  %v6771_v54 = vmul.f32 %v6682_v30, %v13105_v9  ;;  %6897 = vrot.lane.b32.xlu1 %v6861_v27, %s10263_s26  ;;  %v6833_v39 = vmax.f32 %v6801_v62, 0.0  ;;  %v15228_v62 = vld [vmem:[#allocation91_spill] sm:$0xff] }
 0xd81   : > { %v6862_v3 = vpack.c.bf16 %v6832_v31, %v6831_v12  ;;  %v6802_v16 = vadd.f32 %v6770_v44, %v13286_v21  ;;  %v6803_v4 = vadd.f32 %v6771_v54, %v13302_v57  ;;  %v15229_v54 = vld [vmem:[#allocation7_spill] sm:$0xff] }
 0xd82   : > { %v6684_v56 = vpop.permute.xlu0 %6683  ;;  %v6686_v26 = vpop.permute.xlu1 %6685 }
 0xd83   : > { %v6834_v25 = vmax.f32 %v6802_v16, 0.0  ;;  %v6772_v24 = vmul.f32 %v6684_v56, %v13101_v2  ;;  %v6773_v60 = vmul.f32 %v6686_v26, %v13117_v59  ;;  %6899 = vrot.lane.b32.xlu0 %v6862_v3, %s10263_s26  ;;  %v6835_v52 = vmax.f32 %v6803_v4, 0.0  ;;  %v15230_v26 = vld [vmem:[#allocation95_spill] sm:$0xff] }
 0xd85   : > { %v6863_v5 = vpack.c.bf16 %v6834_v25, %v6833_v39  ;;  %v6804_v9 = vadd.f32 %v6772_v24, %v13297_v32  ;;  %v6805_v21 = vadd.f32 %v6773_v60, %v13311_v20  ;;  %v15227_v20 = vld [vmem:[#allocation6_spill] sm:$0xff]  ;;  %v15231_v24 = vld [vmem:[#allocation8_spill] sm:$0xff] }
 0xd86   : > { %v6688_v63 = vpop.permute.xlu0 %6687  ;;  %v6690_v11 = vpop.permute.xlu1 %6689 }
 0xd87   : > { %v6836_v58 = vmax.f32 %v6804_v9, 0.0  ;;  %v6774_v57 = vmul.f32 %v6688_v63, %v13113_v55  ;;  %v6775_v13 = vmul.f32 %v6690_v11, %v13129_v18  ;;  %6901 = vrot.lane.b32.xlu1 %v6863_v5, %s10263_s26  ;;  %v6837_v32 = vmax.f32 %v6805_v21, 0.0 }
 0xd89   : > { %v6864_v2 = vpack.c.bf16 %v6836_v58, %v6835_v52  ;;  %v6806_v59 = vadd.f32 %v6774_v57, %v13308_v23  ;;  %v6807_v61 = vadd.f32 %v6775_v13, %v13324_v34 }
 0xd8a   : > { %v6692_v22 = vpop.permute.xlu0 %6691  ;;  %v6694_v49 = vpop.permute.xlu1 %6693 }
 0xd8b   : > { %v6838_v51 = vmax.f32 %v6806_v59, 0.0  ;;  %v6776_v27 = vmul.f32 %v6692_v22, %v13125_v38  ;;  %v6777_v17 = vmul.f32 %v6694_v49, %v13141_v50  ;;  %6903 = vrot.lane.b32.xlu0 %v6864_v2, %s10263_s26  ;;  %v6839_v12 = vmax.f32 %v6807_v61, 0.0  ;;  %v15232_v61 = vld [vmem:[#allocation103_spill] sm:$0xff] }
 0xd8d   : > { %v6865_v55 = vpack.c.bf16 %v6838_v51, %v6837_v32  ;;  %v6808_v18 = vadd.f32 %v6776_v27, %v15227_v20  ;;  %v6809_v23 = vadd.f32 %v6777_v17, %v13333_v47  ;;  %v15233_v32 = vld [vmem:[#allocation9_spill] sm:$0xff]  ;;  %v15234_v17 = vld [vmem:[#allocation99_spill] sm:$0xff] }
 0xd8e   : > { %v6696_v40 = vpop.permute.xlu0 %6695  ;;  %v6698_v30 = vpop.permute.xlu1 %6697 }
 0xd8f   : > { %v6840_v31 = vmax.f32 %v6808_v18, 0.0  ;;  %v6778_v34 = vmul.f32 %v6696_v40, %v13137_v28  ;;  %v6779_v44 = vmul.f32 %v6698_v30, %v15228_v62  ;;  %6905 = vrot.lane.b32.xlu1 %v6865_v55, %s10263_s26  ;;  %v6841_v16 = vmax.f32 %v6809_v23, 0.0 }
 0xd91   : > { %v6866_v38 = vpack.c.bf16 %v6840_v31, %v6839_v12  ;;  %v6810_v50 = vadd.f32 %v6778_v34, %v15229_v54  ;;  %v6811_v56 = vadd.f32 %v6779_v44, %v13345_v43  ;;  %v15235_v12 = vld [vmem:[#allocation106_spill] sm:$0xff] }
 0xd92   : > { %v6700_v3 = vpop.permute.xlu0 %6699  ;;  %v15236_v44 = vld [vmem:[#allocation110_spill] sm:$0xff] }
 0xd93   : > { %v6842_v4 = vmax.f32 %v6810_v50, 0.0  ;;  %v6780_v39 = vmul.f32 %v6700_v3, %v15230_v26  ;;  %6907 = vrot.lane.b32.xlu0 %v6866_v38, %s10263_s26  ;;  %v6843_v5 = vmax.f32 %v6811_v56, 0.0  ;;  %v15237_v50 = vld [vmem:[#allocation10_spill] sm:$0xff]  ;;  %v15238_v56 = vld [vmem:[#allocation116_spill] sm:$0xff] }
 0xd94   : > { %v6702_v25 = vpop.permute.xlu1 %6701 }
 0xd95   : > { %v6781_v47 = vmul.f32 %v6702_v25, %v13165_v33  ;;  %v6867_v28 = vpack.c.bf16 %v6842_v4, %v6841_v16  ;;  %v6812_v60 = vadd.f32 %v6780_v39, %v15231_v24 }
 0xd97   : > { %v6844_v9 = vmax.f32 %v6812_v60, 0.0  ;;  %6909 = vrot.lane.b32.xlu1 %v6867_v28, %s10263_s26  ;;  %v6813_v11 = vadd.f32 %v6781_v47, %v13354_v42  ;;  %v15239_v47 = vld [vmem:[#allocation129_spill] sm:$0xff] }
 0xd98   : > { %v6704_v52 = vpop.permute.xlu0 %6703  ;;  %v6706_v63 = vpop.permute.xlu1 %6705 }
 0xd99   : > { %v6782_v43 = vmul.f32 %v6704_v52, %v13161_v15  ;;  %v6783_v58 = vmul.f32 %v6706_v63, %v13177_v0  ;;  %v6868_v21 = vpack.c.bf16 %v6844_v9, %v6843_v5  ;;  %v6845_v13 = vmax.f32 %v6813_v11, 0.0  ;;  %v15240_v63 = vld [vmem:[#allocation113_spill] sm:$0xff] }
 0xd9b   : > { %v6814_v57 = vadd.f32 %v6782_v43, %v13352_v53  ;;  %6911 = vrot.lane.b32.xlu0 %v6868_v21, %s10263_s26  ;;  %v6815_v59 = vadd.f32 %v6783_v58, %v13366_v8 }
 0xd9c   : > { %v6708_v33 = vpop.permute.xlu0 %6707 }
 0xd9d   : > { %v6846_v2 = vmax.f32 %v6814_v57, 0.0  ;;  %v6784_v22 = vmul.f32 %v6708_v33, %v15232_v61  ;;  %v6847_v42 = vmax.f32 %v6815_v59, 0.0  ;;  %v15241_v59 = vld [vmem:[#allocation4_spill] sm:$0xff] }
 0xd9f   : > { %v6869_v49 = vpack.c.bf16 %v6846_v2, %v6845_v13  ;;  %v6816_v51 = vadd.f32 %v6784_v22, %v15233_v32 }
 0xda1   : > { %v6848_v27 = vmax.f32 %v6816_v51, 0.0  ;;  %6913 = vrot.lane.b32.xlu1 %v6869_v49, %s10263_s26 }
 0xda3   : > { %v6870_v15 = vpack.c.bf16 %v6848_v27, %v6847_v42  ;;  %v15242_v42 = vld [vmem:[#allocation119_spill] sm:$0xff] }
 0xda4   : > { %v6710_v0 = vpop.permute.xlu1 %6709 }
 0xda5   : > { %v6785_v53 = vmul.f32 %v6710_v0, %v15234_v17  ;;  %6915 = vrot.lane.b32.xlu0 %v6870_v15, %s10263_s26  ;;  %v15243_v15 = vld [vmem:[#allocation11_spill] sm:$0xff] }
 0xda7   : > { %v6817_v18 = vadd.f32 %v6785_v53, %v13375_v10 }
 0xda8   : > { %v6712_v55 = vpop.permute.xlu0 %6711  ;;  %v6714_v20 = vpop.permute.xlu1 %6713 }
 0xda9   : > { %v6786_v8 = vmul.f32 %v6712_v55, %v13185_v14  ;;  %v6787_v40 = vmul.f32 %v6714_v20, %v15235_v12  ;;  %v6849_v23 = vmax.f32 %v6817_v18, 0.0 }
 0xdab   : > { %v6818_v30 = vadd.f32 %v6786_v8, %v13371_v45  ;;  %v6819_v62 = vadd.f32 %v6787_v40, %v13385_v19 }
 0xdac   : > { %v6716_v31 = vpop.permute.xlu0 %6715 }
 0xdad   : > { %v6850_v34 = vmax.f32 %v6818_v30, 0.0  ;;  %v6788_v38 = vmul.f32 %v6716_v31, %v15236_v44  ;;  %v6851_v16 = vmax.f32 %v6819_v62, 0.0 }
 0xdaf   : > { %v6871_v54 = vpack.c.bf16 %v6850_v34, %v6849_v23  ;;  %v6820_v3 = vadd.f32 %v6788_v38, %v15237_v50 }
 0xdb1   : > { %v6852_v4 = vmax.f32 %v6820_v3, 0.0  ;;  %6917 = vrot.lane.b32.xlu1 %v6871_v54, %s10263_s26 }
 0xdb3   : > { %v6872_v10 = vpack.c.bf16 %v6852_v4, %v6851_v16 }
 0xdb4   : > { %v6718_v14 = vpop.permute.xlu1 %6717 }
 0xdb5   : > { %v6789_v26 = vmul.f32 %v6718_v14, %v15238_v56  ;;  %6919 = vrot.lane.b32.xlu0 %v6872_v10, %s10263_s26  ;;  %v15246_v14 = vld [vmem:[#allocation85_spill] sm:$0xff] }
 0xdb7   : > { %v6821_v25 = vadd.f32 %v6789_v26, %v13397_v1  ;;  %v15247_v26 = vld [vmem:[#allocation131_spill] sm:$0xff] }
 0xdb8   : > { %v6720_v45 = vpop.permute.xlu0 %6719  ;;  %v6722_v39 = vpop.permute.xlu1 %6721 }
 0xdb9   : > { %v6790_v19 = vmul.f32 %v6720_v45, %v13209_v41  ;;  %v6791_v28 = vmul.f32 %v6722_v39, %v15239_v47  ;;  %v6853_v5 = vmax.f32 %v6821_v25, 0.0  ;;  %v15249_v39 = vld [vmem:[#allocation134_spill] sm:$0xff] }
 0xdbb   : > { %v6822_v24 = vadd.f32 %v6790_v19, %v13393_v48  ;;  %v6823_v52 = vadd.f32 %v6791_v28, %v13407_v36  ;;  %v15250_v19 = vld [vmem:[#allocation132_spill] sm:$0xff]  ;;  %v15252_v28 = vld [vmem:[#allocation130_spill] sm:$0xff] }
 0xdbc   : > { %v6724_v60 = vpop.permute.xlu0 %6723 }
 0xdbd   : > { %v6854_v9 = vmax.f32 %v6822_v24, 0.0  ;;  %v6792_v11 = vmul.f32 %v6724_v60, %v15240_v63  ;;  %v6855_v21 = vmax.f32 %v6823_v52, 0.0  ;;  %v15254_v60 = vld [vmem:[#allocation138_spill] sm:$0xff]  ;;  %v15256_v63 = vld [vmem:[#allocation137_spill] sm:$0xff] }
 0xdbf   : > { %v6873_v43 = vpack.c.bf16 %v6854_v9, %v6853_v5  ;;  %v6824_v58 = vadd.f32 %v6792_v11, %v13405_v7  ;;  %v15255_v9 = vld [vmem:[#allocation136_spill] sm:$0xff] }
 0xdc1   : > { %v6856_v57 = vmax.f32 %v6824_v58, 0.0  ;;  %6921 = vrot.lane.b32.xlu1 %v6873_v43, %s10263_s26  ;;  %v15257_v43 = vld [vmem:[#allocation135_spill] sm:$0xff] }
 0xdc3   : > { %v6874_v1 = vpack.c.bf16 %v6856_v57, %v6855_v21  ;;  %v15258_v21 = vld [vmem:[#allocation142_spill] sm:$0xff] }
 0xdc4   : > { %v6726_v41 = vpop.permute.xlu1 %6725 }
 0xdc5   : > { %v6793_v33 = vmul.f32 %v6726_v41, %v13237_v6  ;;  %6923 = vrot.lane.b32.xlu0 %v6874_v1, %s10263_s26  ;;  %v15259_v1 = vld [vmem:[#allocation140_spill] sm:$0xff] }
 0xdc7   : > { %v6825_v2 = vadd.f32 %v6793_v33, %v13419_v29  ;;  %v15244_v29 = vld [vmem:[#allocation2_spill] sm:$0xff]  ;;  %v15260_v33 = vld [vmem:[#allocation141_spill] sm:$0xff] }
 0xdc8   : > { %v6728_v48 = vpop.permute.xlu0 %6727  ;;  %v6730_v13 = vpop.permute.xlu1 %6729 }
 0xdc9   : > { %v6794_v36 = vmul.f32 %v6728_v48, %v13233_v35  ;;  %v6795_v61 = vmul.f32 %v6730_v13, %v15241_v59  ;;  %v6857_v49 = vmax.f32 %v6825_v2, 0.0  ;;  %v2095_v35 = vsub.s32 5, %v15244_v29  ;;  %v15261_v13 = vld [vmem:[#allocation139_spill] sm:$0xff] }
 0xdcb   : > { %v6826_v7 = vadd.f32 %v6794_v36, %v13415_v37  ;;  %v6827_v51 = vadd.f32 %v6795_v61, %v13429_v46  ;;  %v10251_v37 = vld [vmem:[%s14688_s20] sm:$0x3f]  ;;  %v15245_v46 = vld [vmem:[#allocation5_spill] sm:$0xff]  ;;  %v15263_v61 = vld [vmem:[#allocation144_spill] sm:$0xff] }
 0xdcc   : > { %v6732_v22 = vpop.permute.xlu0 %6731  ;;  %v2096_v20 = vrot.slane %v10251_v37, %v2095_v35  ;;  %v15262_v36 = vld [vmem:[#allocation146_spill] sm:$0xff]  ;;  %v15271_v37 = vld [vmem:[#allocation152_spill] sm:$0xff] }
 0xdcd   : > { %v6858_v32 = vmax.f32 %v6826_v7, 0.0  ;;  %v6796_v27 = vmul.f32 %v6732_v22, %v15242_v42  ;;  %v6859_v17 = vmax.f32 %v6827_v51, 0.0  ;;  %v15264_v22 = vld [vmem:[#allocation145_spill] sm:$0xff]  ;;  %v15266_v42 = vld [vmem:[#allocation150_spill] sm:$0xff] }
 0xdce   : > { %v15270_v35 = vld [vmem:[#allocation154_spill] sm:$0xff] }
 0xdcf   : > { %v6875_v6 = vpack.c.bf16 %v6858_v32, %v6857_v49  ;;  %v6828_v0 = vadd.f32 %v6796_v27, %v15243_v15  ;;  %v15265_v32 = vld [vmem:[#allocation143_spill] sm:$0xff] }
 0xdd1   : > { %v6860_v53 = vmax.f32 %v6828_v0, 0.0  ;;  %6925 = vrot.lane.b32.xlu1 %v6875_v6, %s10263_s26  ;;  %v15267_v6 = vld [vmem:[#allocation148_spill] sm:$0xff]  ;;  %v15268_v0 = vld [vmem:[#allocation149_spill] sm:$0xff] }
 0xdd3   : > { %v6876_v55 = vpack.c.bf16 %v6860_v53, %v6859_v17  ;;  %v15269_v53 = vld [vmem:[#allocation147_spill] sm:$0xff] }
 0xdd5   : > { %6927 = vrot.lane.b32.xlu0 %v6876_v55, %s10263_s26  ;;  %6941 = vrot.lane.b32.xlu1 %v15245_v46, %s10263_s26  ;;  %v15272_v46 = vld [vmem:[#allocation153_spill] sm:$0xff] }
 0xdd9   : > { %2159 = vrot.lane.b32.xlu0 %v2096_v20, %s10265_s24  ;;  %s15288_s24 = sld [smem:[#allocation164_spill]] }
 0xddf   : > { %s13823_s28 = scalar_lea.vmem %s15288_s24, %s10389_s27  ;;  %s10269_s24 = smov 15  }
 0xdf1   : > { %v6898_v18 = vpop.permute.xlu1 %6897 }
 0xdf2   : > { %9987 = vmatprep.mubr.msk.bf16.mxu1 %vm1397_vm5, %v6898_v18 }
 0xdf5   : > { %v6900_v8 = vpop.permute.xlu0 %6899 }
 0xdf6   : > { %9988 = vmatmul.mubr.msk.bf16.vlgmr.msra.gmra.mxu1 %vm1397_vm5, %v6900_v8  ;;  %v15273_v8 = vld [vmem:[#allocation151_spill] sm:$0xff] }
 0xdf9   : > { %v6902_v12 = vpop.permute.xlu1 %6901 }
 0xdfa   : > { %9991 = vmatprep.mubr.msk.bf16.mxu1 %vm1397_vm5, %v6902_v12 }
 0xdfd   : > { %v6904_v40 = vpop.permute.xlu0 %6903 }
 0xdfe   : > { %9992 = vmatmul.mubr.msk.bf16.gmra.mxu1 %vm1397_vm5, %v6904_v40  ;;  %v15274_v40 = vld [vmem:[#allocation158_spill] sm:$0xff] }
 0xe01   : > { %v6906_v30 = vpop.permute.xlu1 %6905 }
 0xe02   : > { %9995 = vmatprep.mubr.msk.bf16.mxu1 %vm1397_vm5, %v6906_v30 }
 0xe05   : > { %v6908_v31 = vpop.permute.xlu0 %6907 }
 0xe06   : > { %9996 = vmatmul.mubr.msk.bf16.gmra.mxu1 %vm1397_vm5, %v6908_v31  ;;  %v15276_v31 = vld [vmem:[#allocation156_spill] sm:$0xff] }
 0xe09   : > { %v6910_v23 = vpop.permute.xlu1 %6909 }
 0xe0a   : > { %9999 = vmatprep.mubr.msk.bf16.mxu1 %vm1397_vm5, %v6910_v23 }
 0xe0d   : > { %v6912_v34 = vpop.permute.xlu0 %6911 }
 0xe0e   : > { %10000 = vmatmul.mubr.msk.bf16.gmra.mxu1 %vm1397_vm5, %v6912_v34  ;;  %v15278_v34 = vld [vmem:[#allocation157_spill] sm:$0xff] }
 0xe13   : > { %v6914_v62 = vpop.permute.xlu1 %6913 }
 0xe14   : > { %10003 = vmatprep.mubr.msk.bf16.mxu1 %vm1397_vm5, %v6914_v62 }
 0xe17   : > { %v6916_v44 = vpop.permute.xlu0 %6915 }
 0xe18   : > { %10004 = vmatmul.mubr.msk.bf16.gmra.mxu1 %vm1397_vm5, %v6916_v44  ;;  %v15280_v44 = vld [vmem:[#allocation155_spill] sm:$0xff] }
 0xe23   : > { %v6918_v38 = vpop.permute.xlu1 %6917 }
 0xe24   : > { %10007 = vmatprep.mubr.msk.bf16.mxu1 %vm1397_vm5, %v6918_v38 }
 0xe27   : > { %v6920_v54 = vpop.permute.xlu0 %6919 }
 0xe28   : > { %10008 = vmatmul.mubr.msk.bf16.gmra.mxu1 %vm1397_vm5, %v6920_v54  ;;  %v15281_v54 = vld [vmem:[#allocation162_spill] sm:$0xff] }
 0xe33   : > { %v6922_v50 = vpop.permute.xlu1 %6921 }
 0xe34   : > { %10011 = vmatprep.mubr.msk.bf16.mxu1 %vm1397_vm5, %v6922_v50 }
 0xe37   : > { %v6924_v3 = vpop.permute.xlu0 %6923 }
 0xe38   : > { %10012 = vmatmul.mubr.msk.bf16.gmra.mxu1 %vm1397_vm5, %v6924_v3  ;;  %v15283_v3 = vld [vmem:[#allocation160_spill] sm:$0xff] }
 0xe43   : > { %v6926_v16 = vpop.permute.xlu1 %6925 }
 0xe44   : > { %10015 = vmatprep.mubr.msk.bf16.mxu1 %vm1397_vm5, %v6926_v16 }
 0xe47   : > { %v6928_v4 = vpop.permute.xlu0 %6927 }
 0xe48   : > { %10016 = vmatmul.mubr.msk.bf16.gmra.mxu1 %vm1397_vm5, %v6928_v4  ;;  %v10179_v4 = vld [vmem:[%s14686_s18] sm:$0xff]  }
 0xe49   : > { %10019 = vmatprep.subr.bf16.mxu0 %v10179_v4 }
 0xe4a   : > { %10020 = vmatpush3.bf16.msra.mxu0 %v10179_v4 }
 0xe4b   : > { %v2160_v10 = vpop.permute.xlu0 %2159 }
 0xe4c   : > { %v13615_v56 = vsel %vm1397_vm5, %v15246_v14, %v2160_v10  ;;  %v10180_v10 = vld [vmem:[%s14685_s17 + $0x8] sm:$0xff]   ;;  %v13803_v14 = vpop.permute.xlu1 %6941 }
 0xe4d   : > { %v13619_v45 = vadd.f32 %v15247_v26, %v13615_v56  ;;  %v13623_v25 = vadd.f32 %v15249_v39, %v13615_v56  ;;  %v13631_v47 = vadd.f32 %v15250_v19, %v13615_v56  ;;  %v13635_v24 = vadd.f32 %v15252_v28, %v13615_v56  ;;  %10053 = vmatprep.subr.bf16.mxu1 %v10180_v10  ;;  %v10181_v28 = vld [vmem:[%s14685_s17] sm:$0xff]  }
 0xe4e   : > { %v13643_v5 = vadd.f32 %v15254_v60, %v13615_v56  ;;  %v13647_v52 = vadd.f32 %v15255_v9, %v13615_v56  ;;  %v13655_v11 = vadd.f32 %v15256_v63, %v13615_v56  ;;  %v13659_v58 = vadd.f32 %v15257_v43, %v13615_v56  ;;  %10054 = vmatpush3.bf16.msra.mxu1 %v10180_v10 }
 0xe4f   : > { %15248 = vst [vmem:[#allocation12_spill] sm:$0xff] %v13619_v45  ;;  %7347 = vrot.lane.b32.xlu0 %v13623_v25, %s10262_s5  ;;  %7345 = vrot.lane.b32.xlu1 %v13619_v45, %s10262_s5  ;;  %15251 = vst [vmem:[#allocation13_spill] sm:$0xff] %v13631_v47  ;;  %v13667_v57 = vadd.f32 %v15258_v21, %v13615_v56  ;;  %v13671_v41 = vadd.f32 %v15259_v1, %v13615_v56  ;;  %v737_v21 = vld [vmem:[%s13823_s28] sm:$0xff]  ;;  %v738_v1 = vld [vmem:[%s13823_s28 + $0x8] sm:$0xff] }
 0xe50   : > { %15253 = vst [vmem:[#allocation14_spill] sm:$0xff] %v13635_v24  ;;  %v13679_v48 = vadd.f32 %v15260_v33, %v13615_v56  ;;  %v13683_v2 = vadd.f32 %v15261_v13, %v13615_v56  ;;  %v13691_v59 = vadd.f32 %v15262_v36, %v13615_v56  ;;  %v13695_v7 = vadd.f32 %v15263_v61, %v13615_v56  ;;  %v739_v36 = vld [vmem:[%s13823_s28 + $0x10] sm:$0xff]  ;;  %v740_v61 = vld [vmem:[%s13823_s28 + $0x18] sm:$0xff] }
 0xe51   : > { %v13703_v49 = vadd.f32 %v15264_v22, %v13615_v56  ;;  %v13707_v51 = vadd.f32 %v15265_v32, %v13615_v56  ;;  %v13715_v27 = vadd.f32 %v15266_v42, %v13615_v56  ;;  %v13719_v15 = vadd.f32 %v15267_v6, %v13615_v56  ;;  %10055 = vmatprep.subr.bf16.mxu1 %v10181_v28 }
 0xe52   : > { %v13727_v17 = vadd.f32 %v15268_v0, %v13615_v56  ;;  %v13731_v29 = vadd.f32 %v15269_v53, %v13615_v56  ;;  %v13739_v55 = vadd.f32 %v15270_v35, %v13615_v56  ;;  %v13743_v20 = vadd.f32 %v15271_v37, %v13615_v56  ;;  %10056 = vmatpush3.bf16.msra.mxu1 %v10181_v28 }
 0xe53   : > { %7351 = vrot.lane.b32.xlu0 %v13631_v47, %s10262_s5  ;;  %7349 = vrot.lane.b32.xlu1 %v13635_v24, %s10262_s5  ;;  %v13751_v18 = vadd.f32 %v15272_v46, %v13615_v56  ;;  %v13755_v12 = vadd.f32 %v15273_v8, %v13615_v56  ;;  %v13763_v30 = vadd.f32 %v15274_v40, %v13615_v56  ;;  %v741_v46 = vld [vmem:[%s13823_s28 + $0x20] sm:$0xff]  ;;  %v742_v8 = vld [vmem:[%s13823_s28 + $0x28] sm:$0xff] }
 0xe54   : > { %v13767_v23 = vadd.f32 %v15276_v31, %v13615_v56  ;;  %v13775_v62 = vadd.f32 %v15278_v34, %v13615_v56  ;;  %v13779_v38 = vadd.f32 %v15280_v44, %v13615_v56  ;;  %v13787_v50 = vadd.f32 %v15281_v54, %v13615_v56  ;;  %v743_v40 = vld [vmem:[%s13823_s28 + $0x30] sm:$0xff]  ;;  %v744_v34 = vld [vmem:[%s13823_s28 + $0x38] sm:$0xff] }
 0xe55   : > { %15275 = vst [vmem:[#allocation15_spill] sm:$0xff] %v13763_v30  ;;  %v13791_v16 = vadd.f32 %v15283_v3, %v13615_v56  ;;  %v7493_v13 = vpack.c.bf16 %v738_v1, %v737_v21  ;;  %v7494_v42 = vpack.c.bf16 %v740_v61, %v739_v36  ;;  %v7495_v31 = vpack.c.bf16 %v742_v8, %v741_v46  ;;  %v746_v21 = vld [vmem:[%s13823_s28 + $0x48] sm:$0xff]  ;;  %v747_v1 = vld [vmem:[%s13823_s28 + $0x50] sm:$0xff] }
 0xe56   : > { %15277 = vst [vmem:[#allocation16_spill] sm:$0xff] %v13767_v23  ;;  %15279 = vst [vmem:[#allocation17_spill] sm:$0xff] %v13775_v62  ;;  %v7496_v54 = vpack.c.bf16 %v744_v34, %v743_v40  ;;  %v749_v34 = vld [vmem:[%s13823_s28 + $0x60] sm:$0xff] }
 0xe57   : > { %7355 = vrot.lane.b32.xlu0 %v13643_v5, %s10262_s5  ;;  %7353 = vrot.lane.b32.xlu1 %v13647_v52, %s10262_s5  ;;  %15282 = vst [vmem:[#allocation102_spill] sm:$0xff] %v13787_v50  ;;  %15284 = vst [vmem:[#allocation18_spill] sm:$0xff] %v13791_v16 }
 0xe58   : > { %10021 = vmatprep.mubr.msk.bf16.mxu0 %vm833_vm0, %v7493_v13  ;;  %v748_v13 = vld [vmem:[%s13823_s28 + $0x58] sm:$0xff] }
 0xe59   : > { %10022 = vmatmul.mubr.msk.bf16.vlgmr.msra.gmra.mxu0 %vm833_vm0, %v7494_v42  ;;  %v7498_v61 = vpack.c.bf16 %v748_v13, %v747_v1 }
 0xe5a   : > { %10025 = vmatprep.mubr.msk.bf16.mxu0 %vm833_vm0, %v7495_v31 }
 0xe5b   : > { %7359 = vrot.lane.b32.xlu0 %v13655_v11, %s10262_s5  ;;  %7357 = vrot.lane.b32.xlu1 %v13659_v58, %s10262_s5 }
 0xe5f   : > { %7363 = vrot.lane.b32.xlu0 %v13667_v57, %s10262_s5  ;;  %7361 = vrot.lane.b32.xlu1 %v13671_v41, %s10262_s5 }
 0xe61   : > { %10026 = vmatmul.mubr.msk.bf16.gmra.mxu0 %vm833_vm0, %v7496_v54 }
 0xe63   : > { %7367 = vrot.lane.b32.xlu0 %v13679_v48, %s10262_s5  ;;  %7365 = vrot.lane.b32.xlu1 %v13683_v2, %s10262_s5 }
 0xe67   : > { %7371 = vrot.lane.b32.xlu0 %v13691_v59, %s10262_s5  ;;  %7369 = vrot.lane.b32.xlu1 %v13695_v7, %s10262_s5 }
 0xe6b   : > { %7375 = vrot.lane.b32.xlu0 %v13703_v49, %s10262_s5  ;;  %7373 = vrot.lane.b32.xlu1 %v13707_v51, %s10262_s5 }
 0xe6f   : > { %7379 = vrot.lane.b32.xlu0 %v13715_v27, %s10262_s5  ;;  %7377 = vrot.lane.b32.xlu1 %v13719_v15, %s10262_s5 }
 0xe73   : > { %7383 = vrot.lane.b32.xlu0 %v13727_v17, %s10262_s5  ;;  %7381 = vrot.lane.b32.xlu1 %v13731_v29, %s10262_s5 }
 0xe77   : > { %7387 = vrot.lane.b32.xlu0 %v13739_v55, %s10262_s5  ;;  %7385 = vrot.lane.b32.xlu1 %v13743_v20, %s10262_s5 }
 0xe7b   : > { %7391 = vrot.lane.b32.xlu0 %v13751_v18, %s10262_s5  ;;  %7389 = vrot.lane.b32.xlu1 %v13755_v12, %s10262_s5 }
 0xe7f   : > { %7395 = vrot.lane.b32.xlu0 %v13763_v30, %s10262_s5  ;;  %7393 = vrot.lane.b32.xlu1 %v13767_v23, %s10262_s5 }
 0xe83   : > { %7399 = vrot.lane.b32.xlu0 %v13775_v62, %s10262_s5  ;;  %7397 = vrot.lane.b32.xlu1 %v13779_v38, %s10262_s5 }
 0xe87   : > { %7403 = vrot.lane.b32.xlu0 %v13787_v50, %s10262_s5  ;;  %7401 = vrot.lane.b32.xlu1 %v13791_v16, %s10262_s5 }
 0xeb6   : > { %v9989_v26 = vpop.f32.mrf.mxu1 }
 0xeb7   : > { %v13806_v39 = vadd.f32 %v9989_v26, %v13803_v14 }
 0xeb8   : > { %v7026_v19 = vpop.f32.mrf.mxu1 }
 0xeb9   : > { %15285 = vst [vmem:[#allocation133_spill] sm:$0xff] %v13806_v39  ;;  %7189 = vrot.lane.b32.xlu1 %v13806_v39, %s10266_s23  ;;  %v13814_v9 = vadd.f32 %v7026_v19, %v13803_v14 }
 0xeba   : > { %v9990_v60 = vpop.f32.mrf.mxu1 }
 0xebb   : > { %15286 = vst [vmem:[#allocation109_spill] sm:$0xff] %v13814_v9  ;;  %v13817_v63 = vadd.f32 %v9990_v60, %v13803_v14 }
 0xebc   : > { %v7029_v43 = vpop.f32.mrf.mxu1 }
 0xebd   : > { %15287 = vst [vmem:[#allocation124_spill] sm:$0xff] %v13817_v63  ;;  %7191 = vrot.lane.b32.xlu0 %v13817_v63, %s10266_s23  ;;  %7185 = vrot.lane.b32.xlu1 %v13814_v9, %s10266_s23  ;;  %v13834_v22 = vadd.f32 %v7029_v43, %v13803_v14  ;;  %v745_v43 = vld [vmem:[%s13823_s28 + $0x40] sm:$0xff] }
 0xebe   : > { %v9993_v33 = vpop.f32.mrf.mxu1 }
 0xebf   : > { %15289 = vst [vmem:[#allocation21_spill] sm:$0xff] %v13834_v22  ;;  %v13837_v32 = vadd.f32 %v9993_v33, %v13803_v14  ;;  %v7497_v33 = vpack.c.bf16 %v746_v21, %v745_v43 }
 0xec0   : > { %v7042_v6 = vpop.f32.mrf.mxu1 }
 0xec1   : > { %15290 = vst [vmem:[#allocation60_spill] sm:$0xff] %v13837_v32  ;;  %7187 = vrot.lane.b32.xlu0 %v13834_v22, %s10266_s23  ;;  %7197 = vrot.lane.b32.xlu1 %v13837_v32, %s10266_s23  ;;  %v13846_v53 = vadd.f32 %v7042_v6, %v13803_v14  ;;  %v13897_v46 = vpop.permute.xlu1 %7345  ;;  %v768_v32 = vld [vmem:[%s13823_s28 + $0xf8] sm:$0xff] }
 0xec2   : > { %v9994_v0 = vpop.f32.mrf.mxu1  ;;  %10029 = vmatprep.mubr.msk.bf16.mxu0 %vm833_vm0, %v7497_v33 }
 0xec3   : > { %15291 = vst [vmem:[#allocation19_spill] sm:$0xff] %v13846_v53  ;;  %v13849_v35 = vadd.f32 %v9994_v0, %v13803_v14  ;;  %10030 = vmatmul.mubr.msk.bf16.gmra.mxu0 %vm833_vm0, %v7498_v61  ;;  %v753_v61 = vld [vmem:[%s13823_s28 + $0x80] sm:$0xff] }
 0xec4   : > { %v7045_v37 = vpop.f32.mrf.mxu1 }
 0xec5   : > { %15292 = vst [vmem:[#allocation67_spill] sm:$0xff] %v13849_v35  ;;  %7199 = vrot.lane.b32.xlu0 %v13849_v35, %s10266_s23  ;;  %7193 = vrot.lane.b32.xlu1 %v13846_v53, %s10266_s23  ;;  %v13860_v3 = vadd.f32 %v7045_v37, %v13803_v14  ;;  %v13922_v13 = vpop.permute.xlu1 %7349 }
 0xec6   : > { %v9997_v44 = vpop.f32.mrf.mxu1 }
 0xec7   : > { %15293 = vst [vmem:[#allocation74_spill] sm:$0xff] %v13860_v3  ;;  %v13863_v4 = vadd.f32 %v9997_v44, %v13803_v14  ;;  %v750_v44 = vld [vmem:[%s13823_s28 + $0x68] sm:$0xff] }
 0xec8   : > { %v7058_v10 = vpop.f32.mrf.mxu1  ;;  %v7499_v54 = vpack.c.bf16 %v750_v44, %v749_v34  ;;  %v755_v34 = vld [vmem:[%s13823_s28 + $0x90] sm:$0xff]  ;;  %v756_v44 = vld [vmem:[%s13823_s28 + $0x98] sm:$0xff] }
 0xec9   : > { %15294 = vst [vmem:[#allocation125_spill] sm:$0xff] %v13863_v4  ;;  %7195 = vrot.lane.b32.xlu0 %v13860_v3, %s10266_s23  ;;  %7205 = vrot.lane.b32.xlu1 %v13863_v4, %s10266_s23  ;;  %v13872_v19 = vadd.f32 %v7058_v10, %v13803_v14  ;;  %v751_v10 = vld [vmem:[%s13823_s28 + $0x70] sm:$0xff] }
 0xeca   : > { %v9998_v26 = vpop.f32.mrf.mxu1  ;;  %10033 = vmatprep.mubr.msk.bf16.mxu0 %vm833_vm0, %v7499_v54 }
 0xecb   : > { %15295 = vst [vmem:[#allocation24_spill] sm:$0xff] %v13872_v19  ;;  %v13875_v28 = vadd.f32 %v9998_v26, %v13803_v14  ;;  %v752_v26 = vld [vmem:[%s13823_s28 + $0x78] sm:$0xff] }
 0xecc   : > { %v7061_v60 = vpop.f32.mrf.mxu1  ;;  %v7500_v1 = vpack.c.bf16 %v752_v26, %v751_v10 }
 0xecd   : > { %15296 = vst [vmem:[#allocation126_spill] sm:$0xff] %v13875_v28  ;;  %7207 = vrot.lane.b32.xlu0 %v13875_v28, %s10266_s23  ;;  %7201 = vrot.lane.b32.xlu1 %v13872_v19, %s10266_s23  ;;  %v13886_v42 = vadd.f32 %v7061_v60, %v13803_v14  ;;  %v13913_v60 = vpop.permute.xlu0 %7347  ;;  %v763_v28 = vld [vmem:[%s13823_s28 + $0xd0] sm:$0xff] }
 0xece   : > { %v10001_v36 = vpop.f32.mrf.mxu1  ;;  %10034 = vmatmul.mubr.msk.bf16.gmra.mxu0 %vm833_vm0, %v7500_v1  ;;  %v7502_v1 = vpack.c.bf16 %v756_v44, %v755_v34 }
 0xecf   : > { %15297 = vst [vmem:[#allocation127_spill] sm:$0xff] %v13886_v42  ;;  %v13889_v6 = vadd.f32 %v10001_v36, %v13803_v14 }
 0xed0   : > { %v7074_v0 = vpop.f32.mrf.mxu1 }
 0xed1   : > { %15298 = vst [vmem:[#allocation81_spill] sm:$0xff] %v13889_v6  ;;  %7203 = vrot.lane.b32.xlu0 %v13886_v42, %s10266_s23  ;;  %7213 = vrot.lane.b32.xlu1 %v13889_v6, %s10266_s23  ;;  %v13900_v8 = vadd.f32 %v7074_v0, %v13803_v14  ;;  %v754_v0 = vld [vmem:[%s13823_s28 + $0x88] sm:$0xff]  ;;  %v13940_v26 = vpop.permute.xlu0 %7351 }
 0xed2   : > { %v10002_v37 = vpop.f32.mrf.mxu1 }
 0xed3   : > { %15299 = vst [vmem:[#allocation94_spill] sm:$0xff] %v13900_v8  ;;  %v13903_v40 = vadd.f32 %v10002_v37, %v13803_v14  ;;  %v7501_v37 = vpack.c.bf16 %v754_v0, %v753_v61  ;;  %v13946_v61 = vpop.permute.xlu1 %7353 }
 0xed4   : > { %v7077_v31 = vpop.f32.mrf.mxu1 }
 0xed5   : > { %15300 = vst [vmem:[#allocation128_spill] sm:$0xff] %v13903_v40  ;;  %7215 = vrot.lane.b32.xlu0 %v13903_v40, %s10266_s23  ;;  %7209 = vrot.lane.b32.xlu1 %v13900_v8, %s10266_s23  ;;  %v13916_v43 = vadd.f32 %v7077_v31, %v13803_v14  ;;  %v13954_v0 = vpop.permute.xlu0 %7355  ;;  %v760_v8 = vld [vmem:[%s13823_s28 + $0xb8] sm:$0xff] }
 0xed6   : > { %10037 = vmatprep.mubr.msk.bf16.mxu0 %vm833_vm0, %v7501_v37 }
 0xed7   : > { %15301 = vst [vmem:[#allocation3_spill] sm:$0xff] %v13916_v43  ;;  %10038 = vmatmul.mubr.msk.bf16.gmra.mxu0 %vm833_vm0, %v7502_v1  ;;  %v13956_v37 = vpop.permute.xlu1 %7357 }
 0xed8   : > { %v10005_v21 = vpop.f32.mrf.mxu1 }
 0xed9   : > { %v13919_v33 = vadd.f32 %v10005_v21, %v13803_v14  ;;  %7211 = vrot.lane.b32.xlu0 %v13916_v43, %s10266_s23  ;;  %v13961_v34 = vpop.permute.xlu0 %7359  ;;  %v759_v43 = vld [vmem:[%s13823_s28 + $0xb0] sm:$0xff] }
 0xeda   : > { %v7090_v36 = vpop.f32.mrf.mxu1  ;;  %v7504_v6 = vpack.c.bf16 %v760_v8, %v759_v43 }
 0xedb   : > { %15302 = vst [vmem:[#allocation98_spill] sm:$0xff] %v13919_v33  ;;  %7221 = vrot.lane.b32.xlu1 %v13919_v33, %s10266_s23  ;;  %v13934_v10 = vadd.f32 %v7090_v36, %v13803_v14 }
 0xedc   : > { %v10006_v31 = vpop.f32.mrf.mxu1 }
 0xedd   : > { %15303 = vst [vmem:[#allocation123_spill] sm:$0xff] %v13934_v10  ;;  %v13937_v54 = vadd.f32 %v10006_v31, %v13803_v14 }
 0xede   : > { %v7093_v21 = vpop.f32.mrf.mxu1 }
 0xedf   : > { %15304 = vst [vmem:[#allocation20_spill] sm:$0xff] %v13937_v54  ;;  %7223 = vrot.lane.b32.xlu0 %v13937_v54, %s10266_s23  ;;  %7217 = vrot.lane.b32.xlu1 %v13934_v10, %s10266_s23  ;;  %v13949_v36 = vadd.f32 %v7093_v21, %v13803_v14  ;;  %v757_v54 = vld [vmem:[%s13823_s28 + $0xa0] sm:$0xff]  ;;  %v758_v21 = vld [vmem:[%s13823_s28 + $0xa8] sm:$0xff] }
 0xee0   : > { %v7503_v33 = vpack.c.bf16 %v758_v21, %v757_v54  ;;  %v13982_v54 = vpop.permute.xlu0 %7363 }
 0xee1   : > { %15305 = vst [vmem:[#allocation23_spill] sm:$0xff] %v13949_v36 }
 0xee2   : > { %10041 = vmatprep.mubr.msk.bf16.mxu0 %vm833_vm0, %v7503_v33 }
 0xee3   : > { %7219 = vrot.lane.b32.xlu0 %v13949_v36, %s10266_s23  ;;  %v13967_v36 = vpop.permute.xlu1 %7361  ;;  %10042 = vmatmul.mubr.msk.bf16.gmra.mxu0 %vm833_vm0, %v7504_v6  ;;  %v762_v6 = vld [vmem:[%s13823_s28 + $0xc8] sm:$0xff] }
 0xee4   : > { %v13992_v8 = vpop.permute.xlu0 %7367 }
 0xee7   : > { %v13988_v21 = vpop.permute.xlu1 %7365 }
 0xee8   : > { %v10009_v31 = vpop.f32.mrf.mxu1 }
 0xee9   : > { %v13959_v10 = vadd.f32 %v10009_v31, %v13803_v14 }
 0xeea   : > { %v7106_v44 = vpop.f32.mrf.mxu1 }
 0xeeb   : > { %15306 = vst [vmem:[#allocation29_spill] sm:$0xff] %v13959_v10  ;;  %7229 = vrot.lane.b32.xlu1 %v13959_v10, %s10266_s23  ;;  %v13972_v40 = vadd.f32 %v7106_v44, %v13803_v14  ;;  %v13994_v43 = vpop.permute.xlu1 %7369  ;;  %v14003_v10 = vpop.permute.xlu0 %7371 }
 0xeec   : > { %v10010_v1 = vpop.f32.mrf.mxu1 }
 0xeed   : > { %15307 = vst [vmem:[#allocation26_spill] sm:$0xff] %v13972_v40  ;;  %v13975_v31 = vadd.f32 %v10010_v1, %v13803_v14 }
 0xeee   : > { %v7109_v42 = vpop.f32.mrf.mxu1 }
 0xeef   : > { %15308 = vst [vmem:[#allocation35_spill] sm:$0xff] %v13975_v31  ;;  %7231 = vrot.lane.b32.xlu0 %v13975_v31, %s10266_s23  ;;  %7225 = vrot.lane.b32.xlu1 %v13972_v40, %s10266_s23  ;;  %v13986_v44 = vadd.f32 %v7109_v42, %v13803_v14  ;;  %v761_v31 = vld [vmem:[%s13823_s28 + $0xc0] sm:$0xff]  ;;  %v14014_v53 = vpop.permute.xlu1 %7373 }
 0xef0   : > { %v7505_v42 = vpack.c.bf16 %v762_v6, %v761_v31 }
 0xef1   : > { %15309 = vst [vmem:[#allocation32_spill] sm:$0xff] %v13986_v44 }
 0xef2   : > { %10045 = vmatprep.mubr.msk.bf16.mxu0 %vm833_vm0, %v7505_v42 }
 0xef3   : > { %7227 = vrot.lane.b32.xlu0 %v13986_v44, %s10266_s23  ;;  %v764_v44 = vld [vmem:[%s13823_s28 + $0xd8] sm:$0xff] }
 0xef8   : > { %v10013_v33 = vpop.f32.mrf.mxu1 }
 0xef9   : > { %v13997_v1 = vadd.f32 %v10013_v33, %v13803_v14  ;;  %v7506_v33 = vpack.c.bf16 %v764_v44, %v763_v28  ;;  %v14028_v28 = vpop.permute.xlu1 %7377 }
 0xefa   : > { %v7122_v40 = vpop.f32.mrf.mxu1 }
 0xefb   : > { %15310 = vst [vmem:[#allocation41_spill] sm:$0xff] %v13997_v1  ;;  %7237 = vrot.lane.b32.xlu1 %v13997_v1, %s10266_s23  ;;  %v14008_v4 = vadd.f32 %v7122_v40, %v13803_v14  ;;  %10046 = vmatmul.mubr.msk.bf16.gmra.mxu0 %vm833_vm0, %v7506_v33  ;;  %v14024_v40 = vpop.permute.xlu0 %7375  ;;  %v765_v33 = vld [vmem:[%s13823_s28 + $0xe0] sm:$0xff]  ;;  %v766_v1 = vld [vmem:[%s13823_s28 + $0xe8] sm:$0xff] }
 0xefc   : > { %v10014_v19 = vpop.f32.mrf.mxu1  ;;  %v7507_v35 = vpack.c.bf16 %v766_v1, %v765_v33 }
 0xefd   : > { %15311 = vst [vmem:[#allocation38_spill] sm:$0xff] %v14008_v4  ;;  %v14011_v3 = vadd.f32 %v10014_v19, %v13803_v14 }
 0xefe   : > { %v7125_v31 = vpop.f32.mrf.mxu1  ;;  %10049 = vmatprep.mubr.msk.bf16.mxu0 %vm833_vm0, %v7507_v35  ;;  %v15320_v35 = vld [vmem:[#allocation161_spill] sm:$0xff] }
 0xeff   : > { %15312 = vst [vmem:[#allocation47_spill] sm:$0xff] %v14011_v3  ;;  %7239 = vrot.lane.b32.xlu0 %v14011_v3, %s10266_s23  ;;  %7233 = vrot.lane.b32.xlu1 %v14008_v4, %s10266_s23  ;;  %v14022_v19 = vadd.f32 %v7125_v31, %v13803_v14  ;;  %v14030_v44 = vpop.permute.xlu0 %7379  ;;  %v14035_v4 = vpop.permute.xlu1 %7381  ;;  %v767_v31 = vld [vmem:[%s13823_s28 + $0xf0] sm:$0xff]  ;;  %v14074_v33 = vadd.f32 %v15320_v35, %v13615_v56 }
 0xf00   : > { %v7508_v22 = vpack.c.bf16 %v768_v32, %v767_v31 }
 0xf01   : > { %15313 = vst [vmem:[#allocation44_spill] sm:$0xff] %v14022_v19  ;;  %15321 = vst [vmem:[#allocation63_spill] sm:$0xff] %v14074_v33 }
 0xf03   : > { %7235 = vrot.lane.b32.xlu0 %v14022_v19, %s10266_s23  ;;  %10050 = vmatmul.mubr.msk.bf16.gmra.mxu0 %vm833_vm0, %v7508_v22  ;;  %v14057_v32 = vpop.permute.xlu1 %7385 }
 0xf07   : > { %v14076_v31 = vpop.permute.xlu1 %7389 }
 0xf08   : > { %v10017_v6 = vpop.f32.mrf.mxu1  ;;  %15322 = vst [vmem:[#allocation73_spill] sm:$0xff] %v14076_v31 }
 0xf09   : > { %v14033_v42 = vadd.f32 %v10017_v6, %v13803_v14  ;;  %v14050_v6 = vpop.permute.xlu0 %7383 }
 0xf0a   : > { %v7138_v3 = vpop.f32.mrf.mxu1 }
 0xf0b   : > { %15314 = vst [vmem:[#allocation53_spill] sm:$0xff] %v14033_v42  ;;  %7245 = vrot.lane.b32.xlu1 %v14033_v42, %s10266_s23  ;;  %v14044_v9 = vadd.f32 %v7138_v3, %v13803_v14  ;;  %v15317_v3 = vld [vmem:[#allocation159_spill] sm:$0xff] }
 0xf0c   : > { %v10018_v19 = vpop.f32.mrf.mxu1  ;;  %v14061_v1 = vadd.f32 %v15317_v3, %v13615_v56  ;;  %v14089_v56 = vpop.permute.xlu1 %7393 }
 0xf0d   : > { %15315 = vst [vmem:[#allocation50_spill] sm:$0xff] %v14044_v9  ;;  %v14047_v63 = vadd.f32 %v10018_v19, %v13803_v14  ;;  %v14070_v22 = vpop.permute.xlu0 %7387  ;;  %15323 = vst [vmem:[#allocation70_spill] sm:$0xff] %v14089_v56 }
 0xf0e   : > { %v7141_v39 = vpop.f32.mrf.mxu1  ;;  %15318 = vst [vmem:[#allocation56_spill] sm:$0xff] %v14061_v1 }
 0xf0f   : > { %15316 = vst [vmem:[#allocation59_spill] sm:$0xff] %v14047_v63  ;;  %7247 = vrot.lane.b32.xlu0 %v14047_v63, %s10266_s23  ;;  %7241 = vrot.lane.b32.xlu1 %v14044_v9, %s10266_s23  ;;  %v14064_v19 = vadd.f32 %v7141_v39, %v13803_v14  ;;  %v10252_v14 = vld [vmem:[%s14688_s20 + $0x7] ss:$0 sm:$0xff] }
 0xf10   : > { %v14097_v35 = vpop.permute.xlu1 %7397 }
 0xf11   : > { %15319 = vst [vmem:[#allocation66_spill] sm:$0xff] %v14064_v19  ;;  %v14083_v39 = vpop.permute.xlu0 %7391  ;;  %15325 = vst [vmem:[#allocation77_spill] sm:$0xff] %v14097_v35 }
 0xf13   : > { %7243 = vrot.lane.b32.xlu0 %v14064_v19, %s10266_s23  ;;  %7405 = vrot.lane.b32.xlu1 %v14061_v1, %s10262_s5 }
 0xf14   : > { %v14109_v63 = vpop.permute.xlu1 %7401 }
 0xf15   : > { %v14095_v3 = vpop.permute.xlu0 %7395  ;;  %15327 = vst [vmem:[#allocation84_spill] sm:$0xff] %v14109_v63 }
 0xf16   : > { %15324 = vst [vmem:[#allocation80_spill] sm:$0xff] %v14095_v3 }
 0xf17   : > { %7407 = vrot.lane.b32.xlu0 %v14074_v33, %s10262_s5  ;;  %7947 = vrot.lane.b32.xlu1 %v10252_v14, %s10267_s30 }
 0xf19   : > { %v14103_v14 = vpop.permute.xlu0 %7399 }
 0xf1a   : > { %15326 = vst [vmem:[#allocation87_spill] sm:$0xff] %v14103_v14 }
 0xf1b   : > { %8142 = vrot.lane.b32.xlu0 %v13619_v45, %s10268_s22  ;;  %8144 = vrot.lane.b32.xlu1 %v13623_v25, %s10268_s22 }
 0xf1d   : > { %v14115_v42 = vpop.permute.xlu0 %7403 }
 0xf1e   : > { %15328 = vst [vmem:[#allocation93_spill] sm:$0xff] %v14115_v42 }
 0xf1f   : > { %8146 = vrot.lane.b32.xlu0 %v13635_v24, %s10268_s22  ;;  %8148 = vrot.lane.b32.xlu1 %v13631_v47, %s10268_s22 }
 0xf23   : > { %8150 = vrot.lane.b32.xlu0 %v13647_v52, %s10268_s22  ;;  %8152 = vrot.lane.b32.xlu1 %v13643_v5, %s10268_s22 }
 0xf27   : > { %8154 = vrot.lane.b32.xlu0 %v13659_v58, %s10268_s22  ;;  %8156 = vrot.lane.b32.xlu1 %v13655_v11, %s10268_s22 }
 0xf2b   : > { %8158 = vrot.lane.b32.xlu0 %v13671_v41, %s10268_s22  ;;  %8160 = vrot.lane.b32.xlu1 %v13667_v57, %s10268_s22  ;;  %v7190_v19 = vpop.permute.xlu1 %7189 }
 0xf2c   : > { %v7283_v42 = vmul.f32 %v7190_v19, %v13635_v24 }
 0xf2f   : > { %8162 = vrot.lane.b32.xlu0 %v13683_v2, %s10268_s22  ;;  %8164 = vrot.lane.b32.xlu1 %v13679_v48, %s10268_s22  ;;  %v7192_v9 = vpop.permute.xlu0 %7191  ;;  %v7186_v33 = vpop.permute.xlu1 %7185 }
 0xf30   : > { %v7284_v1 = vmul.f32 %v7192_v9, %v13631_v47  ;;  %v7281_v63 = vmul.f32 %v7186_v33, %v13619_v45  ;;  %v7443_v33 = vadd.f32 %v13922_v13, %v7283_v42 }
 0xf32   : > { %v7444_v14 = vadd.f32 %v13940_v26, %v7284_v1  ;;  %v7441_v31 = vadd.f32 %v13897_v46, %v7281_v63 }
 0xf33   : > { %8166 = vrot.lane.b32.xlu0 %v13695_v7, %s10268_s22  ;;  %8168 = vrot.lane.b32.xlu1 %v13691_v59, %s10268_s22  ;;  %v7188_v35 = vpop.permute.xlu0 %7187  ;;  %v7198_v3 = vpop.permute.xlu1 %7197 }
 0xf34   : > { %v7282_v56 = vmul.f32 %v7188_v35, %v13623_v25  ;;  %v7474_v24 = vpack.c.bf16 %v7444_v14, %v7443_v33  ;;  %v7287_v63 = vmul.f32 %v7198_v3, %v13659_v58 }
 0xf36   : > { %v7442_v9 = vadd.f32 %v13913_v60, %v7282_v56  ;;  %v7447_v1 = vadd.f32 %v13956_v37, %v7287_v63 }
 0xf37   : > { %8170 = vrot.lane.b32.xlu0 %v13707_v51, %s10268_s22  ;;  %8172 = vrot.lane.b32.xlu1 %v13703_v49, %s10268_s22  ;;  %v7200_v47 = vpop.permute.xlu0 %7199  ;;  %v7194_v19 = vpop.permute.xlu1 %7193 }
 0xf38   : > { %v7473_v45 = vpack.c.bf16 %v7442_v9, %v7441_v31  ;;  %v7288_v35 = vmul.f32 %v7200_v47, %v13655_v11  ;;  %v7285_v26 = vmul.f32 %v7194_v19, %v13647_v52 }
 0xf3a   : > { %10057 = vmatprep.mubr.msk.bf16.mxu1 %vm1397_vm5, %v7473_v45  ;;  %v7448_v47 = vadd.f32 %v13961_v34, %v7288_v35  ;;  %v7445_v42 = vadd.f32 %v13946_v61, %v7285_v26 }
 0xf3b   : > { %8174 = vrot.lane.b32.xlu0 %v13719_v15, %s10268_s22  ;;  %v7196_v46 = vpop.permute.xlu0 %7195  ;;  %8176 = vrot.lane.b32.xlu1 %v13715_v27, %s10268_s22  ;;  %v7206_v60 = vpop.permute.xlu1 %7205 }
 0xf3c   : > { %10058 = vmatmul.mubr.msk.bf16.vlgmr.msra.gmra.mxu1 %vm1397_vm5, %v7474_v24  ;;  %v7286_v13 = vmul.f32 %v7196_v46, %v13643_v5  ;;  %v7476_v3 = vpack.c.bf16 %v7448_v47, %v7447_v1  ;;  %v7291_v61 = vmul.f32 %v7206_v60, %v13683_v2 }
 0xf3e   : > { %v7446_v45 = vadd.f32 %v13954_v0, %v7286_v13  ;;  %v7451_v26 = vadd.f32 %v13988_v21, %v7291_v61 }
 0xf3f   : > { %8178 = vrot.lane.b32.xlu0 %v13731_v29, %s10268_s22  ;;  %v7208_v31 = vpop.permute.xlu0 %7207  ;;  %8180 = vrot.lane.b32.xlu1 %v13727_v17, %s10268_s22  ;;  %v7202_v56 = vpop.permute.xlu1 %7201 }
 0xf40   : > { %v7475_v24 = vpack.c.bf16 %v7446_v45, %v7445_v42  ;;  %v7292_v14 = vmul.f32 %v7208_v31, %v13679_v48  ;;  %v7289_v34 = vmul.f32 %v7202_v56, %v13671_v41 }
 0xf42   : > { %10061 = vmatprep.mubr.msk.bf16.mxu1 %vm1397_vm5, %v7475_v24  ;;  %v7452_v33 = vadd.f32 %v13992_v8, %v7292_v14  ;;  %v7449_v19 = vadd.f32 %v13967_v36, %v7289_v34 }
 0xf43   : > { %8182 = vrot.lane.b32.xlu0 %v13743_v20, %s10268_s22  ;;  %v7204_v0 = vpop.permute.xlu0 %7203  ;;  %8184 = vrot.lane.b32.xlu1 %v13739_v55, %s10268_s22  ;;  %v7214_v37 = vpop.permute.xlu1 %7213 }
 0xf44   : > { %10062 = vmatmul.mubr.msk.bf16.gmra.mxu1 %vm1397_vm5, %v7476_v3  ;;  %v7290_v9 = vmul.f32 %v7204_v0, %v13667_v57  ;;  %v7478_v13 = vpack.c.bf16 %v7452_v33, %v7451_v26  ;;  %v7295_v36 = vmul.f32 %v7214_v37, %v13707_v51 }
 0xf46   : > { %v7450_v35 = vadd.f32 %v13982_v54, %v7290_v9  ;;  %v7455_v56 = vadd.f32 %v14014_v53, %v7295_v36  ;;  %v15329_v36 = vld [vmem:[#allocation73_spill] sm:$0xff] }
 0xf47   : > { %8186 = vrot.lane.b32.xlu0 %v13755_v12, %s10268_s22  ;;  %v7216_v63 = vpop.permute.xlu0 %7215  ;;  %8188 = vrot.lane.b32.xlu1 %v13751_v18, %s10268_s22  ;;  %v7210_v46 = vpop.permute.xlu1 %7209 }
 0xf48   : > { %v7477_v60 = vpack.c.bf16 %v7450_v35, %v7449_v19  ;;  %v7296_v47 = vmul.f32 %v7216_v63, %v13703_v49  ;;  %v7293_v8 = vmul.f32 %v7210_v46, %v13695_v7 }
 0xf4a   : > { %10065 = vmatprep.mubr.msk.bf16.mxu1 %vm1397_vm5, %v7477_v60  ;;  %v7456_v45 = vadd.f32 %v14024_v40, %v7296_v47  ;;  %v7453_v1 = vadd.f32 %v13994_v43, %v7293_v8 }
 0xf4b   : > { %8190 = vrot.lane.b32.xlu0 %v13767_v23, %s10268_s22  ;;  %v7212_v54 = vpop.permute.xlu0 %7211  ;;  %8192 = vrot.lane.b32.xlu1 %v13763_v30, %s10268_s22 }
 0xf4c   : > { %10066 = vmatmul.mubr.msk.bf16.gmra.mxu1 %vm1397_vm5, %v7478_v13  ;;  %v7294_v21 = vmul.f32 %v7212_v54, %v13691_v59  ;;  %v7480_v34 = vpack.c.bf16 %v7456_v45, %v7455_v56 }
 0xf4d   : > { %v7222_v42 = vpop.permute.xlu1 %7221 }
 0xf4e   : > { %v7454_v31 = vadd.f32 %v14003_v10, %v7294_v21  ;;  %v7299_v53 = vmul.f32 %v7222_v42, %v13731_v29 }
 0xf4f   : > { %8194 = vrot.lane.b32.xlu0 %v13779_v38, %s10268_s22  ;;  %8196 = vrot.lane.b32.xlu1 %v13775_v62, %s10268_s22 }
 0xf50   : > { %v7479_v24 = vpack.c.bf16 %v7454_v31, %v7453_v1  ;;  %v7459_v33 = vadd.f32 %v14035_v4, %v7299_v53 }
 0xf51   : > { %v7224_v3 = vpop.permute.xlu0 %7223  ;;  %v7218_v14 = vpop.permute.xlu1 %7217 }
 0xf52   : > { %v7300_v61 = vmul.f32 %v7224_v3, %v13727_v17  ;;  %10069 = vmatprep.mubr.msk.bf16.mxu1 %vm1397_vm5, %v7479_v24  ;;  %v7297_v10 = vmul.f32 %v7218_v14, %v13719_v15  ;;  %v15330_v3 = vld [vmem:[#allocation87_spill] sm:$0xff] }
 0xf53   : > { %8198 = vrot.lane.b32.xlu0 %v13791_v16, %s10268_s22  ;;  %8200 = vrot.lane.b32.xlu1 %v13787_v50, %s10268_s22 }
 0xf54   : > { %10070 = vmatmul.mubr.msk.bf16.gmra.mxu1 %vm1397_vm5, %v7480_v34  ;;  %v7460_v0 = vadd.f32 %v14050_v6, %v7300_v61  ;;  %v7457_v37 = vadd.f32 %v14028_v28, %v7297_v10  ;;  %v15331_v34 = vld [vmem:[#allocation70_spill] sm:$0xff]  ;;  %v15332_v10 = vld [vmem:[#allocation80_spill] sm:$0xff] }
 0xf55   : > { %v7220_v43 = vpop.permute.xlu0 %7219 }
 0xf56   : > { %v7298_v40 = vmul.f32 %v7220_v43, %v13715_v27  ;;  %v7482_v35 = vpack.c.bf16 %v7460_v0, %v7459_v33  ;;  %v15333_v43 = vld [vmem:[#allocation77_spill] sm:$0xff] }
 0xf58   : > { %v7458_v9 = vadd.f32 %v14030_v44, %v7298_v40 }
 0xf5a   : > { %v7481_v19 = vpack.c.bf16 %v7458_v9, %v7457_v37 }
 0xf5c   : > { %10073 = vmatprep.mubr.msk.bf16.mxu1 %vm1397_vm5, %v7481_v19 }
 0xf5d   : > { %10074 = vmatmul.mubr.msk.bf16.gmra.mxu1 %vm1397_vm5, %v7482_v35  ;;  %v7230_v26 = vpop.permute.xlu1 %7229 }
 0xf5e   : > { %v7303_v6 = vmul.f32 %v7230_v26, %v13755_v12 }
 0xf60   : > { %v7463_v54 = vadd.f32 %v15329_v36, %v7303_v6  ;;  %v15335_v6 = vld [vmem:[#allocation63_spill] sm:$0xff] }
 0xf61   : > { %v7232_v63 = vpop.permute.xlu0 %7231  ;;  %v7226_v46 = vpop.permute.xlu1 %7225 }
 0xf62   : > { %v7304_v60 = vmul.f32 %v7232_v63, %v13751_v18  ;;  %v7301_v13 = vmul.f32 %v7226_v46, %v13743_v20 }
 0xf64   : > { %v7464_v4 = vadd.f32 %v14083_v39, %v7304_v60  ;;  %v7461_v47 = vadd.f32 %v14057_v32, %v7301_v13  ;;  %v15334_v60 = vld [vmem:[#allocation56_spill] sm:$0xff] }
 0xf65   : > { %v7228_v28 = vpop.permute.xlu0 %7227 }
 0xf66   : > { %v7302_v44 = vmul.f32 %v7228_v28, %v13739_v55  ;;  %v7484_v42 = vpack.c.bf16 %v7464_v4, %v7463_v54 }
 0xf68   : > { %v7462_v8 = vadd.f32 %v14070_v22, %v7302_v44  ;;  %v15336_v44 = vld [vmem:[#allocation84_spill] sm:$0xff] }
 0xf6a   : > { %v7483_v21 = vpack.c.bf16 %v7462_v8, %v7461_v47  ;;  %v15337_v47 = vld [vmem:[#allocation93_spill] sm:$0xff] }
 0xf6c   : > { %10077 = vmatprep.mubr.msk.bf16.mxu1 %vm1397_vm5, %v7483_v21 }
 0xf6d   : > { %10078 = vmatmul.mubr.msk.bf16.gmra.mxu1 %vm1397_vm5, %v7484_v42  ;;  %v7238_v45 = vpop.permute.xlu1 %7237 }
 0xf6e   : > { %v7307_v39 = vmul.f32 %v7238_v45, %v13779_v38 }
 0xf70   : > { %v7467_v40 = vadd.f32 %v15333_v43, %v7307_v39 }
 0xf71   : > { %v7240_v1 = vpop.permute.xlu0 %7239  ;;  %v7234_v31 = vpop.permute.xlu1 %7233 }
 0xf72   : > { %v7308_v56 = vmul.f32 %v7240_v1, %v13775_v62  ;;  %v7305_v24 = vmul.f32 %v7234_v31, %v13767_v23  ;;  %v10023_v1 = vpop.f32.mrf.mxu0 }
 0xf74   : > { %v7468_v14 = vadd.f32 %v15330_v3, %v7308_v56  ;;  %v7465_v61 = vadd.f32 %v15331_v34, %v7305_v24  ;;  %v7599_v31 = vpop.f32.mrf.mxu0 }
 0xf75   : > { %v7236_v32 = vpop.permute.xlu0 %7235 }
 0xf76   : > { %v7306_v22 = vmul.f32 %v7236_v32, %v13763_v30  ;;  %v7486_v37 = vpack.c.bf16 %v7468_v14, %v7467_v40  ;;  %v10024_v56 = vpop.f32.mrf.mxu0 }
 0xf78   : > { %v7466_v53 = vadd.f32 %v15332_v10, %v7306_v22  ;;  %v7602_v24 = vpop.f32.mrf.mxu0 }
 0xf7a   : > { %v7485_v0 = vpack.c.bf16 %v7466_v53, %v7465_v61  ;;  %v10027_v39 = vpop.f32.mrf.mxu0 }
 0xf7c   : > { %10081 = vmatprep.mubr.msk.bf16.mxu1 %vm1397_vm5, %v7485_v0  ;;  %v7615_v32 = vpop.f32.mrf.mxu0 }
 0xf7d   : > { %10082 = vmatmul.mubr.msk.bf16.gmra.mxu1 %vm1397_vm5, %v7486_v37  ;;  %v7246_v9 = vpop.permute.xlu1 %7245 }
 0xf7e   : > { %v7311_v13 = vmul.f32 %v7246_v9, %v15334_v60  ;;  %v10028_v22 = vpop.f32.mrf.mxu0 }
 0xf80   : > { %v7618_v3 = vpop.f32.mrf.mxu0 }
 0xf81   : > { %v7248_v33 = vpop.permute.xlu0 %7247  ;;  %v7242_v19 = vpop.permute.xlu1 %7241 }
 0xf82   : > { %v7309_v35 = vmul.f32 %v7242_v19, %v13791_v16  ;;  %v7312_v28 = vmul.f32 %v7248_v33, %v15335_v6  ;;  %v15346_v16 = vld [vmem:[#allocation13_spill] sm:$0xff] }
 0xf83   : > { %v10031_v14 = vpop.f32.mrf.mxu0 }
 0xf84   : > { %v7469_v4 = vadd.f32 %v15336_v44, %v7309_v35 }
 0xf85   : > { %v7244_v26 = vpop.permute.xlu0 %7243  ;;  %v7406_v46 = vpop.permute.xlu1 %7405 }
 0xf86   : > { %v7310_v63 = vmul.f32 %v7244_v26, %v13787_v50  ;;  %v7471_v21 = vadd.f32 %v7406_v46, %v7311_v13  ;;  %v7631_v34 = vpop.f32.mrf.mxu0 }
 0xf88   : > { %v7470_v8 = vadd.f32 %v15337_v47, %v7310_v63  ;;  %v10032_v37 = vpop.f32.mrf.mxu0 }
 0xf89   : > { %v7408_v36 = vpop.permute.xlu0 %7407  ;;  %v14235_v53 = vpop.permute.xlu1 %7947 }
 0xf8a   : > { %v7487_v54 = vpack.c.bf16 %v7470_v8, %v7469_v4  ;;  %v7472_v42 = vadd.f32 %v7408_v36, %v7312_v28  ;;  %v7634_v46 = vpop.f32.mrf.mxu0 }
 0xf8c   : > { %v7488_v45 = vpack.c.bf16 %v7472_v42, %v7471_v21  ;;  %10085 = vmatprep.mubr.msk.bf16.mxu1 %vm1397_vm5, %v7487_v54 }
 0xf8e   : > { %10086 = vmatmul.mubr.msk.bf16.gmra.mxu1 %vm1397_vm5, %v7488_v45  ;;  %v10035_v36 = vpop.f32.mrf.mxu0  ;;  %vm8747_vm5 = vcmask 31744  }
 0xffc   : > { %v10059_v61 = vpop.f32.mrf.mxu1 }
 0xffd   : > { %v7829_v10 = vadd.f32 %v10059_v61, %v10023_v1 }
 0xffe   : > { %v7820_v43 = vpop.f32.mrf.mxu1 }
 0xfff   : > { %v7952_v40 = vadd.f32 %v14235_v53, %v7829_v10  ;;  %v7821_v0 = vadd.f32 %v7820_v43, %v7599_v31 }
0x1000   : > { %v10060_v9 = vpop.f32.mrf.mxu1 }
0x1001   : > { %v7832_v33 = vadd.f32 %v10060_v9, %v10024_v56  ;;  %8018 = vrot.lane.b32.xlu0 %v7952_v40, %s10263_s26  ;;  %v7950_v35 = vadd.f32 %v14235_v53, %v7821_v0  ;;  %v7647_v56 = vpop.f32.mrf.mxu0 }
0x1002   : > { %v7823_v19 = vpop.f32.mrf.mxu1 }
0x1003   : > { %v7953_v26 = vadd.f32 %v14235_v53, %v7832_v33  ;;  %v7824_v63 = vadd.f32 %v7823_v19, %v7602_v24  ;;  %v10036_v43 = vpop.f32.mrf.mxu0 }
0x1004   : > { %v10063_v13 = vpop.f32.mrf.mxu1 }
0x1005   : > { %v7845_v28 = vadd.f32 %v10063_v13, %v10027_v39  ;;  %8020 = vrot.lane.b32.xlu1 %v7953_v26, %s10263_s26  ;;  %8014 = vrot.lane.b32.xlu0 %v7950_v35, %s10263_s26  ;;  %v7951_v4 = vadd.f32 %v14235_v53, %v7824_v63  ;;  %v7650_v19 = vpop.f32.mrf.mxu0 }
0x1006   : > { %v7836_v44 = vpop.f32.mrf.mxu1 }
0x1007   : > { %v7956_v47 = vadd.f32 %v14235_v53, %v7845_v28  ;;  %v7837_v8 = vadd.f32 %v7836_v44, %v7615_v32 }
0x1008   : > { %v10064_v54 = vpop.f32.mrf.mxu1 }
0x1009   : > { %v7848_v21 = vadd.f32 %v10064_v54, %v10028_v22  ;;  %8016 = vrot.lane.b32.xlu1 %v7951_v4, %s10263_s26  ;;  %8026 = vrot.lane.b32.xlu0 %v7956_v47, %s10263_s26  ;;  %v7954_v45 = vadd.f32 %v14235_v53, %v7837_v8  ;;  %v14263_v47 = vpop.permute.xlu0 %8142 }
0x100a   : > { %v7839_v42 = vpop.f32.mrf.mxu1 }
0x100b   : > { %v7957_v1 = vadd.f32 %v14235_v53, %v7848_v21  ;;  %v7840_v31 = vadd.f32 %v7839_v42, %v7618_v3 }
0x100c   : > { %v10067_v24 = vpop.f32.mrf.mxu1 }
0x100d   : > { %v7861_v39 = vadd.f32 %v10067_v24, %v10031_v14  ;;  %8028 = vrot.lane.b32.xlu1 %v7957_v1, %s10263_s26  ;;  %8022 = vrot.lane.b32.xlu0 %v7954_v45, %s10263_s26  ;;  %v7955_v22 = vadd.f32 %v14235_v53, %v7840_v31  ;;  %v14269_v1 = vpop.permute.xlu1 %8144 }
0x100e   : > { %v7852_v32 = vpop.f32.mrf.mxu1 }
0x100f   : > { %v7960_v61 = vadd.f32 %v14235_v53, %v7861_v39  ;;  %v7853_v10 = vadd.f32 %v7852_v32, %v7631_v34  ;;  %v10039_v34 = vpop.f32.mrf.mxu0  ;;  %v14272_v39 = vpop.permute.xlu0 %8146 }
0x1010   : > { %v10068_v40 = vpop.f32.mrf.mxu1 }
0x1011   : > { %v7864_v0 = vadd.f32 %v10068_v40, %v10032_v37  ;;  %8024 = vrot.lane.b32.xlu1 %v7955_v22, %s10263_s26  ;;  %8034 = vrot.lane.b32.xlu0 %v7960_v61, %s10263_s26  ;;  %v7958_v14 = vadd.f32 %v14235_v53, %v7853_v10 }
0x1012   : > { %v7855_v3 = vpop.f32.mrf.mxu1 }
0x1013   : > { %v7961_v9 = vadd.f32 %v14235_v53, %v7864_v0  ;;  %v7856_v33 = vadd.f32 %v7855_v3, %v7634_v46  ;;  %v7663_v46 = vpop.f32.mrf.mxu0  ;;  %v14277_v0 = vpop.permute.xlu1 %8148 }
0x1014   : > { %v10071_v35 = vpop.f32.mrf.mxu1 }
0x1015   : > { %v7877_v26 = vadd.f32 %v10071_v35, %v10035_v36  ;;  %8036 = vrot.lane.b32.xlu1 %v7961_v9, %s10263_s26  ;;  %8030 = vrot.lane.b32.xlu0 %v7958_v14, %s10263_s26  ;;  %v7959_v37 = vadd.f32 %v14235_v53, %v7856_v33  ;;  %v10040_v45 = vpop.f32.mrf.mxu0 }
0x1016   : > { %v7868_v63 = vpop.f32.mrf.mxu1 }
0x1017   : > { %v7964_v13 = vadd.f32 %v14235_v53, %v7877_v26  ;;  %v7869_v28 = vadd.f32 %v7868_v63, %v7647_v56  ;;  %v7666_v10 = vpop.f32.mrf.mxu0 }
0x1018   : > { %v10072_v44 = vpop.f32.mrf.mxu1 }
0x1019   : > { %v7880_v4 = vadd.f32 %v10072_v44, %v10036_v43  ;;  %8032 = vrot.lane.b32.xlu1 %v7959_v37, %s10263_s26  ;;  %8042 = vrot.lane.b32.xlu0 %v7964_v13, %s10263_s26  ;;  %v7962_v36 = vadd.f32 %v14235_v53, %v7869_v28  ;;  %v10043_v33 = vpop.f32.mrf.mxu0 }
0x101a   : > { %v7871_v8 = vpop.f32.mrf.mxu1 }
0x101b   : > { %v7965_v54 = vadd.f32 %v14235_v53, %v7880_v4  ;;  %v7872_v21 = vadd.f32 %v7871_v8, %v7650_v19  ;;  %v14281_v19 = vpop.permute.xlu0 %8150  ;;  %v7679_v26 = vpop.f32.mrf.mxu0 }
0x101d   : > { %8044 = vrot.lane.b32.xlu1 %v7965_v54, %s10263_s26  ;;  %8038 = vrot.lane.b32.xlu0 %v7962_v36, %s10263_s26  ;;  %v10075_v42 = vpop.f32.mrf.mxu1  ;;  %v7963_v56 = vadd.f32 %v14235_v53, %v7872_v21  ;;  %v10044_v13 = vpop.f32.mrf.mxu0 }
0x101e   : > { %v7893_v31 = vadd.f32 %v10075_v42, %v10039_v34  ;;  %v14286_v34 = vpop.permute.xlu1 %8152 }
0x101f   : > { %v7884_v24 = vpop.f32.mrf.mxu1  ;;  %v14289_v63 = vpop.permute.xlu0 %8154 }
0x1020   : > { %v7968_v32 = vadd.f32 %v14235_v53, %v7893_v31  ;;  %v7885_v22 = vadd.f32 %v7884_v24, %v7663_v46  ;;  %v7682_v54 = vpop.f32.mrf.mxu0 }
0x1021   : > { %8040 = vrot.lane.b32.xlu1 %v7963_v56, %s10263_s26  ;;  %v10076_v61 = vpop.f32.mrf.mxu1 }
0x1022   : > { %v7896_v43 = vadd.f32 %v10076_v61, %v10040_v45  ;;  %8050 = vrot.lane.b32.xlu0 %v7968_v32, %s10263_s26  ;;  %v7966_v3 = vadd.f32 %v14235_v53, %v7885_v22  ;;  %v14291_v4 = vpop.permute.xlu1 %8156  ;;  %v10047_v32 = vpop.f32.mrf.mxu0 }
0x1023   : > { %v7887_v40 = vpop.f32.mrf.mxu1  ;;  %v14295_v42 = vpop.permute.xlu0 %8158 }
0x1024   : > { %v7969_v14 = vadd.f32 %v14235_v53, %v7896_v43  ;;  %v7888_v9 = vadd.f32 %v7887_v40, %v7666_v10  ;;  %v7695_v43 = vpop.f32.mrf.mxu0 }
0x1026   : > { %8052 = vrot.lane.b32.xlu1 %v7969_v14, %s10263_s26  ;;  %8046 = vrot.lane.b32.xlu0 %v7966_v3, %s10263_s26  ;;  %v7967_v35 = vadd.f32 %v14235_v53, %v7888_v9  ;;  %v14299_v22 = vpop.permute.xlu1 %8160  ;;  %v10048_v14 = vpop.f32.mrf.mxu0 }
0x1027   : > { %v14304_v10 = vpop.permute.xlu0 %8162 }
0x102a   : > { %8048 = vrot.lane.b32.xlu1 %v7967_v35, %s10263_s26  ;;  %v14307_v40 = vpop.permute.xlu1 %8164 }
0x102d   : > { %v10079_v37 = vpop.f32.mrf.mxu1 }
0x102e   : > { %v7909_v28 = vadd.f32 %v10079_v37, %v10043_v33  ;;  %v14309_v33 = vpop.permute.xlu0 %8166 }
0x102f   : > { %v7900_v44 = vpop.f32.mrf.mxu1 }
0x1030   : > { %v7972_v46 = vadd.f32 %v14235_v53, %v7909_v28  ;;  %v7901_v8 = vadd.f32 %v7900_v44, %v7679_v26  ;;  %v7698_v28 = vpop.f32.mrf.mxu0 }
0x1031   : > { %v10080_v36 = vpop.f32.mrf.mxu1 }
0x1032   : > { %v7912_v21 = vadd.f32 %v10080_v36, %v10044_v13  ;;  %8058 = vrot.lane.b32.xlu0 %v7972_v46, %s10263_s26  ;;  %v7970_v31 = vadd.f32 %v14235_v53, %v7901_v8  ;;  %v14313_v46 = vpop.permute.xlu1 %8168 }
0x1033   : > { %v7903_v45 = vpop.f32.mrf.mxu1 }
0x1034   : > { %v7973_v56 = vadd.f32 %v14235_v53, %v7912_v21  ;;  %v7904_v24 = vadd.f32 %v7903_v45, %v7682_v54  ;;  %v14317_v45 = vpop.permute.xlu0 %8170 }
0x1036   : > { %8060 = vrot.lane.b32.xlu1 %v7973_v56, %s10263_s26  ;;  %8054 = vrot.lane.b32.xlu0 %v7970_v31, %s10263_s26  ;;  %v7971_v61 = vadd.f32 %v14235_v53, %v7904_v24  ;;  %v10051_v56 = vpop.f32.mrf.mxu0  ;;  %v14322_v24 = vpop.permute.xlu1 %8172 }
0x103a   : > { %8056 = vrot.lane.b32.xlu1 %v7971_v61, %s10263_s26  ;;  %v7711_v61 = vpop.f32.mrf.mxu0 }
0x103d   : > { %v10083_v3 = vpop.f32.mrf.mxu1 }
0x103e   : > { %v7925_v9 = vadd.f32 %v10083_v3, %v10047_v32  ;;  %v14325_v32 = vpop.permute.xlu0 %8174  ;;  %v14327_v3 = vpop.permute.xlu1 %8176 }
0x103f   : > { %v7916_v35 = vpop.f32.mrf.mxu1 }
0x1040   : > { %v7976_v26 = vadd.f32 %v14235_v53, %v7925_v9  ;;  %v7917_v37 = vadd.f32 %v7916_v35, %v7695_v43  ;;  %v10052_v9 = vpop.f32.mrf.mxu0 }
0x1041   : > { %v10084_v13 = vpop.f32.mrf.mxu1 }
0x1042   : > { %v7928_v44 = vadd.f32 %v10084_v13, %v10048_v14  ;;  %8066 = vrot.lane.b32.xlu0 %v7976_v26, %s10263_s26  ;;  %v7974_v36 = vadd.f32 %v14235_v53, %v7917_v37  ;;  %v14329_v26 = vpop.permute.xlu0 %8178 }
0x1043   : > { %v7919_v8 = vpop.f32.mrf.mxu1 }
0x1044   : > { %v7977_v54 = vadd.f32 %v14235_v53, %v7928_v44  ;;  %v7920_v21 = vadd.f32 %v7919_v8, %v7698_v28  ;;  %v7714_v8 = vpop.f32.mrf.mxu0 }
0x1046   : > { %8068 = vrot.lane.b32.xlu1 %v7977_v54, %s10263_s26  ;;  %8062 = vrot.lane.b32.xlu0 %v7974_v36, %s10263_s26  ;;  %v7975_v31 = vadd.f32 %v14235_v53, %v7920_v21  ;;  %v14333_v54 = vpop.permute.xlu1 %8180  ;;  %v14340_v50 = vpop.permute.xlu0 %8182 }
0x104a   : > { %8064 = vrot.lane.b32.xlu1 %v7975_v31, %s10263_s26 }
0x104e   : > { %v10087_v43 = vpop.f32.mrf.mxu1 }
0x104f   : > { %v7941_v14 = vadd.f32 %v10087_v43, %v10051_v56  ;;  %v10182_v43 = vld [vmem:[%s14687_s19] sm:$0xff]  }
0x1050   : > { %v7932_v35 = vpop.f32.mrf.mxu1  ;;  %10089 = vmatprep.subr.bf16.mxu0 %v10182_v43 }
0x1051   : > { %v7980_v37 = vadd.f32 %v14235_v53, %v7941_v14  ;;  %v7933_v13 = vadd.f32 %v7932_v35, %v7711_v61  ;;  %10090 = vmatpush3.bf16.msra.mxu0 %v10182_v43  ;;  %v14345_v14 = vpop.permute.xlu1 %8184 }
0x1052   : > { %v10088_v28 = vpop.f32.mrf.mxu1 }
0x1053   : > { %v7944_v44 = vadd.f32 %v10088_v28, %v10052_v9  ;;  %8074 = vrot.lane.b32.xlu0 %v7980_v37, %s10263_s26  ;;  %v7978_v21 = vadd.f32 %v14235_v53, %v7933_v13  ;;  %v14350_v9 = vpop.permute.xlu0 %8186 }
0x1054   : > { %v7935_v36 = vpop.f32.mrf.mxu1 }
0x1055   : > { %v7981_v31 = vadd.f32 %v14235_v53, %v7944_v44  ;;  %v7936_v56 = vadd.f32 %v7935_v36, %v7714_v8  ;;  %v14354_v35 = vpop.permute.xlu1 %8188 }
0x1057   : > { %8076 = vrot.lane.b32.xlu1 %v7981_v31, %s10263_s26  ;;  %8070 = vrot.lane.b32.xlu0 %v7978_v21, %s10263_s26  ;;  %v7979_v61 = vadd.f32 %v14235_v53, %v7936_v56  ;;  %v14356_v37 = vpop.permute.xlu0 %8190  ;;  %v15344_v21 = vld [vmem:[#allocation14_spill] sm:$0xff] }
0x1058   : > { %15338 = vst [vmem:[#allocation90_spill] sm:$0xff] %v14356_v37 }
0x1059   : > { %v14358_v13 = vpop.permute.xlu1 %8192 }
0x105a   : > { %15339 = vst [vmem:[#allocation101_spill] sm:$0xff] %v14358_v13 }
0x105b   : > { %8072 = vrot.lane.b32.xlu1 %v7979_v61, %s10263_s26  ;;  %8202 = vrot.lane.b32.xlu0 %v15334_v60, %s10268_s22  ;;  %v14360_v53 = vpop.permute.xlu0 %8194 }
0x105c   : > { %15340 = vst [vmem:[#allocation97_spill] sm:$0xff] %v14360_v53 }
0x105d   : > { %v14362_v28 = vpop.permute.xlu1 %8196 }
0x105e   : > { %15341 = vst [vmem:[#allocation108_spill] sm:$0xff] %v14362_v28 }
0x105f   : > { %8204 = vrot.lane.b32.xlu1 %v15335_v6, %s10268_s22  ;;  %v14364_v44 = vpop.permute.xlu0 %8198  ;;  %v15345_v6 = vld [vmem:[#allocation12_spill] sm:$0xff] }
0x1060   : > { %15342 = vst [vmem:[#allocation105_spill] sm:$0xff] %v14364_v44 }
0x1061   : > { %v14366_v8 = vpop.permute.xlu1 %8200 }
0x1062   : > { %15343 = vst [vmem:[#allocation115_spill] sm:$0xff] %v14366_v8 }
0x1073   : > { %v8019_v36 = vpop.permute.xlu0 %8018 }
0x1074   : > { %v8112_v31 = vmul.f32 %v8019_v36, %v15344_v21 }
0x1076   : > { %v8240_v61 = vadd.f32 %v14272_v39, %v8112_v31 }
0x1077   : > { %v8015_v56 = vpop.permute.xlu0 %8014  ;;  %v8021_v43 = vpop.permute.xlu1 %8020 }
0x1078   : > { %v8110_v60 = vmul.f32 %v8015_v56, %v15345_v6  ;;  %v8113_v30 = vmul.f32 %v8021_v43, %v15346_v16  ;;  %v8272_v44 = vmax.f32 %v8240_v61, 0.0 }
0x107a   : > { %v8241_v13 = vadd.f32 %v14277_v0, %v8113_v30  ;;  %v8238_v37 = vadd.f32 %v14263_v47, %v8110_v60 }
0x107b   : > { %v8027_v28 = vpop.permute.xlu0 %8026  ;;  %v8017_v62 = vpop.permute.xlu1 %8016 }
0x107c   : > { %v8273_v23 = vmax.f32 %v8241_v13, 0.0  ;;  %v8116_v8 = vmul.f32 %v8027_v28, %v13659_v58  ;;  %v8111_v36 = vmul.f32 %v8017_v62, %v13623_v25  ;;  %v8270_v39 = vmax.f32 %v8238_v37, 0.0 }
0x107e   : > { %v8303_v21 = vpack.c.bf16 %v8273_v23, %v8272_v44  ;;  %v8239_v53 = vadd.f32 %v14269_v1, %v8111_v36  ;;  %v8244_v16 = vadd.f32 %v14289_v63, %v8116_v8 }
0x107f   : > { %v8023_v31 = vpop.permute.xlu0 %8022  ;;  %v8029_v6 = vpop.permute.xlu1 %8028 }
0x1080   : > { %v8271_v56 = vmax.f32 %v8239_v53, 0.0  ;;  %v8114_v30 = vmul.f32 %v8023_v31, %v13647_v52  ;;  %v8117_v60 = vmul.f32 %v8029_v6, %v13655_v11  ;;  %8338 = vrot.lane.b32.xlu1 %v8303_v21, %s10263_s26  ;;  %v8276_v1 = vmax.f32 %v8244_v16, 0.0 }
0x1082   : > { %v8302_v47 = vpack.c.bf16 %v8271_v56, %v8270_v39  ;;  %v8245_v58 = vadd.f32 %v14291_v4, %v8117_v60  ;;  %v8242_v25 = vadd.f32 %v14281_v19, %v8114_v30 }
0x1083   : > { %v8035_v23 = vpop.permute.xlu0 %8034  ;;  %v8025_v62 = vpop.permute.xlu1 %8024 }
0x1084   : > { %v8277_v0 = vmax.f32 %v8245_v58, 0.0  ;;  %v8120_v37 = vmul.f32 %v8035_v23, %v13683_v2  ;;  %v8115_v63 = vmul.f32 %v8025_v62, %v13643_v5  ;;  %8336 = vrot.lane.b32.xlu0 %v8302_v47, %s10263_s26  ;;  %v8274_v13 = vmax.f32 %v8242_v25, 0.0 }
0x1086   : > { %v8305_v52 = vpack.c.bf16 %v8277_v0, %v8276_v1  ;;  %v8243_v11 = vadd.f32 %v14286_v34, %v8115_v63  ;;  %v8248_v4 = vadd.f32 %v14304_v10, %v8120_v37 }
0x1087   : > { %v8031_v53 = vpop.permute.xlu0 %8030  ;;  %v8037_v28 = vpop.permute.xlu1 %8036 }
0x1088   : > { %v8275_v44 = vmax.f32 %v8243_v11, 0.0  ;;  %v8118_v19 = vmul.f32 %v8031_v53, %v13671_v41  ;;  %v8121_v8 = vmul.f32 %v8037_v28, %v13679_v48  ;;  %8342 = vrot.lane.b32.xlu1 %v8305_v52, %s10263_s26  ;;  %v8280_v34 = vmax.f32 %v8248_v4, 0.0 }
0x108a   : > { %v8304_v2 = vpack.c.bf16 %v8275_v44, %v8274_v13  ;;  %v8249_v5 = vadd.f32 %v14307_v40, %v8121_v8  ;;  %v8246_v43 = vadd.f32 %v14295_v42, %v8118_v19 }
0x108b   : > { %v8043_v61 = vpop.permute.xlu0 %8042  ;;  %v8033_v36 = vpop.permute.xlu1 %8032 }
0x108c   : > { %v8281_v21 = vmax.f32 %v8249_v5, 0.0  ;;  %v8124_v39 = vmul.f32 %v8043_v61, %v13707_v51  ;;  %v8119_v10 = vmul.f32 %v8033_v36, %v13667_v57  ;;  %8340 = vrot.lane.b32.xlu0 %v8304_v2, %s10263_s26  ;;  %v8278_v31 = vmax.f32 %v8246_v43, 0.0 }
0x108e   : > { %v8307_v41 = vpack.c.bf16 %v8281_v21, %v8280_v34  ;;  %v8247_v48 = vadd.f32 %v14299_v22, %v8119_v10  ;;  %v8252_v40 = vadd.f32 %v14317_v45, %v8124_v39 }
0x108f   : > { %v8039_v6 = vpop.permute.xlu0 %8038  ;;  %v8045_v16 = vpop.permute.xlu1 %8044 }
0x1090   : > { %v8279_v56 = vmax.f32 %v8247_v48, 0.0  ;;  %v8122_v42 = vmul.f32 %v8039_v6, %v13695_v7  ;;  %v8125_v30 = vmul.f32 %v8045_v16, %v13703_v49  ;;  %8346 = vrot.lane.b32.xlu1 %v8307_v41, %s10263_s26  ;;  %v8284_v47 = vmax.f32 %v8252_v40, 0.0  ;;  %v15347_v48 = vld [vmem:[#allocation97_spill] sm:$0xff]  ;;  %v15350_v40 = vld [vmem:[#allocation108_spill] sm:$0xff] }
0x1092   : > { %v8306_v51 = vpack.c.bf16 %v8279_v56, %v8278_v31  ;;  %v8253_v57 = vadd.f32 %v14322_v24, %v8125_v30  ;;  %v8250_v58 = vadd.f32 %v14309_v33, %v8122_v42  ;;  %v15348_v31 = vld [vmem:[#allocation16_spill] sm:$0xff]  ;;  %v15351_v30 = vld [vmem:[#allocation90_spill] sm:$0xff] }
0x1093   : > { %v8041_v60 = vpop.permute.xlu1 %8040 }
0x1094   : > { %v8285_v22 = vmax.f32 %v8253_v57, 0.0  ;;  %v8123_v25 = vmul.f32 %v8041_v60, %v13691_v59  ;;  %8344 = vrot.lane.b32.xlu0 %v8306_v51, %s10263_s26  ;;  %v8051_v45 = vpop.permute.xlu0 %8050  ;;  %v8282_v62 = vmax.f32 %v8250_v58, 0.0  ;;  %v15352_v60 = vld [vmem:[#allocation15_spill] sm:$0xff]  ;;  %v15353_v58 = vld [vmem:[#allocation101_spill] sm:$0xff] }
0x1095   : > { %v8128_v23 = vmul.f32 %v8051_v45, %v13731_v29 }
0x1096   : > { %v8309_v7 = vpack.c.bf16 %v8285_v22, %v8284_v47  ;;  %v8251_v49 = vadd.f32 %v14313_v46, %v8123_v25 }
0x1097   : > { %v8256_v37 = vadd.f32 %v14329_v26, %v8128_v23 }
0x1098   : > { %v8283_v1 = vmax.f32 %v8251_v49, 0.0  ;;  %8350 = vrot.lane.b32.xlu1 %v8309_v7, %s10263_s26  ;;  %v8047_v24 = vpop.permute.xlu0 %8046  ;;  %v8053_v0 = vpop.permute.xlu1 %8052 }
0x1099   : > { %v8126_v33 = vmul.f32 %v8047_v24, %v13719_v15  ;;  %v8129_v59 = vmul.f32 %v8053_v0, %v13727_v17  ;;  %v8288_v11 = vmax.f32 %v8256_v37, 0.0 }
0x109a   : > { %v8308_v63 = vpack.c.bf16 %v8283_v1, %v8282_v62  ;;  %v15354_v1 = vld [vmem:[#allocation18_spill] sm:$0xff] }
0x109b   : > { %v8257_v52 = vadd.f32 %v14333_v54, %v8129_v59  ;;  %v8254_v46 = vadd.f32 %v14325_v32, %v8126_v33  ;;  %v15355_v33 = vld [vmem:[#allocation56_spill] sm:$0xff] }
0x109c   : > { %8348 = vrot.lane.b32.xlu0 %v8308_v63, %s10263_s26  ;;  %v8049_v29 = vpop.permute.xlu1 %8048  ;;  %v15356_v63 = vld [vmem:[#allocation105_spill] sm:$0xff] }
0x109d   : > { %v8289_v13 = vmax.f32 %v8257_v52, 0.0  ;;  %v8127_v53 = vmul.f32 %v8049_v29, %v13715_v27  ;;  %v8286_v26 = vmax.f32 %v8254_v46, 0.0  ;;  %v15357_v29 = vld [vmem:[#allocation102_spill] sm:$0xff]  ;;  %v15358_v46 = vld [vmem:[#allocation63_spill] sm:$0xff] }
0x109f   : > { %v8311_v28 = vpack.c.bf16 %v8289_v13, %v8288_v11  ;;  %v8255_v4 = vadd.f32 %v14327_v3, %v8127_v53 }
0x10a1   : > { %v8287_v44 = vmax.f32 %v8255_v4, 0.0  ;;  %8354 = vrot.lane.b32.xlu1 %v8311_v28, %s10263_s26  ;;  %v15359_v28 = vld [vmem:[#allocation115_spill] sm:$0xff] }
0x10a3   : > { %v8310_v15 = vpack.c.bf16 %v8287_v44, %v8286_v26 }
0x10a4   : > { %v8059_v17 = vpop.permute.xlu0 %8058 }
0x10a5   : > { %v8132_v54 = vmul.f32 %v8059_v17, %v13755_v12  ;;  %8352 = vrot.lane.b32.xlu0 %v8310_v15, %s10263_s26 }
0x10a7   : > { %v8260_v32 = vadd.f32 %v14350_v9, %v8132_v54 }
0x10a8   : > { %v8055_v19 = vpop.permute.xlu0 %8054  ;;  %v8061_v8 = vpop.permute.xlu1 %8060 }
0x10a9   : > { %v8130_v2 = vmul.f32 %v8055_v19, %v13743_v20  ;;  %v8133_v27 = vmul.f32 %v8061_v8, %v13751_v18  ;;  %v8292_v43 = vmax.f32 %v8260_v32, 0.0 }
0x10ab   : > { %v8261_v3 = vadd.f32 %v14354_v35, %v8133_v27  ;;  %v8258_v61 = vadd.f32 %v14340_v50, %v8130_v2  ;;  %v10253_v2 = vld [vmem:[%s14688_s20 + $0x7] ss:$0 sm:$0xff] }
0x10ac   : > { %v8057_v5 = vpop.permute.xlu1 %8056 }
0x10ad   : > { %v8293_v36 = vmax.f32 %v8261_v3, 0.0  ;;  %v8131_v34 = vmul.f32 %v8057_v5, %v13739_v55  ;;  %v8290_v39 = vmax.f32 %v8258_v61, 0.0  ;;  %v15349_v55 = vld [vmem:[#allocation17_spill] sm:$0xff] }
0x10af   : > { %v8313_v12 = vpack.c.bf16 %v8293_v36, %v8292_v43  ;;  %v8259_v21 = vadd.f32 %v14345_v14, %v8131_v34 }
0x10b1   : > { %v8291_v10 = vmax.f32 %v8259_v21, 0.0  ;;  %8358 = vrot.lane.b32.xlu1 %v8313_v12, %s10263_s26 }
0x10b3   : > { %v8312_v9 = vpack.c.bf16 %v8291_v10, %v8290_v39 }
0x10b4   : > { %v8067_v20 = vpop.permute.xlu0 %8066 }
0x10b5   : > { %v8136_v18 = vmul.f32 %v8067_v20, %v13779_v38  ;;  %8356 = vrot.lane.b32.xlu0 %v8312_v9, %s10263_s26 }
0x10b7   : > { %v8264_v50 = vadd.f32 %v15347_v48, %v8136_v18 }
0x10b8   : > { %v8063_v35 = vpop.permute.xlu0 %8062  ;;  %v8069_v41 = vpop.permute.xlu1 %8068 }
0x10b9   : > { %v8134_v6 = vmul.f32 %v8063_v35, %v15348_v31  ;;  %v8137_v16 = vmul.f32 %v8069_v41, %v15349_v55  ;;  %v8296_v42 = vmax.f32 %v8264_v50, 0.0 }
0x10bb   : > { %v8265_v14 = vadd.f32 %v15350_v40, %v8137_v16  ;;  %v8262_v51 = vadd.f32 %v15351_v30, %v8134_v6 }
0x10bc   : > { %v8065_v56 = vpop.permute.xlu1 %8064 }
0x10bd   : > { %v8297_v57 = vmax.f32 %v8265_v14, 0.0  ;;  %v8135_v47 = vmul.f32 %v8065_v56, %v15352_v60  ;;  %v8294_v25 = vmax.f32 %v8262_v51, 0.0 }
0x10bf   : > { %v8315_v38 = vpack.c.bf16 %v8297_v57, %v8296_v42  ;;  %v8263_v22 = vadd.f32 %v15353_v58, %v8135_v47 }
0x10c1   : > { %v8295_v45 = vmax.f32 %v8263_v22, 0.0  ;;  %8362 = vrot.lane.b32.xlu1 %v8315_v38, %s10263_s26 }
0x10c3   : > { %v8314_v23 = vpack.c.bf16 %v8295_v45, %v8294_v25 }
0x10c5   : > { %v8075_v7 = vpop.permute.xlu0 %8074  ;;  %8360 = vrot.lane.b32.xlu0 %v8314_v23, %s10263_s26 }
0x10c6   : > { %v8140_v59 = vmul.f32 %v8075_v7, %v15355_v33 }
0x10c9   : > { %v8071_v49 = vpop.permute.xlu0 %8070  ;;  %v8077_v62 = vpop.permute.xlu1 %8076 }
0x10ca   : > { %v8138_v24 = vmul.f32 %v8071_v49, %v15354_v1  ;;  %v8141_v13 = vmul.f32 %v8077_v62, %v15358_v46 }
0x10cc   : > { %v8266_v52 = vadd.f32 %v15356_v63, %v8138_v24 }
0x10cd   : > { %v8203_v0 = vpop.permute.xlu0 %8202  ;;  %v8073_v37 = vpop.permute.xlu1 %8072 }
0x10ce   : > { %v8139_v11 = vmul.f32 %v8073_v37, %v15357_v29  ;;  %v8268_v53 = vadd.f32 %v8203_v0, %v8140_v59  ;;  %v8298_v44 = vmax.f32 %v8266_v52, 0.0 }
0x10d0   : > { %v8267_v4 = vadd.f32 %v15359_v28, %v8139_v11  ;;  %v8300_v54 = vmax.f32 %v8268_v53, 0.0 }
0x10d1   : > { %v8205_v26 = vpop.permute.xlu1 %8204 }
0x10d2   : > { %v8299_v15 = vmax.f32 %v8267_v4, 0.0  ;;  %v8269_v17 = vadd.f32 %v8205_v26, %v8141_v13 }
0x10d4   : > { %v8316_v19 = vpack.c.bf16 %v8299_v15, %v8298_v44  ;;  %v8301_v8 = vmax.f32 %v8269_v17, 0.0 }
0x10d6   : > { %v8317_v32 = vpack.c.bf16 %v8301_v8, %v8300_v54  ;;  %8364 = vrot.lane.b32.xlu0 %v8316_v19, %s10263_s26 }
0x10d8   : > { %8366 = vrot.lane.b32.xlu1 %v8317_v32, %s10263_s26  ;;  %s10270_s26 = smov 1  }
0x10da   : > { %8374 = vrot.lane.b32.xlu0 %v10253_v2, %s10269_s24 }
0x10f2   : > { %v8339_v3 = vpop.permute.xlu1 %8338 }
0x10f6   : > { %v8337_v27 = vpop.permute.xlu0 %8336 }
0x10f7   : > { %10091 = vmatprep.mubr.msk.bf16.mxu0 %vm833_vm0, %v8337_v27 }
0x10f8   : > { %10092 = vmatmul.mubr.msk.bf16.vlgmr.msra.gmra.mxu0 %vm833_vm0, %v8339_v3 }
0x10fa   : > { %v8343_v43 = vpop.permute.xlu1 %8342 }
0x10fe   : > { %v8341_v5 = vpop.permute.xlu0 %8340 }
0x10ff   : > { %10095 = vmatprep.mubr.msk.bf16.mxu0 %vm833_vm0, %v8341_v5 }
0x1100   : > { %10096 = vmatmul.mubr.msk.bf16.gmra.mxu0 %vm833_vm0, %v8343_v43 }
0x1102   : > { %v8347_v36 = vpop.permute.xlu1 %8346 }
0x1106   : > { %v8345_v61 = vpop.permute.xlu0 %8344 }
0x1107   : > { %10099 = vmatprep.mubr.msk.bf16.mxu0 %vm833_vm0, %v8345_v61 }
0x1108   : > { %10100 = vmatmul.mubr.msk.bf16.gmra.mxu0 %vm833_vm0, %v8347_v36 }
0x110a   : > { %v8351_v12 = vpop.permute.xlu1 %8350 }
0x110e   : > { %v8349_v34 = vpop.permute.xlu0 %8348 }
0x110f   : > { %10103 = vmatprep.mubr.msk.bf16.mxu0 %vm833_vm0, %v8349_v34 }
0x1110   : > { %10104 = vmatmul.mubr.msk.bf16.gmra.mxu0 %vm833_vm0, %v8351_v12 }
0x1113   : > { %v8355_v39 = vpop.permute.xlu1 %8354 }
0x1117   : > { %v8353_v21 = vpop.permute.xlu0 %8352 }
0x1118   : > { %10107 = vmatprep.mubr.msk.bf16.mxu0 %vm833_vm0, %v8353_v21 }
0x1119   : > { %10108 = vmatmul.mubr.msk.bf16.gmra.mxu0 %vm833_vm0, %v8355_v39 }
0x1123   : > { %v8359_v9 = vpop.permute.xlu1 %8358 }
0x1127   : > { %v8357_v10 = vpop.permute.xlu0 %8356 }
0x1128   : > { %10111 = vmatprep.mubr.msk.bf16.mxu0 %vm833_vm0, %v8357_v10 }
0x1129   : > { %10112 = vmatmul.mubr.msk.bf16.gmra.mxu0 %vm833_vm0, %v8359_v9 }
0x1133   : > { %v8363_v18 = vpop.permute.xlu1 %8362 }
0x1137   : > { %v8361_v20 = vpop.permute.xlu0 %8360 }
0x1138   : > { %10115 = vmatprep.mubr.msk.bf16.mxu0 %vm833_vm0, %v8361_v20 }
0x1139   : > { %10116 = vmatmul.mubr.msk.bf16.gmra.mxu0 %vm833_vm0, %v8363_v18 }
0x1148   : > { %v8365_v35 = vpop.permute.xlu0 %8364 }
0x1149   : > { %10119 = vmatprep.mubr.msk.bf16.mxu0 %vm833_vm0, %v8365_v35 }
0x114a   : > { %v8367_v41 = vpop.permute.xlu1 %8366 }
0x114b   : > { %10120 = vmatmul.mubr.msk.bf16.gmra.mxu0 %vm833_vm0, %v8367_v41  ;;  %vm8714_vm0 = vcmask 7168  }
0x114c   : > { %v14465_v48 = vpop.permute.xlu0 %8374 }
0x11b8   : > { %v10093_v50 = vpop.f32.mrf.mxu0 }
0x11b9   : > { %v8468_v31 = vadd.f32 %v10093_v50, %v14465_v48 }
0x11ba   : > { %v8459_v6 = vpop.f32.mrf.mxu0 }
0x11bb   : > { %8622 = vrot.lane.b32.xlu1 %v8468_v31, %s10270_s26  ;;  %v8460_v16 = vadd.f32 %v8459_v6, %v14465_v48  ;;  %v15360_v6 = vld [vmem:[#allocation133_spill] sm:$0xff] }
0x11bc   : > { %v10094_v55 = vpop.f32.mrf.mxu0 }
0x11bd   : > { %v8471_v40 = vadd.f32 %v10094_v55, %v14465_v48 }
0x11be   : > { %v8462_v14 = vpop.f32.mrf.mxu0 }
0x11bf   : > { %8624 = vrot.lane.b32.xlu0 %v8471_v40, %s10270_s26  ;;  %8618 = vrot.lane.b32.xlu1 %v8460_v16, %s10270_s26  ;;  %v8463_v42 = vadd.f32 %v8462_v14, %v14465_v48  ;;  %v15361_v40 = vld [vmem:[#allocation124_spill] sm:$0xff] }
0x11c0   : > { %v10097_v56 = vpop.f32.mrf.mxu0 }
0x11c1   : > { %v8484_v30 = vadd.f32 %v10097_v56, %v14465_v48  ;;  %v15362_v56 = vld [vmem:[#allocation109_spill] sm:$0xff] }
0x11c2   : > { %v8475_v51 = vpop.f32.mrf.mxu0 }
0x11c3   : > { %8620 = vrot.lane.b32.xlu0 %v8463_v42, %s10270_s26  ;;  %8630 = vrot.lane.b32.xlu1 %v8484_v30, %s10270_s26  ;;  %v8476_v60 = vadd.f32 %v8475_v51, %v14465_v48 }
0x11c4   : > { %v10098_v57 = vpop.f32.mrf.mxu0 }
0x11c5   : > { %v8487_v47 = vadd.f32 %v10098_v57, %v14465_v48  ;;  %v15363_v57 = vld [vmem:[#allocation21_spill] sm:$0xff] }
0x11c6   : > { %v8478_v38 = vpop.f32.mrf.mxu0 }
0x11c7   : > { %8632 = vrot.lane.b32.xlu0 %v8487_v47, %s10270_s26  ;;  %8626 = vrot.lane.b32.xlu1 %v8476_v60, %s10270_s26  ;;  %v8479_v22 = vadd.f32 %v8478_v38, %v14465_v48  ;;  %v15364_v47 = vld [vmem:[#allocation60_spill] sm:$0xff] }
0x11c8   : > { %v10101_v58 = vpop.f32.mrf.mxu0 }
0x11c9   : > { %v8500_v25 = vadd.f32 %v10101_v58, %v14465_v48 }
0x11ca   : > { %v8491_v45 = vpop.f32.mrf.mxu0 }
0x11cb   : > { %8628 = vrot.lane.b32.xlu0 %v8479_v22, %s10270_s26  ;;  %8638 = vrot.lane.b32.xlu1 %v8500_v25, %s10270_s26  ;;  %v8492_v7 = vadd.f32 %v8491_v45, %v14465_v48  ;;  %v15365_v25 = vld [vmem:[#allocation67_spill] sm:$0xff] }
0x11cc   : > { %v10102_v23 = vpop.f32.mrf.mxu0 }
0x11cd   : > { %v8503_v49 = vadd.f32 %v10102_v23, %v14465_v48  ;;  %v15366_v23 = vld [vmem:[#allocation19_spill] sm:$0xff] }
0x11ce   : > { %v8494_v62 = vpop.f32.mrf.mxu0 }
0x11cf   : > { %8640 = vrot.lane.b32.xlu0 %v8503_v49, %s10270_s26  ;;  %8634 = vrot.lane.b32.xlu1 %v8492_v7, %s10270_s26  ;;  %v8495_v24 = vadd.f32 %v8494_v62, %v14465_v48 }
0x11d0   : > { %v10105_v1 = vpop.f32.mrf.mxu0 }
0x11d1   : > { %v8516_v0 = vadd.f32 %v10105_v1, %v14465_v48  ;;  %v15367_v1 = vld [vmem:[#allocation74_spill] sm:$0xff] }
0x11d2   : > { %v8507_v37 = vpop.f32.mrf.mxu0 }
0x11d3   : > { %8636 = vrot.lane.b32.xlu0 %v8495_v24, %s10270_s26  ;;  %8646 = vrot.lane.b32.xlu1 %v8516_v0, %s10270_s26  ;;  %v8508_v59 = vadd.f32 %v8507_v37, %v14465_v48  ;;  %v15368_v0 = vld [vmem:[#allocation125_spill] sm:$0xff] }
0x11d4   : > { %v10106_v33 = vpop.f32.mrf.mxu0 }
0x11d5   : > { %v8519_v63 = vadd.f32 %v10106_v33, %v14465_v48 }
0x11d6   : > { %v8510_v52 = vpop.f32.mrf.mxu0 }
0x11d7   : > { %8648 = vrot.lane.b32.xlu0 %v8519_v63, %s10270_s26  ;;  %8642 = vrot.lane.b32.xlu1 %v8508_v59, %s10270_s26  ;;  %v8511_v29 = vadd.f32 %v8510_v52, %v14465_v48  ;;  %v15369_v63 = vld [vmem:[#allocation126_spill] sm:$0xff] }
0x11d9   : > { %v10109_v11 = vpop.f32.mrf.mxu0 }
0x11da   : > { %v8532_v46 = vadd.f32 %v10109_v11, %v14465_v48 }
0x11db   : > { %8644 = vrot.lane.b32.xlu0 %v8511_v29, %s10270_s26  ;;  %v8523_v13 = vpop.f32.mrf.mxu0  ;;  %v15370_v29 = vld [vmem:[#allocation24_spill] sm:$0xff] }
0x11dc   : > { %8654 = vrot.lane.b32.xlu1 %v8532_v46, %s10270_s26  ;;  %v8524_v28 = vadd.f32 %v8523_v13, %v14465_v48 }
0x11dd   : > { %v10110_v53 = vpop.f32.mrf.mxu0 }
0x11de   : > { %v8535_v4 = vadd.f32 %v10110_v53, %v14465_v48  ;;  %v15371_v53 = vld [vmem:[#allocation127_spill] sm:$0xff] }
0x11df   : > { %v8526_v26 = vpop.f32.mrf.mxu0 }
0x11e0   : > { %8656 = vrot.lane.b32.xlu0 %v8535_v4, %s10270_s26  ;;  %8650 = vrot.lane.b32.xlu1 %v8524_v28, %s10270_s26  ;;  %v8527_v44 = vadd.f32 %v8526_v26, %v14465_v48  ;;  %v15372_v4 = vld [vmem:[#allocation81_spill] sm:$0xff] }
0x11e4   : > { %8652 = vrot.lane.b32.xlu0 %v8527_v44, %s10270_s26 }
0x11e9   : > { %v10113_v15 = vpop.f32.mrf.mxu0 }
0x11ea   : > { %v8548_v17 = vadd.f32 %v10113_v15, %v14465_v48 }
0x11eb   : > { %v8539_v54 = vpop.f32.mrf.mxu0 }
0x11ec   : > { %8662 = vrot.lane.b32.xlu1 %v8548_v17, %s10270_s26  ;;  %v8540_v8 = vadd.f32 %v8539_v54, %v14465_v48  ;;  %v15373_v17 = vld [vmem:[#allocation128_spill] sm:$0xff] }
0x11ed   : > { %v10114_v19 = vpop.f32.mrf.mxu0 }
0x11ee   : > { %v8551_v32 = vadd.f32 %v10114_v19, %v14465_v48  ;;  %v15374_v19 = vld [vmem:[#allocation94_spill] sm:$0xff] }
0x11ef   : > { %v8542_v2 = vpop.f32.mrf.mxu0 }
0x11f0   : > { %8664 = vrot.lane.b32.xlu0 %v8551_v32, %s10270_s26  ;;  %8658 = vrot.lane.b32.xlu1 %v8540_v8, %s10270_s26  ;;  %v8543_v27 = vadd.f32 %v8542_v2, %v14465_v48  ;;  %v15375_v2 = vld [vmem:[#allocation3_spill] sm:$0xff] }
0x11f4   : > { %8660 = vrot.lane.b32.xlu0 %v8543_v27, %s10270_s26 }
0x11f9   : > { %v10117_v3 = vpop.f32.mrf.mxu0 }
0x11fa   : > { %v8564_v5 = vadd.f32 %v10117_v3, %v14465_v48 }
0x11fb   : > { %v8555_v43 = vpop.f32.mrf.mxu0 }
0x11fc   : > { %8670 = vrot.lane.b32.xlu1 %v8564_v5, %s10270_s26  ;;  %v8556_v36 = vadd.f32 %v8555_v43, %v14465_v48  ;;  %v15376_v5 = vld [vmem:[#allocation98_spill] sm:$0xff] }
0x11fd   : > { %v10118_v61 = vpop.f32.mrf.mxu0 }
0x11fe   : > { %v8567_v34 = vadd.f32 %v10118_v61, %v14465_v48 }
0x11ff   : > { %v8558_v12 = vpop.f32.mrf.mxu0 }
0x1200   : > { %8672 = vrot.lane.b32.xlu0 %v8567_v34, %s10270_s26  ;;  %8666 = vrot.lane.b32.xlu1 %v8556_v36, %s10270_s26  ;;  %v8559_v21 = vadd.f32 %v8558_v12, %v14465_v48  ;;  %v15377_v34 = vld [vmem:[#allocation20_spill] sm:$0xff] }
0x1204   : > { %8668 = vrot.lane.b32.xlu0 %v8559_v21, %s10270_s26  ;;  %v15378_v21 = vld [vmem:[#allocation123_spill] sm:$0xff] }
0x120b   : > { %v10121_v39 = vpop.f32.mrf.mxu0 }
0x120c   : > { %v8580_v35 = vadd.f32 %v10121_v39, %v14465_v48 }
0x120d   : > { %v8571_v10 = vpop.f32.mrf.mxu0 }
0x120e   : > { %v8572_v9 = vadd.f32 %v8571_v10, %v14465_v48 }
0x120f   : > { %v10122_v20 = vpop.f32.mrf.mxu0 }
0x1210   : > { %8674 = vrot.lane.b32.xlu1 %v8572_v9, %s10270_s26  ;;  %v8583_v50 = vadd.f32 %v10122_v20, %v14465_v48  ;;  %v15379_v9 = vld [vmem:[#allocation23_spill] sm:$0xff] }
0x1211   : > { %v8574_v18 = vpop.f32.mrf.mxu0 }
0x1212   : > { %v8575_v41 = vadd.f32 %v8574_v18, %v14465_v48 }
0x1214   : > { %8676 = vrot.lane.b32.xlu0 %v8575_v41, %s10270_s26  ;;  %8678 = vrot.lane.b32.xlu1 %v8580_v35, %s10270_s26  ;;  %v15380_v35 = vld [vmem:[#allocation29_spill] sm:$0xff] }
0x1218   : > { %8680 = vrot.lane.b32.xlu0 %v8583_v50, %s10270_s26 }
0x122d   : > { %v8623_v31 = vpop.permute.xlu1 %8622 }
0x122e   : > { %v8717_v55 = vsel %vm8714_vm0, %v15360_v6, %v8623_v31  ;;  %v15381_v6 = vld [vmem:[#allocation35_spill] sm:$0xff] }
0x122f   : > { %8750 = vst.msk [vmem:[%s14535_s4 + $0x10] sm:$0xff] %vm8747_vm5, %v8717_v55 }
0x1231   : > { %v8625_v48 = vpop.permute.xlu0 %8624  ;;  %v8619_v16 = vpop.permute.xlu1 %8618 }
0x1232   : > { %v8718_v14 = vsel %vm8714_vm0, %v15361_v40, %v8625_v48  ;;  %v8715_v42 = vsel %vm8714_vm0, %v15362_v56, %v8619_v16  ;;  %v15382_v48 = vld [vmem:[#allocation26_spill] sm:$0xff] }
0x1233   : > { %8751 = vst.msk [vmem:[%s14535_s4 + $0x18] sm:$0xff] %vm8747_vm5, %v8718_v14  ;;  %8748 = vst.msk [vmem:[%s14535_s4] sm:$0xff] %vm8747_vm5, %v8715_v42  ;;  %v15383_v14 = vld [vmem:[#allocation32_spill] sm:$0xff] }
0x1235   : > { %v8621_v30 = vpop.permute.xlu0 %8620  ;;  %v8631_v51 = vpop.permute.xlu1 %8630 }
0x1236   : > { %v8716_v60 = vsel %vm8714_vm0, %v15363_v57, %v8621_v30  ;;  %v8721_v38 = vsel %vm8714_vm0, %v15364_v47, %v8631_v51  ;;  %v15384_v30 = vld [vmem:[#allocation41_spill] sm:$0xff]  ;;  %v15385_v47 = vld [vmem:[#allocation47_spill] sm:$0xff] }
0x1237   : > { %8749 = vst.msk [vmem:[%s14535_s4 + $0x8] sm:$0xff] %vm8747_vm5, %v8716_v60  ;;  %8754 = vst.msk [vmem:[%s14535_s4 + $0x30] sm:$0xff] %vm8747_vm5, %v8721_v38 }
0x1239   : > { %v8633_v58 = vpop.permute.xlu0 %8632  ;;  %v8627_v22 = vpop.permute.xlu1 %8626 }
0x123a   : > { %v8722_v45 = vsel %vm8714_vm0, %v15365_v25, %v8633_v58  ;;  %v8719_v7 = vsel %vm8714_vm0, %v15366_v23, %v8627_v22  ;;  %v15386_v58 = vld [vmem:[#allocation38_spill] sm:$0xff] }
0x123b   : > { %8755 = vst.msk [vmem:[%s14535_s4 + $0x38] sm:$0xff] %vm8747_vm5, %v8722_v45  ;;  %8752 = vst.msk [vmem:[%s14535_s4 + $0x20] sm:$0xff] %vm8747_vm5, %v8719_v7  ;;  %v15387_v45 = vld [vmem:[#allocation44_spill] sm:$0xff] }
0x123d   : > { %v8629_v49 = vpop.permute.xlu0 %8628  ;;  %v8639_v62 = vpop.permute.xlu1 %8638 }
0x123e   : > { %v8720_v24 = vsel %vm8714_vm0, %v15367_v1, %v8629_v49  ;;  %v8725_v37 = vsel %vm8714_vm0, %v15368_v0, %v8639_v62  ;;  %v15388_v49 = vld [vmem:[#allocation50_spill] sm:$0xff] }
0x123f   : > { %8753 = vst.msk [vmem:[%s14535_s4 + $0x28] sm:$0xff] %vm8747_vm5, %v8720_v24  ;;  %8758 = vst.msk [vmem:[%s14535_s4 + $0x50] sm:$0xff] %vm8747_vm5, %v8725_v37  ;;  %v15389_v0 = vld [vmem:[#allocation66_spill] sm:$0xff] }
0x1241   : > { %v8641_v33 = vpop.permute.xlu0 %8640  ;;  %v8635_v59 = vpop.permute.xlu1 %8634 }
0x1242   : > { %v8726_v52 = vsel %vm8714_vm0, %v15369_v63, %v8641_v33  ;;  %v8723_v11 = vsel %vm8714_vm0, %v15370_v29, %v8635_v59  ;;  %v15390_v33 = vld [vmem:[#allocation53_spill] sm:$0xff] }
0x1243   : > { %8759 = vst.msk [vmem:[%s14535_s4 + $0x58] sm:$0xff] %vm8747_vm5, %v8726_v52  ;;  %8756 = vst.msk [vmem:[%s14535_s4 + $0x40] sm:$0xff] %vm8747_vm5, %v8723_v11  ;;  %v15391_v52 = vld [vmem:[#allocation59_spill] sm:$0xff] }
0x1245   : > { %v8637_v46 = vpop.permute.xlu0 %8636  ;;  %v8647_v13 = vpop.permute.xlu1 %8646 }
0x1246   : > { %v8724_v28 = vsel %vm8714_vm0, %v15371_v53, %v8637_v46  ;;  %v8729_v26 = vsel %vm8714_vm0, %v15372_v4, %v8647_v13 }
0x1247   : > { %8757 = vst.msk [vmem:[%s14535_s4 + $0x48] sm:$0xff] %vm8747_vm5, %v8724_v28  ;;  %8762 = vst.msk [vmem:[%s14535_s4 + $0x70] sm:$0xff] %vm8747_vm5, %v8729_v26 }
0x1249   : > { %v8649_v44 = vpop.permute.xlu0 %8648  ;;  %v8643_v15 = vpop.permute.xlu1 %8642 }
0x124a   : > { %v8730_v54 = vsel %vm8714_vm0, %v15373_v17, %v8649_v44  ;;  %v8727_v8 = vsel %vm8714_vm0, %v15374_v19, %v8643_v15 }
0x124b   : > { %8763 = vst.msk [vmem:[%s14535_s4 + $0x78] sm:$0xff] %vm8747_vm5, %v8730_v54  ;;  %8760 = vst.msk [vmem:[%s14535_s4 + $0x60] sm:$0xff] %vm8747_vm5, %v8727_v8 }
0x124d   : > { %v8645_v32 = vpop.permute.xlu0 %8644 }
0x124e   : > { %v8728_v27 = vsel %vm8714_vm0, %v15375_v2, %v8645_v32  ;;  %v8655_v3 = vpop.permute.xlu1 %8654 }
0x124f   : > { %8761 = vst.msk [vmem:[%s14535_s4 + $0x68] sm:$0xff] %vm8747_vm5, %v8728_v27  ;;  %v8733_v43 = vsel %vm8714_vm0, %v15376_v5, %v8655_v3 }
0x1250   : > { %8766 = vst.msk [vmem:[%s14535_s4 + $0x90] sm:$0xff] %vm8747_vm5, %v8733_v43 }
0x1252   : > { %v8657_v61 = vpop.permute.xlu0 %8656  ;;  %v8651_v36 = vpop.permute.xlu1 %8650 }
0x1253   : > { %v8734_v12 = vsel %vm8714_vm0, %v15377_v34, %v8657_v61  ;;  %v8731_v39 = vsel %vm8714_vm0, %v15378_v21, %v8651_v36 }
0x1254   : > { %8767 = vst.msk [vmem:[%s14535_s4 + $0x98] sm:$0xff] %vm8747_vm5, %v8734_v12  ;;  %8764 = vst.msk [vmem:[%s14535_s4 + $0x80] sm:$0xff] %vm8747_vm5, %v8731_v39 }
0x1256   : > { %v8653_v10 = vpop.permute.xlu0 %8652 }
0x1257   : > { %v8732_v20 = vsel %vm8714_vm0, %v15379_v9, %v8653_v10 }
0x1258   : > { %8765 = vst.msk [vmem:[%s14535_s4 + $0x88] sm:$0xff] %vm8747_vm5, %v8732_v20 }
0x125e   : > { %v8663_v18 = vpop.permute.xlu1 %8662 }
0x125f   : > { %v8737_v41 = vsel %vm8714_vm0, %v15380_v35, %v8663_v18 }
0x1260   : > { %8770 = vst.msk [vmem:[%s14535_s4 + $0xb0] sm:$0xff] %vm8747_vm5, %v8737_v41 }
0x1262   : > { %v8665_v50 = vpop.permute.xlu0 %8664  ;;  %v8659_v31 = vpop.permute.xlu1 %8658 }
0x1263   : > { %v8738_v55 = vsel %vm8714_vm0, %v15381_v6, %v8665_v50  ;;  %v8735_v16 = vsel %vm8714_vm0, %v15382_v48, %v8659_v31 }
0x1264   : > { %8771 = vst.msk [vmem:[%s14535_s4 + $0xb8] sm:$0xff] %vm8747_vm5, %v8738_v55  ;;  %8768 = vst.msk [vmem:[%s14535_s4 + $0xa0] sm:$0xff] %vm8747_vm5, %v8735_v16 }
0x1266   : > { %v8661_v40 = vpop.permute.xlu0 %8660 }
0x1267   : > { %v8736_v56 = vsel %vm8714_vm0, %v15383_v14, %v8661_v40 }
0x1268   : > { %8769 = vst.msk [vmem:[%s14535_s4 + $0xa8] sm:$0xff] %vm8747_vm5, %v8736_v56 }
0x126e   : > { %v8671_v42 = vpop.permute.xlu1 %8670 }
0x126f   : > { %v8741_v51 = vsel %vm8714_vm0, %v15384_v30, %v8671_v42 }
0x1270   : > { %8774 = vst.msk [vmem:[%s14535_s4 + $0xd0] sm:$0xff] %vm8747_vm5, %v8741_v51 }
0x1272   : > { %v8673_v57 = vpop.permute.xlu0 %8672  ;;  %v8667_v60 = vpop.permute.xlu1 %8666 }
0x1273   : > { %v8742_v38 = vsel %vm8714_vm0, %v15385_v47, %v8673_v57  ;;  %v8739_v22 = vsel %vm8714_vm0, %v15386_v58, %v8667_v60 }
0x1274   : > { %8775 = vst.msk [vmem:[%s14535_s4 + $0xd8] sm:$0xff] %vm8747_vm5, %v8742_v38  ;;  %8772 = vst.msk [vmem:[%s14535_s4 + $0xc0] sm:$0xff] %vm8747_vm5, %v8739_v22 }
0x1276   : > { %v8669_v25 = vpop.permute.xlu0 %8668 }
0x1277   : > { %v8740_v23 = vsel %vm8714_vm0, %v15387_v45, %v8669_v25 }
0x1278   : > { %8773 = vst.msk [vmem:[%s14535_s4 + $0xc8] sm:$0xff] %vm8747_vm5, %v8740_v23 }
0x1282   : > { %v8675_v7 = vpop.permute.xlu1 %8674 }
0x1283   : > { %v8743_v62 = vsel %vm8714_vm0, %v15388_v49, %v8675_v7 }
0x1284   : > { %8776 = vst.msk [vmem:[%s14535_s4 + $0xe0] sm:$0xff] %vm8747_vm5, %v8743_v62 }
0x1286   : > { %v8677_v1 = vpop.permute.xlu0 %8676  ;;  %v8679_v24 = vpop.permute.xlu1 %8678 }
0x1287   : > { %v8744_v37 = vsel %vm8714_vm0, %v15389_v0, %v8677_v1  ;;  %v8745_v59 = vsel %vm8714_vm0, %v15390_v33, %v8679_v24 }
0x1288   : > { %8777 = vst.msk [vmem:[%s14535_s4 + $0xe8] sm:$0xff] %vm8747_vm5, %v8744_v37  ;;  %8778 = vst.msk [vmem:[%s14535_s4 + $0xf0] sm:$0xff] %vm8747_vm5, %v8745_v59 }
0x128a   : > { %v8681_v63 = vpop.permute.xlu0 %8680 }
0x128b   : > { %v8746_v29 = vsel %vm8714_vm0, %v15391_v52, %v8681_v63 }
0x128c   : > { %8779 = vst.msk [vmem:[%s14535_s4 + $0xf8] sm:$0xff] %vm8747_vm5, %v8746_v29 }
0x128d PF: > { %s31_s2 = sadd.s32 1, %s10260_s2  }
0x128e   : > { %p28_p4 = scmp.ge.s32.totalorder %s31_s2, 4  }
0x1290   :  { %30 = sbr.rel (!%p28_p4) target bundleno = 7 (0x7), region = 140 }

</bundles_post_ra>
